<compile_context>
chip_gen: v7x
topology: tpu7x:2x2x1
jax: 0.10.0
libtpu: 0.0.40
codegen_flags: <defaults>
</compile_context>

<pallas_src>
import functools

import jax
import jax.numpy as jnp
from jax.experimental import pallas as pl
from jax.experimental.pallas import tpu as pltpu

# ----------------------------- sizes ---------------------------------------
T = 8      # max_len
B = 8      # batch size
E = 128    # embedding size
H = 128    # hidden size
V = 256    # vocab size


# ----------------------------- fused kernel --------------------------------
def _generator_kernel(q_ref, dec_ref, lens_ref,
                      enc_wi_fb_ref, enc_wh_blk_ref, enc_b_fb_ref,
                      red_w_blk_ref, red_b_ref,
                      dec_wi_ref, dec_wh_ref, dec_b_ref,
                      out_w_ref, out_b_ref,
                      logits_ref,
                      gx_fb_ref, gx_d_ref, dec_h_ref,
                      *, t_steps, batch, hidden):
    f32 = jnp.float32
    bf16 = jnp.bfloat16

    lens = lens_ref[...]                         # [B, 1] f32

    # ---- hoisted encoder input projection (fwd||bwd fused along N), staged
    #      in VMEM scratch so the serial loop only vld's 8-row slices. -------
    gx_fb_ref[...] = (jnp.dot(q_ref[...], enc_wi_fb_ref[...],
                              preferred_element_type=f32)
                      + enc_b_fb_ref[...])       # [T*B, 8H] f32

    def lstm_gates(gates, c):
        # PyTorch gate order: i, f, g, o  (fp32 nonlinearities)
        i = jax.nn.sigmoid(gates[:, 0 * hidden:1 * hidden])
        f = jax.nn.sigmoid(gates[:, 1 * hidden:2 * hidden])
        g = jnp.tanh(gates[:, 2 * hidden:3 * hidden])
        o = jax.nn.sigmoid(gates[:, 3 * hidden:4 * hidden])
        c_new = f * c + i * g
        h_new = o * jnp.tanh(c_new)
        return h_new, c_new

    zeros = jnp.zeros((batch, hidden), f32)
    h_f, c_f, h_b, c_b = zeros, zeros, zeros, zeros

    # ---- encoder: both directions per unrolled step, ONE recurrent matmul --
    # Block-diagonal weight [2H, 8H] => cols 0:4H = h_f@Wh_f, 4H:8H = h_b@Wh_b
    for s in range(t_steps):                     # fully unrolled, T=8
        tb = t_steps - 1 - s                     # backward-direction time idx
        h_fb = jnp.concatenate([h_f, h_b], axis=-1).astype(bf16)   # [B, 2H]
        gh = jnp.dot(h_fb, enc_wh_blk_ref[...],
                     preferred_element_type=f32)                   # [B, 8H]

        gates_f = gh[:, 0:4 * hidden] + gx_fb_ref[pl.ds(s * batch, batch),
                                                  0:4 * hidden]
        gates_b = gh[:, 4 * hidden:8 * hidden] + gx_fb_ref[
            pl.ds(tb * batch, batch), 4 * hidden:8 * hidden]

        hf_new, cf_new = lstm_gates(gates_f, c_f)
        hb_new, cb_new = lstm_gates(gates_b, c_b)

        # pack_padded emulation: freeze state on padded timesteps
        vf = lens > float(s)
        vb = lens > float(tb)
        h_f = jnp.where(vf, hf_new, h_f)
        c_f = jnp.where(vf, cf_new, c_f)
        h_b = jnp.where(vb, hb_new, h_b)
        c_b = jnp.where(vb, cb_new, c_b)

    # ---- reduce_state: one block-diag matmul for both Linear(2H->H)+ReLU ---
    hc_cat = jnp.concatenate([h_f, h_b, c_f, c_b], axis=-1).astype(bf16)
    red = jnp.maximum(
        jnp.dot(hc_cat, red_w_blk_ref[...], preferred_element_type=f32)
        + red_b_ref[...], 0.0)                                    # [B, 2H]
    h_d = red[:, 0:hidden]
    c_d = red[:, hidden:2 * hidden]

    # ---- decoder input projection: computed just before it is needed -------
    gx_d_ref[...] = (jnp.dot(dec_ref[...], dec_wi_ref[...],
                             preferred_element_type=f32)
                     + dec_b_ref[...])           # [T*B, 4H] f32

    # ---- decoder LSTM (no mask); h_d staged into a VMEM slab ---------------
    for t in range(t_steps):
        gates = (gx_d_ref[pl.ds(t * batch, batch), :]
                 + jnp.dot(h_d.astype(bf16), dec_wh_ref[...],
                           preferred_element_type=f32))
        h_d, c_d = lstm_gates(gates, c_d)
        dec_h_ref[pl.ds(t * batch, batch), :] = h_d

    # ---- flattened vocab projection (single MXU pass, lane-dense output) ---
    dec_h = dec_h_ref[...].astype(bf16)                           # [T*B, H]
    logits_ref[...] = (jnp.dot(dec_h, out_w_ref[...],
                               preferred_element_type=f32)
                       + out_b_ref[...])                          # [T*B, V]


# ----------------------------- Generator forward ---------------------------
def generator_forward(params, q_inputs, q_inputs_len, dec_inputs):
    """q_inputs, dec_inputs: [T, B] int32;  q_inputs_len: [B] int32.
       Returns logits [T, B, V] float32."""
    Tn, Bn = q_inputs.shape
    emb = params["embedding"]                     # [V, E] bf16

    # Embedding lookup + dropout (identity in eval mode) kept as XLA glue.
    q_flat = emb[q_inputs.reshape(-1)]            # [T*B, E] bf16
    dec_flat = emb[dec_inputs.reshape(-1)]        # [T*B, E] bf16
    lens = q_inputs_len.astype(jnp.float32).reshape(Bn, 1)

    logits_flat = pl.pallas_call(
        functools.partial(_generator_kernel, t_steps=Tn, batch=Bn, hidden=H),
        out_shape=jax.ShapeDtypeStruct((Tn * Bn, V), jnp.float32),
        scratch_shapes=[
            pltpu.VMEM((Tn * Bn, 8 * H), jnp.float32),   # gx_fb (encoder)
            pltpu.VMEM((Tn * Bn, 4 * H), jnp.float32),   # gx_d  (decoder)
            pltpu.VMEM((Tn * Bn, H), jnp.float32),       # decoder hidden slab
        ],
    )(q_flat, dec_flat, lens,
      params["enc_wi_fb"], params["enc_wh_blk"], params["enc_b_fb"],
      params["red_w_blk"], params["red_b"],
      params["dec_wi"], params["dec_wh"], params["dec_b"],
      params["out_w"], params["out_b"])
    return logits_flat.reshape(Tn, Bn, V)


# ----------------------------- params --------------------------------------
def init_params(key):
    ks = jax.random.split(key, 16)
    w = lambda k, shape, s=0.05: (s * jax.random.normal(k, shape)).astype(jnp.bfloat16)
    b = lambda k, shape, s=0.05: (s * jax.random.normal(k, shape)).astype(jnp.float32)

    # per-module weights, [in, out] layout (PyTorch checkpoints would need a
    # transpose and b_ih + b_hh summation before this point).
    enc_wi_f, enc_wh_f, enc_b_f = w(ks[1], (E, 4 * H)), w(ks[2], (H, 4 * H)), b(ks[3], (1, 4 * H))
    enc_wi_b, enc_wh_b, enc_b_b = w(ks[4], (E, 4 * H)), w(ks[5], (H, 4 * H)), b(ks[6], (1, 4 * H))
    red_wh, red_bh = w(ks[7], (2 * H, H)), b(ks[8], (1, H))
    red_wc, red_bc = w(ks[9], (2 * H, H)), b(ks[10], (1, H))

    # ---- host-side fusions (perf) ----
    # fwd||bwd input projection along N:
    enc_wi_fb = jnp.concatenate([enc_wi_f, enc_wi_b], axis=1)       # [E, 8H]
    enc_b_fb = jnp.concatenate([enc_b_f, enc_b_b], axis=1)          # [1, 8H]
    # block-diagonal recurrent weight -> one matmul drives both directions:
    enc_wh_blk = jnp.zeros((2 * H, 8 * H), jnp.bfloat16)
    enc_wh_blk = enc_wh_blk.at[:H, :4 * H].set(enc_wh_f)
    enc_wh_blk = enc_wh_blk.at[H:, 4 * H:].set(enc_wh_b)
    # block-diagonal reduce_state -> one matmul for the h and c reductions:
    red_w_blk = jnp.zeros((4 * H, 2 * H), jnp.bfloat16)
    red_w_blk = red_w_blk.at[:2 * H, :H].set(red_wh)
    red_w_blk = red_w_blk.at[2 * H:, H:].set(red_wc)
    red_b = jnp.concatenate([red_bh, red_bc], axis=1)               # [1, 2H]

    return {
        "embedding": w(ks[0], (V, E)),
        "enc_wi_fb": enc_wi_fb, "enc_wh_blk": enc_wh_blk, "enc_b_fb": enc_b_fb,
        "red_w_blk": red_w_blk, "red_b": red_b,
        "dec_wi": w(ks[11], (E, 4 * H)), "dec_wh": w(ks[12], (H, 4 * H)),
        "dec_b": b(ks[13], (1, 4 * H)),
        "out_w": w(ks[14], (H, V)), "out_b": b(ks[15], (1, V)),
    }


# ----------------------------- main -----------------------------------------
if __name__ == "__main__":
    key = jax.random.PRNGKey(0)
    kp, kq, kd = jax.random.split(key, 3)

    params = init_params(kp)
    q_inputs = jax.random.randint(kq, (T, B), 0, V, dtype=jnp.int32)
    dec_inputs = jax.random.randint(kd, (T, B), 0, V, dtype=jnp.int32)
    q_inputs_len = jnp.array([8, 7, 5, 3, 8, 6, 2, 4], dtype=jnp.int32)

    logits = jax.jit(generator_forward)(params, q_inputs, q_inputs_len, dec_inputs)
    jax.block_until_ready(logits)

    assert logits.shape == (T, B, V), logits.shape
    assert bool(jnp.all(jnp.isfinite(logits)))
    print("KERNEL_OK")
</pallas_src>

<mosaic_0001>
module attributes {stable_mosaic.version = 11 : i64} {
  func.func @_generator_kernel(%arg0: memref<64x128xbf16, #tpu.memory_space<vmem>>, %arg1: memref<64x128xbf16, #tpu.memory_space<vmem>>, %arg2: memref<8x1xf32, #tpu.memory_space<vmem>>, %arg3: memref<128x1024xbf16, #tpu.memory_space<vmem>>, %arg4: memref<256x1024xbf16, #tpu.memory_space<vmem>>, %arg5: memref<1x1024xf32, #tpu.memory_space<vmem>>, %arg6: memref<512x256xbf16, #tpu.memory_space<vmem>>, %arg7: memref<1x256xf32, #tpu.memory_space<vmem>>, %arg8: memref<128x512xbf16, #tpu.memory_space<vmem>>, %arg9: memref<128x512xbf16, #tpu.memory_space<vmem>>, %arg10: memref<1x512xf32, #tpu.memory_space<vmem>>, %arg11: memref<128x256xbf16, #tpu.memory_space<vmem>>, %arg12: memref<1x256xf32, #tpu.memory_space<vmem>>, %arg13: memref<64x256xf32, #tpu.memory_space<vmem>>, %arg14: memref<64x1024xf32, #tpu.memory_space<vmem>>, %arg15: memref<64x512xf32, #tpu.memory_space<vmem>>, %arg16: memref<64x128xf32, #tpu.memory_space<vmem>>) attributes {dimension_semantics = [], scalar_prefetch = 0 : i64, scratch_operands = 3 : i64, tpu.core_type = #tpu.core_type<tc>} {
    %c0 = arith.constant 0 : index
    %c0_0 = arith.constant 0 : index
    %0 = vector.load %arg2[%c0, %c0_0] : memref<8x1xf32, #tpu.memory_space<vmem>>, vector<8x1xf32>
    %c0_1 = arith.constant 0 : index
    %c0_2 = arith.constant 0 : index
    %1 = vector.load %arg0[%c0_1, %c0_2] : memref<64x128xbf16, #tpu.memory_space<vmem>>, vector<64x128xbf16>
    %c0_3 = arith.constant 0 : index
    %c0_4 = arith.constant 0 : index
    %2 = vector.load %arg3[%c0_3, %c0_4] : memref<128x1024xbf16, #tpu.memory_space<vmem>>, vector<128x1024xbf16>
    %cst = arith.constant dense<0.000000e+00> : vector<64x1024xf32>
    %3 = tpu.matmul %1, %2, %cst {dimension_numbers = #tpu.dot_dimension_numbers<[1], [0], [0], [1], [0, 0, 1, 1], [], []>} : vector<64x128xbf16>, vector<128x1024xbf16>, vector<64x1024xf32> -> vector<64x1024xf32>
    %c0_5 = arith.constant 0 : index
    %c0_6 = arith.constant 0 : index
    %4 = vector.load %arg5[%c0_5, %c0_6] : memref<1x1024xf32, #tpu.memory_space<vmem>>, vector<1x1024xf32>
    %5 = vector.broadcast %4 : vector<1x1024xf32> to vector<64x1024xf32>
    %6 = arith.addf %3, %5 : vector<64x1024xf32>
    %c0_7 = arith.constant 0 : index
    %c0_8 = arith.constant 0 : index
    %7 = vector.load %arg14[%c0_7, %c0_8] : memref<64x1024xf32, #tpu.memory_space<vmem>>, vector<64x1024xf32>
    tpu.vector_store %arg14[%c0_7, %c0_8], %6 {strides = array<i32>} : memref<64x1024xf32, #tpu.memory_space<vmem>>, vector<64x1024xf32>,
    %cst_9 = arith.constant 0.000000e+00 : f32
    %8 = vector.broadcast %cst_9 : f32 to vector<8x128xf32>
    %9 = tpu.concatenate %8, %8 in 1 : vector<8x128xf32>, vector<8x128xf32> -> vector<8x256xf32>
    %10 = arith.truncf %9 : vector<8x256xf32> to vector<8x256xbf16>
    %c0_10 = arith.constant 0 : index
    %c0_11 = arith.constant 0 : index
    %11 = vector.load %arg4[%c0_10, %c0_11] : memref<256x1024xbf16, #tpu.memory_space<vmem>>, vector<256x1024xbf16>
    %cst_12 = arith.constant dense<0.000000e+00> : vector<8x1024xf32>
    %12 = tpu.matmul %10, %11, %cst_12 {dimension_numbers = #tpu.dot_dimension_numbers<[1], [0], [0], [1], [0, 0, 1, 1], [], []>} : vector<8x256xbf16>, vector<256x1024xbf16>, vector<8x1024xf32> -> vector<8x1024xf32>
    %13 = vector.extract_strided_slice %12 {offsets = [0, 0], sizes = [8, 512], strides = [1, 1]} : vector<8x1024xf32> to vector<8x512xf32>
    %c0_13 = arith.constant 0 : index
    %c0_14 = arith.constant 0 : index
    %14 = vector.load %arg14[%c0_13, %c0_14] : memref<64x1024xf32, #tpu.memory_space<vmem>>, vector<8x512xf32>
    %15 = arith.addf %13, %14 : vector<8x512xf32>
    %16 = vector.extract_strided_slice %12 {offsets = [0, 512], sizes = [8, 512], strides = [1, 1]} : vector<8x1024xf32> to vector<8x512xf32>
    %c56 = arith.constant 56 : index
    %c512 = arith.constant 512 : index
    %17 = vector.load %arg14[%c56, %c512] : memref<64x1024xf32, #tpu.memory_space<vmem>>, vector<8x512xf32>
    %18 = arith.addf %16, %17 : vector<8x512xf32>
    %19 = vector.extract_strided_slice %15 {offsets = [0, 0], sizes = [8, 128], strides = [1, 1]} : vector<8x512xf32> to vector<8x128xf32>
    %20 = arith.negf %19 : vector<8x128xf32>
    %21 = math.exp %20 : vector<8x128xf32>
    %cst_15 = arith.constant 1.000000e+00 : f32
    %22 = vector.broadcast %cst_15 : f32 to vector<8x128xf32>
    %23 = arith.addf %22, %21 : vector<8x128xf32>
    %24 = arith.divf %22, %23 : vector<8x128xf32>
    %25 = vector.extract_strided_slice %15 {offsets = [0, 128], sizes = [8, 128], strides = [1, 1]} : vector<8x512xf32> to vector<8x128xf32>
    %26 = arith.negf %25 : vector<8x128xf32>
    %27 = math.exp %26 : vector<8x128xf32>
    %cst_16 = arith.constant 1.000000e+00 : f32
    %28 = vector.broadcast %cst_16 : f32 to vector<8x128xf32>
    %29 = arith.addf %28, %27 : vector<8x128xf32>
    %30 = arith.divf %28, %29 : vector<8x128xf32>
    %31 = vector.extract_strided_slice %15 {offsets = [0, 256], sizes = [8, 128], strides = [1, 1]} : vector<8x512xf32> to vector<8x128xf32>
    %32 = math.tanh %31 : vector<8x128xf32>
    %33 = vector.extract_strided_slice %15 {offsets = [0, 384], sizes = [8, 128], strides = [1, 1]} : vector<8x512xf32> to vector<8x128xf32>
    %34 = arith.negf %33 : vector<8x128xf32>
    %35 = math.exp %34 : vector<8x128xf32>
    %cst_17 = arith.constant 1.000000e+00 : f32
    %36 = vector.broadcast %cst_17 : f32 to vector<8x128xf32>
    %37 = arith.addf %36, %35 : vector<8x128xf32>
    %38 = arith.divf %36, %37 : vector<8x128xf32>
    %39 = arith.mulf %30, %8 : vector<8x128xf32>
    %40 = arith.mulf %24, %32 : vector<8x128xf32>
    %41 = arith.addf %39, %40 : vector<8x128xf32>
    %42 = math.tanh %41 : vector<8x128xf32>
    %43 = arith.mulf %38, %42 : vector<8x128xf32>
    %44 = vector.extract_strided_slice %18 {offsets = [0, 0], sizes = [8, 128], strides = [1, 1]} : vector<8x512xf32> to vector<8x128xf32>
    %45 = arith.negf %44 : vector<8x128xf32>
    %46 = math.exp %45 : vector<8x128xf32>
    %cst_18 = arith.constant 1.000000e+00 : f32
    %47 = vector.broadcast %cst_18 : f32 to vector<8x128xf32>
    %48 = arith.addf %47, %46 : vector<8x128xf32>
    %49 = arith.divf %47, %48 : vector<8x128xf32>
    %50 = vector.extract_strided_slice %18 {offsets = [0, 128], sizes = [8, 128], strides = [1, 1]} : vector<8x512xf32> to vector<8x128xf32>
    %51 = arith.negf %50 : vector<8x128xf32>
    %52 = math.exp %51 : vector<8x128xf32>
    %cst_19 = arith.constant 1.000000e+00 : f32
    %53 = vector.broadcast %cst_19 : f32 to vector<8x128xf32>
    %54 = arith.addf %53, %52 : vector<8x128xf32>
    %55 = arith.divf %53, %54 : vector<8x128xf32>
    %56 = vector.extract_strided_slice %18 {offsets = [0, 256], sizes = [8, 128], strides = [1, 1]} : vector<8x512xf32> to vector<8x128xf32>
    %57 = math.tanh %56 : vector<8x128xf32>
    %58 = vector.extract_strided_slice %18 {offsets = [0, 384], sizes = [8, 128], strides = [1, 1]} : vector<8x512xf32> to vector<8x128xf32>
    %59 = arith.negf %58 : vector<8x128xf32>
    %60 = math.exp %59 : vector<8x128xf32>
    %cst_20 = arith.constant 1.000000e+00 : f32
    %61 = vector.broadcast %cst_20 : f32 to vector<8x128xf32>
    %62 = arith.addf %61, %60 : vector<8x128xf32>
    %63 = arith.divf %61, %62 : vector<8x128xf32>
    %64 = arith.mulf %55, %8 : vector<8x128xf32>
    %65 = arith.mulf %49, %57 : vector<8x128xf32>
    %66 = arith.addf %64, %65 : vector<8x128xf32>
    %67 = math.tanh %66 : vector<8x128xf32>
    %68 = arith.mulf %63, %67 : vector<8x128xf32>
    %cst_21 = arith.constant 0.000000e+00 : f32
    %69 = vector.broadcast %cst_21 : f32 to vector<8x1xf32>
    %70 = arith.cmpf ogt, %0, %69 : vector<8x1xf32>
    %cst_22 = arith.constant 7.000000e+00 : f32
    %71 = vector.broadcast %cst_22 : f32 to vector<8x1xf32>
    %72 = arith.cmpf ogt, %0, %71 : vector<8x1xf32>
    %73 = vector.shape_cast %70 : vector<8x1xi1> to vector<8x1xi1>
    %74 = vector.broadcast %73 : vector<8x1xi1> to vector<8x128xi1>
    %75 = arith.select %74, %43, %8 : vector<8x128xi1>, vector<8x128xf32>
    %76 = vector.shape_cast %70 : vector<8x1xi1> to vector<8x1xi1>
    %77 = vector.broadcast %76 : vector<8x1xi1> to vector<8x128xi1>
    %78 = arith.select %77, %41, %8 : vector<8x128xi1>, vector<8x128xf32>
    %79 = vector.shape_cast %72 : vector<8x1xi1> to vector<8x1xi1>
    %80 = vector.broadcast %79 : vector<8x1xi1> to vector<8x128xi1>
    %81 = arith.select %80, %68, %8 : vector<8x128xi1>, vector<8x128xf32>
    %82 = vector.shape_cast %72 : vector<8x1xi1> to vector<8x1xi1>
    %83 = vector.broadcast %82 : vector<8x1xi1> to vector<8x128xi1>
    %84 = arith.select %83, %66, %8 : vector<8x128xi1>, vector<8x128xf32>
    %85 = tpu.concatenate %75, %81 in 1 : vector<8x128xf32>, vector<8x128xf32> -> vector<8x256xf32>
    %86 = arith.truncf %85 : vector<8x256xf32> to vector<8x256xbf16>
    %c0_23 = arith.constant 0 : index
    %c0_24 = arith.constant 0 : index
    %87 = vector.load %arg4[%c0_23, %c0_24] : memref<256x1024xbf16, #tpu.memory_space<vmem>>, vector<256x1024xbf16>
    %cst_25 = arith.constant dense<0.000000e+00> : vector<8x1024xf32>
    %88 = tpu.matmul %86, %87, %cst_25 {dimension_numbers = #tpu.dot_dimension_numbers<[1], [0], [0], [1], [0, 0, 1, 1], [], []>} : vector<8x256xbf16>, vector<256x1024xbf16>, vector<8x1024xf32> -> vector<8x1024xf32>
    %89 = vector.extract_strided_slice %88 {offsets = [0, 0], sizes = [8, 512], strides = [1, 1]} : vector<8x1024xf32> to vector<8x512xf32>
    %c8 = arith.constant 8 : index
    %c0_26 = arith.constant 0 : index
    %90 = vector.load %arg14[%c8, %c0_26] : memref<64x1024xf32, #tpu.memory_space<vmem>>, vector<8x512xf32>
    %91 = arith.addf %89, %90 : vector<8x512xf32>
    %92 = vector.extract_strided_slice %88 {offsets = [0, 512], sizes = [8, 512], strides = [1, 1]} : vector<8x1024xf32> to vector<8x512xf32>
    %c48 = arith.constant 48 : index
    %c512_27 = arith.constant 512 : index
    %93 = vector.load %arg14[%c48, %c512_27] : memref<64x1024xf32, #tpu.memory_space<vmem>>, vector<8x512xf32>
    %94 = arith.addf %92, %93 : vector<8x512xf32>
    %95 = vector.extract_strided_slice %91 {offsets = [0, 0], sizes = [8, 128], strides = [1, 1]} : vector<8x512xf32> to vector<8x128xf32>
    %96 = arith.negf %95 : vector<8x128xf32>
    %97 = math.exp %96 : vector<8x128xf32>
    %cst_28 = arith.constant 1.000000e+00 : f32
    %98 = vector.broadcast %cst_28 : f32 to vector<8x128xf32>
    %99 = arith.addf %98, %97 : vector<8x128xf32>
    %100 = arith.divf %98, %99 : vector<8x128xf32>
    %101 = vector.extract_strided_slice %91 {offsets = [0, 128], sizes = [8, 128], strides = [1, 1]} : vector<8x512xf32> to vector<8x128xf32>
    %102 = arith.negf %101 : vector<8x128xf32>
    %103 = math.exp %102 : vector<8x128xf32>
    %cst_29 = arith.constant 1.000000e+00 : f32
    %104 = vector.broadcast %cst_29 : f32 to vector<8x128xf32>
    %105 = arith.addf %104, %103 : vector<8x128xf32>
    %106 = arith.divf %104, %105 : vector<8x128xf32>
    %107 = vector.extract_strided_slice %91 {offsets = [0, 256], sizes = [8, 128], strides = [1, 1]} : vector<8x512xf32> to vector<8x128xf32>
    %108 = math.tanh %107 : vector<8x128xf32>
    %109 = vector.extract_strided_slice %91 {offsets = [0, 384], sizes = [8, 128], strides = [1, 1]} : vector<8x512xf32> to vector<8x128xf32>
    %110 = arith.negf %109 : vector<8x128xf32>
    %111 = math.exp %110 : vector<8x128xf32>
    %cst_30 = arith.constant 1.000000e+00 : f32
    %112 = vector.broadcast %cst_30 : f32 to vector<8x128xf32>
    %113 = arith.addf %112, %111 : vector<8x128xf32>
    %114 = arith.divf %112, %113 : vector<8x128xf32>
    %115 = arith.mulf %106, %78 : vector<8x128xf32>
    %116 = arith.mulf %100, %108 : vector<8x128xf32>
    %117 = arith.addf %115, %116 : vector<8x128xf32>
    %118 = math.tanh %117 : vector<8x128xf32>
    %119 = arith.mulf %114, %118 : vector<8x128xf32>
    %120 = vector.extract_strided_slice %94 {offsets = [0, 0], sizes = [8, 128], strides = [1, 1]} : vector<8x512xf32> to vector<8x128xf32>
    %121 = arith.negf %120 : vector<8x128xf32>
    %122 = math.exp %121 : vector<8x128xf32>
    %cst_31 = arith.constant 1.000000e+00 : f32
    %123 = vector.broadcast %cst_31 : f32 to vector<8x128xf32>
    %124 = arith.addf %123, %122 : vector<8x128xf32>
    %125 = arith.divf %123, %124 : vector<8x128xf32>
    %126 = vector.extract_strided_slice %94 {offsets = [0, 128], sizes = [8, 128], strides = [1, 1]} : vector<8x512xf32> to vector<8x128xf32>
    %127 = arith.negf %126 : vector<8x128xf32>
    %128 = math.exp %127 : vector<8x128xf32>
    %cst_32 = arith.constant 1.000000e+00 : f32
    %129 = vector.broadcast %cst_32 : f32 to vector<8x128xf32>
    %130 = arith.addf %129, %128 : vector<8x128xf32>
    %131 = arith.divf %129, %130 : vector<8x128xf32>
    %132 = vector.extract_strided_slice %94 {offsets = [0, 256], sizes = [8, 128], strides = [1, 1]} : vector<8x512xf32> to vector<8x128xf32>
    %133 = math.tanh %132 : vector<8x128xf32>
    %134 = vector.extract_strided_slice %94 {offsets = [0, 384], sizes = [8, 128], strides = [1, 1]} : vector<8x512xf32> to vector<8x128xf32>
    %135 = arith.negf %134 : vector<8x128xf32>
    %136 = math.exp %135 : vector<8x128xf32>
    %cst_33 = arith.constant 1.000000e+00 : f32
    %137 = vector.broadcast %cst_33 : f32 to vector<8x128xf32>
    %138 = arith.addf %137, %136 : vector<8x128xf32>
    %139 = arith.divf %137, %138 : vector<8x128xf32>
    %140 = arith.mulf %131, %84 : vector<8x128xf32>
    %141 = arith.mulf %125, %133 : vector<8x128xf32>
    %142 = arith.addf %140, %141 : vector<8x128xf32>
    %143 = math.tanh %142 : vector<8x128xf32>
    %144 = arith.mulf %139, %143 : vector<8x128xf32>
    %cst_34 = arith.constant 1.000000e+00 : f32
    %145 = vector.broadcast %cst_34 : f32 to vector<8x1xf32>
    %146 = arith.cmpf ogt, %0, %145 : vector<8x1xf32>
    %cst_35 = arith.constant 6.000000e+00 : f32
    %147 = vector.broadcast %cst_35 : f32 to vector<8x1xf32>
    %148 = arith.cmpf ogt, %0, %147 : vector<8x1xf32>
    %149 = vector.shape_cast %146 : vector<8x1xi1> to vector<8x1xi1>
    %150 = vector.broadcast %149 : vector<8x1xi1> to vector<8x128xi1>
    %151 = arith.select %150, %119, %75 : vector<8x128xi1>, vector<8x128xf32>
    %152 = vector.shape_cast %146 : vector<8x1xi1> to vector<8x1xi1>
    %153 = vector.broadcast %152 : vector<8x1xi1> to vector<8x128xi1>
    %154 = arith.select %153, %117, %78 : vector<8x128xi1>, vector<8x128xf32>
    %155 = vector.shape_cast %148 : vector<8x1xi1> to vector<8x1xi1>
    %156 = vector.broadcast %155 : vector<8x1xi1> to vector<8x128xi1>
    %157 = arith.select %156, %144, %81 : vector<8x128xi1>, vector<8x128xf32>
    %158 = vector.shape_cast %148 : vector<8x1xi1> to vector<8x1xi1>
    %159 = vector.broadcast %158 : vector<8x1xi1> to vector<8x128xi1>
    %160 = arith.select %159, %142, %84 : vector<8x128xi1>, vector<8x128xf32>
    %161 = tpu.concatenate %151, %157 in 1 : vector<8x128xf32>, vector<8x128xf32> -> vector<8x256xf32>
    %162 = arith.truncf %161 : vector<8x256xf32> to vector<8x256xbf16>
    %c0_36 = arith.constant 0 : index
    %c0_37 = arith.constant 0 : index
    %163 = vector.load %arg4[%c0_36, %c0_37] : memref<256x1024xbf16, #tpu.memory_space<vmem>>, vector<256x1024xbf16>
    %cst_38 = arith.constant dense<0.000000e+00> : vector<8x1024xf32>
    %164 = tpu.matmul %162, %163, %cst_38 {dimension_numbers = #tpu.dot_dimension_numbers<[1], [0], [0], [1], [0, 0, 1, 1], [], []>} : vector<8x256xbf16>, vector<256x1024xbf16>, vector<8x1024xf32> -> vector<8x1024xf32>
    %165 = vector.extract_strided_slice %164 {offsets = [0, 0], sizes = [8, 512], strides = [1, 1]} : vector<8x1024xf32> to vector<8x512xf32>
    %c16 = arith.constant 16 : index
    %c0_39 = arith.constant 0 : index
    %166 = vector.load %arg14[%c16, %c0_39] : memref<64x1024xf32, #tpu.memory_space<vmem>>, vector<8x512xf32>
    %167 = arith.addf %165, %166 : vector<8x512xf32>
    %168 = vector.extract_strided_slice %164 {offsets = [0, 512], sizes = [8, 512], strides = [1, 1]} : vector<8x1024xf32> to vector<8x512xf32>
    %c40 = arith.constant 40 : index
    %c512_40 = arith.constant 512 : index
    %169 = vector.load %arg14[%c40, %c512_40] : memref<64x1024xf32, #tpu.memory_space<vmem>>, vector<8x512xf32>
    %170 = arith.addf %168, %169 : vector<8x512xf32>
    %171 = vector.extract_strided_slice %167 {offsets = [0, 0], sizes = [8, 128], strides = [1, 1]} : vector<8x512xf32> to vector<8x128xf32>
    %172 = arith.negf %171 : vector<8x128xf32>
    %173 = math.exp %172 : vector<8x128xf32>
    %cst_41 = arith.constant 1.000000e+00 : f32
    %174 = vector.broadcast %cst_41 : f32 to vector<8x128xf32>
    %175 = arith.addf %174, %173 : vector<8x128xf32>
    %176 = arith.divf %174, %175 : vector<8x128xf32>
    %177 = vector.extract_strided_slice %167 {offsets = [0, 128], sizes = [8, 128], strides = [1, 1]} : vector<8x512xf32> to vector<8x128xf32>
    %178 = arith.negf %177 : vector<8x128xf32>
    %179 = math.exp %178 : vector<8x128xf32>
    %cst_42 = arith.constant 1.000000e+00 : f32
    %180 = vector.broadcast %cst_42 : f32 to vector<8x128xf32>
    %181 = arith.addf %180, %179 : vector<8x128xf32>
    %182 = arith.divf %180, %181 : vector<8x128xf32>
    %183 = vector.extract_strided_slice %167 {offsets = [0, 256], sizes = [8, 128], strides = [1, 1]} : vector<8x512xf32> to vector<8x128xf32>
    %184 = math.tanh %183 : vector<8x128xf32>
    %185 = vector.extract_strided_slice %167 {offsets = [0, 384], sizes = [8, 128], strides = [1, 1]} : vector<8x512xf32> to vector<8x128xf32>
    %186 = arith.negf %185 : vector<8x128xf32>
    %187 = math.exp %186 : vector<8x128xf32>
    %cst_43 = arith.constant 1.000000e+00 : f32
    %188 = vector.broadcast %cst_43 : f32 to vector<8x128xf32>
    %189 = arith.addf %188, %187 : vector<8x128xf32>
    %190 = arith.divf %188, %189 : vector<8x128xf32>
    %191 = arith.mulf %182, %154 : vector<8x128xf32>
    %192 = arith.mulf %176, %184 : vector<8x128xf32>
    %193 = arith.addf %191, %192 : vector<8x128xf32>
    %194 = math.tanh %193 : vector<8x128xf32>
    %195 = arith.mulf %190, %194 : vector<8x128xf32>
    %196 = vector.extract_strided_slice %170 {offsets = [0, 0], sizes = [8, 128], strides = [1, 1]} : vector<8x512xf32> to vector<8x128xf32>
    %197 = arith.negf %196 : vector<8x128xf32>
    %198 = math.exp %197 : vector<8x128xf32>
    %cst_44 = arith.constant 1.000000e+00 : f32
    %199 = vector.broadcast %cst_44 : f32 to vector<8x128xf32>
    %200 = arith.addf %199, %198 : vector<8x128xf32>
    %201 = arith.divf %199, %200 : vector<8x128xf32>
    %202 = vector.extract_strided_slice %170 {offsets = [0, 128], sizes = [8, 128], strides = [1, 1]} : vector<8x512xf32> to vector<8x128xf32>
    %203 = arith.negf %202 : vector<8x128xf32>
    %204 = math.exp %203 : vector<8x128xf32>
    %cst_45 = arith.constant 1.000000e+00 : f32
    %205 = vector.broadcast %cst_45 : f32 to vector<8x128xf32>
    %206 = arith.addf %205, %204 : vector<8x128xf32>
    %207 = arith.divf %205, %206 : vector<8x128xf32>
    %208 = vector.extract_strided_slice %170 {offsets = [0, 256], sizes = [8, 128], strides = [1, 1]} : vector<8x512xf32> to vector<8x128xf32>
    %209 = math.tanh %208 : vector<8x128xf32>
    %210 = vector.extract_strided_slice %170 {offsets = [0, 384], sizes = [8, 128], strides = [1, 1]} : vector<8x512xf32> to vector<8x128xf32>
    %211 = arith.negf %210 : vector<8x128xf32>
    %212 = math.exp %211 : vector<8x128xf32>
    %cst_46 = arith.constant 1.000000e+00 : f32
    %213 = vector.broadcast %cst_46 : f32 to vector<8x128xf32>
    %214 = arith.addf %213, %212 : vector<8x128xf32>
    %215 = arith.divf %213, %214 : vector<8x128xf32>
    %216 = arith.mulf %207, %160 : vector<8x128xf32>
    %217 = arith.mulf %201, %209 : vector<8x128xf32>
    %218 = arith.addf %216, %217 : vector<8x128xf32>
    %219 = math.tanh %218 : vector<8x128xf32>
    %220 = arith.mulf %215, %219 : vector<8x128xf32>
    %cst_47 = arith.constant 2.000000e+00 : f32
    %221 = vector.broadcast %cst_47 : f32 to vector<8x1xf32>
    %222 = arith.cmpf ogt, %0, %221 : vector<8x1xf32>
    %cst_48 = arith.constant 5.000000e+00 : f32
    %223 = vector.broadcast %cst_48 : f32 to vector<8x1xf32>
    %224 = arith.cmpf ogt, %0, %223 : vector<8x1xf32>
    %225 = vector.shape_cast %222 : vector<8x1xi1> to vector<8x1xi1>
    %226 = vector.broadcast %225 : vector<8x1xi1> to vector<8x128xi1>
    %227 = arith.select %226, %195, %151 : vector<8x128xi1>, vector<8x128xf32>
    %228 = vector.shape_cast %222 : vector<8x1xi1> to vector<8x1xi1>
    %229 = vector.broadcast %228 : vector<8x1xi1> to vector<8x128xi1>
    %230 = arith.select %229, %193, %154 : vector<8x128xi1>, vector<8x128xf32>
    %231 = vector.shape_cast %224 : vector<8x1xi1> to vector<8x1xi1>
    %232 = vector.broadcast %231 : vector<8x1xi1> to vector<8x128xi1>
    %233 = arith.select %232, %220, %157 : vector<8x128xi1>, vector<8x128xf32>
    %234 = vector.shape_cast %224 : vector<8x1xi1> to vector<8x1xi1>
    %235 = vector.broadcast %234 : vector<8x1xi1> to vector<8x128xi1>
    %236 = arith.select %235, %218, %160 : vector<8x128xi1>, vector<8x128xf32>
    %237 = tpu.concatenate %227, %233 in 1 : vector<8x128xf32>, vector<8x128xf32> -> vector<8x256xf32>
    %238 = arith.truncf %237 : vector<8x256xf32> to vector<8x256xbf16>
    %c0_49 = arith.constant 0 : index
    %c0_50 = arith.constant 0 : index
    %239 = vector.load %arg4[%c0_49, %c0_50] : memref<256x1024xbf16, #tpu.memory_space<vmem>>, vector<256x1024xbf16>
    %cst_51 = arith.constant dense<0.000000e+00> : vector<8x1024xf32>
    %240 = tpu.matmul %238, %239, %cst_51 {dimension_numbers = #tpu.dot_dimension_numbers<[1], [0], [0], [1], [0, 0, 1, 1], [], []>} : vector<8x256xbf16>, vector<256x1024xbf16>, vector<8x1024xf32> -> vector<8x1024xf32>
    %241 = vector.extract_strided_slice %240 {offsets = [0, 0], sizes = [8, 512], strides = [1, 1]} : vector<8x1024xf32> to vector<8x512xf32>
    %c24 = arith.constant 24 : index
    %c0_52 = arith.constant 0 : index
    %242 = vector.load %arg14[%c24, %c0_52] : memref<64x1024xf32, #tpu.memory_space<vmem>>, vector<8x512xf32>
    %243 = arith.addf %241, %242 : vector<8x512xf32>
    %244 = vector.extract_strided_slice %240 {offsets = [0, 512], sizes = [8, 512], strides = [1, 1]} : vector<8x1024xf32> to vector<8x512xf32>
    %c32 = arith.constant 32 : index
    %c512_53 = arith.constant 512 : index
    %245 = vector.load %arg14[%c32, %c512_53] : memref<64x1024xf32, #tpu.memory_space<vmem>>, vector<8x512xf32>
    %246 = arith.addf %244, %245 : vector<8x512xf32>
    %247 = vector.extract_strided_slice %243 {offsets = [0, 0], sizes = [8, 128], strides = [1, 1]} : vector<8x512xf32> to vector<8x128xf32>
    %248 = arith.negf %247 : vector<8x128xf32>
    %249 = math.exp %248 : vector<8x128xf32>
    %cst_54 = arith.constant 1.000000e+00 : f32
    %250 = vector.broadcast %cst_54 : f32 to vector<8x128xf32>
    %251 = arith.addf %250, %249 : vector<8x128xf32>
    %252 = arith.divf %250, %251 : vector<8x128xf32>
    %253 = vector.extract_strided_slice %243 {offsets = [0, 128], sizes = [8, 128], strides = [1, 1]} : vector<8x512xf32> to vector<8x128xf32>
    %254 = arith.negf %253 : vector<8x128xf32>
    %255 = math.exp %254 : vector<8x128xf32>
    %cst_55 = arith.constant 1.000000e+00 : f32
    %256 = vector.broadcast %cst_55 : f32 to vector<8x128xf32>
    %257 = arith.addf %256, %255 : vector<8x128xf32>
    %258 = arith.divf %256, %257 : vector<8x128xf32>
    %259 = vector.extract_strided_slice %243 {offsets = [0, 256], sizes = [8, 128], strides = [1, 1]} : vector<8x512xf32> to vector<8x128xf32>
    %260 = math.tanh %259 : vector<8x128xf32>
    %261 = vector.extract_strided_slice %243 {offsets = [0, 384], sizes = [8, 128], strides = [1, 1]} : vector<8x512xf32> to vector<8x128xf32>
    %262 = arith.negf %261 : vector<8x128xf32>
    %263 = math.exp %262 : vector<8x128xf32>
    %cst_56 = arith.constant 1.000000e+00 : f32
    %264 = vector.broadcast %cst_56 : f32 to vector<8x128xf32>
    %265 = arith.addf %264, %263 : vector<8x128xf32>
    %266 = arith.divf %264, %265 : vector<8x128xf32>
    %267 = arith.mulf %258, %230 : vector<8x128xf32>
    %268 = arith.mulf %252, %260 : vector<8x128xf32>
    %269 = arith.addf %267, %268 : vector<8x128xf32>
    %270 = math.tanh %269 : vector<8x128xf32>
    %271 = arith.mulf %266, %270 : vector<8x128xf32>
    %272 = vector.extract_strided_slice %246 {offsets = [0, 0], sizes = [8, 128], strides = [1, 1]} : vector<8x512xf32> to vector<8x128xf32>
    %273 = arith.negf %272 : vector<8x128xf32>
    %274 = math.exp %273 : vector<8x128xf32>
    %cst_57 = arith.constant 1.000000e+00 : f32
    %275 = vector.broadcast %cst_57 : f32 to vector<8x128xf32>
    %276 = arith.addf %275, %274 : vector<8x128xf32>
    %277 = arith.divf %275, %276 : vector<8x128xf32>
    %278 = vector.extract_strided_slice %246 {offsets = [0, 128], sizes = [8, 128], strides = [1, 1]} : vector<8x512xf32> to vector<8x128xf32>
    %279 = arith.negf %278 : vector<8x128xf32>
    %280 = math.exp %279 : vector<8x128xf32>
    %cst_58 = arith.constant 1.000000e+00 : f32
    %281 = vector.broadcast %cst_58 : f32 to vector<8x128xf32>
    %282 = arith.addf %281, %280 : vector<8x128xf32>
    %283 = arith.divf %281, %282 : vector<8x128xf32>
    %284 = vector.extract_strided_slice %246 {offsets = [0, 256], sizes = [8, 128], strides = [1, 1]} : vector<8x512xf32> to vector<8x128xf32>
    %285 = math.tanh %284 : vector<8x128xf32>
    %286 = vector.extract_strided_slice %246 {offsets = [0, 384], sizes = [8, 128], strides = [1, 1]} : vector<8x512xf32> to vector<8x128xf32>
    %287 = arith.negf %286 : vector<8x128xf32>
    %288 = math.exp %287 : vector<8x128xf32>
    %cst_59 = arith.constant 1.000000e+00 : f32
    %289 = vector.broadcast %cst_59 : f32 to vector<8x128xf32>
    %290 = arith.addf %289, %288 : vector<8x128xf32>
    %291 = arith.divf %289, %290 : vector<8x128xf32>
    %292 = arith.mulf %283, %236 : vector<8x128xf32>
    %293 = arith.mulf %277, %285 : vector<8x128xf32>
    %294 = arith.addf %292, %293 : vector<8x128xf32>
    %295 = math.tanh %294 : vector<8x128xf32>
    %296 = arith.mulf %291, %295 : vector<8x128xf32>
    %cst_60 = arith.constant 3.000000e+00 : f32
    %297 = vector.broadcast %cst_60 : f32 to vector<8x1xf32>
    %298 = arith.cmpf ogt, %0, %297 : vector<8x1xf32>
    %cst_61 = arith.constant 4.000000e+00 : f32
    %299 = vector.broadcast %cst_61 : f32 to vector<8x1xf32>
    %300 = arith.cmpf ogt, %0, %299 : vector<8x1xf32>
    %301 = vector.shape_cast %298 : vector<8x1xi1> to vector<8x1xi1>
    %302 = vector.broadcast %301 : vector<8x1xi1> to vector<8x128xi1>
    %303 = arith.select %302, %271, %227 : vector<8x128xi1>, vector<8x128xf32>
    %304 = vector.shape_cast %298 : vector<8x1xi1> to vector<8x1xi1>
    %305 = vector.broadcast %304 : vector<8x1xi1> to vector<8x128xi1>
    %306 = arith.select %305, %269, %230 : vector<8x128xi1>, vector<8x128xf32>
    %307 = vector.shape_cast %300 : vector<8x1xi1> to vector<8x1xi1>
    %308 = vector.broadcast %307 : vector<8x1xi1> to vector<8x128xi1>
    %309 = arith.select %308, %296, %233 : vector<8x128xi1>, vector<8x128xf32>
    %310 = vector.shape_cast %300 : vector<8x1xi1> to vector<8x1xi1>
    %311 = vector.broadcast %310 : vector<8x1xi1> to vector<8x128xi1>
    %312 = arith.select %311, %294, %236 : vector<8x128xi1>, vector<8x128xf32>
    %313 = tpu.concatenate %303, %309 in 1 : vector<8x128xf32>, vector<8x128xf32> -> vector<8x256xf32>
    %314 = arith.truncf %313 : vector<8x256xf32> to vector<8x256xbf16>
    %c0_62 = arith.constant 0 : index
    %c0_63 = arith.constant 0 : index
    %315 = vector.load %arg4[%c0_62, %c0_63] : memref<256x1024xbf16, #tpu.memory_space<vmem>>, vector<256x1024xbf16>
    %cst_64 = arith.constant dense<0.000000e+00> : vector<8x1024xf32>
    %316 = tpu.matmul %314, %315, %cst_64 {dimension_numbers = #tpu.dot_dimension_numbers<[1], [0], [0], [1], [0, 0, 1, 1], [], []>} : vector<8x256xbf16>, vector<256x1024xbf16>, vector<8x1024xf32> -> vector<8x1024xf32>
    %317 = vector.extract_strided_slice %316 {offsets = [0, 0], sizes = [8, 512], strides = [1, 1]} : vector<8x1024xf32> to vector<8x512xf32>
    %c32_65 = arith.constant 32 : index
    %c0_66 = arith.constant 0 : index
    %318 = vector.load %arg14[%c32_65, %c0_66] : memref<64x1024xf32, #tpu.memory_space<vmem>>, vector<8x512xf32>
    %319 = arith.addf %317, %318 : vector<8x512xf32>
    %320 = vector.extract_strided_slice %316 {offsets = [0, 512], sizes = [8, 512], strides = [1, 1]} : vector<8x1024xf32> to vector<8x512xf32>
    %c24_67 = arith.constant 24 : index
    %c512_68 = arith.constant 512 : index
    %321 = vector.load %arg14[%c24_67, %c512_68] : memref<64x1024xf32, #tpu.memory_space<vmem>>, vector<8x512xf32>
    %322 = arith.addf %320, %321 : vector<8x512xf32>
    %323 = vector.extract_strided_slice %319 {offsets = [0, 0], sizes = [8, 128], strides = [1, 1]} : vector<8x512xf32> to vector<8x128xf32>
    %324 = arith.negf %323 : vector<8x128xf32>
    %325 = math.exp %324 : vector<8x128xf32>
    %cst_69 = arith.constant 1.000000e+00 : f32
    %326 = vector.broadcast %cst_69 : f32 to vector<8x128xf32>
    %327 = arith.addf %326, %325 : vector<8x128xf32>
    %328 = arith.divf %326, %327 : vector<8x128xf32>
    %329 = vector.extract_strided_slice %319 {offsets = [0, 128], sizes = [8, 128], strides = [1, 1]} : vector<8x512xf32> to vector<8x128xf32>
    %330 = arith.negf %329 : vector<8x128xf32>
    %331 = math.exp %330 : vector<8x128xf32>
    %cst_70 = arith.constant 1.000000e+00 : f32
    %332 = vector.broadcast %cst_70 : f32 to vector<8x128xf32>
    %333 = arith.addf %332, %331 : vector<8x128xf32>
    %334 = arith.divf %332, %333 : vector<8x128xf32>
    %335 = vector.extract_strided_slice %319 {offsets = [0, 256], sizes = [8, 128], strides = [1, 1]} : vector<8x512xf32> to vector<8x128xf32>
    %336 = math.tanh %335 : vector<8x128xf32>
    %337 = vector.extract_strided_slice %319 {offsets = [0, 384], sizes = [8, 128], strides = [1, 1]} : vector<8x512xf32> to vector<8x128xf32>
    %338 = arith.negf %337 : vector<8x128xf32>
    %339 = math.exp %338 : vector<8x128xf32>
    %cst_71 = arith.constant 1.000000e+00 : f32
    %340 = vector.broadcast %cst_71 : f32 to vector<8x128xf32>
    %341 = arith.addf %340, %339 : vector<8x128xf32>
    %342 = arith.divf %340, %341 : vector<8x128xf32>
    %343 = arith.mulf %334, %306 : vector<8x128xf32>
    %344 = arith.mulf %328, %336 : vector<8x128xf32>
    %345 = arith.addf %343, %344 : vector<8x128xf32>
    %346 = math.tanh %345 : vector<8x128xf32>
    %347 = arith.mulf %342, %346 : vector<8x128xf32>
    %348 = vector.extract_strided_slice %322 {offsets = [0, 0], sizes = [8, 128], strides = [1, 1]} : vector<8x512xf32> to vector<8x128xf32>
    %349 = arith.negf %348 : vector<8x128xf32>
    %350 = math.exp %349 : vector<8x128xf32>
    %cst_72 = arith.constant 1.000000e+00 : f32
    %351 = vector.broadcast %cst_72 : f32 to vector<8x128xf32>
    %352 = arith.addf %351, %350 : vector<8x128xf32>
    %353 = arith.divf %351, %352 : vector<8x128xf32>
    %354 = vector.extract_strided_slice %322 {offsets = [0, 128], sizes = [8, 128], strides = [1, 1]} : vector<8x512xf32> to vector<8x128xf32>
    %355 = arith.negf %354 : vector<8x128xf32>
    %356 = math.exp %355 : vector<8x128xf32>
    %cst_73 = arith.constant 1.000000e+00 : f32
    %357 = vector.broadcast %cst_73 : f32 to vector<8x128xf32>
    %358 = arith.addf %357, %356 : vector<8x128xf32>
    %359 = arith.divf %357, %358 : vector<8x128xf32>
    %360 = vector.extract_strided_slice %322 {offsets = [0, 256], sizes = [8, 128], strides = [1, 1]} : vector<8x512xf32> to vector<8x128xf32>
    %361 = math.tanh %360 : vector<8x128xf32>
    %362 = vector.extract_strided_slice %322 {offsets = [0, 384], sizes = [8, 128], strides = [1, 1]} : vector<8x512xf32> to vector<8x128xf32>
    %363 = arith.negf %362 : vector<8x128xf32>
    %364 = math.exp %363 : vector<8x128xf32>
    %cst_74 = arith.constant 1.000000e+00 : f32
    %365 = vector.broadcast %cst_74 : f32 to vector<8x128xf32>
    %366 = arith.addf %365, %364 : vector<8x128xf32>
    %367 = arith.divf %365, %366 : vector<8x128xf32>
    %368 = arith.mulf %359, %312 : vector<8x128xf32>
    %369 = arith.mulf %353, %361 : vector<8x128xf32>
    %370 = arith.addf %368, %369 : vector<8x128xf32>
    %371 = math.tanh %370 : vector<8x128xf32>
    %372 = arith.mulf %367, %371 : vector<8x128xf32>
    %cst_75 = arith.constant 4.000000e+00 : f32
    %373 = vector.broadcast %cst_75 : f32 to vector<8x1xf32>
    %374 = arith.cmpf ogt, %0, %373 : vector<8x1xf32>
    %cst_76 = arith.constant 3.000000e+00 : f32
    %375 = vector.broadcast %cst_76 : f32 to vector<8x1xf32>
    %376 = arith.cmpf ogt, %0, %375 : vector<8x1xf32>
    %377 = vector.shape_cast %374 : vector<8x1xi1> to vector<8x1xi1>
    %378 = vector.broadcast %377 : vector<8x1xi1> to vector<8x128xi1>
    %379 = arith.select %378, %347, %303 : vector<8x128xi1>, vector<8x128xf32>
    %380 = vector.shape_cast %374 : vector<8x1xi1> to vector<8x1xi1>
    %381 = vector.broadcast %380 : vector<8x1xi1> to vector<8x128xi1>
    %382 = arith.select %381, %345, %306 : vector<8x128xi1>, vector<8x128xf32>
    %383 = vector.shape_cast %376 : vector<8x1xi1> to vector<8x1xi1>
    %384 = vector.broadcast %383 : vector<8x1xi1> to vector<8x128xi1>
    %385 = arith.select %384, %372, %309 : vector<8x128xi1>, vector<8x128xf32>
    %386 = vector.shape_cast %376 : vector<8x1xi1> to vector<8x1xi1>
    %387 = vector.broadcast %386 : vector<8x1xi1> to vector<8x128xi1>
    %388 = arith.select %387, %370, %312 : vector<8x128xi1>, vector<8x128xf32>
    %389 = tpu.concatenate %379, %385 in 1 : vector<8x128xf32>, vector<8x128xf32> -> vector<8x256xf32>
    %390 = arith.truncf %389 : vector<8x256xf32> to vector<8x256xbf16>
    %c0_77 = arith.constant 0 : index
    %c0_78 = arith.constant 0 : index
    %391 = vector.load %arg4[%c0_77, %c0_78] : memref<256x1024xbf16, #tpu.memory_space<vmem>>, vector<256x1024xbf16>
    %cst_79 = arith.constant dense<0.000000e+00> : vector<8x1024xf32>
    %392 = tpu.matmul %390, %391, %cst_79 {dimension_numbers = #tpu.dot_dimension_numbers<[1], [0], [0], [1], [0, 0, 1, 1], [], []>} : vector<8x256xbf16>, vector<256x1024xbf16>, vector<8x1024xf32> -> vector<8x1024xf32>
    %393 = vector.extract_strided_slice %392 {offsets = [0, 0], sizes = [8, 512], strides = [1, 1]} : vector<8x1024xf32> to vector<8x512xf32>
    %c40_80 = arith.constant 40 : index
    %c0_81 = arith.constant 0 : index
    %394 = vector.load %arg14[%c40_80, %c0_81] : memref<64x1024xf32, #tpu.memory_space<vmem>>, vector<8x512xf32>
    %395 = arith.addf %393, %394 : vector<8x512xf32>
    %396 = vector.extract_strided_slice %392 {offsets = [0, 512], sizes = [8, 512], strides = [1, 1]} : vector<8x1024xf32> to vector<8x512xf32>
    %c16_82 = arith.constant 16 : index
    %c512_83 = arith.constant 512 : index
    %397 = vector.load %arg14[%c16_82, %c512_83] : memref<64x1024xf32, #tpu.memory_space<vmem>>, vector<8x512xf32>
    %398 = arith.addf %396, %397 : vector<8x512xf32>
    %399 = vector.extract_strided_slice %395 {offsets = [0, 0], sizes = [8, 128], strides = [1, 1]} : vector<8x512xf32> to vector<8x128xf32>
    %400 = arith.negf %399 : vector<8x128xf32>
    %401 = math.exp %400 : vector<8x128xf32>
    %cst_84 = arith.constant 1.000000e+00 : f32
    %402 = vector.broadcast %cst_84 : f32 to vector<8x128xf32>
    %403 = arith.addf %402, %401 : vector<8x128xf32>
    %404 = arith.divf %402, %403 : vector<8x128xf32>
    %405 = vector.extract_strided_slice %395 {offsets = [0, 128], sizes = [8, 128], strides = [1, 1]} : vector<8x512xf32> to vector<8x128xf32>
    %406 = arith.negf %405 : vector<8x128xf32>
    %407 = math.exp %406 : vector<8x128xf32>
    %cst_85 = arith.constant 1.000000e+00 : f32
    %408 = vector.broadcast %cst_85 : f32 to vector<8x128xf32>
    %409 = arith.addf %408, %407 : vector<8x128xf32>
    %410 = arith.divf %408, %409 : vector<8x128xf32>
    %411 = vector.extract_strided_slice %395 {offsets = [0, 256], sizes = [8, 128], strides = [1, 1]} : vector<8x512xf32> to vector<8x128xf32>
    %412 = math.tanh %411 : vector<8x128xf32>
    %413 = vector.extract_strided_slice %395 {offsets = [0, 384], sizes = [8, 128], strides = [1, 1]} : vector<8x512xf32> to vector<8x128xf32>
    %414 = arith.negf %413 : vector<8x128xf32>
    %415 = math.exp %414 : vector<8x128xf32>
    %cst_86 = arith.constant 1.000000e+00 : f32
    %416 = vector.broadcast %cst_86 : f32 to vector<8x128xf32>
    %417 = arith.addf %416, %415 : vector<8x128xf32>
    %418 = arith.divf %416, %417 : vector<8x128xf32>
    %419 = arith.mulf %410, %382 : vector<8x128xf32>
    %420 = arith.mulf %404, %412 : vector<8x128xf32>
    %421 = arith.addf %419, %420 : vector<8x128xf32>
    %422 = math.tanh %421 : vector<8x128xf32>
    %423 = arith.mulf %418, %422 : vector<8x128xf32>
    %424 = vector.extract_strided_slice %398 {offsets = [0, 0], sizes = [8, 128], strides = [1, 1]} : vector<8x512xf32> to vector<8x128xf32>
    %425 = arith.negf %424 : vector<8x128xf32>
    %426 = math.exp %425 : vector<8x128xf32>
    %cst_87 = arith.constant 1.000000e+00 : f32
    %427 = vector.broadcast %cst_87 : f32 to vector<8x128xf32>
    %428 = arith.addf %427, %426 : vector<8x128xf32>
    %429 = arith.divf %427, %428 : vector<8x128xf32>
    %430 = vector.extract_strided_slice %398 {offsets = [0, 128], sizes = [8, 128], strides = [1, 1]} : vector<8x512xf32> to vector<8x128xf32>
    %431 = arith.negf %430 : vector<8x128xf32>
    %432 = math.exp %431 : vector<8x128xf32>
    %cst_88 = arith.constant 1.000000e+00 : f32
    %433 = vector.broadcast %cst_88 : f32 to vector<8x128xf32>
    %434 = arith.addf %433, %432 : vector<8x128xf32>
    %435 = arith.divf %433, %434 : vector<8x128xf32>
    %436 = vector.extract_strided_slice %398 {offsets = [0, 256], sizes = [8, 128], strides = [1, 1]} : vector<8x512xf32> to vector<8x128xf32>
    %437 = math.tanh %436 : vector<8x128xf32>
    %438 = vector.extract_strided_slice %398 {offsets = [0, 384], sizes = [8, 128], strides = [1, 1]} : vector<8x512xf32> to vector<8x128xf32>
    %439 = arith.negf %438 : vector<8x128xf32>
    %440 = math.exp %439 : vector<8x128xf32>
    %cst_89 = arith.constant 1.000000e+00 : f32
    %441 = vector.broadcast %cst_89 : f32 to vector<8x128xf32>
    %442 = arith.addf %441, %440 : vector<8x128xf32>
    %443 = arith.divf %441, %442 : vector<8x128xf32>
    %444 = arith.mulf %435, %388 : vector<8x128xf32>
    %445 = arith.mulf %429, %437 : vector<8x128xf32>
    %446 = arith.addf %444, %445 : vector<8x128xf32>
    %447 = math.tanh %446 : vector<8x128xf32>
    %448 = arith.mulf %443, %447 : vector<8x128xf32>
    %cst_90 = arith.constant 5.000000e+00 : f32
    %449 = vector.broadcast %cst_90 : f32 to vector<8x1xf32>
    %450 = arith.cmpf ogt, %0, %449 : vector<8x1xf32>
    %cst_91 = arith.constant 2.000000e+00 : f32
    %451 = vector.broadcast %cst_91 : f32 to vector<8x1xf32>
    %452 = arith.cmpf ogt, %0, %451 : vector<8x1xf32>
    %453 = vector.shape_cast %450 : vector<8x1xi1> to vector<8x1xi1>
    %454 = vector.broadcast %453 : vector<8x1xi1> to vector<8x128xi1>
    %455 = arith.select %454, %423, %379 : vector<8x128xi1>, vector<8x128xf32>
    %456 = vector.shape_cast %450 : vector<8x1xi1> to vector<8x1xi1>
    %457 = vector.broadcast %456 : vector<8x1xi1> to vector<8x128xi1>
    %458 = arith.select %457, %421, %382 : vector<8x128xi1>, vector<8x128xf32>
    %459 = vector.shape_cast %452 : vector<8x1xi1> to vector<8x1xi1>
    %460 = vector.broadcast %459 : vector<8x1xi1> to vector<8x128xi1>
    %461 = arith.select %460, %448, %385 : vector<8x128xi1>, vector<8x128xf32>
    %462 = vector.shape_cast %452 : vector<8x1xi1> to vector<8x1xi1>
    %463 = vector.broadcast %462 : vector<8x1xi1> to vector<8x128xi1>
    %464 = arith.select %463, %446, %388 : vector<8x128xi1>, vector<8x128xf32>
    %465 = tpu.concatenate %455, %461 in 1 : vector<8x128xf32>, vector<8x128xf32> -> vector<8x256xf32>
    %466 = arith.truncf %465 : vector<8x256xf32> to vector<8x256xbf16>
    %c0_92 = arith.constant 0 : index
    %c0_93 = arith.constant 0 : index
    %467 = vector.load %arg4[%c0_92, %c0_93] : memref<256x1024xbf16, #tpu.memory_space<vmem>>, vector<256x1024xbf16>
    %cst_94 = arith.constant dense<0.000000e+00> : vector<8x1024xf32>
    %468 = tpu.matmul %466, %467, %cst_94 {dimension_numbers = #tpu.dot_dimension_numbers<[1], [0], [0], [1], [0, 0, 1, 1], [], []>} : vector<8x256xbf16>, vector<256x1024xbf16>, vector<8x1024xf32> -> vector<8x1024xf32>
    %469 = vector.extract_strided_slice %468 {offsets = [0, 0], sizes = [8, 512], strides = [1, 1]} : vector<8x1024xf32> to vector<8x512xf32>
    %c48_95 = arith.constant 48 : index
    %c0_96 = arith.constant 0 : index
    %470 = vector.load %arg14[%c48_95, %c0_96] : memref<64x1024xf32, #tpu.memory_space<vmem>>, vector<8x512xf32>
    %471 = arith.addf %469, %470 : vector<8x512xf32>
    %472 = vector.extract_strided_slice %468 {offsets = [0, 512], sizes = [8, 512], strides = [1, 1]} : vector<8x1024xf32> to vector<8x512xf32>
    %c8_97 = arith.constant 8 : index
    %c512_98 = arith.constant 512 : index
    %473 = vector.load %arg14[%c8_97, %c512_98] : memref<64x1024xf32, #tpu.memory_space<vmem>>, vector<8x512xf32>
    %474 = arith.addf %472, %473 : vector<8x512xf32>
    %475 = vector.extract_strided_slice %471 {offsets = [0, 0], sizes = [8, 128], strides = [1, 1]} : vector<8x512xf32> to vector<8x128xf32>
    %476 = arith.negf %475 : vector<8x128xf32>
    %477 = math.exp %476 : vector<8x128xf32>
    %cst_99 = arith.constant 1.000000e+00 : f32
    %478 = vector.broadcast %cst_99 : f32 to vector<8x128xf32>
    %479 = arith.addf %478, %477 : vector<8x128xf32>
    %480 = arith.divf %478, %479 : vector<8x128xf32>
    %481 = vector.extract_strided_slice %471 {offsets = [0, 128], sizes = [8, 128], strides = [1, 1]} : vector<8x512xf32> to vector<8x128xf32>
    %482 = arith.negf %481 : vector<8x128xf32>
    %483 = math.exp %482 : vector<8x128xf32>
    %cst_100 = arith.constant 1.000000e+00 : f32
    %484 = vector.broadcast %cst_100 : f32 to vector<8x128xf32>
    %485 = arith.addf %484, %483 : vector<8x128xf32>
    %486 = arith.divf %484, %485 : vector<8x128xf32>
    %487 = vector.extract_strided_slice %471 {offsets = [0, 256], sizes = [8, 128], strides = [1, 1]} : vector<8x512xf32> to vector<8x128xf32>
    %488 = math.tanh %487 : vector<8x128xf32>
    %489 = vector.extract_strided_slice %471 {offsets = [0, 384], sizes = [8, 128], strides = [1, 1]} : vector<8x512xf32> to vector<8x128xf32>
    %490 = arith.negf %489 : vector<8x128xf32>
    %491 = math.exp %490 : vector<8x128xf32>
    %cst_101 = arith.constant 1.000000e+00 : f32
    %492 = vector.broadcast %cst_101 : f32 to vector<8x128xf32>
    %493 = arith.addf %492, %491 : vector<8x128xf32>
    %494 = arith.divf %492, %493 : vector<8x128xf32>
    %495 = arith.mulf %486, %458 : vector<8x128xf32>
    %496 = arith.mulf %480, %488 : vector<8x128xf32>
    %497 = arith.addf %495, %496 : vector<8x128xf32>
    %498 = math.tanh %497 : vector<8x128xf32>
    %499 = arith.mulf %494, %498 : vector<8x128xf32>
    %500 = vector.extract_strided_slice %474 {offsets = [0, 0], sizes = [8, 128], strides = [1, 1]} : vector<8x512xf32> to vector<8x128xf32>
    %501 = arith.negf %500 : vector<8x128xf32>
    %502 = math.exp %501 : vector<8x128xf32>
    %cst_102 = arith.constant 1.000000e+00 : f32
    %503 = vector.broadcast %cst_102 : f32 to vector<8x128xf32>
    %504 = arith.addf %503, %502 : vector<8x128xf32>
    %505 = arith.divf %503, %504 : vector<8x128xf32>
    %506 = vector.extract_strided_slice %474 {offsets = [0, 128], sizes = [8, 128], strides = [1, 1]} : vector<8x512xf32> to vector<8x128xf32>
    %507 = arith.negf %506 : vector<8x128xf32>
    %508 = math.exp %507 : vector<8x128xf32>
    %cst_103 = arith.constant 1.000000e+00 : f32
    %509 = vector.broadcast %cst_103 : f32 to vector<8x128xf32>
    %510 = arith.addf %509, %508 : vector<8x128xf32>
    %511 = arith.divf %509, %510 : vector<8x128xf32>
    %512 = vector.extract_strided_slice %474 {offsets = [0, 256], sizes = [8, 128], strides = [1, 1]} : vector<8x512xf32> to vector<8x128xf32>
    %513 = math.tanh %512 : vector<8x128xf32>
    %514 = vector.extract_strided_slice %474 {offsets = [0, 384], sizes = [8, 128], strides = [1, 1]} : vector<8x512xf32> to vector<8x128xf32>
    %515 = arith.negf %514 : vector<8x128xf32>
    %516 = math.exp %515 : vector<8x128xf32>
    %cst_104 = arith.constant 1.000000e+00 : f32
    %517 = vector.broadcast %cst_104 : f32 to vector<8x128xf32>
    %518 = arith.addf %517, %516 : vector<8x128xf32>
    %519 = arith.divf %517, %518 : vector<8x128xf32>
    %520 = arith.mulf %511, %464 : vector<8x128xf32>
    %521 = arith.mulf %505, %513 : vector<8x128xf32>
    %522 = arith.addf %520, %521 : vector<8x128xf32>
    %523 = math.tanh %522 : vector<8x128xf32>
    %524 = arith.mulf %519, %523 : vector<8x128xf32>
    %cst_105 = arith.constant 6.000000e+00 : f32
    %525 = vector.broadcast %cst_105 : f32 to vector<8x1xf32>
    %526 = arith.cmpf ogt, %0, %525 : vector<8x1xf32>
    %cst_106 = arith.constant 1.000000e+00 : f32
    %527 = vector.broadcast %cst_106 : f32 to vector<8x1xf32>
    %528 = arith.cmpf ogt, %0, %527 : vector<8x1xf32>
    %529 = vector.shape_cast %526 : vector<8x1xi1> to vector<8x1xi1>
    %530 = vector.broadcast %529 : vector<8x1xi1> to vector<8x128xi1>
    %531 = arith.select %530, %499, %455 : vector<8x128xi1>, vector<8x128xf32>
    %532 = vector.shape_cast %526 : vector<8x1xi1> to vector<8x1xi1>
    %533 = vector.broadcast %532 : vector<8x1xi1> to vector<8x128xi1>
    %534 = arith.select %533, %497, %458 : vector<8x128xi1>, vector<8x128xf32>
    %535 = vector.shape_cast %528 : vector<8x1xi1> to vector<8x1xi1>
    %536 = vector.broadcast %535 : vector<8x1xi1> to vector<8x128xi1>
    %537 = arith.select %536, %524, %461 : vector<8x128xi1>, vector<8x128xf32>
    %538 = vector.shape_cast %528 : vector<8x1xi1> to vector<8x1xi1>
    %539 = vector.broadcast %538 : vector<8x1xi1> to vector<8x128xi1>
    %540 = arith.select %539, %522, %464 : vector<8x128xi1>, vector<8x128xf32>
    %541 = tpu.concatenate %531, %537 in 1 : vector<8x128xf32>, vector<8x128xf32> -> vector<8x256xf32>
    %542 = arith.truncf %541 : vector<8x256xf32> to vector<8x256xbf16>
    %c0_107 = arith.constant 0 : index
    %c0_108 = arith.constant 0 : index
    %543 = vector.load %arg4[%c0_107, %c0_108] : memref<256x1024xbf16, #tpu.memory_space<vmem>>, vector<256x1024xbf16>
    %cst_109 = arith.constant dense<0.000000e+00> : vector<8x1024xf32>
    %544 = tpu.matmul %542, %543, %cst_109 {dimension_numbers = #tpu.dot_dimension_numbers<[1], [0], [0], [1], [0, 0, 1, 1], [], []>} : vector<8x256xbf16>, vector<256x1024xbf16>, vector<8x1024xf32> -> vector<8x1024xf32>
    %545 = vector.extract_strided_slice %544 {offsets = [0, 0], sizes = [8, 512], strides = [1, 1]} : vector<8x1024xf32> to vector<8x512xf32>
    %c56_110 = arith.constant 56 : index
    %c0_111 = arith.constant 0 : index
    %546 = vector.load %arg14[%c56_110, %c0_111] : memref<64x1024xf32, #tpu.memory_space<vmem>>, vector<8x512xf32>
    %547 = arith.addf %545, %546 : vector<8x512xf32>
    %548 = vector.extract_strided_slice %544 {offsets = [0, 512], sizes = [8, 512], strides = [1, 1]} : vector<8x1024xf32> to vector<8x512xf32>
    %c0_112 = arith.constant 0 : index
    %c512_113 = arith.constant 512 : index
    %549 = vector.load %arg14[%c0_112, %c512_113] : memref<64x1024xf32, #tpu.memory_space<vmem>>, vector<8x512xf32>
    %550 = arith.addf %548, %549 : vector<8x512xf32>
    %551 = vector.extract_strided_slice %547 {offsets = [0, 0], sizes = [8, 128], strides = [1, 1]} : vector<8x512xf32> to vector<8x128xf32>
    %552 = arith.negf %551 : vector<8x128xf32>
    %553 = math.exp %552 : vector<8x128xf32>
    %cst_114 = arith.constant 1.000000e+00 : f32
    %554 = vector.broadcast %cst_114 : f32 to vector<8x128xf32>
    %555 = arith.addf %554, %553 : vector<8x128xf32>
    %556 = arith.divf %554, %555 : vector<8x128xf32>
    %557 = vector.extract_strided_slice %547 {offsets = [0, 128], sizes = [8, 128], strides = [1, 1]} : vector<8x512xf32> to vector<8x128xf32>
    %558 = arith.negf %557 : vector<8x128xf32>
    %559 = math.exp %558 : vector<8x128xf32>
    %cst_115 = arith.constant 1.000000e+00 : f32
    %560 = vector.broadcast %cst_115 : f32 to vector<8x128xf32>
    %561 = arith.addf %560, %559 : vector<8x128xf32>
    %562 = arith.divf %560, %561 : vector<8x128xf32>
    %563 = vector.extract_strided_slice %547 {offsets = [0, 256], sizes = [8, 128], strides = [1, 1]} : vector<8x512xf32> to vector<8x128xf32>
    %564 = math.tanh %563 : vector<8x128xf32>
    %565 = vector.extract_strided_slice %547 {offsets = [0, 384], sizes = [8, 128], strides = [1, 1]} : vector<8x512xf32> to vector<8x128xf32>
    %566 = arith.negf %565 : vector<8x128xf32>
    %567 = math.exp %566 : vector<8x128xf32>
    %cst_116 = arith.constant 1.000000e+00 : f32
    %568 = vector.broadcast %cst_116 : f32 to vector<8x128xf32>
    %569 = arith.addf %568, %567 : vector<8x128xf32>
    %570 = arith.divf %568, %569 : vector<8x128xf32>
    %571 = arith.mulf %562, %534 : vector<8x128xf32>
    %572 = arith.mulf %556, %564 : vector<8x128xf32>
    %573 = arith.addf %571, %572 : vector<8x128xf32>
    %574 = math.tanh %573 : vector<8x128xf32>
    %575 = arith.mulf %570, %574 : vector<8x128xf32>
    %576 = vector.extract_strided_slice %550 {offsets = [0, 0], sizes = [8, 128], strides = [1, 1]} : vector<8x512xf32> to vector<8x128xf32>
    %577 = arith.negf %576 : vector<8x128xf32>
    %578 = math.exp %577 : vector<8x128xf32>
    %cst_117 = arith.constant 1.000000e+00 : f32
    %579 = vector.broadcast %cst_117 : f32 to vector<8x128xf32>
    %580 = arith.addf %579, %578 : vector<8x128xf32>
    %581 = arith.divf %579, %580 : vector<8x128xf32>
    %582 = vector.extract_strided_slice %550 {offsets = [0, 128], sizes = [8, 128], strides = [1, 1]} : vector<8x512xf32> to vector<8x128xf32>
    %583 = arith.negf %582 : vector<8x128xf32>
    %584 = math.exp %583 : vector<8x128xf32>
    %cst_118 = arith.constant 1.000000e+00 : f32
    %585 = vector.broadcast %cst_118 : f32 to vector<8x128xf32>
    %586 = arith.addf %585, %584 : vector<8x128xf32>
    %587 = arith.divf %585, %586 : vector<8x128xf32>
    %588 = vector.extract_strided_slice %550 {offsets = [0, 256], sizes = [8, 128], strides = [1, 1]} : vector<8x512xf32> to vector<8x128xf32>
    %589 = math.tanh %588 : vector<8x128xf32>
    %590 = vector.extract_strided_slice %550 {offsets = [0, 384], sizes = [8, 128], strides = [1, 1]} : vector<8x512xf32> to vector<8x128xf32>
    %591 = arith.negf %590 : vector<8x128xf32>
    %592 = math.exp %591 : vector<8x128xf32>
    %cst_119 = arith.constant 1.000000e+00 : f32
    %593 = vector.broadcast %cst_119 : f32 to vector<8x128xf32>
    %594 = arith.addf %593, %592 : vector<8x128xf32>
    %595 = arith.divf %593, %594 : vector<8x128xf32>
    %596 = arith.mulf %587, %540 : vector<8x128xf32>
    %597 = arith.mulf %581, %589 : vector<8x128xf32>
    %598 = arith.addf %596, %597 : vector<8x128xf32>
    %599 = math.tanh %598 : vector<8x128xf32>
    %600 = arith.mulf %595, %599 : vector<8x128xf32>
    %cst_120 = arith.constant 7.000000e+00 : f32
    %601 = vector.broadcast %cst_120 : f32 to vector<8x1xf32>
    %602 = arith.cmpf ogt, %0, %601 : vector<8x1xf32>
    %cst_121 = arith.constant 0.000000e+00 : f32
    %603 = vector.broadcast %cst_121 : f32 to vector<8x1xf32>
    %604 = arith.cmpf ogt, %0, %603 : vector<8x1xf32>
    %605 = vector.shape_cast %602 : vector<8x1xi1> to vector<8x1xi1>
    %606 = vector.broadcast %605 : vector<8x1xi1> to vector<8x128xi1>
    %607 = arith.select %606, %575, %531 : vector<8x128xi1>, vector<8x128xf32>
    %608 = vector.shape_cast %602 : vector<8x1xi1> to vector<8x1xi1>
    %609 = vector.broadcast %608 : vector<8x1xi1> to vector<8x128xi1>
    %610 = arith.select %609, %573, %534 : vector<8x128xi1>, vector<8x128xf32>
    %611 = vector.shape_cast %604 : vector<8x1xi1> to vector<8x1xi1>
    %612 = vector.broadcast %611 : vector<8x1xi1> to vector<8x128xi1>
    %613 = arith.select %612, %600, %537 : vector<8x128xi1>, vector<8x128xf32>
    %614 = vector.shape_cast %604 : vector<8x1xi1> to vector<8x1xi1>
    %615 = vector.broadcast %614 : vector<8x1xi1> to vector<8x128xi1>
    %616 = arith.select %615, %598, %540 : vector<8x128xi1>, vector<8x128xf32>
    %617 = tpu.concatenate %607, %613, %610, %616 in 1 : vector<8x128xf32>, vector<8x128xf32>, vector<8x128xf32>, vector<8x128xf32> -> vector<8x512xf32>
    %618 = arith.truncf %617 : vector<8x512xf32> to vector<8x512xbf16>
    %c0_122 = arith.constant 0 : index
    %c0_123 = arith.constant 0 : index
    %619 = vector.load %arg6[%c0_122, %c0_123] : memref<512x256xbf16, #tpu.memory_space<vmem>>, vector<512x256xbf16>
    %cst_124 = arith.constant dense<0.000000e+00> : vector<8x256xf32>
    %620 = tpu.matmul %618, %619, %cst_124 {dimension_numbers = #tpu.dot_dimension_numbers<[1], [0], [0], [1], [0, 0, 1, 1], [], []>} : vector<8x512xbf16>, vector<512x256xbf16>, vector<8x256xf32> -> vector<8x256xf32>
    %c0_125 = arith.constant 0 : index
    %c0_126 = arith.constant 0 : index
    %621 = vector.load %arg7[%c0_125, %c0_126] : memref<1x256xf32, #tpu.memory_space<vmem>>, vector<1x256xf32>
    %622 = vector.broadcast %621 : vector<1x256xf32> to vector<8x256xf32>
    %623 = arith.addf %620, %622 : vector<8x256xf32>
    %cst_127 = arith.constant 0.000000e+00 : f32
    %624 = vector.broadcast %cst_127 : f32 to vector<8x256xf32>
    %625 = arith.maximumf %623, %624 : vector<8x256xf32>
    %626 = vector.extract_strided_slice %625 {offsets = [0, 0], sizes = [8, 128], strides = [1, 1]} : vector<8x256xf32> to vector<8x128xf32>
    %627 = vector.extract_strided_slice %625 {offsets = [0, 128], sizes = [8, 128], strides = [1, 1]} : vector<8x256xf32> to vector<8x128xf32>
    %c0_128 = arith.constant 0 : index
    %c0_129 = arith.constant 0 : index
    %628 = vector.load %arg1[%c0_128, %c0_129] : memref<64x128xbf16, #tpu.memory_space<vmem>>, vector<64x128xbf16>
    %c0_130 = arith.constant 0 : index
    %c0_131 = arith.constant 0 : index
    %629 = vector.load %arg8[%c0_130, %c0_131] : memref<128x512xbf16, #tpu.memory_space<vmem>>, vector<128x512xbf16>
    %cst_132 = arith.constant dense<0.000000e+00> : vector<64x512xf32>
    %630 = tpu.matmul %628, %629, %cst_132 {dimension_numbers = #tpu.dot_dimension_numbers<[1], [0], [0], [1], [0, 0, 1, 1], [], []>} : vector<64x128xbf16>, vector<128x512xbf16>, vector<64x512xf32> -> vector<64x512xf32>
    %c0_133 = arith.constant 0 : index
    %c0_134 = arith.constant 0 : index
    %631 = vector.load %arg10[%c0_133, %c0_134] : memref<1x512xf32, #tpu.memory_space<vmem>>, vector<1x512xf32>
    %632 = vector.broadcast %631 : vector<1x512xf32> to vector<64x512xf32>
    %633 = arith.addf %630, %632 : vector<64x512xf32>
    %c0_135 = arith.constant 0 : index
    %c0_136 = arith.constant 0 : index
    %634 = vector.load %arg15[%c0_135, %c0_136] : memref<64x512xf32, #tpu.memory_space<vmem>>, vector<64x512xf32>
    tpu.vector_store %arg15[%c0_135, %c0_136], %633 {strides = array<i32>} : memref<64x512xf32, #tpu.memory_space<vmem>>, vector<64x512xf32>,
    %c0_137 = arith.constant 0 : index
    %c0_138 = arith.constant 0 : index
    %635 = vector.load %arg15[%c0_137, %c0_138] : memref<64x512xf32, #tpu.memory_space<vmem>>, vector<8x512xf32>
    %636 = arith.truncf %626 : vector<8x128xf32> to vector<8x128xbf16>
    %c0_139 = arith.constant 0 : index
    %c0_140 = arith.constant 0 : index
    %637 = vector.load %arg9[%c0_139, %c0_140] : memref<128x512xbf16, #tpu.memory_space<vmem>>, vector<128x512xbf16>
    %cst_141 = arith.constant dense<0.000000e+00> : vector<8x512xf32>
    %638 = tpu.matmul %636, %637, %cst_141 {dimension_numbers = #tpu.dot_dimension_numbers<[1], [0], [0], [1], [0, 0, 1, 1], [], []>} : vector<8x128xbf16>, vector<128x512xbf16>, vector<8x512xf32> -> vector<8x512xf32>
    %639 = arith.addf %635, %638 : vector<8x512xf32>
    %640 = vector.extract_strided_slice %639 {offsets = [0, 0], sizes = [8, 128], strides = [1, 1]} : vector<8x512xf32> to vector<8x128xf32>
    %641 = arith.negf %640 : vector<8x128xf32>
    %642 = math.exp %641 : vector<8x128xf32>
    %cst_142 = arith.constant 1.000000e+00 : f32
    %643 = vector.broadcast %cst_142 : f32 to vector<8x128xf32>
    %644 = arith.addf %643, %642 : vector<8x128xf32>
    %645 = arith.divf %643, %644 : vector<8x128xf32>
    %646 = vector.extract_strided_slice %639 {offsets = [0, 128], sizes = [8, 128], strides = [1, 1]} : vector<8x512xf32> to vector<8x128xf32>
    %647 = arith.negf %646 : vector<8x128xf32>
    %648 = math.exp %647 : vector<8x128xf32>
    %cst_143 = arith.constant 1.000000e+00 : f32
    %649 = vector.broadcast %cst_143 : f32 to vector<8x128xf32>
    %650 = arith.addf %649, %648 : vector<8x128xf32>
    %651 = arith.divf %649, %650 : vector<8x128xf32>
    %652 = vector.extract_strided_slice %639 {offsets = [0, 256], sizes = [8, 128], strides = [1, 1]} : vector<8x512xf32> to vector<8x128xf32>
    %653 = math.tanh %652 : vector<8x128xf32>
    %654 = vector.extract_strided_slice %639 {offsets = [0, 384], sizes = [8, 128], strides = [1, 1]} : vector<8x512xf32> to vector<8x128xf32>
    %655 = arith.negf %654 : vector<8x128xf32>
    %656 = math.exp %655 : vector<8x128xf32>
    %cst_144 = arith.constant 1.000000e+00 : f32
    %657 = vector.broadcast %cst_144 : f32 to vector<8x128xf32>
    %658 = arith.addf %657, %656 : vector<8x128xf32>
    %659 = arith.divf %657, %658 : vector<8x128xf32>
    %660 = arith.mulf %651, %627 : vector<8x128xf32>
    %661 = arith.mulf %645, %653 : vector<8x128xf32>
    %662 = arith.addf %660, %661 : vector<8x128xf32>
    %663 = math.tanh %662 : vector<8x128xf32>
    %664 = arith.mulf %659, %663 : vector<8x128xf32>
    %c0_145 = arith.constant 0 : index
    %c0_146 = arith.constant 0 : index
    %665 = vector.load %arg16[%c0_145, %c0_146] : memref<64x128xf32, #tpu.memory_space<vmem>>, vector<8x128xf32>
    tpu.vector_store %arg16[%c0_145, %c0_146], %664 {strides = array<i32>} : memref<64x128xf32, #tpu.memory_space<vmem>>, vector<8x128xf32>,
    %c8_147 = arith.constant 8 : index
    %c0_148 = arith.constant 0 : index
    %666 = vector.load %arg15[%c8_147, %c0_148] : memref<64x512xf32, #tpu.memory_space<vmem>>, vector<8x512xf32>
    %667 = arith.truncf %664 : vector<8x128xf32> to vector<8x128xbf16>
    %c0_149 = arith.constant 0 : index
    %c0_150 = arith.constant 0 : index
    %668 = vector.load %arg9[%c0_149, %c0_150] : memref<128x512xbf16, #tpu.memory_space<vmem>>, vector<128x512xbf16>
    %cst_151 = arith.constant dense<0.000000e+00> : vector<8x512xf32>
    %669 = tpu.matmul %667, %668, %cst_151 {dimension_numbers = #tpu.dot_dimension_numbers<[1], [0], [0], [1], [0, 0, 1, 1], [], []>} : vector<8x128xbf16>, vector<128x512xbf16>, vector<8x512xf32> -> vector<8x512xf32>
    %670 = arith.addf %666, %669 : vector<8x512xf32>
    %671 = vector.extract_strided_slice %670 {offsets = [0, 0], sizes = [8, 128], strides = [1, 1]} : vector<8x512xf32> to vector<8x128xf32>
    %672 = arith.negf %671 : vector<8x128xf32>
    %673 = math.exp %672 : vector<8x128xf32>
    %cst_152 = arith.constant 1.000000e+00 : f32
    %674 = vector.broadcast %cst_152 : f32 to vector<8x128xf32>
    %675 = arith.addf %674, %673 : vector<8x128xf32>
    %676 = arith.divf %674, %675 : vector<8x128xf32>
    %677 = vector.extract_strided_slice %670 {offsets = [0, 128], sizes = [8, 128], strides = [1, 1]} : vector<8x512xf32> to vector<8x128xf32>
    %678 = arith.negf %677 : vector<8x128xf32>
    %679 = math.exp %678 : vector<8x128xf32>
    %cst_153 = arith.constant 1.000000e+00 : f32
    %680 = vector.broadcast %cst_153 : f32 to vector<8x128xf32>
    %681 = arith.addf %680, %679 : vector<8x128xf32>
    %682 = arith.divf %680, %681 : vector<8x128xf32>
    %683 = vector.extract_strided_slice %670 {offsets = [0, 256], sizes = [8, 128], strides = [1, 1]} : vector<8x512xf32> to vector<8x128xf32>
    %684 = math.tanh %683 : vector<8x128xf32>
    %685 = vector.extract_strided_slice %670 {offsets = [0, 384], sizes = [8, 128], strides = [1, 1]} : vector<8x512xf32> to vector<8x128xf32>
    %686 = arith.negf %685 : vector<8x128xf32>
    %687 = math.exp %686 : vector<8x128xf32>
    %cst_154 = arith.constant 1.000000e+00 : f32
    %688 = vector.broadcast %cst_154 : f32 to vector<8x128xf32>
    %689 = arith.addf %688, %687 : vector<8x128xf32>
    %690 = arith.divf %688, %689 : vector<8x128xf32>
    %691 = arith.mulf %682, %662 : vector<8x128xf32>
    %692 = arith.mulf %676, %684 : vector<8x128xf32>
    %693 = arith.addf %691, %692 : vector<8x128xf32>
    %694 = math.tanh %693 : vector<8x128xf32>
    %695 = arith.mulf %690, %694 : vector<8x128xf32>
    %c8_155 = arith.constant 8 : index
    %c0_156 = arith.constant 0 : index
    %696 = vector.load %arg16[%c8_155, %c0_156] : memref<64x128xf32, #tpu.memory_space<vmem>>, vector<8x128xf32>
    tpu.vector_store %arg16[%c8_155, %c0_156], %695 {strides = array<i32>} : memref<64x128xf32, #tpu.memory_space<vmem>>, vector<8x128xf32>,
    %c16_157 = arith.constant 16 : index
    %c0_158 = arith.constant 0 : index
    %697 = vector.load %arg15[%c16_157, %c0_158] : memref<64x512xf32, #tpu.memory_space<vmem>>, vector<8x512xf32>
    %698 = arith.truncf %695 : vector<8x128xf32> to vector<8x128xbf16>
    %c0_159 = arith.constant 0 : index
    %c0_160 = arith.constant 0 : index
    %699 = vector.load %arg9[%c0_159, %c0_160] : memref<128x512xbf16, #tpu.memory_space<vmem>>, vector<128x512xbf16>
    %cst_161 = arith.constant dense<0.000000e+00> : vector<8x512xf32>
    %700 = tpu.matmul %698, %699, %cst_161 {dimension_numbers = #tpu.dot_dimension_numbers<[1], [0], [0], [1], [0, 0, 1, 1], [], []>} : vector<8x128xbf16>, vector<128x512xbf16>, vector<8x512xf32> -> vector<8x512xf32>
    %701 = arith.addf %697, %700 : vector<8x512xf32>
    %702 = vector.extract_strided_slice %701 {offsets = [0, 0], sizes = [8, 128], strides = [1, 1]} : vector<8x512xf32> to vector<8x128xf32>
    %703 = arith.negf %702 : vector<8x128xf32>
    %704 = math.exp %703 : vector<8x128xf32>
    %cst_162 = arith.constant 1.000000e+00 : f32
    %705 = vector.broadcast %cst_162 : f32 to vector<8x128xf32>
    %706 = arith.addf %705, %704 : vector<8x128xf32>
    %707 = arith.divf %705, %706 : vector<8x128xf32>
    %708 = vector.extract_strided_slice %701 {offsets = [0, 128], sizes = [8, 128], strides = [1, 1]} : vector<8x512xf32> to vector<8x128xf32>
    %709 = arith.negf %708 : vector<8x128xf32>
    %710 = math.exp %709 : vector<8x128xf32>
    %cst_163 = arith.constant 1.000000e+00 : f32
    %711 = vector.broadcast %cst_163 : f32 to vector<8x128xf32>
    %712 = arith.addf %711, %710 : vector<8x128xf32>
    %713 = arith.divf %711, %712 : vector<8x128xf32>
    %714 = vector.extract_strided_slice %701 {offsets = [0, 256], sizes = [8, 128], strides = [1, 1]} : vector<8x512xf32> to vector<8x128xf32>
    %715 = math.tanh %714 : vector<8x128xf32>
    %716 = vector.extract_strided_slice %701 {offsets = [0, 384], sizes = [8, 128], strides = [1, 1]} : vector<8x512xf32> to vector<8x128xf32>
    %717 = arith.negf %716 : vector<8x128xf32>
    %718 = math.exp %717 : vector<8x128xf32>
    %cst_164 = arith.constant 1.000000e+00 : f32
    %719 = vector.broadcast %cst_164 : f32 to vector<8x128xf32>
    %720 = arith.addf %719, %718 : vector<8x128xf32>
    %721 = arith.divf %719, %720 : vector<8x128xf32>
    %722 = arith.mulf %713, %693 : vector<8x128xf32>
    %723 = arith.mulf %707, %715 : vector<8x128xf32>
    %724 = arith.addf %722, %723 : vector<8x128xf32>
    %725 = math.tanh %724 : vector<8x128xf32>
    %726 = arith.mulf %721, %725 : vector<8x128xf32>
    %c16_165 = arith.constant 16 : index
    %c0_166 = arith.constant 0 : index
    %727 = vector.load %arg16[%c16_165, %c0_166] : memref<64x128xf32, #tpu.memory_space<vmem>>, vector<8x128xf32>
    tpu.vector_store %arg16[%c16_165, %c0_166], %726 {strides = array<i32>} : memref<64x128xf32, #tpu.memory_space<vmem>>, vector<8x128xf32>,
    %c24_167 = arith.constant 24 : index
    %c0_168 = arith.constant 0 : index
    %728 = vector.load %arg15[%c24_167, %c0_168] : memref<64x512xf32, #tpu.memory_space<vmem>>, vector<8x512xf32>
    %729 = arith.truncf %726 : vector<8x128xf32> to vector<8x128xbf16>
    %c0_169 = arith.constant 0 : index
    %c0_170 = arith.constant 0 : index
    %730 = vector.load %arg9[%c0_169, %c0_170] : memref<128x512xbf16, #tpu.memory_space<vmem>>, vector<128x512xbf16>
    %cst_171 = arith.constant dense<0.000000e+00> : vector<8x512xf32>
    %731 = tpu.matmul %729, %730, %cst_171 {dimension_numbers = #tpu.dot_dimension_numbers<[1], [0], [0], [1], [0, 0, 1, 1], [], []>} : vector<8x128xbf16>, vector<128x512xbf16>, vector<8x512xf32> -> vector<8x512xf32>
    %732 = arith.addf %728, %731 : vector<8x512xf32>
    %733 = vector.extract_strided_slice %732 {offsets = [0, 0], sizes = [8, 128], strides = [1, 1]} : vector<8x512xf32> to vector<8x128xf32>
    %734 = arith.negf %733 : vector<8x128xf32>
    %735 = math.exp %734 : vector<8x128xf32>
    %cst_172 = arith.constant 1.000000e+00 : f32
    %736 = vector.broadcast %cst_172 : f32 to vector<8x128xf32>
    %737 = arith.addf %736, %735 : vector<8x128xf32>
    %738 = arith.divf %736, %737 : vector<8x128xf32>
    %739 = vector.extract_strided_slice %732 {offsets = [0, 128], sizes = [8, 128], strides = [1, 1]} : vector<8x512xf32> to vector<8x128xf32>
    %740 = arith.negf %739 : vector<8x128xf32>
    %741 = math.exp %740 : vector<8x128xf32>
    %cst_173 = arith.constant 1.000000e+00 : f32
    %742 = vector.broadcast %cst_173 : f32 to vector<8x128xf32>
    %743 = arith.addf %742, %741 : vector<8x128xf32>
    %744 = arith.divf %742, %743 : vector<8x128xf32>
    %745 = vector.extract_strided_slice %732 {offsets = [0, 256], sizes = [8, 128], strides = [1, 1]} : vector<8x512xf32> to vector<8x128xf32>
    %746 = math.tanh %745 : vector<8x128xf32>
    %747 = vector.extract_strided_slice %732 {offsets = [0, 384], sizes = [8, 128], strides = [1, 1]} : vector<8x512xf32> to vector<8x128xf32>
    %748 = arith.negf %747 : vector<8x128xf32>
    %749 = math.exp %748 : vector<8x128xf32>
    %cst_174 = arith.constant 1.000000e+00 : f32
    %750 = vector.broadcast %cst_174 : f32 to vector<8x128xf32>
    %751 = arith.addf %750, %749 : vector<8x128xf32>
    %752 = arith.divf %750, %751 : vector<8x128xf32>
    %753 = arith.mulf %744, %724 : vector<8x128xf32>
    %754 = arith.mulf %738, %746 : vector<8x128xf32>
    %755 = arith.addf %753, %754 : vector<8x128xf32>
    %756 = math.tanh %755 : vector<8x128xf32>
    %757 = arith.mulf %752, %756 : vector<8x128xf32>
    %c24_175 = arith.constant 24 : index
    %c0_176 = arith.constant 0 : index
    %758 = vector.load %arg16[%c24_175, %c0_176] : memref<64x128xf32, #tpu.memory_space<vmem>>, vector<8x128xf32>
    tpu.vector_store %arg16[%c24_175, %c0_176], %757 {strides = array<i32>} : memref<64x128xf32, #tpu.memory_space<vmem>>, vector<8x128xf32>,
    %c32_177 = arith.constant 32 : index
    %c0_178 = arith.constant 0 : index
    %759 = vector.load %arg15[%c32_177, %c0_178] : memref<64x512xf32, #tpu.memory_space<vmem>>, vector<8x512xf32>
    %760 = arith.truncf %757 : vector<8x128xf32> to vector<8x128xbf16>
    %c0_179 = arith.constant 0 : index
    %c0_180 = arith.constant 0 : index
    %761 = vector.load %arg9[%c0_179, %c0_180] : memref<128x512xbf16, #tpu.memory_space<vmem>>, vector<128x512xbf16>
    %cst_181 = arith.constant dense<0.000000e+00> : vector<8x512xf32>
    %762 = tpu.matmul %760, %761, %cst_181 {dimension_numbers = #tpu.dot_dimension_numbers<[1], [0], [0], [1], [0, 0, 1, 1], [], []>} : vector<8x128xbf16>, vector<128x512xbf16>, vector<8x512xf32> -> vector<8x512xf32>
    %763 = arith.addf %759, %762 : vector<8x512xf32>
    %764 = vector.extract_strided_slice %763 {offsets = [0, 0], sizes = [8, 128], strides = [1, 1]} : vector<8x512xf32> to vector<8x128xf32>
    %765 = arith.negf %764 : vector<8x128xf32>
    %766 = math.exp %765 : vector<8x128xf32>
    %cst_182 = arith.constant 1.000000e+00 : f32
    %767 = vector.broadcast %cst_182 : f32 to vector<8x128xf32>
    %768 = arith.addf %767, %766 : vector<8x128xf32>
    %769 = arith.divf %767, %768 : vector<8x128xf32>
    %770 = vector.extract_strided_slice %763 {offsets = [0, 128], sizes = [8, 128], strides = [1, 1]} : vector<8x512xf32> to vector<8x128xf32>
    %771 = arith.negf %770 : vector<8x128xf32>
    %772 = math.exp %771 : vector<8x128xf32>
    %cst_183 = arith.constant 1.000000e+00 : f32
    %773 = vector.broadcast %cst_183 : f32 to vector<8x128xf32>
    %774 = arith.addf %773, %772 : vector<8x128xf32>
    %775 = arith.divf %773, %774 : vector<8x128xf32>
    %776 = vector.extract_strided_slice %763 {offsets = [0, 256], sizes = [8, 128], strides = [1, 1]} : vector<8x512xf32> to vector<8x128xf32>
    %777 = math.tanh %776 : vector<8x128xf32>
    %778 = vector.extract_strided_slice %763 {offsets = [0, 384], sizes = [8, 128], strides = [1, 1]} : vector<8x512xf32> to vector<8x128xf32>
    %779 = arith.negf %778 : vector<8x128xf32>
    %780 = math.exp %779 : vector<8x128xf32>
    %cst_184 = arith.constant 1.000000e+00 : f32
    %781 = vector.broadcast %cst_184 : f32 to vector<8x128xf32>
    %782 = arith.addf %781, %780 : vector<8x128xf32>
    %783 = arith.divf %781, %782 : vector<8x128xf32>
    %784 = arith.mulf %775, %755 : vector<8x128xf32>
    %785 = arith.mulf %769, %777 : vector<8x128xf32>
    %786 = arith.addf %784, %785 : vector<8x128xf32>
    %787 = math.tanh %786 : vector<8x128xf32>
    %788 = arith.mulf %783, %787 : vector<8x128xf32>
    %c32_185 = arith.constant 32 : index
    %c0_186 = arith.constant 0 : index
    %789 = vector.load %arg16[%c32_185, %c0_186] : memref<64x128xf32, #tpu.memory_space<vmem>>, vector<8x128xf32>
    tpu.vector_store %arg16[%c32_185, %c0_186], %788 {strides = array<i32>} : memref<64x128xf32, #tpu.memory_space<vmem>>, vector<8x128xf32>,
    %c40_187 = arith.constant 40 : index
    %c0_188 = arith.constant 0 : index
    %790 = vector.load %arg15[%c40_187, %c0_188] : memref<64x512xf32, #tpu.memory_space<vmem>>, vector<8x512xf32>
    %791 = arith.truncf %788 : vector<8x128xf32> to vector<8x128xbf16>
    %c0_189 = arith.constant 0 : index
    %c0_190 = arith.constant 0 : index
    %792 = vector.load %arg9[%c0_189, %c0_190] : memref<128x512xbf16, #tpu.memory_space<vmem>>, vector<128x512xbf16>
    %cst_191 = arith.constant dense<0.000000e+00> : vector<8x512xf32>
    %793 = tpu.matmul %791, %792, %cst_191 {dimension_numbers = #tpu.dot_dimension_numbers<[1], [0], [0], [1], [0, 0, 1, 1], [], []>} : vector<8x128xbf16>, vector<128x512xbf16>, vector<8x512xf32> -> vector<8x512xf32>
    %794 = arith.addf %790, %793 : vector<8x512xf32>
    %795 = vector.extract_strided_slice %794 {offsets = [0, 0], sizes = [8, 128], strides = [1, 1]} : vector<8x512xf32> to vector<8x128xf32>
    %796 = arith.negf %795 : vector<8x128xf32>
    %797 = math.exp %796 : vector<8x128xf32>
    %cst_192 = arith.constant 1.000000e+00 : f32
    %798 = vector.broadcast %cst_192 : f32 to vector<8x128xf32>
    %799 = arith.addf %798, %797 : vector<8x128xf32>
    %800 = arith.divf %798, %799 : vector<8x128xf32>
    %801 = vector.extract_strided_slice %794 {offsets = [0, 128], sizes = [8, 128], strides = [1, 1]} : vector<8x512xf32> to vector<8x128xf32>
    %802 = arith.negf %801 : vector<8x128xf32>
    %803 = math.exp %802 : vector<8x128xf32>
    %cst_193 = arith.constant 1.000000e+00 : f32
    %804 = vector.broadcast %cst_193 : f32 to vector<8x128xf32>
    %805 = arith.addf %804, %803 : vector<8x128xf32>
    %806 = arith.divf %804, %805 : vector<8x128xf32>
    %807 = vector.extract_strided_slice %794 {offsets = [0, 256], sizes = [8, 128], strides = [1, 1]} : vector<8x512xf32> to vector<8x128xf32>
    %808 = math.tanh %807 : vector<8x128xf32>
    %809 = vector.extract_strided_slice %794 {offsets = [0, 384], sizes = [8, 128], strides = [1, 1]} : vector<8x512xf32> to vector<8x128xf32>
    %810 = arith.negf %809 : vector<8x128xf32>
    %811 = math.exp %810 : vector<8x128xf32>
    %cst_194 = arith.constant 1.000000e+00 : f32
    %812 = vector.broadcast %cst_194 : f32 to vector<8x128xf32>
    %813 = arith.addf %812, %811 : vector<8x128xf32>
    %814 = arith.divf %812, %813 : vector<8x128xf32>
    %815 = arith.mulf %806, %786 : vector<8x128xf32>
    %816 = arith.mulf %800, %808 : vector<8x128xf32>
    %817 = arith.addf %815, %816 : vector<8x128xf32>
    %818 = math.tanh %817 : vector<8x128xf32>
    %819 = arith.mulf %814, %818 : vector<8x128xf32>
    %c40_195 = arith.constant 40 : index
    %c0_196 = arith.constant 0 : index
    %820 = vector.load %arg16[%c40_195, %c0_196] : memref<64x128xf32, #tpu.memory_space<vmem>>, vector<8x128xf32>
    tpu.vector_store %arg16[%c40_195, %c0_196], %819 {strides = array<i32>} : memref<64x128xf32, #tpu.memory_space<vmem>>, vector<8x128xf32>,
    %c48_197 = arith.constant 48 : index
    %c0_198 = arith.constant 0 : index
    %821 = vector.load %arg15[%c48_197, %c0_198] : memref<64x512xf32, #tpu.memory_space<vmem>>, vector<8x512xf32>
    %822 = arith.truncf %819 : vector<8x128xf32> to vector<8x128xbf16>
    %c0_199 = arith.constant 0 : index
    %c0_200 = arith.constant 0 : index
    %823 = vector.load %arg9[%c0_199, %c0_200] : memref<128x512xbf16, #tpu.memory_space<vmem>>, vector<128x512xbf16>
    %cst_201 = arith.constant dense<0.000000e+00> : vector<8x512xf32>
    %824 = tpu.matmul %822, %823, %cst_201 {dimension_numbers = #tpu.dot_dimension_numbers<[1], [0], [0], [1], [0, 0, 1, 1], [], []>} : vector<8x128xbf16>, vector<128x512xbf16>, vector<8x512xf32> -> vector<8x512xf32>
    %825 = arith.addf %821, %824 : vector<8x512xf32>
    %826 = vector.extract_strided_slice %825 {offsets = [0, 0], sizes = [8, 128], strides = [1, 1]} : vector<8x512xf32> to vector<8x128xf32>
    %827 = arith.negf %826 : vector<8x128xf32>
    %828 = math.exp %827 : vector<8x128xf32>
    %cst_202 = arith.constant 1.000000e+00 : f32
    %829 = vector.broadcast %cst_202 : f32 to vector<8x128xf32>
    %830 = arith.addf %829, %828 : vector<8x128xf32>
    %831 = arith.divf %829, %830 : vector<8x128xf32>
    %832 = vector.extract_strided_slice %825 {offsets = [0, 128], sizes = [8, 128], strides = [1, 1]} : vector<8x512xf32> to vector<8x128xf32>
    %833 = arith.negf %832 : vector<8x128xf32>
    %834 = math.exp %833 : vector<8x128xf32>
    %cst_203 = arith.constant 1.000000e+00 : f32
    %835 = vector.broadcast %cst_203 : f32 to vector<8x128xf32>
    %836 = arith.addf %835, %834 : vector<8x128xf32>
    %837 = arith.divf %835, %836 : vector<8x128xf32>
    %838 = vector.extract_strided_slice %825 {offsets = [0, 256], sizes = [8, 128], strides = [1, 1]} : vector<8x512xf32> to vector<8x128xf32>
    %839 = math.tanh %838 : vector<8x128xf32>
    %840 = vector.extract_strided_slice %825 {offsets = [0, 384], sizes = [8, 128], strides = [1, 1]} : vector<8x512xf32> to vector<8x128xf32>
    %841 = arith.negf %840 : vector<8x128xf32>
    %842 = math.exp %841 : vector<8x128xf32>
    %cst_204 = arith.constant 1.000000e+00 : f32
    %843 = vector.broadcast %cst_204 : f32 to vector<8x128xf32>
    %844 = arith.addf %843, %842 : vector<8x128xf32>
    %845 = arith.divf %843, %844 : vector<8x128xf32>
    %846 = arith.mulf %837, %817 : vector<8x128xf32>
    %847 = arith.mulf %831, %839 : vector<8x128xf32>
    %848 = arith.addf %846, %847 : vector<8x128xf32>
    %849 = math.tanh %848 : vector<8x128xf32>
    %850 = arith.mulf %845, %849 : vector<8x128xf32>
    %c48_205 = arith.constant 48 : index
    %c0_206 = arith.constant 0 : index
    %851 = vector.load %arg16[%c48_205, %c0_206] : memref<64x128xf32, #tpu.memory_space<vmem>>, vector<8x128xf32>
    tpu.vector_store %arg16[%c48_205, %c0_206], %850 {strides = array<i32>} : memref<64x128xf32, #tpu.memory_space<vmem>>, vector<8x128xf32>,
    %c56_207 = arith.constant 56 : index
    %c0_208 = arith.constant 0 : index
    %852 = vector.load %arg15[%c56_207, %c0_208] : memref<64x512xf32, #tpu.memory_space<vmem>>, vector<8x512xf32>
    %853 = arith.truncf %850 : vector<8x128xf32> to vector<8x128xbf16>
    %c0_209 = arith.constant 0 : index
    %c0_210 = arith.constant 0 : index
    %854 = vector.load %arg9[%c0_209, %c0_210] : memref<128x512xbf16, #tpu.memory_space<vmem>>, vector<128x512xbf16>
    %cst_211 = arith.constant dense<0.000000e+00> : vector<8x512xf32>
    %855 = tpu.matmul %853, %854, %cst_211 {dimension_numbers = #tpu.dot_dimension_numbers<[1], [0], [0], [1], [0, 0, 1, 1], [], []>} : vector<8x128xbf16>, vector<128x512xbf16>, vector<8x512xf32> -> vector<8x512xf32>
    %856 = arith.addf %852, %855 : vector<8x512xf32>
    %857 = vector.extract_strided_slice %856 {offsets = [0, 0], sizes = [8, 128], strides = [1, 1]} : vector<8x512xf32> to vector<8x128xf32>
    %858 = arith.negf %857 : vector<8x128xf32>
    %859 = math.exp %858 : vector<8x128xf32>
    %cst_212 = arith.constant 1.000000e+00 : f32
    %860 = vector.broadcast %cst_212 : f32 to vector<8x128xf32>
    %861 = arith.addf %860, %859 : vector<8x128xf32>
    %862 = arith.divf %860, %861 : vector<8x128xf32>
    %863 = vector.extract_strided_slice %856 {offsets = [0, 128], sizes = [8, 128], strides = [1, 1]} : vector<8x512xf32> to vector<8x128xf32>
    %864 = arith.negf %863 : vector<8x128xf32>
    %865 = math.exp %864 : vector<8x128xf32>
    %cst_213 = arith.constant 1.000000e+00 : f32
    %866 = vector.broadcast %cst_213 : f32 to vector<8x128xf32>
    %867 = arith.addf %866, %865 : vector<8x128xf32>
    %868 = arith.divf %866, %867 : vector<8x128xf32>
    %869 = vector.extract_strided_slice %856 {offsets = [0, 256], sizes = [8, 128], strides = [1, 1]} : vector<8x512xf32> to vector<8x128xf32>
    %870 = math.tanh %869 : vector<8x128xf32>
    %871 = vector.extract_strided_slice %856 {offsets = [0, 384], sizes = [8, 128], strides = [1, 1]} : vector<8x512xf32> to vector<8x128xf32>
    %872 = arith.negf %871 : vector<8x128xf32>
    %873 = math.exp %872 : vector<8x128xf32>
    %cst_214 = arith.constant 1.000000e+00 : f32
    %874 = vector.broadcast %cst_214 : f32 to vector<8x128xf32>
    %875 = arith.addf %874, %873 : vector<8x128xf32>
    %876 = arith.divf %874, %875 : vector<8x128xf32>
    %877 = arith.mulf %868, %848 : vector<8x128xf32>
    %878 = arith.mulf %862, %870 : vector<8x128xf32>
    %879 = arith.addf %877, %878 : vector<8x128xf32>
    %880 = math.tanh %879 : vector<8x128xf32>
    %881 = arith.mulf %876, %880 : vector<8x128xf32>
    %c56_215 = arith.constant 56 : index
    %c0_216 = arith.constant 0 : index
    %882 = vector.load %arg16[%c56_215, %c0_216] : memref<64x128xf32, #tpu.memory_space<vmem>>, vector<8x128xf32>
    tpu.vector_store %arg16[%c56_215, %c0_216], %881 {strides = array<i32>} : memref<64x128xf32, #tpu.memory_space<vmem>>, vector<8x128xf32>,
    %c0_217 = arith.constant 0 : index
    %c0_218 = arith.constant 0 : index
    %883 = vector.load %arg16[%c0_217, %c0_218] : memref<64x128xf32, #tpu.memory_space<vmem>>, vector<64x128xf32>
    %884 = arith.truncf %883 : vector<64x128xf32> to vector<64x128xbf16>
    %c0_219 = arith.constant 0 : index
    %c0_220 = arith.constant 0 : index
    %885 = vector.load %arg11[%c0_219, %c0_220] : memref<128x256xbf16, #tpu.memory_space<vmem>>, vector<128x256xbf16>
    %cst_221 = arith.constant dense<0.000000e+00> : vector<64x256xf32>
    %886 = tpu.matmul %884, %885, %cst_221 {dimension_numbers = #tpu.dot_dimension_numbers<[1], [0], [0], [1], [0, 0, 1, 1], [], []>} : vector<64x128xbf16>, vector<128x256xbf16>, vector<64x256xf32> -> vector<64x256xf32>
    %c0_222 = arith.constant 0 : index
    %c0_223 = arith.constant 0 : index
    %887 = vector.load %arg12[%c0_222, %c0_223] : memref<1x256xf32, #tpu.memory_space<vmem>>, vector<1x256xf32>
    %888 = vector.broadcast %887 : vector<1x256xf32> to vector<64x256xf32>
    %889 = arith.addf %886, %888 : vector<64x256xf32>
    %c0_224 = arith.constant 0 : index
    %c0_225 = arith.constant 0 : index
    %890 = vector.load %arg13[%c0_224, %c0_225] : memref<64x256xf32, #tpu.memory_space<vmem>>, vector<64x256xf32>
    tpu.vector_store %arg13[%c0_224, %c0_225], %889 {strides = array<i32>} : memref<64x256xf32, #tpu.memory_space<vmem>>, vector<64x256xf32>,
    return
  }
}

</mosaic_0001>

<bundles_post_ra>
// kernel: generator_forward.1
= control target key start
LH: loop header
LB: loop body
LE: loop exit
PB: predicated region body
PF: predicated region fallthrough
CT: control target
= control target key end

     0   :  { %18 = vsyncpa [#allocation6], 0  ;;  %s11818_s0 = inlined_call_operand.vmem [shape: bf16[64,128], index: 0, kind: input, shape index: {}]   ;;  %s11819_s1 = inlined_call_operand.vmem [shape: bf16[64,128], index: 1, kind: input, shape index: {}]   ;;  %s11820_s2 = inlined_call_operand.vmem [shape: f32[8,1], index: 2, kind: input, shape index: {}]   ;;  %s11821_s3 = inlined_call_operand.vmem [shape: bf16[128,1024], index: 3, kind: input, shape index: {}]   ;;  %s11822_s4 = inlined_call_operand.hbm [shape: bf16[256,1024], index: 4, kind: input, shape index: {}]   ;;  %s11823_s5 = inlined_call_operand.vmem [shape: f32[1,1024], index: 5, kind: input, shape index: {}]   ;;  %s11824_s6 = inlined_call_operand.hbm [shape: bf16[512,256], index: 6, kind: input, shape index: {}]   ;;  %s11825_s7 = inlined_call_operand.hbm [shape: f32[1,256], index: 7, kind: input, shape index: {}]   ;;  %s11826_s8 = inlined_call_operand.hbm [shape: bf16[128,512], index: 8, kind: input, shape index: {}]   ;;  %s11827_s9 = inlined_call_operand.hbm [shape: bf16[128,512], index: 9, kind: input, shape index: {}]   ;;  %s11828_s10 = inlined_call_operand.hbm [shape: f32[1,512], index: 10, kind: input, shape index: {}]   ;;  %s11829_s11 = inlined_call_operand.vmem [shape: bf16[128,256], index: 11, kind: input, shape index: {}]   ;;  %s11830_s12 = inlined_call_operand.hbm [shape: f32[1,256], index: 12, kind: input, shape index: {}]   ;;  %s11831_s13 = inlined_call_operand.hbm [shape: f32[64,256], index: 13, kind: output, shape index: {}]  }
   0x1   :  { %19 = vsyncpa [#allocation9], 0 }
   0x2   :  { %20 = vsyncpa [#allocation12], 0 }
   0x3   :  { %21 = vsyncpa [#allocation15], 0 }
   0x4   :  { %22 = vsyncpa [#allocation7], 0  ;;  %s8768_s25 = smov [#allocation8]   ;;  %s8582_s29 = scalar_lea.hbm %s11824_s6, 8192 }
   0x5   :  { %s50_s26 = sshll.u32 %s8768_s25, 4  ;;  %p8583_p0 = scmp.ne.s32.totalorder %s11824_s6, %s8582_s29  ;;  %s51_s26 = int_to_ptr.vmem [resolvable:$true] %s50_s26 }
   0x6   :  { %p8586_p1 = scmp.lt.u32.totalorder %s8582_s29, %s11824_s6 }
   0x8   :  { %p8588_p2 = pnand %p8586_p1, %p8583_p0 }
   0xa   :  { %8591 = shalt.err (!%p8588_p2)
}
   0xb   :  { %s8592_s17 = scalar_lea.vmem %s51_s26, 8192  ;;  %p8597_p4 = scmp.lt.s32.totalorder %s51_s26, %s51_s26 }
   0xc   :  { %p8593_p3 = scmp.ne.s32.totalorder %s51_s26, %s8592_s17  ;;  %p8598_p5 = scmp.lt.s32.totalorder %s8592_s17, %s8592_s17 }
   0xe   :  { %p8599_p6 = por %p8598_p5, %p8597_p4 }
  0x10   :  { %p8600_p7 = pnand %p8599_p6, %p8593_p3 }
  0x12   :  { %8603 = shalt.err (!%p8600_p7)
}
  0x13   :  { %s8769_s18 = smov 128   ;;  %s8770_s19 = smov 8  }
  0x14   :  { %56 = dma.hbm_to_vmem [thread:$0]  %s11824_s6, 8192, %s51_s26, [#allocation9], %s8769_s18, %s8769_s18, %s8770_s19  }
  0x15   :  { %s8771_s22 = smov [#allocation11]   ;;  %s8604_s27 = scalar_lea.hbm %s11826_s8, 4096 }
  0x16   :  { %s72_s23 = sshll.u32 %s8771_s22, 4  ;;  %p8605_p8 = scmp.ne.s32.totalorder %s11826_s8, %s8604_s27  ;;  %s73_s23 = int_to_ptr.vmem [resolvable:$true] %s72_s23 }
  0x17   :  { %p8608_p9 = scmp.lt.u32.totalorder %s8604_s27, %s11826_s8 }
  0x19   :  { %p8610_p10 = pnand %p8608_p9, %p8605_p8 }
  0x1b   :  { %8613 = shalt.err (!%p8610_p10)
}
  0x1c   :  { %s8614_s15 = scalar_lea.vmem %s73_s23, 4096  ;;  %p8619_p12 = scmp.lt.s32.totalorder %s73_s23, %s73_s23 }
  0x1d   :  { %p8615_p11 = scmp.ne.s32.totalorder %s73_s23, %s8614_s15  ;;  %p8620_p13 = scmp.lt.s32.totalorder %s8614_s15, %s8614_s15 }
  0x1f   :  { %p8621_p0 = por %p8620_p13, %p8619_p12 }
  0x21   :  { %p8622_p1 = pnand %p8621_p0, %p8615_p11 }
  0x23   :  { %8625 = shalt.err (!%p8622_p1)
}
  0x24   :  { %s8772_s6 = smov 256   ;;  %s8773_s26 = smov 16  }
  0x25   :  { %78 = dma.hbm_to_vmem [thread:$0]  %s11826_s8, 4096, %s73_s23, [#allocation12], %s8772_s6, %s8772_s6, %s8773_s26  }
  0x26   :  { %s8774_s18 = smov [#allocation14]   ;;  %s8775_s20 = smov [#allocation5]  }
  0x27   :  { %s97_s19 = sshll.u32 %s8774_s18, 4  ;;  %s36_s21 = sshll.u32 %s8775_s20, 4  ;;  %s98_s19 = int_to_ptr.vmem [resolvable:$true] %s97_s19  ;;  %s8881_s21 = int_to_ptr.vmem [resolvable:$true] %s36_s21 }
  0x28   :  { %s8626_s25 = scalar_lea.hbm %s11828_s10, 64 }
  0x29   :  { %p8627_p2 = scmp.ne.s32.totalorder %s11828_s10, %s8626_s25  ;;  %p8630_p3 = scmp.lt.u32.totalorder %s8626_s25, %s11828_s10 }
  0x2b   :  { %p8632_p4 = pnand %p8630_p3, %p8627_p2 }
  0x2d   :  { %8635 = shalt.err (!%p8632_p4)
}
  0x2e   :  { %s8636_s8 = scalar_lea.vmem %s98_s19, 64  ;;  %p8641_p6 = scmp.lt.s32.totalorder %s98_s19, %s98_s19 }
  0x2f   :  { %p8637_p5 = scmp.ne.s32.totalorder %s98_s19, %s8636_s8  ;;  %p8642_p7 = scmp.lt.s32.totalorder %s8636_s8, %s8636_s8 }
  0x31   :  { %p8643_p8 = por %p8642_p7, %p8641_p6 }
  0x33   :  { %p8644_p9 = pnand %p8643_p8, %p8637_p5 }
  0x35   :  { %8647 = shalt.err (!%p8644_p9)
}
  0x36   :  { %100 = dma.hbm_to_vmem [thread:$0]  %s11828_s10, 64, %s98_s19, [#allocation15]  }
  0x37   :  { %s8648_s17 = scalar_lea.hbm %s11822_s4, 16384 }
  0x38   :  { %p8649_p10 = scmp.ne.s32.totalorder %s11822_s4, %s8648_s17  ;;  %p8652_p11 = scmp.lt.u32.totalorder %s8648_s17, %s11822_s4 }
  0x3a   :  { %p8654_p12 = pnand %p8652_p11, %p8649_p10 }
  0x3c   :  { %8657 = shalt.err (!%p8654_p12)
}
  0x3d   :  { %s8658_s25 = scalar_lea.vmem %s8881_s21, 16384  ;;  %p8663_p0 = scmp.lt.s32.totalorder %s8881_s21, %s8881_s21 }
  0x3e   :  { %p8659_p13 = scmp.ne.s32.totalorder %s8881_s21, %s8658_s25  ;;  %p8664_p1 = scmp.lt.s32.totalorder %s8658_s25, %s8658_s25 }
  0x40   :  { %p8665_p2 = por %p8664_p1, %p8663_p0 }
  0x42   :  { %p8666_p3 = pnand %p8665_p2, %p8659_p13 }
  0x44   :  { %8669 = shalt.err (!%p8666_p3)
}
  0x45   :  { %s8776_s10 = smov 512   ;;  %s8777_s19 = smov 32  }
  0x46   :  { %42 = dma.hbm_to_vmem [thread:$0]  %s11822_s4, 16384, %s8881_s21, [#allocation6], %s8776_s10, %s8776_s10, %s8777_s19  }
  0x47   :  { %s8778_s29 = smov [#allocation10]   ;;  %s8779_s8 = smov [#allocation13]  }
  0x48   :  { %s63_s30 = sshll.u32 %s8778_s29, 4  ;;  %s84_s23 = sshll.u32 %s8779_s8, 4  ;;  %s64_s30 = int_to_ptr.vmem [resolvable:$true] %s63_s30  ;;  %s8912_s23 = int_to_ptr.vmem [resolvable:$true] %s84_s23 }
  0x49   :  { %s8670_s16 = scalar_lea.hbm %s11825_s7, 32 }
  0x4a   :  { %p8671_p4 = scmp.ne.s32.totalorder %s11825_s7, %s8670_s16  ;;  %p8674_p5 = scmp.lt.u32.totalorder %s8670_s16, %s11825_s7 }
  0x4c   :  { %p8676_p6 = pnand %p8674_p5, %p8671_p4 }
  0x4e   :  { %8679 = shalt.err (!%p8676_p6)
}
  0x4f   :  { %s8680_s4 = scalar_lea.vmem %s64_s30, 32  ;;  %p8685_p8 = scmp.lt.s32.totalorder %s64_s30, %s64_s30 }
  0x50   :  { %p8681_p7 = scmp.ne.s32.totalorder %s64_s30, %s8680_s4  ;;  %p8686_p9 = scmp.lt.s32.totalorder %s8680_s4, %s8680_s4 }
  0x52   :  { %p8687_p10 = por %p8686_p9, %p8685_p8 }
  0x54   :  { %p8688_p11 = pnand %p8687_p10, %p8681_p7 }
  0x56   :  { %8691 = shalt.err (!%p8688_p11)
}
  0x57   :  { %66 = dma.hbm_to_vmem [thread:$0]  %s11825_s7, 32, %s64_s30, [#allocation9]  }
  0x58   :  { %s8692_s19 = scalar_lea.hbm %s11827_s9, 4096 }
  0x59   :  { %p8693_p12 = scmp.ne.s32.totalorder %s11827_s9, %s8692_s19  ;;  %p8696_p13 = scmp.lt.u32.totalorder %s8692_s19, %s11827_s9 }
  0x5b   :  { %p8698_p0 = pnand %p8696_p13, %p8693_p12 }
  0x5d   :  { %8701 = shalt.err (!%p8698_p0)
}
  0x5e   :  { %s8702_s14 = scalar_lea.vmem %s8912_s23, 4096  ;;  %p8707_p2 = scmp.lt.s32.totalorder %s8912_s23, %s8912_s23 }
  0x5f   :  { %p8703_p1 = scmp.ne.s32.totalorder %s8912_s23, %s8702_s14  ;;  %p8708_p3 = scmp.lt.s32.totalorder %s8702_s14, %s8702_s14 }
  0x61   :  { %p8709_p4 = por %p8708_p3, %p8707_p2 }
  0x63   :  { %p8710_p5 = pnand %p8709_p4, %p8703_p1 }
  0x65   :  { %8713 = shalt.err (!%p8710_p5)
}
  0x66   :  { %90 = dma.hbm_to_vmem [thread:$0]  %s11827_s9, 4096, %s8912_s23, [#allocation12], %s8772_s6, %s8772_s6, %s8773_s26  }
  0x67   :  { %s8780_s15 = smov [#allocation16]   ;;  %s8714_s20 = scalar_lea.hbm %s11830_s12, 32 }
  0x68   :  { %s109_s16 = sshll.u32 %s8780_s15, 4  ;;  %p8715_p6 = scmp.ne.s32.totalorder %s11830_s12, %s8714_s20  ;;  %s110_s16 = int_to_ptr.vmem [resolvable:$true] %s109_s16 }
  0x69   :  { %p8718_p7 = scmp.lt.u32.totalorder %s8714_s20, %s11830_s12 }
  0x6b   :  { %p8720_p8 = pnand %p8718_p7, %p8715_p6 }
  0x6d   :  { %8723 = shalt.err (!%p8720_p8)
}
  0x6e   :  { %s8724_s25 = scalar_lea.vmem %s110_s16, 32  ;;  %p8729_p10 = scmp.lt.s32.totalorder %s110_s16, %s110_s16 }
  0x6f   :  { %p8725_p9 = scmp.ne.s32.totalorder %s110_s16, %s8724_s25  ;;  %p8730_p11 = scmp.lt.s32.totalorder %s8724_s25, %s8724_s25 }
  0x71   :  { %p8731_p12 = por %p8730_p11, %p8729_p10 }
  0x73   :  { %p8732_p13 = pnand %p8731_p12, %p8725_p9 }
  0x75   :  { %8735 = shalt.err (!%p8732_p13)
}
  0x76   :  { %112 = dma.hbm_to_vmem [thread:$0]  %s11830_s12, 32, %s110_s16, [#allocation15]  }
  0x77   :  { %8758 = dma.done.wait [#allocation6], 16384  }
  0x78   :  { %8759 = vsyncadd [#allocation6], 4294950912 }
  0x79   :  { %8760 = dma.done.wait [#allocation9], 8224  }
  0x7a   :  { %8761 = vsyncadd [#allocation9], 4294959072 }
  0x7b   :  { %8762 = dma.done.wait [#allocation12], 8192  }
  0x7c   :  { %8763 = vsyncadd [#allocation12], 4294959104 }
  0x7d   :  { %8764 = dma.done.wait [#allocation15], 96  }
  0x7e   :  { %8765 = vsyncadd [#allocation15], 4294967200  ;;  %v11836_v0 = vmov 0   ;;  %v144_v1 = vld [vmem:[%s11821_s3] sm:$0xff]  ;;  %v146_v3 = vld [vmem:[%s11821_s3 + $0x10] sm:$0xff] }
  0x7f   :  { %626 = vmatprep.mubr.bf16.mxu1 %v11836_v0  ;;  %772 = vmatprep.mubr.bf16.mxu0 %v11836_v0  ;;  %v148_v2 = vld [vmem:[%s11821_s3 + $0x20] sm:$0xff]  ;;  %v150_v5 = vld [vmem:[%s11821_s3 + $0x30] sm:$0xff]  ;;  %v145_v63 = vld [vmem:[%s11821_s3 + $0x8] sm:$0xff] }
  0x80   :  { %7924 = vset.pattern.permute.xlu0 %v11836_v0  ;;  %7925 = vset.pattern.permute.xlu1 %v11836_v0  ;;  %v7243_v4 = vcombine.high %v144_v1, %v148_v2  ;;  %v7242_v6 = vcombine.low %v144_v1, %v148_v2  ;;  %v152_v7 = vld [vmem:[%s11821_s3 + $0x40] sm:$0xff]  ;;  %v7247_v9 = vcombine.high %v146_v3, %v150_v5  ;;  %v154_v12 = vld [vmem:[%s11821_s3 + $0x50] sm:$0xff]  ;;  %v149_v1 = vld [vmem:[%s11821_s3 + $0x28] sm:$0xff] }
  0x81   :  { %v156_v8 = vld [vmem:[%s11821_s3 + $0x60] sm:$0xff]  ;;  %v7246_v10 = vcombine.low %v146_v3, %v150_v5  ;;  %v158_v13 = vld [vmem:[%s11821_s3 + $0x70] sm:$0xff] }
  0x82   :  { %v7251_v11 = vcombine.high %v152_v7, %v156_v8  ;;  %v160_v14 = vld [vmem:[%s11821_s3 + $0x80] sm:$0xff]  ;;  %594 = vmatprep.subr.bf16.mxu1 %v7243_v4  ;;  %v7255_v15 = vcombine.high %v154_v12, %v158_v13  ;;  %v162_v17 = vld [vmem:[%s11821_s3 + $0x90] sm:$0xff]  ;;  %740 = vmatprep.subr.bf16.mxu0 %v7247_v9  ;;  %v7250_v19 = vcombine.low %v152_v7, %v156_v8  ;;  %v153_v8 = vld [vmem:[%s11821_s3 + $0x48] sm:$0xff] }
  0x83   :  { %v164_v16 = vld [vmem:[%s11821_s3 + $0xa0] sm:$0xff]  ;;  %v166_v18 = vld [vmem:[%s11821_s3 + $0xb0] sm:$0xff]  ;;  %595 = vmatpush1.bf16.msra.mxu1 %v7242_v6  ;;  %741 = vmatpush1.bf16.msra.mxu0 %v7246_v10  ;;  %v7254_v20 = vcombine.low %v154_v12, %v158_v13  ;;  %v7245_v6 = vcombine.high %v145_v63, %v149_v1  ;;  %v157_v9 = vld [vmem:[%s11821_s3 + $0x68] sm:$0xff]  ;;  %v7244_v13 = vcombine.low %v145_v63, %v149_v1 }
  0x84   :  { %596 = vmatprep.subr.bf16.mxu1 %v7251_v11  ;;  %v7259_v21 = vcombine.high %v160_v14, %v164_v16  ;;  %742 = vmatprep.subr.bf16.mxu0 %v7255_v15  ;;  %v7263_v22 = vcombine.high %v162_v17, %v166_v18  ;;  %v168_v23 = vld [vmem:[%s11821_s3 + $0xc0] sm:$0xff]  ;;  %v170_v25 = vld [vmem:[%s11821_s3 + $0xd0] sm:$0xff]  ;;  %v7258_v27 = vcombine.low %v160_v14, %v164_v16 }
  0x85   :  { %v172_v24 = vld [vmem:[%s11821_s3 + $0xe0] sm:$0xff]  ;;  %v174_v26 = vld [vmem:[%s11821_s3 + $0xf0] sm:$0xff]  ;;  %v7262_v28 = vcombine.low %v162_v17, %v166_v18  ;;  %v7253_v15 = vcombine.high %v153_v8, %v157_v9  ;;  %v161_v17 = vld [vmem:[%s11821_s3 + $0x88] sm:$0xff] }
  0x86   :  { %v7267_v29 = vcombine.high %v168_v23, %v172_v24  ;;  %v7271_v30 = vcombine.high %v170_v25, %v174_v26  ;;  %v176_v31 = vld [vmem:[%s11821_s3 + $0x100] sm:$0xff]  ;;  %v178_v33 = vld [vmem:[%s11821_s3 + $0x110] sm:$0xff]  ;;  %v7266_v35 = vcombine.low %v168_v23, %v172_v24  ;;  %v7270_v36 = vcombine.low %v170_v25, %v174_v26  ;;  %v165_v18 = vld [vmem:[%s11821_s3 + $0xa8] sm:$0xff] }
  0x87   :  { %597 = vmatpush1.bf16.msra.mxu1 %v7250_v19  ;;  %743 = vmatpush1.bf16.msra.mxu0 %v7254_v20  ;;  %v180_v32 = vld [vmem:[%s11821_s3 + $0x120] sm:$0xff]  ;;  %v182_v34 = vld [vmem:[%s11821_s3 + $0x130] sm:$0xff]  ;;  %v7261_v23 = vcombine.high %v161_v17, %v165_v18  ;;  %v169_v25 = vld [vmem:[%s11821_s3 + $0xc8] sm:$0xff] }
  0x88   :  { %598 = vmatprep.subr.bf16.mxu1 %v7259_v21  ;;  %744 = vmatprep.subr.bf16.mxu0 %v7263_v22  ;;  %v7275_v37 = vcombine.high %v176_v31, %v180_v32  ;;  %v184_v38 = vld [vmem:[%s11821_s3 + $0x140] sm:$0xff]  ;;  %v7279_v39 = vcombine.high %v178_v33, %v182_v34  ;;  %v186_v41 = vld [vmem:[%s11821_s3 + $0x150] sm:$0xff]  ;;  %v7274_v43 = vcombine.low %v176_v31, %v180_v32  ;;  %v173_v26 = vld [vmem:[%s11821_s3 + $0xe8] sm:$0xff] }
  0x89   :  { %v188_v40 = vld [vmem:[%s11821_s3 + $0x160] sm:$0xff]  ;;  %v190_v42 = vld [vmem:[%s11821_s3 + $0x170] sm:$0xff]  ;;  %v7278_v44 = vcombine.low %v178_v33, %v182_v34  ;;  %v7252_v21 = vcombine.low %v153_v8, %v157_v9  ;;  %v7269_v32 = vcombine.high %v169_v25, %v173_v26  ;;  %v177_v34 = vld [vmem:[%s11821_s3 + $0x108] sm:$0xff] }
  0x8a   :  { %v7283_v45 = vcombine.high %v184_v38, %v188_v40  ;;  %v192_v46 = vld [vmem:[%s11821_s3 + $0x180] sm:$0xff]  ;;  %v7287_v47 = vcombine.high %v186_v41, %v190_v42  ;;  %v194_v49 = vld [vmem:[%s11821_s3 + $0x190] sm:$0xff]  ;;  %v7282_v51 = vcombine.low %v184_v38, %v188_v40  ;;  %v7286_v52 = vcombine.low %v186_v41, %v190_v42  ;;  %v185_v42 = vld [vmem:[%s11821_s3 + $0x148] sm:$0xff] }
  0x8b   :  { %599 = vmatpush1.bf16.msra.mxu1 %v7258_v27  ;;  %745 = vmatpush1.bf16.msra.mxu0 %v7262_v28  ;;  %v196_v48 = vld [vmem:[%s11821_s3 + $0x1a0] sm:$0xff]  ;;  %v198_v50 = vld [vmem:[%s11821_s3 + $0x1b0] sm:$0xff]  ;;  %v9106_v27 = vld [vmem:[%s11818_s0 + $0x8] sm:$0xff]   ;;  %v7268_v38 = vcombine.low %v169_v25, %v173_v26 }
  0x8c   :  { %600 = vmatprep.subr.bf16.mxu1 %v7267_v29  ;;  %746 = vmatprep.subr.bf16.mxu0 %v7271_v30  ;;  %v7291_v53 = vcombine.high %v192_v46, %v196_v48  ;;  %v7295_v54 = vcombine.high %v194_v49, %v198_v50  ;;  %v200_v55 = vld [vmem:[%s11821_s3 + $0x1c0] sm:$0xff]  ;;  %v202_v57 = vld [vmem:[%s11821_s3 + $0x1d0] sm:$0xff]  ;;  %v7290_v59 = vcombine.low %v192_v46, %v196_v48  ;;  %v163_v25 = vld [vmem:[%s11821_s3 + $0x98] sm:$0xff] }
  0x8d   :  { %v204_v56 = vld [vmem:[%s11821_s3 + $0x1e0] sm:$0xff]  ;;  %v206_v58 = vld [vmem:[%s11821_s3 + $0x1f0] sm:$0xff]  ;;  %v7294_v60 = vcombine.low %v194_v49, %v198_v50  ;;  %v7260_v30 = vcombine.low %v161_v17, %v165_v18  ;;  %v159_v17 = vld [vmem:[%s11821_s3 + $0x78] sm:$0xff] }
  0x8e   :  { %v7299_v61 = vcombine.high %v200_v55, %v204_v56  ;;  %v7303_v62 = vcombine.high %v202_v57, %v206_v58  ;;  %v951_v2 = vld [vmem:[#allocation5] sm:$0xff]  ;;  %v7298_v4 = vcombine.low %v200_v55, %v204_v56  ;;  %v7302_v5 = vcombine.low %v202_v57, %v206_v58  ;;  %v167_v26 = vld [vmem:[%s11821_s3 + $0xb8] sm:$0xff] }
  0x8f   :  { %601 = vmatpush1.bf16.msra.mxu1 %v7266_v35  ;;  %747 = vmatpush1.bf16.msra.mxu0 %v7270_v36  ;;  %v955_v3 = vld [vmem:[#allocation5 + $0x20] sm:$0xff]  ;;  %v181_v35 = vld [vmem:[%s11821_s3 + $0x128] sm:$0xff] }
  0x90   :  { %602 = vmatprep.subr.bf16.mxu1 %v7275_v37  ;;  %748 = vmatprep.subr.bf16.mxu0 %v7279_v39  ;;  %v9064_v7 = vcombine.high %v951_v2, %v955_v3  ;;  %v9075_v10 = vld [vmem:[%s11818_s0] sm:$0xff]   ;;  %v9077_v14 = vcombine.low %v951_v2, %v955_v3  ;;  %v7277_v40 = vcombine.high %v177_v34, %v181_v35 }
  0x91   :  { %v959_v11 = vld [vmem:[#allocation5 + $0x40] sm:$0xff] }
  0x92   :  { %12090 = vst [vmem:[#allocation23_spill] sm:$0xff] %v9064_v7  ;;  %v963_v12 = vld [vmem:[#allocation5 + $0x60] sm:$0xff]  ;;  %12091 = vst [vmem:[#allocation24_spill] sm:$0xff] %v9077_v14 }
  0x93   :  { %603 = vmatpush1.bf16.msra.mxu1 %v7274_v43  ;;  %749 = vmatpush1.bf16.msra.mxu0 %v7278_v44  ;;  %v9080_v16 = vcombine.high %v959_v11, %v963_v12  ;;  %v967_v19 = vld [vmem:[#allocation5 + $0x80] sm:$0xff]  ;;  %v9091_v22 = vcombine.low %v959_v11, %v963_v12  ;;  %v189_v43 = vld [vmem:[%s11821_s3 + $0x168] sm:$0xff]  ;;  %v9139_v44 = vld [vmem:[%s11818_s0 + $0x10] sm:$0xff]  }
  0x94   :  { %604 = vmatprep.subr.bf16.mxu1 %v7283_v45  ;;  %750 = vmatprep.subr.bf16.mxu0 %v7287_v47  ;;  %v971_v20 = vld [vmem:[#allocation5 + $0xa0] sm:$0xff]  ;;  %v7276_v47 = vcombine.low %v177_v34, %v181_v35  ;;  %v7285_v49 = vcombine.high %v185_v42, %v189_v43  ;;  %v7284_v55 = vcombine.low %v185_v42, %v189_v43 }
  0x95   :  { %12092 = vst [vmem:[#allocation25_spill] sm:$0xff] %v9080_v16  ;;  %12093 = vst [vmem:[#allocation26_spill] sm:$0xff] %v9091_v22  ;;  %v9095_v24 = vcombine.high %v967_v19, %v971_v20  ;;  %v975_v28 = vld [vmem:[#allocation5 + $0xc0] sm:$0xff]  ;;  %v9110_v31 = vcombine.low %v967_v19, %v971_v20 }
  0x96   :  { %v979_v29 = vld [vmem:[#allocation5 + $0xe0] sm:$0xff] }
  0x97   :  { %605 = vmatpush1.bf16.msra.mxu1 %v7282_v51  ;;  %751 = vmatpush1.bf16.msra.mxu0 %v7286_v52  ;;  %12094 = vst [vmem:[#allocation27_spill] sm:$0xff] %v9095_v24  ;;  %12095 = vst [vmem:[#allocation28_spill] sm:$0xff] %v9110_v31  ;;  %v9113_v33 = vcombine.high %v975_v28, %v979_v29  ;;  %v983_v36 = vld [vmem:[#allocation5 + $0x100] sm:$0xff]  ;;  %v9124_v39 = vcombine.low %v975_v28, %v979_v29  ;;  %v193_v51 = vld [vmem:[%s11821_s3 + $0x188] sm:$0xff] }
  0x98   :  { %606 = vmatprep.subr.bf16.mxu1 %v7291_v53  ;;  %752 = vmatprep.subr.bf16.mxu0 %v7295_v54  ;;  %v987_v37 = vld [vmem:[#allocation5 + $0x120] sm:$0xff]  ;;  %v197_v52 = vld [vmem:[%s11821_s3 + $0x1a8] sm:$0xff] }
  0x99   :  { %12096 = vst [vmem:[#allocation29_spill] sm:$0xff] %v9113_v33  ;;  %12097 = vst [vmem:[#allocation30_spill] sm:$0xff] %v9124_v39  ;;  %v9127_v41 = vcombine.high %v983_v36, %v987_v37  ;;  %v991_v45 = vld [vmem:[#allocation5 + $0x140] sm:$0xff]  ;;  %v9143_v48 = vcombine.low %v983_v36, %v987_v37  ;;  %v7293_v57 = vcombine.high %v193_v51, %v197_v52  ;;  %v171_v36 = vld [vmem:[%s11821_s3 + $0xd8] sm:$0xff] }
  0x9a   :  { %v995_v46 = vld [vmem:[#allocation5 + $0x160] sm:$0xff]  ;;  %v7292_v1 = vcombine.low %v193_v51, %v197_v52  ;;  %v175_v37 = vld [vmem:[%s11821_s3 + $0xf8] sm:$0xff] }
  0x9b   :  { %607 = vmatpush1.bf16.msra.mxu1 %v7290_v59  ;;  %753 = vmatpush1.bf16.msra.mxu0 %v7294_v60  ;;  %12098 = vst [vmem:[#allocation31_spill] sm:$0xff] %v9127_v41  ;;  %12099 = vst [vmem:[#allocation32_spill] sm:$0xff] %v9143_v48  ;;  %v9146_v50 = vcombine.high %v991_v45, %v995_v46  ;;  %v999_v53 = vld [vmem:[#allocation5 + $0x180] sm:$0xff]  ;;  %v9157_v56 = vcombine.low %v991_v45, %v995_v46  ;;  %v201_v59 = vld [vmem:[%s11821_s3 + $0x1c8] sm:$0xff] }
  0x9c   :  { %608 = vmatprep.subr.bf16.mxu1 %v7299_v61  ;;  %754 = vmatprep.subr.bf16.mxu0 %v7303_v62  ;;  %v1003_v54 = vld [vmem:[#allocation5 + $0x1a0] sm:$0xff]  ;;  %v205_v60 = vld [vmem:[%s11821_s3 + $0x1e8] sm:$0xff]  ;;  %v9172_v61 = vld [vmem:[%s11818_s0 + $0x18] sm:$0xff]   ;;  %v7264_v46 = vcombine.low %v163_v25, %v167_v26  ;;  %v7273_v52 = vcombine.high %v171_v36, %v175_v37 }
  0x9d   :  { %12100 = vst [vmem:[#allocation33_spill] sm:$0xff] %v9146_v50  ;;  %12101 = vst [vmem:[#allocation34_spill] sm:$0xff] %v9157_v56  ;;  %v9160_v58 = vcombine.high %v999_v53, %v1003_v54  ;;  %v1007_v62 = vld [vmem:[#allocation5 + $0x1c0] sm:$0xff]  ;;  %v9176_v2 = vcombine.low %v999_v53, %v1003_v54  ;;  %v7301_v3 = vcombine.high %v201_v59, %v205_v60 }
  0x9e   :  { %v1011_v63 = vld [vmem:[#allocation5 + $0x1e0] sm:$0xff]  ;;  %v7300_v11 = vcombine.low %v201_v59, %v205_v60  ;;  %v187_v59 = vld [vmem:[%s11821_s3 + $0x158] sm:$0xff] }
  0x9f   :  { %609 = vmatpush1.bf16.msra.mxu1 %v7298_v4  ;;  %755 = vmatpush1.bf16.msra.mxu0 %v7302_v5  ;;  %12102 = vst [vmem:[#allocation35_spill] sm:$0xff] %v9160_v58  ;;  %12103 = vst [vmem:[#allocation36_spill] sm:$0xff] %v9176_v2  ;;  %v9179_v4 = vcombine.high %v1007_v62, %v1011_v63  ;;  %v147_v5 = vld [vmem:[%s11821_s3 + $0x18] sm:$0xff]  ;;  %v1015_v8 = vld [vmem:[#allocation5 + $0x200] sm:$0xff]  ;;  %v9190_v12 = vcombine.low %v1007_v62, %v1011_v63 }
  0xa0   :  { %667 = vmatprep.subr.bf16.mxu1 %v7245_v6  ;;  %1719 = vmatprep.subr.bf16.mxu0 %v9064_v7  ;;  %v151_v6 = vld [vmem:[%s11821_s3 + $0x38] sm:$0xff]  ;;  %v1019_v9 = vld [vmem:[#allocation5 + $0x220] sm:$0xff] }
  0xa1   :  { %12104 = vst [vmem:[#allocation37_spill] sm:$0xff] %v9179_v4  ;;  %12105 = vst [vmem:[#allocation38_spill] sm:$0xff] %v9190_v12  ;;  %v9199_v18 = vcombine.high %v1015_v8, %v1019_v9  ;;  %v1023_v19 = vld [vmem:[#allocation5 + $0x240] sm:$0xff]  ;;  %v9210_v28 = vcombine.low %v1015_v8, %v1019_v9  ;;  %v191_v60 = vld [vmem:[%s11821_s3 + $0x178] sm:$0xff] }
  0xa2   :  { %627 = vmatmul.mubr.bf16.vlgmr.msra.gmra.mrb[0].mxu1 %v9075_v10  ;;  %773 = vmatmul.mubr.bf16.vlgmr.msra.gmra.mrb[0].mxu0 %v9075_v10  ;;  %v1027_v20 = vld [vmem:[#allocation5 + $0x260] sm:$0xff]  ;;  %v195_v8 = vld [vmem:[%s11821_s3 + $0x198] sm:$0xff] }
  0xa3   :  { %668 = vmatpush1.bf16.msra.mxu1 %v7244_v13  ;;  %1720 = vmatpush1.bf16.msra.mxu0 %v9077_v14  ;;  %v7249_v13 = vcombine.high %v147_v5, %v151_v6  ;;  %12106 = vst [vmem:[#allocation39_spill] sm:$0xff] %v9199_v18  ;;  %12107 = vst [vmem:[#allocation40_spill] sm:$0xff] %v9210_v28  ;;  %v9213_v34 = vcombine.high %v1023_v19, %v1027_v20  ;;  %v1039_v42 = vld [vmem:[#allocation5 + $0x2c0] sm:$0xff]  ;;  %v199_v9 = vld [vmem:[%s11821_s3 + $0x1b8] sm:$0xff] }
  0xa4   :  { %669 = vmatprep.subr.bf16.mxu1 %v7253_v15  ;;  %1721 = vmatprep.subr.bf16.mxu0 %v9080_v16  ;;  %v155_v15 = vld [vmem:[%s11821_s3 + $0x58] sm:$0xff]  ;;  %v1043_v43 = vld [vmem:[#allocation5 + $0x2e0] sm:$0xff] }
  0xa5   :  { %636 = vmatprep.mubr.bf16.mxu1 %v11836_v0  ;;  %782 = vmatprep.mubr.bf16.mxu0 %v11836_v0  ;;  %v7257_v29 = vcombine.high %v155_v15, %v159_v17  ;;  %12108 = vst [vmem:[#allocation41_spill] sm:$0xff] %v9213_v34  ;;  %v7256_v35 = vcombine.low %v155_v15, %v159_v17  ;;  %v1047_v53 = vld [vmem:[#allocation5 + $0x300] sm:$0xff] }
  0xa6   :  { %v1051_v54 = vld [vmem:[#allocation5 + $0x320] sm:$0xff]  ;;  %v9250_v62 = vcombine.low %v1039_v42, %v1043_v43 }
  0xa7   :  { %670 = vmatpush1.bf16.msra.mxu1 %v7252_v21  ;;  %1722 = vmatpush1.bf16.msra.mxu0 %v9091_v22  ;;  %v11832_v21 = vmov 0.0|0.0   ;;  %v1063_v15 = vld [vmem:[#allocation5 + $0x380] sm:$0xff] }
  0xa8   :  { %671 = vmatprep.subr.bf16.mxu1 %v7261_v23  ;;  %1723 = vmatprep.subr.bf16.mxu0 %v9095_v24  ;;  %v7248_v23 = vcombine.low %v147_v5, %v151_v6  ;;  %12113 = vst [vmem:[#allocation46_spill] sm:$0xff] %v9250_v62  ;;  %v9253_v5 = vcombine.high %v1047_v53, %v1051_v54  ;;  %v1067_v17 = vld [vmem:[#allocation5 + $0x3a0] sm:$0xff] }
  0xaa   :  { %637 = vmatmul.mubr.bf16.gmra.mrb[4].mxu1 %v9106_v27  ;;  %783 = vmatmul.mubr.bf16.gmra.mrb[4].mxu0 %v9106_v27  ;;  %12114 = vst [vmem:[#allocation47_spill] sm:$0xff] %v9253_v5 }
  0xab   :  { %672 = vmatpush1.bf16.msra.mxu1 %v7260_v30  ;;  %646 = vmatprep.mubr.bf16.mxu1 %v11836_v0  ;;  %v1031_v30 = vld [vmem:[#allocation5 + $0x280] sm:$0xff] }
  0xac   :  { %1724 = vmatpush1.bf16.msra.mxu0 %v9110_v31  ;;  %673 = vmatprep.subr.bf16.mxu1 %v7269_v32  ;;  %v1035_v32 = vld [vmem:[#allocation5 + $0x2a0] sm:$0xff] }
  0xad   :  { %1725 = vmatprep.subr.bf16.mxu0 %v9113_v33  ;;  %792 = vmatprep.mubr.bf16.mxu0 %v11836_v0  ;;  %v9227_v45 = vcombine.high %v1031_v30, %v1035_v32  ;;  %v9236_v51 = vcombine.low %v1031_v30, %v1035_v32  ;;  %v1071_v30 = vld [vmem:[#allocation5 + $0x3c0] sm:$0xff] }
  0xae   :  { %v1075_v32 = vld [vmem:[#allocation5 + $0x3e0] sm:$0xff] }
  0xaf   :  { %674 = vmatpush1.bf16.msra.mxu1 %v7268_v38  ;;  %v9224_v38 = vcombine.low %v1023_v19, %v1027_v20  ;;  %12110 = vst [vmem:[#allocation43_spill] sm:$0xff] %v9227_v45  ;;  %12111 = vst [vmem:[#allocation44_spill] sm:$0xff] %v9236_v51  ;;  %v7288_v20 = vcombine.low %v187_v59, %v191_v60 }
  0xb0   :  { %1726 = vmatpush1.bf16.msra.mxu0 %v9124_v39  ;;  %675 = vmatprep.subr.bf16.mxu1 %v7277_v40  ;;  %v7265_v40 = vcombine.high %v163_v25, %v167_v26  ;;  %v207_v25 = vld [vmem:[%s11821_s3 + $0x1f8] sm:$0xff] }
  0xb1   :  { %1727 = vmatprep.subr.bf16.mxu0 %v9127_v41  ;;  %12109 = vst [vmem:[#allocation42_spill] sm:$0xff] %v9224_v38 }
  0xb2   :  { %647 = vmatmul.mubr.bf16.gmra.mrb[8].mxu1 %v9139_v44  ;;  %793 = vmatmul.mubr.bf16.gmra.mrb[8].mxu0 %v9139_v44 }
  0xb3   :  { %676 = vmatpush1.bf16.msra.mxu1 %v7276_v47  ;;  %656 = vmatprep.mubr.bf16.mxu1 %v11836_v0  ;;  %v179_v47 = vld [vmem:[%s11821_s3 + $0x118] sm:$0xff] }
  0xb4   :  { %1728 = vmatpush1.bf16.msra.mxu0 %v9143_v48  ;;  %677 = vmatprep.subr.bf16.mxu1 %v7285_v49  ;;  %v183_v49 = vld [vmem:[%s11821_s3 + $0x138] sm:$0xff] }
  0xb5   :  { %1729 = vmatprep.subr.bf16.mxu0 %v9146_v50  ;;  %802 = vmatprep.mubr.bf16.mxu0 %v11836_v0  ;;  %v7281_v63 = vcombine.high %v179_v47, %v183_v49  ;;  %v7280_v6 = vcombine.low %v179_v47, %v183_v49  ;;  %v957_v47 = vld [vmem:[#allocation5 + $0x30] sm:$0xff]  ;;  %v9285_v49 = vcombine.high %v1071_v30, %v1075_v32 }
  0xb7   :  { %678 = vmatpush1.bf16.msra.mxu1 %v7284_v55  ;;  %v9239_v55 = vcombine.high %v1039_v42, %v1043_v43  ;;  %v9282_v42 = vcombine.low %v1063_v15, %v1067_v17  ;;  %12120 = vst [vmem:[#allocation53_spill] sm:$0xff] %v9285_v49 }
  0xb8   :  { %1730 = vmatpush1.bf16.msra.mxu0 %v9157_v56  ;;  %679 = vmatprep.subr.bf16.mxu1 %v7293_v57  ;;  %v7272_v57 = vcombine.low %v171_v36, %v175_v37  ;;  %v7296_v36 = vcombine.low %v195_v8, %v199_v9  ;;  %v952_v37 = vld [vmem:[#allocation5 + $0x8] sm:$0xff] }
  0xb9   :  { %1731 = vmatprep.subr.bf16.mxu0 %v9160_v58  ;;  %12112 = vst [vmem:[#allocation45_spill] sm:$0xff] %v9239_v55  ;;  %12119 = vst [vmem:[#allocation52_spill] sm:$0xff] %v9282_v42 }
  0xba   :  { %657 = vmatmul.mubr.bf16.gmra.mrb[12].mxu1 %v9172_v61  ;;  %803 = vmatmul.mubr.bf16.gmra.mrb[12].mxu0 %v9172_v61 }
  0xbb   :  { %680 = vmatpush1.bf16.msra.mxu1 %v7292_v1  ;;  %699 = vmatprep.mubr.bf16.mxu1 %v11836_v0  ;;  %v1055_v1 = vld [vmem:[#allocation5 + $0x340] sm:$0xff] }
  0xbc   :  { %1732 = vmatpush1.bf16.msra.mxu0 %v9176_v2  ;;  %681 = vmatprep.subr.bf16.mxu1 %v7301_v3  ;;  %v1059_v3 = vld [vmem:[#allocation5 + $0x360] sm:$0xff] }
  0xbd   :  { %1733 = vmatprep.subr.bf16.mxu0 %v9179_v4  ;;  %1751 = vmatprep.mubr.bf16.mxu0 %v11832_v21  ;;  %v9265_v19 = vcombine.high %v1055_v1, %v1059_v3  ;;  %v9276_v26 = vcombine.low %v1055_v1, %v1059_v3 }
  0xbf   :  { %682 = vmatpush1.bf16.msra.mxu1 %v7300_v11  ;;  %v9262_v11 = vcombine.low %v1047_v53, %v1051_v54  ;;  %12116 = vst [vmem:[#allocation49_spill] sm:$0xff] %v9265_v19  ;;  %12117 = vst [vmem:[#allocation50_spill] sm:$0xff] %v9276_v26  ;;  %v960_v53 = vld [vmem:[#allocation5 + $0x48] sm:$0xff] }
  0xc0   :  { %1734 = vmatpush1.bf16.msra.mxu0 %v9190_v12  ;;  %813 = vmatprep.subr.bf16.mxu1 %v7249_v13  ;;  %v7289_v13 = vcombine.high %v187_v59, %v191_v60  ;;  %v964_v54 = vld [vmem:[#allocation5 + $0x68] sm:$0xff]  ;;  %v961_v60 = vld [vmem:[#allocation5 + $0x50] sm:$0xff] }
  0xc1   :  { %1735 = vmatprep.subr.bf16.mxu0 %v9199_v18  ;;  %12115 = vst [vmem:[#allocation48_spill] sm:$0xff] %v9262_v11 }
  0xc2   :  { %700 = vmatmul.mubr.bf16.vlgmr.msra.gmra.mrb[16].mxu1 %v9075_v10 }
  0xc3   :  { %814 = vmatpush1.bf16.msra.mxu1 %v7248_v23  ;;  %709 = vmatprep.mubr.bf16.mxu1 %v11836_v0  ;;  %v203_v23 = vld [vmem:[%s11821_s3 + $0x1d8] sm:$0xff] }
  0xc4   :  { %1736 = vmatpush1.bf16.msra.mxu0 %v9210_v28  ;;  %815 = vmatprep.subr.bf16.mxu1 %v7257_v29  ;;  %v7297_v29 = vcombine.high %v195_v8, %v199_v9  ;;  %v7305_v43 = vcombine.high %v203_v23, %v207_v25  ;;  %v972_v8 = vld [vmem:[#allocation5 + $0xa8] sm:$0xff] }
  0xc5   :  { %1737 = vmatprep.subr.bf16.mxu0 %v9213_v34 }
  0xc7   :  { %816 = vmatpush1.bf16.msra.mxu1 %v7256_v35  ;;  %v9279_v35 = vcombine.high %v1063_v15, %v1067_v17  ;;  %v969_v15 = vld [vmem:[#allocation5 + $0x90] sm:$0xff] }
  0xc8   :  { %1738 = vmatpush1.bf16.msra.mxu0 %v9224_v38  ;;  %817 = vmatprep.subr.bf16.mxu1 %v7265_v40  ;;  %v956_v40 = vld [vmem:[#allocation5 + $0x28] sm:$0xff] }
  0xc9   :  { %1739 = vmatprep.subr.bf16.mxu0 %v9227_v45  ;;  %12118 = vst [vmem:[#allocation51_spill] sm:$0xff] %v9279_v35  ;;  %v9292_v59 = vcombine.high %v952_v37, %v956_v40  ;;  %v9297_v3 = vcombine.low %v952_v37, %v956_v40  ;;  %v981_v37 = vld [vmem:[#allocation5 + $0xf0] sm:$0xff] }
  0xca   :  { %710 = vmatmul.mubr.bf16.gmra.mrb[20].mxu1 %v9106_v27 }
  0xcb   :  { %818 = vmatpush1.bf16.msra.mxu1 %v7264_v46  ;;  %719 = vmatprep.mubr.bf16.mxu1 %v11836_v0  ;;  %v953_v46 = vld [vmem:[#allocation5 + $0x10] sm:$0xff]  ;;  %12122 = vst [vmem:[#allocation55_spill] sm:$0xff] %v9292_v59  ;;  %12124 = vst [vmem:[#allocation57_spill] sm:$0xff] %v9297_v3 }
  0xcc   :  { %1740 = vmatpush1.bf16.msra.mxu0 %v9236_v51  ;;  %819 = vmatprep.subr.bf16.mxu1 %v7273_v52  ;;  %v7304_v52 = vcombine.low %v203_v23, %v207_v25  ;;  %v9295_v1 = vcombine.high %v953_v46, %v957_v47  ;;  %v9301_v9 = vcombine.low %v953_v46, %v957_v47  ;;  %v976_v25 = vld [vmem:[#allocation5 + $0xc8] sm:$0xff] }
  0xcd   :  { %1741 = vmatprep.subr.bf16.mxu0 %v9239_v55  ;;  %v9311_v23 = vcombine.low %v960_v53, %v964_v54  ;;  %v988_v46 = vld [vmem:[#allocation5 + $0x128] sm:$0xff] }
  0xce   :  { %12123 = vst [vmem:[#allocation56_spill] sm:$0xff] %v9295_v1  ;;  %12125 = vst [vmem:[#allocation58_spill] sm:$0xff] %v9301_v9 }
  0xcf   :  { %820 = vmatpush1.bf16.msra.mxu1 %v7272_v57  ;;  %v9290_v57 = vcombine.low %v1071_v30, %v1075_v32  ;;  %12128 = vst [vmem:[#allocation61_spill] sm:$0xff] %v9311_v23 }
  0xd0   :  { %1742 = vmatpush1.bf16.msra.mxu0 %v9250_v62  ;;  %821 = vmatprep.subr.bf16.mxu1 %v7281_v63  ;;  %v965_v63 = vld [vmem:[#allocation5 + $0x70] sm:$0xff] }
  0xd1   :  { %1743 = vmatprep.subr.bf16.mxu0 %v9253_v5  ;;  %12121 = vst [vmem:[#allocation54_spill] sm:$0xff] %v9290_v57  ;;  %v9306_v17 = vcombine.high %v961_v60, %v965_v63  ;;  %v9315_v30 = vcombine.low %v961_v60, %v965_v63 }
  0xd2   :  { %720 = vmatmul.mubr.bf16.gmra.mrb[24].mxu1 %v9139_v44 }
  0xd3   :  { %822 = vmatpush1.bf16.msra.mxu1 %v7280_v6  ;;  %729 = vmatprep.mubr.bf16.mxu1 %v11836_v0  ;;  %v968_v6 = vld [vmem:[#allocation5 + $0x88] sm:$0xff]  ;;  %12127 = vst [vmem:[#allocation60_spill] sm:$0xff] %v9306_v17  ;;  %12129 = vst [vmem:[#allocation62_spill] sm:$0xff] %v9315_v30 }
  0xd4   :  { %1744 = vmatpush1.bf16.msra.mxu0 %v9262_v11  ;;  %823 = vmatprep.subr.bf16.mxu1 %v7289_v13  ;;  %v9303_v13 = vcombine.high %v960_v53, %v964_v54  ;;  %v9317_v32 = vcombine.high %v968_v6, %v972_v8  ;;  %v9325_v40 = vcombine.low %v968_v6, %v972_v8  ;;  %v985_v53 = vld [vmem:[#allocation5 + $0x110] sm:$0xff]  ;;  %v992_v6 = vld [vmem:[#allocation5 + $0x148] sm:$0xff] }
  0xd5   :  { %1745 = vmatprep.subr.bf16.mxu0 %v9265_v19  ;;  %v989_v54 = vld [vmem:[#allocation5 + $0x130] sm:$0xff]  ;;  %v996_v8 = vld [vmem:[#allocation5 + $0x168] sm:$0xff] }
  0xd6   :  { %12126 = vst [vmem:[#allocation59_spill] sm:$0xff] %v9303_v13  ;;  %12130 = vst [vmem:[#allocation63_spill] sm:$0xff] %v9317_v32 }
  0xd7   :  { %824 = vmatpush1.bf16.msra.mxu1 %v7288_v20  ;;  %v973_v20 = vld [vmem:[#allocation5 + $0xb0] sm:$0xff]  ;;  %12132 = vst [vmem:[#allocation65_spill] sm:$0xff] %v9325_v40 }
  0xd8   :  { %1746 = vmatpush1.bf16.msra.mxu0 %v9276_v26  ;;  %825 = vmatprep.subr.bf16.mxu1 %v7297_v29  ;;  %v980_v29 = vld [vmem:[#allocation5 + $0xe8] sm:$0xff]  ;;  %v9329_v47 = vcombine.low %v969_v15, %v973_v20 }
  0xd9   :  { %1747 = vmatprep.subr.bf16.mxu0 %v9279_v35  ;;  %v9338_v63 = vcombine.low %v976_v25, %v980_v29 }
  0xda   :  { %730 = vmatmul.mubr.bf16.gmra.mrb[28].mxu1 %v9172_v61  ;;  %12133 = vst [vmem:[#allocation66_spill] sm:$0xff] %v9329_v47 }
  0xdb   :  { %826 = vmatpush1.bf16.msra.mxu1 %v7296_v36  ;;  %845 = vmatprep.mubr.bf16.mxu1 %v11836_v0  ;;  %v977_v36 = vld [vmem:[#allocation5 + $0xd0] sm:$0xff]  ;;  %12136 = vst [vmem:[#allocation69_spill] sm:$0xff] %v9338_v63 }
  0xdc   :  { %1748 = vmatpush1.bf16.msra.mxu0 %v9282_v42  ;;  %827 = vmatprep.subr.bf16.mxu1 %v7305_v43  ;;  %v984_v43 = vld [vmem:[#allocation5 + $0x108] sm:$0xff]  ;;  %v9334_v60 = vcombine.high %v977_v36, %v981_v37 }
  0xdd   :  { %1749 = vmatprep.subr.bf16.mxu0 %v9285_v49 }
  0xde   :  { %12135 = vst [vmem:[#allocation68_spill] sm:$0xff] %v9334_v60 }
  0xdf   :  { %828 = vmatpush1.bf16.msra.mxu1 %v7304_v52  ;;  %v9331_v52 = vcombine.high %v976_v25, %v980_v29  ;;  %v9351_v25 = vcombine.low %v984_v43, %v988_v46  ;;  %v1000_v29 = vld [vmem:[#allocation5 + $0x188] sm:$0xff] }
  0xe0   :  { %1750 = vmatpush1.bf16.msra.mxu0 %v9290_v57  ;;  %1760 = vmatprep.subr.bf16.mxu1 %v9292_v59 }
  0xe1   :  { %1801 = vmatprep.subr.bf16.mxu0 %v9295_v1  ;;  %12134 = vst [vmem:[#allocation67_spill] sm:$0xff] %v9331_v52  ;;  %12140 = vst [vmem:[#allocation73_spill] sm:$0xff] %v9351_v25 }
  0xe2   :  { %846 = vmatmul.mubr.bf16.vlgmr.msra.gmra.mrb[32].mxu1 %v9075_v10  ;;  %v9320_v10 = vcombine.high %v969_v15, %v973_v20  ;;  %v9343_v15 = vcombine.low %v977_v36, %v981_v37  ;;  %v9345_v20 = vcombine.high %v984_v43, %v988_v46  ;;  %v9355_v36 = vcombine.low %v985_v53, %v989_v54  ;;  %v1008_v46 = vld [vmem:[#allocation5 + $0x1c8] sm:$0xff] }
  0xe3   :  { %1752 = vmatmul.mubr.bf16.vlgmr.msra.gmra.mrb[16].mxu0 %v11832_v21  ;;  %1761 = vmatpush1.bf16.msra.mxu1 %v9297_v3  ;;  %v9357_v37 = vcombine.high %v992_v6, %v996_v8  ;;  %v9364_v43 = vcombine.low %v992_v6, %v996_v8  ;;  %v1016_v8 = vld [vmem:[#allocation5 + $0x208] sm:$0xff] }
  0xe4   :  { %1802 = vmatpush1.bf16.msra.mxu0 %v9301_v9  ;;  %1762 = vmatprep.subr.bf16.mxu1 %v9303_v13  ;;  %12131 = vst [vmem:[#allocation64_spill] sm:$0xff] %v9320_v10  ;;  %12137 = vst [vmem:[#allocation70_spill] sm:$0xff] %v9343_v15  ;;  %v1013_v9 = vld [vmem:[#allocation5 + $0x1f0] sm:$0xff] }
  0xe5   :  { %1803 = vmatprep.subr.bf16.mxu0 %v9306_v17  ;;  %855 = vmatprep.mubr.bf16.mxu1 %v11836_v0  ;;  %12138 = vst [vmem:[#allocation71_spill] sm:$0xff] %v9345_v20  ;;  %12141 = vst [vmem:[#allocation74_spill] sm:$0xff] %v9355_v36  ;;  %v12145_v17 = vmov 0  }
  0xe6   :  { %1833 = vmatprep.mubr.bf16.mxu0 %v11832_v21  ;;  %v993_v21 = vld [vmem:[#allocation5 + $0x150] sm:$0xff]  ;;  %12142 = vst [vmem:[#allocation75_spill] sm:$0xff] %v9357_v37  ;;  %12144 = vst [vmem:[#allocation77_spill] sm:$0xff] %v9364_v43 }
  0xe7   :  { %1763 = vmatpush1.bf16.msra.mxu1 %v9311_v23 }
  0xe8   :  { %1804 = vmatpush1.bf16.msra.mxu0 %v9315_v30  ;;  %1764 = vmatprep.subr.bf16.mxu1 %v9317_v32  ;;  %v1005_v30 = vld [vmem:[#allocation5 + $0x1b0] sm:$0xff] }
  0xe9   :  { %1805 = vmatprep.subr.bf16.mxu0 %v9320_v10  ;;  %v997_v10 = vld [vmem:[#allocation5 + $0x170] sm:$0xff] }
  0xea   :  { %856 = vmatmul.mubr.bf16.gmra.mrb[36].mxu1 %v9106_v27  ;;  %v9348_v27 = vcombine.high %v985_v53, %v989_v54  ;;  %v9369_v53 = vcombine.low %v993_v21, %v997_v10 }
  0xeb   :  { %1765 = vmatpush1.bf16.msra.mxu1 %v9325_v40  ;;  %865 = vmatprep.mubr.bf16.mxu1 %v11836_v0  ;;  %v1004_v0 = vld [vmem:[#allocation5 + $0x1a8] sm:$0xff] }
  0xec   :  { %1806 = vmatpush1.bf16.msra.mxu0 %v9329_v47  ;;  %1766 = vmatprep.subr.bf16.mxu1 %v9331_v52  ;;  %12139 = vst [vmem:[#allocation72_spill] sm:$0xff] %v9348_v27  ;;  %v1001_v47 = vld [vmem:[#allocation5 + $0x190] sm:$0xff]  ;;  %12146 = vst [vmem:[#allocation78_spill] sm:$0xff] %v9369_v53  ;;  %v9371_v54 = vcombine.high %v1000_v29, %v1004_v0  ;;  %v9377_v6 = vcombine.low %v1000_v29, %v1004_v0  ;;  %v1024_v29 = vld [vmem:[#allocation5 + $0x248] sm:$0xff] }
  0xed   :  { %1807 = vmatprep.subr.bf16.mxu0 %v9334_v60  ;;  %v9360_v60 = vcombine.high %v993_v21, %v997_v10  ;;  %v9381_v21 = vcombine.low %v1001_v47, %v1005_v30 }
  0xee   :  { %12147 = vst [vmem:[#allocation79_spill] sm:$0xff] %v9371_v54  ;;  %12149 = vst [vmem:[#allocation81_spill] sm:$0xff] %v9377_v6 }
  0xef   :  { %1767 = vmatpush1.bf16.msra.mxu1 %v9338_v63  ;;  %12143 = vst [vmem:[#allocation76_spill] sm:$0xff] %v9360_v60  ;;  %12150 = vst [vmem:[#allocation82_spill] sm:$0xff] %v9381_v21  ;;  %v1053_v63 = vld [vmem:[#allocation5 + $0x330] sm:$0xff] }
  0xf0   :  { %1808 = vmatpush1.bf16.msra.mxu0 %v9343_v15  ;;  %1768 = vmatprep.subr.bf16.mxu1 %v9345_v20  ;;  %v1012_v15 = vld [vmem:[#allocation5 + $0x1e8] sm:$0xff]  ;;  %v1049_v20 = vld [vmem:[#allocation5 + $0x310] sm:$0xff] }
  0xf1   :  { %1809 = vmatprep.subr.bf16.mxu0 %v9348_v27  ;;  %v1009_v27 = vld [vmem:[#allocation5 + $0x1d0] sm:$0xff]  ;;  %v9383_v10 = vcombine.high %v1008_v46, %v1012_v15  ;;  %v9390_v0 = vcombine.low %v1008_v46, %v1012_v15 }
  0xf2   :  { %866 = vmatmul.mubr.bf16.gmra.mrb[40].mxu1 %v9139_v44  ;;  %v9374_v44 = vcombine.high %v1001_v47, %v1005_v30  ;;  %v9395_v30 = vcombine.low %v1009_v27, %v1013_v9 }
  0xf3   :  { %1769 = vmatpush1.bf16.msra.mxu1 %v9351_v25  ;;  %875 = vmatprep.mubr.bf16.mxu1 %v12145_v17  ;;  %v1020_v25 = vld [vmem:[#allocation5 + $0x228] sm:$0xff]  ;;  %12151 = vst [vmem:[#allocation83_spill] sm:$0xff] %v9383_v10  ;;  %12153 = vst [vmem:[#allocation85_spill] sm:$0xff] %v9390_v0 }
  0xf4   :  { %1810 = vmatpush1.bf16.msra.mxu0 %v9355_v36  ;;  %1770 = vmatprep.subr.bf16.mxu1 %v9357_v37  ;;  %12148 = vst [vmem:[#allocation80_spill] sm:$0xff] %v9374_v44  ;;  %v1017_v36 = vld [vmem:[#allocation5 + $0x210] sm:$0xff]  ;;  %12155 = vst [vmem:[#allocation86_spill] sm:$0xff] %v9395_v30  ;;  %v9397_v47 = vcombine.high %v1016_v8, %v1020_v25  ;;  %v9403_v15 = vcombine.low %v1016_v8, %v1020_v25  ;;  %v1036_v25 = vld [vmem:[#allocation5 + $0x2a8] sm:$0xff] }
  0xf5   :  { %1811 = vmatprep.subr.bf16.mxu0 %v9360_v60  ;;  %v1021_v37 = vld [vmem:[#allocation5 + $0x230] sm:$0xff]  ;;  %v9386_v60 = vcombine.high %v1009_v27, %v1013_v9  ;;  %v9414_v27 = vld [vmem:[%s11820_s2] sm:$0xff] }
  0xf6   :  { %12156 = vst [vmem:[#allocation87_spill] sm:$0xff] %v9397_v47  ;;  %12158 = vst [vmem:[#allocation89_spill] sm:$0xff] %v9403_v15  ;;  %v9407_v46 = vcombine.low %v1017_v36, %v1021_v37  ;;  %vm1948_vm0 = vcmp.gt.f32.partialorder %v9414_v27, 7.0  ;;  %v1033_v8 = vld [vmem:[#allocation5 + $0x290] sm:$0xff]  ;;  %vm1947_vm1 = vcmp.gt.f32.partialorder %v9414_v27, 0.0  ;;  %vm2440_vm2 = vcmp.gt.f32.partialorder %v9414_v27, 5.0 }
  0xf7   :  { %1771 = vmatpush1.bf16.msra.mxu1 %v9364_v43  ;;  %12152 = vst [vmem:[#allocation84_spill] sm:$0xff] %v9386_v60  ;;  %v12154_v43 = vmov 0.0|0.0   ;;  %vm2686_vm3 = vcmp.gt.f32.partialorder %v9414_v27, 4.0  ;;  %vm2194_vm4 = vcmp.gt.f32.partialorder %v9414_v27, 6.0  ;;  %vm2193_vm5 = vcmp.gt.f32.partialorder %v9414_v27, 1.0 }
  0xf8   :  { %1812 = vmatpush1.bf16.msra.mxu0 %v9369_v53  ;;  %1772 = vmatprep.subr.bf16.mxu1 %v9371_v54  ;;  %v1028_v53 = vld [vmem:[#allocation5 + $0x268] sm:$0xff]  ;;  %v1029_v54 = vld [vmem:[#allocation5 + $0x270] sm:$0xff]  ;;  %12159 = vst [vmem:[#allocation90_spill] sm:$0xff] %v9407_v46  ;;  %vm2439_vm6 = vcmp.gt.f32.partialorder %v9414_v27, 2.0  ;;  %vm2685_vm7 = vcmp.gt.f32.partialorder %v9414_v27, 3.0 }
  0xf9   :  { %1813 = vmatprep.subr.bf16.mxu0 %v9374_v44  ;;  %v1025_v44 = vld [vmem:[#allocation5 + $0x250] sm:$0xff]  ;;  %v9409_v9 = vcombine.high %v1024_v29, %v1028_v53 }
  0xfa   :  { %876 = vmatmul.mubr.bf16.gmra.mrb[44].mxu1 %v9172_v61  ;;  %v9400_v61 = vcombine.high %v1017_v36, %v1021_v37  ;;  %v1956_v36 = vsel %vm1948_vm0, 1, %v12145_v17  ;;  %v9422_v37 = vcombine.low %v1024_v29, %v1028_v53  ;;  %v1045_v53 = vld [vmem:[#allocation5 + $0x2f0] sm:$0xff]  ;;  %v1949_v29 = vsel %vm1947_vm1, 1, %v12145_v17 }
  0xfb   :  { %1773 = vmatpush1.bf16.msra.mxu1 %v9377_v6  ;;  %1792 = vmatprep.mubr.bf16.mxu1 %v12154_v43  ;;  %12160 = vst [vmem:[#allocation91_spill] sm:$0xff] %v9409_v9  ;;  %v1044_v6 = vld [vmem:[#allocation5 + $0x2e8] sm:$0xff] }
  0xfc   :  { %1814 = vmatpush1.bf16.msra.mxu0 %v9381_v21  ;;  %1774 = vmatprep.subr.bf16.mxu1 %v9383_v10  ;;  %12157 = vst [vmem:[#allocation88_spill] sm:$0xff] %v9400_v61  ;;  %v1032_v21 = vld [vmem:[#allocation5 + $0x288] sm:$0xff]  ;;  %12162 = vst [vmem:[#allocation93_spill] sm:$0xff] %v9422_v37 }
  0xfd   :  { %1815 = vmatprep.subr.bf16.mxu0 %v9386_v60  ;;  %v9417_v60 = vcombine.high %v1025_v44, %v1029_v54  ;;  %1958 = vperm.xlu0 %7924, %v1956_v36   ;;  %v1040_v10 = vld [vmem:[#allocation5 + $0x2c8] sm:$0xff]  ;;  %v9436_v36 = vcombine.low %v1032_v21, %v1036_v25 }
  0xff   :  { %1775 = vmatpush1.bf16.msra.mxu1 %v9390_v0  ;;  %12161 = vst [vmem:[#allocation92_spill] sm:$0xff] %v9417_v60  ;;  %12166 = vst [vmem:[#allocation97_spill] sm:$0xff] %v9436_v36 }
 0x100   :  { %1816 = vmatpush1.bf16.msra.mxu0 %v9395_v30  ;;  %1776 = vmatprep.subr.bf16.mxu1 %v9397_v47  ;;  %v1037_v30 = vld [vmem:[#allocation5 + $0x2b0] sm:$0xff]  ;;  %v9428_v47 = vcombine.high %v1032_v21, %v1036_v25  ;;  %v9448_v21 = vcombine.low %v1040_v10, %v1044_v6 }
 0x101   :  { %1817 = vmatprep.subr.bf16.mxu0 %v9400_v61  ;;  %v9426_v61 = vcombine.low %v1025_v44, %v1029_v54  ;;  %v9431_v0 = vcombine.high %v1033_v8, %v1037_v30  ;;  %1951 = vperm.xlu0 %7924, %v1949_v29   ;;  %v9440_v54 = vcombine.low %v1033_v8, %v1037_v30  ;;  %v1056_v29 = vld [vmem:[#allocation5 + $0x348] sm:$0xff] }
 0x102   :  { %12164 = vst [vmem:[#allocation95_spill] sm:$0xff] %v9428_v47  ;;  %v9442_v44 = vcombine.high %v1040_v10, %v1044_v6  ;;  %12170 = vst [vmem:[#allocation101_spill] sm:$0xff] %v9448_v21  ;;  %v9457_v8 = vcombine.high %v1049_v20, %v1053_v63  ;;  %v9464_v10 = vcombine.low %v1049_v20, %v1053_v63 }
 0x103   :  { %1777 = vmatpush1.bf16.msra.mxu1 %v9403_v15  ;;  %12163 = vst [vmem:[#allocation94_spill] sm:$0xff] %v9426_v61  ;;  %12165 = vst [vmem:[#allocation96_spill] sm:$0xff] %v9431_v0  ;;  %v1041_v15 = vld [vmem:[#allocation5 + $0x2d0] sm:$0xff] }
 0x104   :  { %1818 = vmatpush1.bf16.msra.mxu0 %v9407_v46  ;;  %1778 = vmatprep.subr.bf16.mxu1 %v9409_v9  ;;  %12167 = vst [vmem:[#allocation98_spill] sm:$0xff] %v9440_v54  ;;  %12168 = vst [vmem:[#allocation99_spill] sm:$0xff] %v9442_v44  ;;  %v1048_v46 = vld [vmem:[#allocation5 + $0x308] sm:$0xff]  ;;  %v9452_v30 = vcombine.low %v1041_v15, %v1045_v53 }
 0x105   :  { %1819 = vmatprep.subr.bf16.mxu0 %v9417_v60  ;;  %v9445_v60 = vcombine.high %v1041_v15, %v1045_v53  ;;  %v1052_v9 = vld [vmem:[#allocation5 + $0x328] sm:$0xff]  ;;  %12173 = vst [vmem:[#allocation104_spill] sm:$0xff] %v9457_v8  ;;  %12175 = vst [vmem:[#allocation106_spill] sm:$0xff] %v9464_v10 }
 0x106   :  { %12171 = vst [vmem:[#allocation102_spill] sm:$0xff] %v9452_v30  ;;  %v9454_v25 = vcombine.high %v1048_v46, %v1052_v9  ;;  %v9460_v6 = vcombine.low %v1048_v46, %v1052_v9 }
 0x107   :  { %1779 = vmatpush1.bf16.msra.mxu1 %v9422_v37  ;;  %12169 = vst [vmem:[#allocation100_spill] sm:$0xff] %v9445_v60 }
 0x108   :  { %1820 = vmatpush1.bf16.msra.mxu0 %v9426_v61  ;;  %1780 = vmatprep.subr.bf16.mxu1 %v9428_v47  ;;  %12172 = vst [vmem:[#allocation103_spill] sm:$0xff] %v9454_v25  ;;  %v1057_v61 = vld [vmem:[#allocation5 + $0x350] sm:$0xff]  ;;  %12174 = vst [vmem:[#allocation105_spill] sm:$0xff] %v9460_v6 }
 0x109   :  { %1821 = vmatprep.subr.bf16.mxu0 %v9431_v0  ;;  %v1060_v0 = vld [vmem:[#allocation5 + $0x368] sm:$0xff]  ;;  %v1061_v47 = vld [vmem:[#allocation5 + $0x370] sm:$0xff] }
 0x10a   :  { %v9466_v15 = vcombine.high %v1056_v29, %v1060_v0  ;;  %v9469_v53 = vcombine.high %v1057_v61, %v1061_v47  ;;  %v9472_v46 = vcombine.low %v1056_v29, %v1060_v0  ;;  %v9476_v63 = vcombine.low %v1057_v61, %v1061_v47 }
 0x10b   :  { %1781 = vmatpush1.bf16.msra.mxu1 %v9436_v36  ;;  %v1069_v36 = vld [vmem:[#allocation5 + $0x3b0] sm:$0xff] }
 0x10c   :  { %1822 = vmatpush1.bf16.msra.mxu0 %v9440_v54  ;;  %1782 = vmatprep.subr.bf16.mxu1 %v9442_v44  ;;  %12176 = vst [vmem:[#allocation107_spill] sm:$0xff] %v9466_v15  ;;  %12177 = vst [vmem:[#allocation108_spill] sm:$0xff] %v9469_v53  ;;  %v1068_v54 = vld [vmem:[#allocation5 + $0x3a8] sm:$0xff]  ;;  %v1065_v44 = vld [vmem:[#allocation5 + $0x390] sm:$0xff] }
 0x10d   :  { %1823 = vmatprep.subr.bf16.mxu0 %v9445_v60  ;;  %v1064_v60 = vld [vmem:[#allocation5 + $0x388] sm:$0xff]  ;;  %12178 = vst [vmem:[#allocation109_spill] sm:$0xff] %v9472_v46  ;;  %12179 = vst [vmem:[#allocation110_spill] sm:$0xff] %v9476_v63  ;;  %v9481_v9 = vcombine.high %v1065_v44, %v1069_v36  ;;  %v9488_v47 = vcombine.low %v1065_v44, %v1069_v36  ;;  %v966_v44 = vld [vmem:[#allocation5 + $0x78] sm:$0xff] }
 0x10e   :  { %v9478_v20 = vcombine.high %v1064_v60, %v1068_v54  ;;  %v9484_v0 = vcombine.low %v1064_v60, %v1068_v54  ;;  %v962_v54 = vld [vmem:[#allocation5 + $0x58] sm:$0xff] }
 0x10f   :  { %1783 = vmatpush1.bf16.msra.mxu1 %v9448_v21  ;;  %12181 = vst [vmem:[#allocation112_spill] sm:$0xff] %v9481_v9  ;;  %v1077_v21 = vld [vmem:[#allocation5 + $0x3f0] sm:$0xff]  ;;  %12183 = vst [vmem:[#allocation114_spill] sm:$0xff] %v9488_v47 }
 0x110   :  { %1824 = vmatpush1.bf16.msra.mxu0 %v9452_v30  ;;  %1784 = vmatprep.subr.bf16.mxu1 %v9454_v25  ;;  %12180 = vst [vmem:[#allocation111_spill] sm:$0xff] %v9478_v20  ;;  %v1076_v30 = vld [vmem:[#allocation5 + $0x3e8] sm:$0xff]  ;;  %v1073_v25 = vld [vmem:[#allocation5 + $0x3d0] sm:$0xff]  ;;  %12182 = vst [vmem:[#allocation113_spill] sm:$0xff] %v9484_v0 }
 0x111   :  { %1825 = vmatprep.subr.bf16.mxu0 %v9457_v8  ;;  %v1072_v8 = vld [vmem:[#allocation5 + $0x3c8] sm:$0xff]  ;;  %v9493_v29 = vcombine.high %v1073_v25, %v1077_v21  ;;  %v9500_v60 = vcombine.low %v1073_v25, %v1077_v21  ;;  %v9516_v21 = vcombine.low %v962_v54, %v966_v44 }
 0x112   :  { %v9490_v61 = vcombine.high %v1072_v8, %v1076_v30 }
 0x113   :  { %1785 = vmatpush1.bf16.msra.mxu1 %v9460_v6  ;;  %12185 = vst [vmem:[#allocation116_spill] sm:$0xff] %v9493_v29  ;;  %12187 = vst [vmem:[#allocation118_spill] sm:$0xff] %v9500_v60 }
 0x114   :  { %1826 = vmatpush1.bf16.msra.mxu0 %v9464_v10  ;;  %1786 = vmatprep.subr.bf16.mxu1 %v9466_v15  ;;  %12184 = vst [vmem:[#allocation115_spill] sm:$0xff] %v9490_v61  ;;  %v958_v10 = vld [vmem:[#allocation5 + $0x38] sm:$0xff]  ;;  %v9496_v15 = vcombine.low %v1072_v8, %v1076_v30  ;;  %v9510_v30 = vcombine.high %v962_v54, %v966_v44 }
 0x115   :  { %1827 = vmatprep.subr.bf16.mxu0 %v9469_v53  ;;  %v954_v53 = vld [vmem:[#allocation5 + $0x18] sm:$0xff] }
 0x116   :  { %12186 = vst [vmem:[#allocation117_spill] sm:$0xff] %v9496_v15  ;;  %v9502_v36 = vcombine.high %v954_v53, %v958_v10  ;;  %v970_v8 = vld [vmem:[#allocation5 + $0x98] sm:$0xff] }
 0x117   :  { %1787 = vmatpush1.bf16.msra.mxu1 %v9472_v46  ;;  %v986_v44 = vld [vmem:[#allocation5 + $0x118] sm:$0xff] }
 0x118   :  { %1828 = vmatpush1.bf16.msra.mxu0 %v9476_v63  ;;  %1788 = vmatprep.subr.bf16.mxu1 %v9478_v20  ;;  %12188 = vst [vmem:[#allocation119_spill] sm:$0xff] %v9502_v36 }
 0x119   :  { %1829 = vmatprep.subr.bf16.mxu0 %v9481_v9  ;;  %v9506_v9 = vcombine.low %v954_v53, %v958_v10  ;;  %v978_v10 = vld [vmem:[#allocation5 + $0xd8] sm:$0xff] }
 0x11a   :  { %v982_v53 = vld [vmem:[#allocation5 + $0xf8] sm:$0xff] }
 0x11b   :  { %1789 = vmatpush1.bf16.msra.mxu1 %v9484_v0  ;;  %v9528_v54 = vcombine.high %v978_v10, %v982_v53 }
 0x11c   :  { %1830 = vmatpush1.bf16.msra.mxu0 %v9488_v47  ;;  %1790 = vmatprep.subr.bf16.mxu1 %v9490_v61  ;;  %v974_v47 = vld [vmem:[#allocation5 + $0xb8] sm:$0xff] }
 0x11d   :  { %1831 = vmatprep.subr.bf16.mxu0 %v9493_v29  ;;  %v9519_v25 = vcombine.high %v970_v8, %v974_v47  ;;  %v9533_v29 = vcombine.low %v978_v10, %v982_v53  ;;  %v1002_v10 = vld [vmem:[#allocation5 + $0x198] sm:$0xff] }
 0x11e   :  { %v1006_v53 = vld [vmem:[#allocation5 + $0x1b8] sm:$0xff] }
 0x11f   :  { %1791 = vmatpush1.bf16.msra.mxu1 %v9496_v15 }
 0x120   :  { %1832 = vmatpush1.bf16.msra.mxu0 %v9500_v60  ;;  %1842 = vmatprep.subr.bf16.mxu1 %v9502_v36  ;;  %v990_v60 = vld [vmem:[#allocation5 + $0x138] sm:$0xff] }
 0x121   :  { %1965 = vmatprep.subr.bf16.mxu0 %v9064_v7  ;;  %v9525_v7 = vcombine.low %v970_v8, %v974_v47  ;;  %v994_v47 = vld [vmem:[#allocation5 + $0x158] sm:$0xff] }
 0x122   :  { %1793 = vmatmul.mubr.bf16.vlgmr.msra.gmra.mrb[48].mxu1 %v12154_v43  ;;  %v998_v8 = vld [vmem:[#allocation5 + $0x178] sm:$0xff] }
 0x123   :  { %1834 = vmatmul.mubr.bf16.vlgmr.msra.gmra.mrb[20].mxu0 %v12154_v43  ;;  %1843 = vmatpush1.bf16.msra.mxu1 %v9506_v9 }
 0x124   :  { %1844 = vmatprep.subr.bf16.mxu1 %v9510_v30  ;;  %1874 = vmatprep.mubr.bf16.mxu1 %v12154_v43 }
 0x125   :  { %1966 = vmatpush1.bf16.msra.mxu0 %v9077_v14  ;;  %v9541_v14 = vcombine.low %v986_v44, %v990_v60 }
 0x126   :  { %1967 = vmatprep.subr.bf16.mxu0 %v9080_v16  ;;  %v9536_v16 = vcombine.high %v986_v44, %v990_v60  ;;  %v1010_v60 = vld [vmem:[#allocation5 + $0x1d8] sm:$0xff] }
 0x127   :  { %1845 = vmatpush1.bf16.msra.mxu1 %v9516_v21  ;;  %v1014_v44 = vld [vmem:[#allocation5 + $0x1f8] sm:$0xff] }
 0x128   :  { %1846 = vmatprep.subr.bf16.mxu1 %v9519_v25 }
 0x129   :  { %1968 = vmatpush1.bf16.msra.mxu0 %v9091_v22  ;;  %v9549_v22 = vcombine.low %v994_v47, %v998_v8 }
 0x12a   :  { %1969 = vmatprep.subr.bf16.mxu0 %v9095_v24  ;;  %v9544_v24 = vcombine.high %v994_v47, %v998_v8  ;;  %v1018_v47 = vld [vmem:[#allocation5 + $0x218] sm:$0xff] }
 0x12b   :  { %1847 = vmatpush1.bf16.msra.mxu1 %v9525_v7  ;;  %v1022_v8 = vld [vmem:[#allocation5 + $0x238] sm:$0xff] }
 0x12c   :  { %1848 = vmatprep.subr.bf16.mxu1 %v9528_v54 }
 0x12d   :  { %1970 = vmatpush1.bf16.msra.mxu0 %v9110_v31  ;;  %v9557_v31 = vcombine.low %v1002_v10, %v1006_v53 }
 0x12e   :  { %1971 = vmatprep.subr.bf16.mxu0 %v9113_v33  ;;  %v9552_v33 = vcombine.high %v1002_v10, %v1006_v53  ;;  %v1026_v10 = vld [vmem:[#allocation5 + $0x258] sm:$0xff] }
 0x12f   :  { %1849 = vmatpush1.bf16.msra.mxu1 %v9533_v29  ;;  %v1030_v53 = vld [vmem:[#allocation5 + $0x278] sm:$0xff] }
 0x130   :  { %1850 = vmatprep.subr.bf16.mxu1 %v9536_v16 }
 0x131   :  { %1972 = vmatpush1.bf16.msra.mxu0 %v9124_v39  ;;  %v9565_v39 = vcombine.low %v1010_v60, %v1014_v44 }
 0x132   :  { %1973 = vmatprep.subr.bf16.mxu0 %v9127_v41  ;;  %v9560_v41 = vcombine.high %v1010_v60, %v1014_v44  ;;  %v1034_v60 = vld [vmem:[#allocation5 + $0x298] sm:$0xff] }
 0x133   :  { %1851 = vmatpush1.bf16.msra.mxu1 %v9541_v14  ;;  %v1038_v44 = vld [vmem:[#allocation5 + $0x2b8] sm:$0xff] }
 0x134   :  { %1852 = vmatprep.subr.bf16.mxu1 %v9544_v24 }
 0x135   :  { %1974 = vmatpush1.bf16.msra.mxu0 %v9143_v48  ;;  %v9573_v48 = vcombine.low %v1018_v47, %v1022_v8 }
 0x136   :  { %1975 = vmatprep.subr.bf16.mxu0 %v9146_v50  ;;  %v9568_v50 = vcombine.high %v1018_v47, %v1022_v8  ;;  %v1042_v47 = vld [vmem:[#allocation5 + $0x2d8] sm:$0xff] }
 0x137   :  { %1853 = vmatpush1.bf16.msra.mxu1 %v9549_v22  ;;  %12189 = vst [vmem:[#allocation120_spill] sm:$0xff] %v9573_v48  ;;  %v1046_v8 = vld [vmem:[#allocation5 + $0x2f8] sm:$0xff] }
 0x138   :  { %1854 = vmatprep.subr.bf16.mxu1 %v9552_v33 }
 0x139   :  { %1976 = vmatpush1.bf16.msra.mxu0 %v9157_v56  ;;  %v9581_v56 = vcombine.low %v1026_v10, %v1030_v53 }
 0x13a   :  { %1977 = vmatprep.subr.bf16.mxu0 %v9160_v58  ;;  %v9576_v58 = vcombine.high %v1026_v10, %v1030_v53  ;;  %v1050_v10 = vld [vmem:[#allocation5 + $0x318] sm:$0xff] }
 0x13b   :  { %1855 = vmatpush1.bf16.msra.mxu1 %v9557_v31  ;;  %12191 = vst [vmem:[#allocation122_spill] sm:$0xff] %v9581_v56  ;;  %v1054_v53 = vld [vmem:[#allocation5 + $0x338] sm:$0xff] }
 0x13c   :  { %1856 = vmatprep.subr.bf16.mxu1 %v9560_v41  ;;  %12190 = vst [vmem:[#allocation121_spill] sm:$0xff] %v9576_v58 }
 0x13d   :  { %1978 = vmatpush1.bf16.msra.mxu0 %v9176_v2  ;;  %v9589_v2 = vcombine.low %v1034_v60, %v1038_v44 }
 0x13e   :  { %1979 = vmatprep.subr.bf16.mxu0 %v9179_v4  ;;  %v9584_v4 = vcombine.high %v1034_v60, %v1038_v44  ;;  %v1058_v60 = vld [vmem:[#allocation5 + $0x358] sm:$0xff] }
 0x13f   :  { %1857 = vmatpush1.bf16.msra.mxu1 %v9565_v39  ;;  %12193 = vst [vmem:[#allocation124_spill] sm:$0xff] %v9589_v2  ;;  %v1062_v44 = vld [vmem:[#allocation5 + $0x378] sm:$0xff] }
 0x140   :  { %1858 = vmatprep.subr.bf16.mxu1 %v9568_v50  ;;  %12192 = vst [vmem:[#allocation123_spill] sm:$0xff] %v9584_v4 }
 0x141   :  { %1980 = vmatpush1.bf16.msra.mxu0 %v9190_v12  ;;  %v9597_v12 = vcombine.low %v1042_v47, %v1046_v8 }
 0x142   :  { %1981 = vmatprep.subr.bf16.mxu0 %v9199_v18  ;;  %v9592_v18 = vcombine.high %v1042_v47, %v1046_v8  ;;  %v9610_v47 = vcombine.high %v1058_v60, %v1062_v44  ;;  %v1066_v8 = vld [vmem:[#allocation5 + $0x398] sm:$0xff] }
 0x143   :  { %1859 = vmatpush1.bf16.msra.mxu1 %v9573_v48  ;;  %12195 = vst [vmem:[#allocation126_spill] sm:$0xff] %v9597_v12 }
 0x144   :  { %1860 = vmatprep.subr.bf16.mxu1 %v9576_v58  ;;  %12194 = vst [vmem:[#allocation125_spill] sm:$0xff] %v9592_v18  ;;  %12198 = vst [vmem:[#allocation129_spill] sm:$0xff] %v9610_v47 }
 0x145   :  { %1982 = vmatpush1.bf16.msra.mxu0 %v9210_v28  ;;  %v2448_v28 = vsel %vm2440_vm2, 1, %v12145_v17 }
 0x146   :  { %1983 = vmatprep.subr.bf16.mxu0 %v9213_v34  ;;  %v9600_v34 = vcombine.high %v1050_v10, %v1054_v53  ;;  %2450 = vperm.xlu0 %7924, %v2448_v28  }
 0x147   :  { %1861 = vmatpush1.bf16.msra.mxu1 %v9581_v56 }
 0x148   :  { %1862 = vmatprep.subr.bf16.mxu1 %v9584_v4  ;;  %12196 = vst [vmem:[#allocation127_spill] sm:$0xff] %v9600_v34 }
 0x149   :  { %1984 = vmatpush1.bf16.msra.mxu0 %v9224_v38  ;;  %v1070_v38 = vld [vmem:[#allocation5 + $0x3b8] sm:$0xff] }
 0x14a   :  { %1985 = vmatprep.subr.bf16.mxu0 %v9227_v45  ;;  %v9607_v45 = vcombine.low %v1050_v10, %v1054_v53  ;;  %v9620_v28 = vcombine.high %v1066_v8, %v1070_v38  ;;  %v1074_v10 = vld [vmem:[#allocation5 + $0x3d8] sm:$0xff] }
 0x14b   :  { %1863 = vmatpush1.bf16.msra.mxu1 %v9589_v2  ;;  %v1078_v53 = vld [vmem:[#allocation5 + $0x3f8] sm:$0xff] }
 0x14c   :  { %1864 = vmatprep.subr.bf16.mxu1 %v9592_v18  ;;  %12197 = vst [vmem:[#allocation128_spill] sm:$0xff] %v9607_v45  ;;  %12200 = vst [vmem:[#allocation131_spill] sm:$0xff] %v9620_v28 }
 0x14d   :  { %1986 = vmatpush1.bf16.msra.mxu0 %v9236_v51  ;;  %v2694_v51 = vsel %vm2686_vm3, 1, %v12145_v17 }
 0x14e   :  { %1987 = vmatprep.subr.bf16.mxu0 %v9239_v55  ;;  %v9617_v55 = vcombine.low %v1058_v60, %v1062_v44  ;;  %2696 = vperm.xlu0 %7924, %v2694_v51   ;;  %v9633_v51 = vcombine.low %v1074_v10, %v1078_v53 }
 0x14f   :  { %1865 = vmatpush1.bf16.msra.mxu1 %v9597_v12 }
 0x150   :  { %1866 = vmatprep.subr.bf16.mxu1 %v9600_v34  ;;  %12199 = vst [vmem:[#allocation130_spill] sm:$0xff] %v9617_v55  ;;  %12203 = vst [vmem:[#allocation134_spill] sm:$0xff] %v9633_v51 }
 0x151   :  { %1988 = vmatpush1.bf16.msra.mxu0 %v9250_v62  ;;  %v9625_v62 = vcombine.low %v1066_v8, %v1070_v38  ;;  %v210_v38 = vlaneseq }
 0x152   :  { %1989 = vmatprep.subr.bf16.mxu0 %v9253_v5  ;;  %v9628_v5 = vcombine.high %v1074_v10, %v1078_v53  ;;  %v12207_v53 = vld [vmem:[#allocation71_spill] sm:$0xff] }
 0x153   :  { %1867 = vmatpush1.bf16.msra.mxu1 %v9607_v45  ;;  %12201 = vst [vmem:[#allocation132_spill] sm:$0xff] %v9625_v62  ;;  %v9648_v60 = vshrl.u32 %v210_v38, 7 }
 0x154   :  { %1868 = vmatprep.subr.bf16.mxu1 %v9610_v47  ;;  %12202 = vst [vmem:[#allocation133_spill] sm:$0xff] %v9628_v5 }
 0x155   :  { %1990 = vmatpush1.bf16.msra.mxu0 %v9262_v11  ;;  %12204 = vst [vmem:[#allocation135_spill] sm:$0xff] %v9648_v60  ;;  %v228_v44 = vsub.s32 4, %v9648_v60  ;;  %v9654_v8 = vsub.s32 0, %v9648_v60  ;;  %v232_v10 = vsub.s32 5, %v9648_v60  ;;  %v9664_v38 = vsub.s32 1, %v9648_v60 }
 0x156   :  { %1991 = vmatprep.subr.bf16.mxu0 %v9265_v19 }
 0x157   :  { %1869 = vmatpush1.bf16.msra.mxu1 %v9617_v55  ;;  %12206 = vst [vmem:[#allocation136_spill] sm:$0xff] %v9654_v8  ;;  %12208 = vst [vmem:[#allocation137_spill] sm:$0xff] %v9664_v38 }
 0x158   :  { %1870 = vmatprep.subr.bf16.mxu1 %v9620_v28 }
 0x159   :  { %1992 = vmatpush1.bf16.msra.mxu0 %v9276_v26  ;;  %v12210_v26 = vld [vmem:[#allocation75_spill] sm:$0xff] }
 0x15a   :  { %1993 = vmatprep.subr.bf16.mxu0 %v9279_v35 }
 0x15b   :  { %1871 = vmatpush1.bf16.msra.mxu1 %v9625_v62 }
 0x15c   :  { %1872 = vmatprep.subr.bf16.mxu1 %v9628_v5 }
 0x15d   :  { %1994 = vmatpush1.bf16.msra.mxu0 %v9282_v42 }
 0x15e   :  { %1995 = vmatprep.subr.bf16.mxu0 %v9285_v49  ;;  %v12209_v49 = vld [vmem:[#allocation73_spill] sm:$0xff] }
 0x15f   :  { %1873 = vmatpush1.bf16.msra.mxu1 %v9633_v51 }
 0x160   :  { %2006 = vmatprep.subr.bf16.mxu1 %v9292_v59 }
 0x161   :  { %1996 = vmatpush1.bf16.msra.mxu0 %v9290_v57 }
 0x162   :  { %1875 = vmatmul.mubr.bf16.vlgmr.msra.gmra.mrb[52].mxu1 %v12154_v43  ;;  %2047 = vmatprep.subr.bf16.mxu0 %v9295_v1  ;;  %v12205_v43 = vld [vmem:[#allocation69_spill] sm:$0xff]  ;;  %v9661_v1 = vld [vmem:[%s11823_s5] sm:$0xff] }
 0x163   :  { %2007 = vmatpush1.bf16.msra.mxu1 %v9297_v3  ;;  %v9667_v57 = vrot.slane %v9661_v1, %v228_v44  ;;  %v9672_v42 = vrot.slane %v9661_v1, %v9654_v8  ;;  %v9675_v35 = vrot.slane %v9661_v1, %v232_v10  ;;  %v9684_v44 = vrot.slane %v9661_v1, %v9664_v38 }
 0x164   :  { %2008 = vmatprep.subr.bf16.mxu1 %v9303_v13 }
 0x167   :  { %2009 = vmatpush1.bf16.msra.mxu1 %v9311_v23  ;;  %v12215_v23 = vld [vmem:[#allocation79_spill] sm:$0xff] }
 0x168   :  { %2010 = vmatprep.subr.bf16.mxu1 %v9317_v32 }
 0x16b   :  { %2011 = vmatpush1.bf16.msra.mxu1 %v9325_v40 }
 0x16c   :  { %2012 = vmatprep.subr.bf16.mxu1 %v9331_v52  ;;  %v12212_v52 = vld [vmem:[#allocation77_spill] sm:$0xff] }
 0x16f   :  { %2013 = vmatpush1.bf16.msra.mxu1 %v12205_v43 }
 0x170   :  { %2014 = vmatprep.subr.bf16.mxu1 %v12207_v53 }
 0x173   :  { %2015 = vmatpush1.bf16.msra.mxu1 %v12209_v49 }
 0x174   :  { %2016 = vmatprep.subr.bf16.mxu1 %v12210_v26 }
 0x175   :  { %v9678_v19 = vpop.f32.mrb[0].mxu1  ;;  %v774_v53 = vpop.f32.mrb[0].mxu0 }
 0x176   :  { %v9680_v11 = vpop.f32.mrb[1].mxu1  ;;  %v9687_v49 = vadd.f32 %v774_v53, %v9667_v57  ;;  %v776_v8 = vpop.f32.mrb[1].mxu0 }
 0x177   :  { %v632_v43 = vpop.f32.mrb[2].mxu1  ;;  %2017 = vmatpush1.bf16.msra.mxu1 %v12212_v52  ;;  %v9694_v40 = vadd.f32 %v776_v8, %v9675_v35  ;;  %v778_v32 = vpop.f32.mrb[2].mxu0  ;;  %v12219_v52 = vld [vmem:[#allocation81_spill] sm:$0xff] }
 0x178   :  { %12211 = vst [vmem:[#allocation138_spill] sm:$0xff] %v9687_v49  ;;  %v9691_v10 = vadd.f32 %v632_v43, %v9672_v42  ;;  %v634_v26 = vpop.f32.mrb[3].mxu1  ;;  %2018 = vmatprep.subr.bf16.mxu1 %v12215_v23  ;;  %v9701_v13 = vadd.f32 %v778_v32, %v9667_v57  ;;  %v780_v53 = vpop.f32.mrb[3].mxu0  ;;  %v12220_v43 = vld [vmem:[#allocation83_spill] sm:$0xff] }
 0x179   :  { %12214 = vst [vmem:[#allocation140_spill] sm:$0xff] %v9694_v40  ;;  %v9698_v38 = vadd.f32 %v634_v26, %v9684_v44  ;;  %v9704_v49 = vadd.f32 %v780_v53, %v9675_v35 }
 0x17a   :  { %12213 = vst [vmem:[#allocation139_spill] sm:$0xff] %v9691_v10  ;;  %12217 = vst [vmem:[#allocation142_spill] sm:$0xff] %v9701_v13  ;;  %v12225_v13 = vld [vmem:[#allocation87_spill] sm:$0xff] }
 0x17b   :  { %12216 = vst [vmem:[#allocation141_spill] sm:$0xff] %v9698_v38  ;;  %12218 = vst [vmem:[#allocation143_spill] sm:$0xff] %v9704_v49  ;;  %2019 = vmatpush1.bf16.msra.mxu1 %v12219_v52  ;;  %v12223_v38 = vld [vmem:[#allocation85_spill] sm:$0xff] }
 0x17c   :  { %2020 = vmatprep.subr.bf16.mxu1 %v12220_v43 }
 0x17d   :  { %v638_v10 = vpop.f32.mrb[4].mxu1  ;;  %v784_v49 = vpop.f32.mrb[4].mxu0 }
 0x17e   :  { %v9709_v8 = vadd.f32 %v638_v10, %v9672_v42  ;;  %v640_v40 = vpop.f32.mrb[5].mxu1  ;;  %v9723_v10 = vadd.f32 %v784_v49, %v9667_v57 }
 0x17f   :  { %v9712_v23 = vadd.f32 %v640_v40, %v9684_v44  ;;  %v642_v26 = vpop.f32.mrb[6].mxu1  ;;  %2021 = vmatpush1.bf16.msra.mxu1 %v12223_v38 }
 0x180   :  { %12221 = vst [vmem:[#allocation144_spill] sm:$0xff] %v9709_v8  ;;  %v9716_v32 = vadd.f32 %v642_v26, %v9672_v42  ;;  %v644_v53 = vpop.f32.mrb[7].mxu1  ;;  %2022 = vmatprep.subr.bf16.mxu1 %v12225_v13  ;;  %12227 = vst [vmem:[#allocation148_spill] sm:$0xff] %v9723_v10  ;;  %v786_v8 = vpop.f32.mrb[5].mxu0  ;;  %v12232_v13 = vld [vmem:[#allocation91_spill] sm:$0xff] }
 0x181   :  { %12222 = vst [vmem:[#allocation145_spill] sm:$0xff] %v9712_v23  ;;  %v9720_v43 = vadd.f32 %v644_v53, %v9684_v44  ;;  %v9726_v40 = vadd.f32 %v786_v8, %v9675_v35  ;;  %v788_v23 = vpop.f32.mrb[6].mxu0 }
 0x182   :  { %12224 = vst [vmem:[#allocation146_spill] sm:$0xff] %v9716_v32  ;;  %v9729_v38 = vadd.f32 %v788_v23, %v9667_v57  ;;  %v790_v26 = vpop.f32.mrb[7].mxu0  ;;  %v12230_v32 = vld [vmem:[#allocation89_spill] sm:$0xff] }
 0x183   :  { %12226 = vst [vmem:[#allocation147_spill] sm:$0xff] %v9720_v43  ;;  %12228 = vst [vmem:[#allocation149_spill] sm:$0xff] %v9726_v40  ;;  %2023 = vmatpush1.bf16.msra.mxu1 %v12230_v32  ;;  %v9733_v52 = vadd.f32 %v790_v26, %v9675_v35  ;;  %v12236_v26 = vld [vmem:[#allocation95_spill] sm:$0xff] }
 0x184   :  { %12229 = vst [vmem:[#allocation150_spill] sm:$0xff] %v9729_v38  ;;  %2024 = vmatprep.subr.bf16.mxu1 %v12232_v13 }
 0x185   :  { %12231 = vst [vmem:[#allocation151_spill] sm:$0xff] %v9733_v52  ;;  %v648_v53 = vpop.f32.mrb[8].mxu1  ;;  %v794_v43 = vpop.f32.mrb[8].mxu0 }
 0x186   :  { %v9737_v49 = vadd.f32 %v648_v53, %v9672_v42  ;;  %v650_v10 = vpop.f32.mrb[9].mxu1  ;;  %v9751_v53 = vadd.f32 %v794_v43, %v9667_v57 }
 0x187   :  { %v9740_v8 = vadd.f32 %v650_v10, %v9684_v44  ;;  %v652_v40 = vpop.f32.mrb[10].mxu1  ;;  %2025 = vmatpush1.bf16.msra.mxu1 %v9422_v37 }
 0x188   :  { %12233 = vst [vmem:[#allocation152_spill] sm:$0xff] %v9737_v49  ;;  %v9744_v23 = vadd.f32 %v652_v40, %v9672_v42  ;;  %v654_v38 = vpop.f32.mrb[11].mxu1  ;;  %2026 = vmatprep.subr.bf16.mxu1 %v12236_v26  ;;  %12238 = vst [vmem:[#allocation156_spill] sm:$0xff] %v9751_v53  ;;  %v796_v49 = vpop.f32.mrb[9].mxu0  ;;  %v12243_v26 = vld [vmem:[#allocation99_spill] sm:$0xff]  ;;  %v12246_v53 = vld [vmem:[#allocation101_spill] sm:$0xff] }
 0x189   :  { %12234 = vst [vmem:[#allocation153_spill] sm:$0xff] %v9740_v8  ;;  %v9748_v52 = vadd.f32 %v654_v38, %v9684_v44  ;;  %v9754_v10 = vadd.f32 %v796_v49, %v9675_v35  ;;  %v798_v8 = vpop.f32.mrb[10].mxu0 }
 0x18a   :  { %12235 = vst [vmem:[#allocation154_spill] sm:$0xff] %v9744_v23  ;;  %v9757_v37 = vadd.f32 %v798_v8, %v9667_v57  ;;  %v800_v40 = vpop.f32.mrb[11].mxu0  ;;  %v12241_v23 = vld [vmem:[#allocation97_spill] sm:$0xff] }
 0x18b   :  { %12237 = vst [vmem:[#allocation155_spill] sm:$0xff] %v9748_v52  ;;  %12239 = vst [vmem:[#allocation157_spill] sm:$0xff] %v9754_v10  ;;  %2027 = vmatpush1.bf16.msra.mxu1 %v12241_v23  ;;  %v9761_v13 = vadd.f32 %v800_v40, %v9675_v35  ;;  %v12016_v40 = vsub.s32 2, %v9648_v60  ;;  %v12248_v23 = vld [vmem:[#allocation103_spill] sm:$0xff] }
 0x18c   :  { %12240 = vst [vmem:[#allocation158_spill] sm:$0xff] %v9757_v37  ;;  %2028 = vmatprep.subr.bf16.mxu1 %v12243_v26 }
 0x18d   :  { %12242 = vst [vmem:[#allocation159_spill] sm:$0xff] %v9761_v13  ;;  %v658_v38 = vpop.f32.mrb[12].mxu1  ;;  %v804_v13 = vpop.f32.mrb[12].mxu0 }
 0x18e   :  { %v9765_v43 = vadd.f32 %v658_v38, %v9672_v42  ;;  %v660_v52 = vpop.f32.mrb[13].mxu1  ;;  %v9780_v38 = vadd.f32 %v804_v13, %v9667_v57 }
 0x18f   :  { %v9768_v49 = vadd.f32 %v660_v52, %v9684_v44  ;;  %v662_v10 = vpop.f32.mrb[14].mxu1  ;;  %2029 = vmatpush1.bf16.msra.mxu1 %v12246_v53  ;;  %v806_v52 = vpop.f32.mrb[13].mxu0 }
 0x190   :  { %12244 = vst [vmem:[#allocation160_spill] sm:$0xff] %v9765_v43  ;;  %v9772_v8 = vadd.f32 %v662_v10, %v9672_v42  ;;  %v664_v37 = vpop.f32.mrb[15].mxu1  ;;  %2030 = vmatprep.subr.bf16.mxu1 %v12248_v23  ;;  %12250 = vst [vmem:[#allocation164_spill] sm:$0xff] %v9780_v38  ;;  %v9785_v43 = vpop.f32.mrb[14].mxu0  ;;  %v12017_v10 = vsub.s32 3, %v9648_v60 }
 0x191   :  { %12245 = vst [vmem:[#allocation161_spill] sm:$0xff] %v9768_v49  ;;  %v9777_v26 = vadd.f32 %v664_v37, %v9684_v44  ;;  %v9783_v49 = vadd.f32 %v806_v52, %v9675_v35  ;;  %v9794_v37 = vrot.slane %v9661_v1, %v12016_v40 }
 0x192   :  { %12247 = vst [vmem:[#allocation162_spill] sm:$0xff] %v9772_v8  ;;  %v9788_v8 = vpop.f32.mrb[15].mxu0  ;;  %v9804_v52 = vrot.slane %v9661_v1, %v12017_v10 }
 0x193   :  { %12249 = vst [vmem:[#allocation163_spill] sm:$0xff] %v9777_v26  ;;  %12251 = vst [vmem:[#allocation165_spill] sm:$0xff] %v9783_v49  ;;  %2031 = vmatpush1.bf16.msra.mxu1 %v9460_v6  ;;  %v12252_v26 = vld [vmem:[#allocation107_spill] sm:$0xff] }
 0x194   :  { %2032 = vmatprep.subr.bf16.mxu1 %v12252_v26 }
 0x195   :  { %v9797_v13 = vpop.f32.mrb[16].mxu1 }
 0x196   :  { %v9799_v38 = vpop.f32.mrb[17].mxu1 }
 0x197   :  { %v705_v49 = vpop.f32.mrb[18].mxu1  ;;  %2033 = vmatpush1.bf16.msra.mxu1 %v9472_v46 }
 0x198   :  { %v9808_v6 = vadd.f32 %v705_v49, %v9794_v37  ;;  %v707_v23 = vpop.f32.mrb[19].mxu1  ;;  %2034 = vmatprep.subr.bf16.mxu1 %v9478_v20 }
 0x199   :  { %v9812_v40 = vadd.f32 %v707_v23, %v9804_v52 }
 0x19a   :  { %12253 = vst [vmem:[#allocation166_spill] sm:$0xff] %v9808_v6 }
 0x19b   :  { %12254 = vst [vmem:[#allocation167_spill] sm:$0xff] %v9812_v40  ;;  %2035 = vmatpush1.bf16.msra.mxu1 %v9484_v0 }
 0x19c   :  { %2036 = vmatprep.subr.bf16.mxu1 %v9490_v61 }
 0x19d   :  { %v711_v26 = vpop.f32.mrb[20].mxu1 }
 0x19e   :  { %v9817_v10 = vadd.f32 %v711_v26, %v9794_v37  ;;  %v713_v53 = vpop.f32.mrb[21].mxu1 }
 0x19f   :  { %v9820_v46 = vadd.f32 %v713_v53, %v9804_v52  ;;  %v715_v49 = vpop.f32.mrb[22].mxu1  ;;  %2037 = vmatpush1.bf16.msra.mxu1 %v9496_v15 }
 0x1a0   :  { %12255 = vst [vmem:[#allocation168_spill] sm:$0xff] %v9817_v10  ;;  %v9824_v6 = vadd.f32 %v715_v49, %v9794_v37  ;;  %v717_v23 = vpop.f32.mrb[23].mxu1  ;;  %2088 = vmatprep.subr.bf16.mxu1 %v9502_v36 }
 0x1a1   :  { %12256 = vst [vmem:[#allocation169_spill] sm:$0xff] %v9820_v46  ;;  %v9828_v40 = vadd.f32 %v717_v23, %v9804_v52 }
 0x1a2   :  { %12257 = vst [vmem:[#allocation170_spill] sm:$0xff] %v9824_v6 }
 0x1a3   :  { %12258 = vst [vmem:[#allocation171_spill] sm:$0xff] %v9828_v40 }
 0x1a5   :  { %v721_v61 = vpop.f32.mrb[24].mxu1 }
 0x1a6   :  { %v9831_v26 = vadd.f32 %v721_v61, %v9794_v37  ;;  %v723_v10 = vpop.f32.mrb[25].mxu1  ;;  %v236_v61 = vsub.s32 6, %v9648_v60 }
 0x1a7   :  { %v9834_v53 = vadd.f32 %v723_v10, %v9804_v52  ;;  %v725_v46 = vpop.f32.mrb[26].mxu1 }
 0x1a8   :  { %12259 = vst [vmem:[#allocation172_spill] sm:$0xff] %v9831_v26  ;;  %v9837_v15 = vadd.f32 %v725_v46, %v9794_v37  ;;  %v727_v49 = vpop.f32.mrb[27].mxu1 }
 0x1a9   :  { %12260 = vst [vmem:[#allocation173_spill] sm:$0xff] %v9834_v53  ;;  %v9840_v6 = vadd.f32 %v727_v49, %v9804_v52  ;;  %v240_v53 = vsub.s32 7, %v9648_v60  ;;  %v631_v60 = vadd.f32 %v9680_v11, %v9684_v44 }
 0x1aa   :  { %12261 = vst [vmem:[#allocation174_spill] sm:$0xff] %v9837_v15 }
 0x1ab   :  { %12262 = vst [vmem:[#allocation175_spill] sm:$0xff] %v9840_v6  ;;  %v9857_v6 = vrot.slane %v9661_v1, %v236_v61 }
 0x1ad   :  { %v731_v36 = vpop.f32.mrb[28].mxu1 }
 0x1ae   :  { %v9843_v23 = vadd.f32 %v731_v36, %v9794_v37  ;;  %v733_v40 = vpop.f32.mrb[29].mxu1  ;;  %v9860_v36 = vrot.slane %v9661_v1, %v240_v53 }
 0x1af   :  { %v9847_v26 = vadd.f32 %v733_v40, %v9804_v52  ;;  %v735_v10 = vpop.f32.mrb[30].mxu1  ;;  %v629_v40 = vadd.f32 %v9678_v19, %v9672_v42 }
 0x1b0   :  { %12263 = vst [vmem:[#allocation176_spill] sm:$0xff] %v9843_v23  ;;  %v9851_v46 = vadd.f32 %v735_v10, %v9794_v37  ;;  %v737_v15 = vpop.f32.mrb[31].mxu1 }
 0x1b1   :  { %12264 = vst [vmem:[#allocation177_spill] sm:$0xff] %v9847_v26  ;;  %v9854_v49 = vadd.f32 %v737_v15, %v9804_v52 }
 0x1b2   :  { %12265 = vst [vmem:[#allocation178_spill] sm:$0xff] %v9851_v46 }
 0x1b3   :  { %12266 = vst [vmem:[#allocation179_spill] sm:$0xff] %v9854_v49 }
 0x1b5   :  { %v847_v26 = vpop.f32.mrb[32].mxu1 }
 0x1b6   :  { %v9867_v10 = vadd.f32 %v847_v26, %v9857_v6  ;;  %v1753_v46 = vpop.f32.mrb[16].mxu0  ;;  %v849_v23 = vpop.f32.mrb[33].mxu1 }
 0x1b7   :  { %v1887_v15 = vadd.f32 %v1753_v46, %v629_v40  ;;  %v9870_v49 = vadd.f32 %v849_v23, %v9860_v36  ;;  %v1755_v61 = vpop.f32.mrb[17].mxu0  ;;  %v851_v0 = vpop.f32.mrb[34].mxu1 }
 0x1b8   :  { %12267 = vst [vmem:[#allocation180_spill] sm:$0xff] %v9867_v10  ;;  %v1888_v1 = vadd.f32 %v1755_v61, %v631_v60  ;;  %v9873_v53 = vadd.f32 %v851_v0, %v9857_v6  ;;  %v853_v19 = vpop.f32.mrb[35].mxu1  ;;  %v1757_v42 = vpop.f32.mrb[18].mxu0 }
 0x1b9   :  { %12268 = vst [vmem:[#allocation181_spill] sm:$0xff] %v9870_v49  ;;  %v9876_v20 = vadd.f32 %v853_v19, %v9860_v36  ;;  %v1758_v11 = vpop.f32.mrb[19].mxu0 }
 0x1ba   :  { %12269 = vst [vmem:[#allocation182_spill] sm:$0xff] %v9873_v53 }
 0x1bb   :  { %12270 = vst [vmem:[#allocation183_spill] sm:$0xff] %v9876_v20 }
 0x1bd   :  { %v857_v44 = vpop.f32.mrb[36].mxu1 }
 0x1be   :  { %v9879_v26 = vadd.f32 %v857_v44, %v9857_v6  ;;  %v859_v46 = vpop.f32.mrb[37].mxu1 }
 0x1bf   :  { %v9882_v23 = vadd.f32 %v859_v46, %v9860_v36  ;;  %v861_v40 = vpop.f32.mrb[38].mxu1 }
 0x1c0   :  { %12271 = vst [vmem:[#allocation184_spill] sm:$0xff] %v9879_v26  ;;  %v9885_v60 = vadd.f32 %v861_v40, %v9857_v6  ;;  %v863_v0 = vpop.f32.mrb[39].mxu1  ;;  %v7435_v26 = vmul.f32 -1.442695, %v1888_v1  ;;  %v811_v1 = vadd.f32 %v9788_v8, %v9675_v35 }
 0x1c1   :  { %12272 = vst [vmem:[#allocation185_spill] sm:$0xff] %v9882_v23  ;;  %v9888_v61 = vadd.f32 %v863_v0, %v9860_v36 }
 0x1c2   :  { %12273 = vst [vmem:[#allocation186_spill] sm:$0xff] %v9885_v60  ;;  %8198 = vpow2.f32 %v7435_v26 }
 0x1c3   :  { %12274 = vst [vmem:[#allocation187_spill] sm:$0xff] %v9888_v61  ;;  %v7434_v61 = vmul.f32 -1.442695, %v1887_v15 }
 0x1c5   :  { %v867_v42 = vpop.f32.mrb[40].mxu1  ;;  %8200 = vpow2.f32 %v7434_v61 }
 0x1c6   :  { %v9891_v19 = vadd.f32 %v867_v42, %v9857_v6  ;;  %v869_v11 = vpop.f32.mrb[41].mxu1 }
 0x1c7   :  { %v9894_v44 = vadd.f32 %v869_v11, %v9860_v36  ;;  %v871_v49 = vpop.f32.mrb[42].mxu1 }
 0x1c8   :  { %12275 = vst [vmem:[#allocation188_spill] sm:$0xff] %v9891_v19  ;;  %v9897_v46 = vadd.f32 %v871_v49, %v9857_v6  ;;  %v873_v10 = vpop.f32.mrb[43].mxu1  ;;  %v704_v19 = vadd.f32 %v9799_v38, %v9804_v52 }
 0x1c9   :  { %12276 = vst [vmem:[#allocation189_spill] sm:$0xff] %v9894_v44  ;;  %v9900_v40 = vadd.f32 %v873_v10, %v9860_v36 }
 0x1ca   :  { %12277 = vst [vmem:[#allocation190_spill] sm:$0xff] %v9897_v46 }
 0x1cb   :  { %12278 = vst [vmem:[#allocation191_spill] sm:$0xff] %v9900_v40 }
 0x1cc   :  { %v8199_v49 = vpop.eup %8198 }
 0x1cd   :  { %v877_v20 = vpop.f32.mrb[44].mxu1  ;;  %v1908_v10 = vadd.f32 1.0, %v8199_v49 }
 0x1ce   :  { %v9903_v0 = vadd.f32 %v877_v20, %v9857_v6  ;;  %v879_v53 = vpop.f32.mrb[45].mxu1  ;;  %v702_v20 = vadd.f32 %v9797_v13, %v9794_v37 }
 0x1cf   :  { %v9906_v42 = vadd.f32 %v879_v53, %v9860_v36  ;;  %v9908_v23 = vpop.f32.mrb[46].mxu1  ;;  %v8201_v60 = vpop.eup %8200  ;;  %v809_v53 = vadd.f32 %v9785_v43, %v9667_v57  ;;  %8202 = vrcp.f32 %v1908_v10 }
 0x1d0   :  { %12279 = vst [vmem:[#allocation192_spill] sm:$0xff] %v9903_v0  ;;  %v9910_v11 = vpop.f32.mrb[47].mxu1  ;;  %v1902_v44 = vadd.f32 1.0, %v8201_v60 }
 0x1d1   :  { %12280 = vst [vmem:[#allocation193_spill] sm:$0xff] %v9906_v42 }
 0x1d2   :  { %8204 = vrcp.f32 %v1902_v44 }
 0x1d9   :  { %v8203_v57 = vpop.eup %8202 }
 0x1da   :  { %v1918_v35 = vmul.f32 0.0, %v8203_v57 }
 0x1dc   :  { %v8205_v43 = vpop.eup %8204 }
 0x1f5   :  { %v1794_v40 = vpop.f32.mrb[48].mxu1 }
 0x1f6   :  { %v1889_v15 = vadd.f32 %v1794_v40, %v702_v20  ;;  %v1835_v26 = vpop.f32.mrb[20].mxu0  ;;  %v1796_v61 = vpop.f32.mrb[49].mxu1  ;;  %v2441_v20 = vsel %vm2439_vm6, 1, %v12145_v17 }
 0x1f7   :  { %v1895_v49 = vadd.f32 %v1835_v26, %v809_v53  ;;  %v1890_v60 = vadd.f32 %v1796_v61, %v704_v19  ;;  %v1837_v46 = vpop.f32.mrb[21].mxu0  ;;  %v1798_v42 = vpop.f32.mrb[50].mxu1 }
 0x1f8   :  { %8206 = vtanh.f32 %v1889_v15  ;;  %v1896_v37 = vadd.f32 %v1837_v46, %v811_v1  ;;  %v1799_v13 = vpop.f32.mrb[51].mxu1  ;;  %v1839_v38 = vpop.f32.mrb[22].mxu0  ;;  %v2687_v15 = vsel %vm2685_vm7, 1, %v12145_v17 }
 0x1f9   :  { %v7436_v52 = vmul.f32 -1.442695, %v1890_v60  ;;  %v1840_v0 = vpop.f32.mrb[23].mxu0  ;;  %v7437_v1 = vmul.f32 -1.442695, %v1895_v49  ;;  %v882_v38 = vadd.f32 %v9908_v23, %v9857_v6 }
 0x1fa   :  { %v2202_v0 = vsel %vm2194_vm4, 1, %v12145_v17  ;;  %v7438_v53 = vmul.f32 -1.442695, %v1896_v37 }
 0x1fb   :  { %8208 = vpow2.f32 %v7436_v52  ;;  %2204 = vperm.xlu1 %7925, %v2202_v0   ;;  %v884_v52 = vadd.f32 %v9910_v11, %v9860_v36  ;;  %v9940_v11 = vpop.permute.xlu0 %1958 }
 0x1fc   :  { %12281 = vst [vmem:[#allocation194_spill] sm:$0xff] %v9940_v11  ;;  %vm1960_vm8 = vcmp.eq.s32.totalorder %v9940_v11, 1  ;;  %v12409_v11 = vld [vmem:[#allocation132_spill] sm:$0xff] }
 0x1fd   :  { %vm7440_vm10 = vmpackc.low %vm1960_vm8, %vm1960_vm8 }
 0x202   :  { %v8207_v32 = vpop.eup %8206 }
 0x203   :  { %v1919_v8 = vmul.f32 %v8207_v32, %v8205_v43  ;;  %v2195_v32 = vsel %vm2193_vm5, 1, %v12145_v17  ;;  %v12306_v17 = vld [vmem:[#allocation100_spill] sm:$0xff] }
 0x204   :  { %2197 = vperm.xlu1 %7925, %v2195_v32  }
 0x205   :  { %v9920_v40 = vadd.f32 %v1919_v8, %v1918_v35  ;;  %v8209_v10 = vpop.eup %8208 }
 0x206   :  { %v1915_v19 = vadd.f32 1.0, %v8209_v10 }
 0x207   :  { %8210 = vtanh.f32 %v9920_v40 }
 0x208   :  { %8212 = vrcp.f32 %v1915_v19  ;;  %2443 = vperm.xlu1 %7925, %v2441_v20  }
 0x209   :  { %8214 = vpow2.f32 %v7438_v53  ;;  %v9942_v53 = vpop.permute.xlu0 %1951 }
 0x20a   :  { %8216 = vpow2.f32 %v7437_v1  ;;  %12282 = vst [vmem:[#allocation195_spill] sm:$0xff] %v9942_v53  ;;  %vm1953_vm9 = vcmp.eq.s32.totalorder %v9942_v53, 1 }
 0x20b   :  { %vm9960_vm11 = vmpackc.low %vm1953_vm9, %vm1953_vm9 }
 0x20c   :  { %2689 = vperm.xlu1 %7925, %v2687_v15  }
 0x211   :  { %v8211_v44 = vpop.eup %8210 }
 0x212   :  { %v8213_v42 = vpop.eup %8212 }
 0x213   :  { %v9923_v46 = vmul.f32 %v8213_v42, %v8211_v44  ;;  %v8215_v26 = vpop.eup %8214 }
 0x214   :  { %v8217_v61 = vpop.eup %8216  ;;  %v1932_v60 = vadd.f32 1.0, %v8215_v26 }
 0x215   :  { %v1926_v13 = vadd.f32 1.0, %v8217_v61  ;;  %v9955_v26 = vpack.c.bf16 %v9923_v46, %v9923_v46  ;;  %v12324_v61 = vld [vmem:[#allocation65_spill] sm:$0xff] }
 0x216   :  { %8218 = vrcp.f32 %v1932_v60  ;;  %v12285_v60 = vld [vmem:[#allocation58_spill] sm:$0xff] }
 0x217   :  { %8220 = vrcp.f32 %v1926_v13  ;;  %v12286_v13 = vld [vmem:[#allocation60_spill] sm:$0xff] }
 0x220   :  { %v8219_v10 = vpop.eup %8218 }
 0x221   :  { %v8221_v19 = vpop.eup %8220  ;;  %v1942_v42 = vmul.f32 0.0, %v8219_v10  ;;  %v12296_v10 = vld [vmem:[#allocation80_spill] sm:$0xff] }
 0x235   :  { %v1876_v57 = vpop.f32.mrb[52].mxu1 }
 0x236   :  { %v1897_v27 = vadd.f32 %v1876_v57, %v882_v38  ;;  %v1878_v49 = vpop.f32.mrb[53].mxu1  ;;  %v12287_v38 = vld [vmem:[#allocation62_spill] sm:$0xff] }
 0x237   :  { %v1898_v37 = vadd.f32 %v1878_v49, %v884_v52  ;;  %v1880_v43 = vpop.f32.mrb[54].mxu1  ;;  %v12288_v52 = vld [vmem:[#allocation64_spill] sm:$0xff]  ;;  %v12289_v57 = vld [vmem:[#allocation66_spill] sm:$0xff] }
 0x238   :  { %8222 = vtanh.f32 %v1897_v27  ;;  %v1881_v35 = vpop.f32.mrb[55].mxu1  ;;  %v12290_v27 = vld [vmem:[#allocation68_spill] sm:$0xff]  ;;  %v12291_v49 = vld [vmem:[#allocation70_spill] sm:$0xff] }
 0x239   :  { %v7439_v8 = vmul.f32 -1.442695, %v1898_v37  ;;  %v12292_v37 = vld [vmem:[#allocation72_spill] sm:$0xff]  ;;  %v12293_v43 = vld [vmem:[#allocation74_spill] sm:$0xff] }
 0x23a   :  { %v12294_v35 = vld [vmem:[#allocation76_spill] sm:$0xff] }
 0x23b   :  { %8224 = vpow2.f32 %v7439_v8  ;;  %v12295_v8 = vld [vmem:[#allocation78_spill] sm:$0xff] }
 0x242   :  { %v8223_v44 = vpop.eup %8222 }
 0x243   :  { %v1943_v0 = vmul.f32 %v8223_v44, %v8221_v19  ;;  %v12297_v19 = vld [vmem:[#allocation82_spill] sm:$0xff]  ;;  %v12298_v44 = vld [vmem:[#allocation84_spill] sm:$0xff] }
 0x245   :  { %v8225_v6 = vpop.eup %8224  ;;  %v9937_v23 = vadd.f32 %v1943_v0, %v1942_v42  ;;  %v12299_v42 = vld [vmem:[#allocation86_spill] sm:$0xff]  ;;  %v12300_v0 = vld [vmem:[#allocation88_spill] sm:$0xff] }
 0x246   :  { %v1939_v36 = vadd.f32 1.0, %v8225_v6  ;;  %v12301_v6 = vld [vmem:[#allocation90_spill] sm:$0xff] }
 0x247   :  { %8226 = vtanh.f32 %v9937_v23 }
 0x248   :  { %8228 = vrcp.f32 %v1939_v36  ;;  %v12302_v36 = vld [vmem:[#allocation92_spill] sm:$0xff] }
 0x251   :  { %v8227_v32 = vpop.eup %8226 }
 0x252   :  { %v8229_v20 = vpop.eup %8228 }
 0x253   :  { %v9944_v1 = vmul.f32 %v8229_v20, %v8227_v32  ;;  %v12303_v32 = vld [vmem:[#allocation94_spill] sm:$0xff]  ;;  %v12304_v20 = vld [vmem:[#allocation96_spill] sm:$0xff] }
 0x255   :  { %v7441_v15 = vpack.c.bf16 %v9944_v1, %v9944_v1 }
 0x257   :  { %7442 = vmatprep.mubr.msk.bf16.mxu0 %vm7440_vm10, %v7441_v15  ;;  %7448 = vmatprep.mubr.msk.bf16.mxu1 %vm7440_vm10, %v7441_v15 }
 0x258   :  { %7445 = vmatmul.mubr.msk.bf16.vlgmr.msra.gmra.mrb[24].mxu0 %vm9960_vm11, %v9955_v26  ;;  %7451 = vmatmul.mubr.msk.bf16.vlgmr.msra.gmra.mrb[56].mxu1 %vm9960_vm11, %v9955_v26 }
 0x259   :  { %2048 = vmatpush1.bf16.msra.mxu0 %v12285_v60  ;;  %2089 = vmatpush1.bf16.msra.mxu1 %v9506_v9 }
 0x25a   :  { %7454 = vmatprep.mubr.msk.bf16.mxu0 %vm7440_vm10, %v7441_v15  ;;  %7460 = vmatprep.mubr.msk.bf16.mxu1 %vm7440_vm10, %v7441_v15  ;;  %v12305_v15 = vld [vmem:[#allocation98_spill] sm:$0xff] }
 0x25b   :  { %2049 = vmatprep.subr.bf16.mxu0 %v12286_v13  ;;  %2090 = vmatprep.subr.bf16.mxu1 %v9510_v30 }
 0x25d   :  { %2050 = vmatpush1.bf16.msra.mxu0 %v12287_v38  ;;  %2091 = vmatpush1.bf16.msra.mxu1 %v9516_v21 }
 0x25e   :  { %2051 = vmatprep.subr.bf16.mxu0 %v12288_v52  ;;  %2092 = vmatprep.subr.bf16.mxu1 %v9519_v25 }
 0x261   :  { %2052 = vmatpush1.bf16.msra.mxu0 %v12289_v57  ;;  %2093 = vmatpush1.bf16.msra.mxu1 %v9525_v7 }
 0x262   :  { %2053 = vmatprep.subr.bf16.mxu0 %v12290_v27  ;;  %2094 = vmatprep.subr.bf16.mxu1 %v9528_v54 }
 0x265   :  { %2054 = vmatpush1.bf16.msra.mxu0 %v12291_v49  ;;  %2095 = vmatpush1.bf16.msra.mxu1 %v9533_v29 }
 0x266   :  { %2055 = vmatprep.subr.bf16.mxu0 %v12292_v37  ;;  %2096 = vmatprep.subr.bf16.mxu1 %v9536_v16 }
 0x269   :  { %2056 = vmatpush1.bf16.msra.mxu0 %v12293_v43  ;;  %2097 = vmatpush1.bf16.msra.mxu1 %v9541_v14 }
 0x26a   :  { %2057 = vmatprep.subr.bf16.mxu0 %v12294_v35  ;;  %2098 = vmatprep.subr.bf16.mxu1 %v9544_v24 }
 0x26d   :  { %2058 = vmatpush1.bf16.msra.mxu0 %v12295_v8  ;;  %2099 = vmatpush1.bf16.msra.mxu1 %v9549_v22 }
 0x26e   :  { %2059 = vmatprep.subr.bf16.mxu0 %v12296_v10  ;;  %2100 = vmatprep.subr.bf16.mxu1 %v9552_v33 }
 0x271   :  { %2060 = vmatpush1.bf16.msra.mxu0 %v12297_v19  ;;  %2101 = vmatpush1.bf16.msra.mxu1 %v9557_v31 }
 0x272   :  { %2061 = vmatprep.subr.bf16.mxu0 %v12298_v44  ;;  %2102 = vmatprep.subr.bf16.mxu1 %v9560_v41 }
 0x275   :  { %2062 = vmatpush1.bf16.msra.mxu0 %v12299_v42  ;;  %2103 = vmatpush1.bf16.msra.mxu1 %v9565_v39 }
 0x276   :  { %2063 = vmatprep.subr.bf16.mxu0 %v12300_v0  ;;  %2104 = vmatprep.subr.bf16.mxu1 %v9568_v50 }
 0x279   :  { %2064 = vmatpush1.bf16.msra.mxu0 %v12301_v6  ;;  %2105 = vmatpush1.bf16.msra.mxu1 %v9573_v48  ;;  %v12307_v48 = vld [vmem:[#allocation102_spill] sm:$0xff] }
 0x27a   :  { %2065 = vmatprep.subr.bf16.mxu0 %v12302_v36  ;;  %2106 = vmatprep.subr.bf16.mxu1 %v9576_v58  ;;  %v12308_v58 = vld [vmem:[#allocation104_spill] sm:$0xff] }
 0x27d   :  { %2066 = vmatpush1.bf16.msra.mxu0 %v12303_v32  ;;  %2107 = vmatpush1.bf16.msra.mxu1 %v9581_v56  ;;  %v12309_v56 = vld [vmem:[#allocation106_spill] sm:$0xff] }
 0x27e   :  { %2067 = vmatprep.subr.bf16.mxu0 %v12304_v20  ;;  %2108 = vmatprep.subr.bf16.mxu1 %v9584_v4  ;;  %v12310_v4 = vld [vmem:[#allocation108_spill] sm:$0xff] }
 0x281   :  { %2068 = vmatpush1.bf16.msra.mxu0 %v12305_v15  ;;  %2109 = vmatpush1.bf16.msra.mxu1 %v9589_v2 }
 0x282   :  { %2069 = vmatprep.subr.bf16.mxu0 %v12306_v17  ;;  %2110 = vmatprep.subr.bf16.mxu1 %v9592_v18  ;;  %v12311_v18 = vld [vmem:[#allocation112_spill] sm:$0xff] }
 0x285   :  { %2070 = vmatpush1.bf16.msra.mxu0 %v12307_v48  ;;  %2111 = vmatpush1.bf16.msra.mxu1 %v9597_v12  ;;  %v12312_v12 = vld [vmem:[#allocation114_spill] sm:$0xff] }
 0x286   :  { %2071 = vmatprep.subr.bf16.mxu0 %v12308_v58  ;;  %2112 = vmatprep.subr.bf16.mxu1 %v9600_v34  ;;  %v12313_v34 = vld [vmem:[#allocation116_spill] sm:$0xff] }
 0x289   :  { %2072 = vmatpush1.bf16.msra.mxu0 %v12309_v56  ;;  %2113 = vmatpush1.bf16.msra.mxu1 %v9607_v45  ;;  %v12314_v45 = vld [vmem:[#allocation118_spill] sm:$0xff] }
 0x28a   :  { %2073 = vmatprep.subr.bf16.mxu0 %v12310_v4  ;;  %2114 = vmatprep.subr.bf16.mxu1 %v9610_v47  ;;  %v12315_v47 = vld [vmem:[#allocation23_spill] sm:$0xff] }
 0x28b   :  { %v12382_v4 = vld [vmem:[#allocation167_spill] sm:$0xff] }
 0x28d   :  { %2074 = vmatpush1.bf16.msra.mxu0 %v9476_v63  ;;  %2115 = vmatpush1.bf16.msra.mxu1 %v9617_v55  ;;  %v12381_v63 = vld [vmem:[#allocation141_spill] sm:$0xff] }
 0x28e   :  { %2075 = vmatprep.subr.bf16.mxu0 %v12311_v18  ;;  %2116 = vmatprep.subr.bf16.mxu1 %v9620_v28  ;;  %v12379_v28 = vld [vmem:[#allocation139_spill] sm:$0xff]  ;;  %v12380_v18 = vld [vmem:[#allocation166_spill] sm:$0xff] }
 0x291   :  { %2076 = vmatpush1.bf16.msra.mxu0 %v12312_v12  ;;  %2117 = vmatpush1.bf16.msra.mxu1 %v9625_v62  ;;  %v12316_v62 = vld [vmem:[#allocation24_spill] sm:$0xff] }
 0x292   :  { %2077 = vmatprep.subr.bf16.mxu0 %v12313_v34  ;;  %2118 = vmatprep.subr.bf16.mxu1 %v9628_v5  ;;  %v12317_v5 = vld [vmem:[#allocation25_spill] sm:$0xff]  ;;  %v12322_v34 = vld [vmem:[#allocation63_spill] sm:$0xff]  ;;  %v12323_v12 = vld [vmem:[#allocation28_spill] sm:$0xff] }
 0x295   :  { %2078 = vmatpush1.bf16.msra.mxu0 %v12314_v45  ;;  %2119 = vmatpush1.bf16.msra.mxu1 %v9633_v51  ;;  %v12318_v45 = vld [vmem:[#allocation59_spill] sm:$0xff]  ;;  %v12319_v51 = vld [vmem:[#allocation26_spill] sm:$0xff] }
 0x296   :  { %2211 = vmatprep.subr.bf16.mxu0 %v12315_v47  ;;  %2252 = vmatprep.subr.bf16.mxu1 %v9292_v59  ;;  %v12320_v47 = vld [vmem:[#allocation61_spill] sm:$0xff]  ;;  %v12321_v59 = vld [vmem:[#allocation27_spill] sm:$0xff] }
 0x298   :  { %7457 = vmatmul.mubr.msk.bf16.vlgmr.msra.gmra.mrb[28].mxu0 %vm9960_vm11, %v9955_v26  ;;  %7463 = vmatmul.mubr.msk.bf16.vlgmr.msra.gmra.mrb[60].mxu1 %vm9960_vm11, %v9955_v26  ;;  %v12325_v26 = vld [vmem:[#allocation29_spill] sm:$0xff] }
 0x299   :  { %2212 = vmatpush1.bf16.msra.mxu0 %v12316_v62  ;;  %2253 = vmatpush1.bf16.msra.mxu1 %v9297_v3  ;;  %v12326_v62 = vld [vmem:[#allocation67_spill] sm:$0xff]  ;;  %v12327_v3 = vld [vmem:[#allocation30_spill] sm:$0xff] }
 0x29a   :  { %2213 = vmatprep.subr.bf16.mxu0 %v12317_v5  ;;  %2254 = vmatprep.subr.bf16.mxu1 %v12318_v45  ;;  %v12328_v5 = vld [vmem:[#allocation69_spill] sm:$0xff]  ;;  %v12329_v45 = vld [vmem:[#allocation31_spill] sm:$0xff] }
 0x29d   :  { %2214 = vmatpush1.bf16.msra.mxu0 %v12319_v51  ;;  %2255 = vmatpush1.bf16.msra.mxu1 %v12320_v47  ;;  %v12330_v51 = vld [vmem:[#allocation71_spill] sm:$0xff]  ;;  %v12331_v47 = vld [vmem:[#allocation32_spill] sm:$0xff] }
 0x29e   :  { %2215 = vmatprep.subr.bf16.mxu0 %v12321_v59  ;;  %2256 = vmatprep.subr.bf16.mxu1 %v12322_v34  ;;  %v12332_v59 = vld [vmem:[#allocation73_spill] sm:$0xff] }
 0x29f   :  { %v12333_v34 = vld [vmem:[#allocation33_spill] sm:$0xff] }
 0x2a1   :  { %2216 = vmatpush1.bf16.msra.mxu0 %v12323_v12  ;;  %2257 = vmatpush1.bf16.msra.mxu1 %v12324_v61  ;;  %v12334_v12 = vld [vmem:[#allocation75_spill] sm:$0xff]  ;;  %v12335_v61 = vld [vmem:[#allocation34_spill] sm:$0xff] }
 0x2a2   :  { %2217 = vmatprep.subr.bf16.mxu0 %v12325_v26  ;;  %2258 = vmatprep.subr.bf16.mxu1 %v12326_v62  ;;  %v12336_v26 = vld [vmem:[#allocation77_spill] sm:$0xff]  ;;  %v12337_v62 = vld [vmem:[#allocation35_spill] sm:$0xff] }
 0x2a5   :  { %2218 = vmatpush1.bf16.msra.mxu0 %v12327_v3  ;;  %2259 = vmatpush1.bf16.msra.mxu1 %v12328_v5  ;;  %v12338_v3 = vld [vmem:[#allocation79_spill] sm:$0xff]  ;;  %v12339_v5 = vld [vmem:[#allocation36_spill] sm:$0xff] }
 0x2a6   :  { %2219 = vmatprep.subr.bf16.mxu0 %v12329_v45  ;;  %2260 = vmatprep.subr.bf16.mxu1 %v12330_v51  ;;  %v12340_v45 = vld [vmem:[#allocation81_spill] sm:$0xff] }
 0x2a7   :  { %v12341_v51 = vld [vmem:[#allocation37_spill] sm:$0xff] }
 0x2a9   :  { %2220 = vmatpush1.bf16.msra.mxu0 %v12331_v47  ;;  %2261 = vmatpush1.bf16.msra.mxu1 %v12332_v59  ;;  %v12342_v47 = vld [vmem:[#allocation83_spill] sm:$0xff]  ;;  %v12343_v59 = vld [vmem:[#allocation38_spill] sm:$0xff] }
 0x2aa   :  { %2221 = vmatprep.subr.bf16.mxu0 %v12333_v34  ;;  %2262 = vmatprep.subr.bf16.mxu1 %v12334_v12  ;;  %v12344_v34 = vld [vmem:[#allocation85_spill] sm:$0xff]  ;;  %v12345_v12 = vld [vmem:[#allocation39_spill] sm:$0xff] }
 0x2ad   :  { %2222 = vmatpush1.bf16.msra.mxu0 %v12335_v61  ;;  %2263 = vmatpush1.bf16.msra.mxu1 %v12336_v26  ;;  %v12346_v61 = vld [vmem:[#allocation87_spill] sm:$0xff]  ;;  %v12347_v26 = vld [vmem:[#allocation40_spill] sm:$0xff] }
 0x2ae   :  { %2223 = vmatprep.subr.bf16.mxu0 %v12337_v62  ;;  %2264 = vmatprep.subr.bf16.mxu1 %v12338_v3  ;;  %v12348_v62 = vld [vmem:[#allocation89_spill] sm:$0xff] }
 0x2af   :  { %v12349_v3 = vld [vmem:[#allocation41_spill] sm:$0xff] }
 0x2b1   :  { %2224 = vmatpush1.bf16.msra.mxu0 %v12339_v5  ;;  %2265 = vmatpush1.bf16.msra.mxu1 %v12340_v45  ;;  %v12350_v5 = vld [vmem:[#allocation91_spill] sm:$0xff]  ;;  %v12351_v45 = vld [vmem:[#allocation42_spill] sm:$0xff] }
 0x2b2   :  { %2225 = vmatprep.subr.bf16.mxu0 %v12341_v51  ;;  %2266 = vmatprep.subr.bf16.mxu1 %v12342_v47  ;;  %v12352_v51 = vld [vmem:[#allocation93_spill] sm:$0xff]  ;;  %v12353_v47 = vld [vmem:[#allocation43_spill] sm:$0xff] }
 0x2b5   :  { %2226 = vmatpush1.bf16.msra.mxu0 %v12343_v59  ;;  %2267 = vmatpush1.bf16.msra.mxu1 %v12344_v34  ;;  %v12354_v59 = vld [vmem:[#allocation95_spill] sm:$0xff]  ;;  %v12355_v34 = vld [vmem:[#allocation44_spill] sm:$0xff] }
 0x2b6   :  { %2227 = vmatprep.subr.bf16.mxu0 %v12345_v12  ;;  %2268 = vmatprep.subr.bf16.mxu1 %v12346_v61  ;;  %v12356_v12 = vld [vmem:[#allocation97_spill] sm:$0xff] }
 0x2b7   :  { %v12357_v61 = vld [vmem:[#allocation45_spill] sm:$0xff] }
 0x2b9   :  { %2228 = vmatpush1.bf16.msra.mxu0 %v12347_v26  ;;  %2269 = vmatpush1.bf16.msra.mxu1 %v12348_v62  ;;  %v12358_v26 = vld [vmem:[#allocation99_spill] sm:$0xff]  ;;  %v12359_v62 = vld [vmem:[#allocation46_spill] sm:$0xff] }
 0x2ba   :  { %2229 = vmatprep.subr.bf16.mxu0 %v12349_v3  ;;  %2270 = vmatprep.subr.bf16.mxu1 %v12350_v5  ;;  %v12360_v3 = vld [vmem:[#allocation101_spill] sm:$0xff]  ;;  %v12361_v5 = vld [vmem:[#allocation47_spill] sm:$0xff] }
 0x2bd   :  { %2230 = vmatpush1.bf16.msra.mxu0 %v12351_v45  ;;  %2271 = vmatpush1.bf16.msra.mxu1 %v12352_v51  ;;  %v12362_v45 = vld [vmem:[#allocation103_spill] sm:$0xff]  ;;  %v12363_v51 = vld [vmem:[#allocation48_spill] sm:$0xff] }
 0x2be   :  { %2231 = vmatprep.subr.bf16.mxu0 %v12353_v47  ;;  %2272 = vmatprep.subr.bf16.mxu1 %v12354_v59  ;;  %v12364_v47 = vld [vmem:[#allocation105_spill] sm:$0xff] }
 0x2bf   :  { %v12365_v59 = vld [vmem:[#allocation49_spill] sm:$0xff] }
 0x2c1   :  { %2232 = vmatpush1.bf16.msra.mxu0 %v12355_v34  ;;  %2273 = vmatpush1.bf16.msra.mxu1 %v12356_v12  ;;  %v12366_v34 = vld [vmem:[#allocation107_spill] sm:$0xff]  ;;  %v12367_v12 = vld [vmem:[#allocation50_spill] sm:$0xff] }
 0x2c2   :  { %2233 = vmatprep.subr.bf16.mxu0 %v12357_v61  ;;  %2274 = vmatprep.subr.bf16.mxu1 %v12358_v26  ;;  %v12368_v61 = vld [vmem:[#allocation109_spill] sm:$0xff]  ;;  %v12369_v26 = vld [vmem:[#allocation51_spill] sm:$0xff] }
 0x2c5   :  { %2234 = vmatpush1.bf16.msra.mxu0 %v12359_v62  ;;  %2275 = vmatpush1.bf16.msra.mxu1 %v12360_v3  ;;  %v12370_v62 = vld [vmem:[#allocation111_spill] sm:$0xff]  ;;  %v12371_v3 = vld [vmem:[#allocation52_spill] sm:$0xff] }
 0x2c6   :  { %2235 = vmatprep.subr.bf16.mxu0 %v12361_v5  ;;  %2276 = vmatprep.subr.bf16.mxu1 %v12362_v45  ;;  %v12372_v5 = vld [vmem:[#allocation113_spill] sm:$0xff] }
 0x2c7   :  { %v12373_v45 = vld [vmem:[#allocation53_spill] sm:$0xff] }
 0x2c9   :  { %2236 = vmatpush1.bf16.msra.mxu0 %v12363_v51  ;;  %2277 = vmatpush1.bf16.msra.mxu1 %v12364_v47  ;;  %v12374_v51 = vld [vmem:[#allocation115_spill] sm:$0xff]  ;;  %v12375_v47 = vld [vmem:[#allocation54_spill] sm:$0xff] }
 0x2ca   :  { %2237 = vmatprep.subr.bf16.mxu0 %v12365_v59  ;;  %2278 = vmatprep.subr.bf16.mxu1 %v12366_v34  ;;  %v12376_v59 = vld [vmem:[#allocation117_spill] sm:$0xff]  ;;  %v12377_v34 = vld [vmem:[#allocation56_spill] sm:$0xff] }
 0x2cd   :  { %2238 = vmatpush1.bf16.msra.mxu0 %v12367_v12  ;;  %2279 = vmatpush1.bf16.msra.mxu1 %v12368_v61  ;;  %v12378_v12 = vld [vmem:[#allocation119_spill] sm:$0xff] }
 0x2ce   :  { %2239 = vmatprep.subr.bf16.mxu0 %v12369_v26  ;;  %2280 = vmatprep.subr.bf16.mxu1 %v12370_v62 }
 0x2d1   :  { %2240 = vmatpush1.bf16.msra.mxu0 %v12371_v3  ;;  %2281 = vmatpush1.bf16.msra.mxu1 %v12372_v5 }
 0x2d2   :  { %2241 = vmatprep.subr.bf16.mxu0 %v12373_v45  ;;  %2282 = vmatprep.subr.bf16.mxu1 %v12374_v51 }
 0x2d5   :  { %2242 = vmatpush1.bf16.msra.mxu0 %v12375_v47  ;;  %2283 = vmatpush1.bf16.msra.mxu1 %v12376_v59 }
 0x2d6   :  { %2293 = vmatprep.subr.bf16.mxu0 %v12377_v34  ;;  %2334 = vmatprep.subr.bf16.mxu1 %v12378_v12 }
 0x32b   :  { %v1999_v61 = vpop.f32.mrb[24].mxu0  ;;  %v2040_v26 = vpop.f32.mrb[56].mxu1 }
 0x32c   :  { %v2133_v62 = vadd.f32 %v1999_v61, %v12379_v28  ;;  %v2135_v3 = vadd.f32 %v2040_v26, %v12380_v18  ;;  %v2001_v55 = vpop.f32.mrb[25].mxu0  ;;  %v2042_v5 = vpop.f32.mrb[57].mxu1  ;;  %v12385_v26 = vld [vmem:[#allocation164_spill] sm:$0xff] }
 0x32d   :  { %v2134_v45 = vadd.f32 %v2001_v55, %v12381_v63  ;;  %v2136_v51 = vadd.f32 %v2042_v5, %v12382_v4  ;;  %v2003_v56 = vpop.f32.mrb[26].mxu0  ;;  %v2044_v47 = vpop.f32.mrb[58].mxu1 }
 0x32e   :  { %v7464_v58 = vmul.f32 -1.442695, %v2133_v62  ;;  %v2004_v59 = vpop.f32.mrb[27].mxu0  ;;  %v2045_v48 = vpop.f32.mrb[59].mxu1  ;;  %v1954_v47 = vsel %vm1953_vm9, %v9923_v46, 0.0 }
 0x32f   :  { %v7465_v34 = vmul.f32 -1.442695, %v2134_v45  ;;  %v7466_v12 = vmul.f32 -1.442695, %v2136_v51  ;;  %v10108_v55 = vpop.permute.xlu1 %2204 }
 0x330   :  { %8230 = vpow2.f32 %v7464_v58  ;;  %12383 = vst [vmem:[#allocation58_spill] sm:$0xff] %v10108_v55  ;;  %v1955_v58 = vsel %vm1953_vm9, %v9920_v40, 0.0  ;;  %vm2206_vm13 = vcmp.eq.s32.totalorder %v10108_v55, 1  ;;  %v12410_v55 = vld [vmem:[#allocation116_spill] sm:$0xff] }
 0x331   :  { %8232 = vpow2.f32 %v7465_v34 }
 0x332   :  { %8234 = vpow2.f32 %v7466_v12 }
 0x333   :  { %8236 = vtanh.f32 %v2135_v3  ;;  %v10110_v62 = vpop.permute.xlu1 %2197 }
 0x334   :  { %12384 = vst [vmem:[#allocation60_spill] sm:$0xff] %v10110_v62  ;;  %vm2199_vm12 = vcmp.eq.s32.totalorder %v10110_v62, 1 }
 0x33a   :  { %v8231_v17 = vpop.eup %8230 }
 0x33b   :  { %v8233_v2 = vpop.eup %8232  ;;  %v2148_v28 = vadd.f32 1.0, %v8231_v17 }
 0x33c   :  { %v2154_v18 = vadd.f32 1.0, %v8233_v2  ;;  %v8235_v4 = vpop.eup %8234 }
 0x33d   :  { %8238 = vrcp.f32 %v2148_v28  ;;  %v8237_v56 = vpop.eup %8236  ;;  %v2161_v45 = vadd.f32 1.0, %v8235_v4 }
 0x33e   :  { %8240 = vrcp.f32 %v2154_v18  ;;  %v12386_v18 = vld [vmem:[#allocation192_spill] sm:$0xff] }
 0x33f   :  { %8242 = vrcp.f32 %v2161_v45 }
 0x347   :  { %v8239_v5 = vpop.eup %8238 }
 0x348   :  { %v8241_v48 = vpop.eup %8240  ;;  %v2165_v34 = vmul.f32 %v8239_v5, %v8237_v56 }
 0x349   :  { %v2164_v59 = vmul.f32 %v8241_v48, %v1955_v58  ;;  %v8243_v3 = vpop.eup %8242  ;;  %v12387_v48 = vld [vmem:[#allocation165_spill] sm:$0xff] }
 0x34b   :  { %v2166_v2 = vadd.f32 %v2165_v34, %v2164_v59 }
 0x34d   :  { %8244 = vtanh.f32 %v2166_v2  ;;  %v10118_v12 = vsel %vm2199_vm12, %v2166_v2, %v1955_v58  ;;  %v12388_v58 = vld [vmem:[#allocation193_spill] sm:$0xff] }
 0x357   :  { %v8245_v17 = vpop.eup %8244 }
 0x358   :  { %v2168_v63 = vmul.f32 %v8245_v17, %v8243_v3 }
 0x35a   :  { %v10125_v51 = vsel %vm2199_vm12, %v2168_v63, %v1954_v47 }
 0x36b   :  { %v2081_v40 = vpop.f32.mrb[28].mxu0  ;;  %v2122_v61 = vpop.f32.mrb[60].mxu1 }
 0x36c   :  { %v2141_v28 = vadd.f32 %v2081_v40, %v12385_v26  ;;  %v2143_v4 = vadd.f32 %v2122_v61, %v12386_v18  ;;  %v2083_v56 = vpop.f32.mrb[29].mxu0  ;;  %v2124_v5 = vpop.f32.mrb[61].mxu1 }
 0x36d   :  { %v2142_v45 = vadd.f32 %v2083_v56, %v12387_v48  ;;  %v2144_v34 = vadd.f32 %v2124_v5, %v12388_v58  ;;  %v2085_v59 = vpop.f32.mrb[30].mxu0  ;;  %v2126_v2 = vpop.f32.mrb[62].mxu1 }
 0x36e   :  { %v7467_v3 = vmul.f32 -1.442695, %v2141_v28  ;;  %v2086_v46 = vpop.f32.mrb[31].mxu0  ;;  %v2127_v17 = vpop.f32.mrb[63].mxu1  ;;  %v1962_v28 = vsel %vm1960_vm8, %v9937_v23, 0.0  ;;  %v1961_v2 = vsel %vm1960_vm8, %v9944_v1, 0.0 }
 0x36f   :  { %v7468_v53 = vmul.f32 -1.442695, %v2142_v45  ;;  %v7469_v63 = vmul.f32 -1.442695, %v2144_v34  ;;  %v10150_v46 = vpack.c.bf16 %v10125_v51, %v10125_v51  ;;  %v12389_v1 = vld [vmem:[#allocation120_spill] sm:$0xff]  ;;  %v12390_v17 = vld [vmem:[#allocation121_spill] sm:$0xff] }
 0x370   :  { %8246 = vpow2.f32 %v7467_v3 }
 0x371   :  { %8248 = vpow2.f32 %v7468_v53 }
 0x372   :  { %8250 = vpow2.f32 %v7469_v63  ;;  %v12391_v63 = vld [vmem:[#allocation122_spill] sm:$0xff] }
 0x373   :  { %8252 = vtanh.f32 %v2143_v4 }
 0x37a   :  { %v8247_v47 = vpop.eup %8246 }
 0x37b   :  { %v8249_v62 = vpop.eup %8248  ;;  %v2172_v40 = vadd.f32 1.0, %v8247_v47  ;;  %v12392_v47 = vld [vmem:[#allocation123_spill] sm:$0xff] }
 0x37c   :  { %v2178_v61 = vadd.f32 1.0, %v8249_v62  ;;  %v8251_v26 = vpop.eup %8250 }
 0x37d   :  { %8254 = vrcp.f32 %v2172_v40  ;;  %v8253_v18 = vpop.eup %8252  ;;  %v2185_v45 = vadd.f32 1.0, %v8251_v26  ;;  %v12393_v40 = vld [vmem:[#allocation124_spill] sm:$0xff]  ;;  %v12395_v26 = vld [vmem:[#allocation125_spill] sm:$0xff] }
 0x37e   :  { %8256 = vrcp.f32 %v2178_v61  ;;  %v12394_v61 = vld [vmem:[#allocation100_spill] sm:$0xff] }
 0x37f   :  { %8258 = vrcp.f32 %v2185_v45  ;;  %v12401_v45 = vld [vmem:[#allocation128_spill] sm:$0xff] }
 0x387   :  { %v8255_v56 = vpop.eup %8254 }
 0x388   :  { %v8257_v5 = vpop.eup %8256  ;;  %v2189_v48 = vmul.f32 %v8255_v56, %v8253_v18  ;;  %v12396_v18 = vld [vmem:[#allocation102_spill] sm:$0xff] }
 0x389   :  { %v2188_v53 = vmul.f32 %v8257_v5, %v1962_v28  ;;  %v8259_v4 = vpop.eup %8258  ;;  %v12397_v56 = vld [vmem:[#allocation126_spill] sm:$0xff]  ;;  %v12398_v5 = vld [vmem:[#allocation104_spill] sm:$0xff] }
 0x38b   :  { %v2190_v58 = vadd.f32 %v2189_v48, %v2188_v53  ;;  %v12400_v48 = vld [vmem:[#allocation106_spill] sm:$0xff]  ;;  %v12402_v53 = vld [vmem:[#allocation108_spill] sm:$0xff] }
 0x38d   :  { %8260 = vtanh.f32 %v2190_v58  ;;  %v10137_v62 = vsel %vm2206_vm13, %v2190_v58, %v1962_v28  ;;  %v12399_v28 = vld [vmem:[#allocation127_spill] sm:$0xff]  ;;  %v12403_v58 = vld [vmem:[#allocation129_spill] sm:$0xff] }
 0x397   :  { %v8261_v34 = vpop.eup %8260 }
 0x398   :  { %v2192_v59 = vmul.f32 %v8261_v34, %v8259_v4  ;;  %v12404_v4 = vld [vmem:[#allocation110_spill] sm:$0xff] }
 0x399   :  { %v12405_v34 = vld [vmem:[#allocation130_spill] sm:$0xff] }
 0x39a   :  { %v10144_v23 = vsel %vm2206_vm13, %v2192_v59, %v1961_v2  ;;  %v12406_v59 = vld [vmem:[#allocation112_spill] sm:$0xff]  ;;  %v12407_v2 = vld [vmem:[#allocation131_spill] sm:$0xff] }
 0x39b   :  { %v2210_v3 = vpack.c.bf16 %v10144_v23, %v10144_v23 }
 0x39d   :  { %2243 = vmatprep.mubr.bf16.mxu0 %v2210_v3  ;;  %2284 = vmatprep.mubr.bf16.mxu1 %v2210_v3 }
 0x39e   :  { %2244 = vmatmul.mubr.bf16.vlgmr.msra.gmra.mrb[32].mxu0 %v10150_v46  ;;  %2285 = vmatmul.mubr.bf16.vlgmr.msra.gmra.mrb[64].mxu1 %v10150_v46 }
 0x39f   :  { %2294 = vmatpush1.bf16.msra.mxu0 %v12285_v60  ;;  %2335 = vmatpush1.bf16.msra.mxu1 %v9506_v9 }
 0x3a0   :  { %2325 = vmatprep.mubr.bf16.mxu0 %v2210_v3  ;;  %2366 = vmatprep.mubr.bf16.mxu1 %v2210_v3  ;;  %v12408_v3 = vld [vmem:[#allocation114_spill] sm:$0xff] }
 0x3a1   :  { %2295 = vmatprep.subr.bf16.mxu0 %v12286_v13  ;;  %2336 = vmatprep.subr.bf16.mxu1 %v9510_v30 }
 0x3a3   :  { %2296 = vmatpush1.bf16.msra.mxu0 %v12287_v38  ;;  %2337 = vmatpush1.bf16.msra.mxu1 %v9516_v21 }
 0x3a4   :  { %2297 = vmatprep.subr.bf16.mxu0 %v12288_v52  ;;  %2338 = vmatprep.subr.bf16.mxu1 %v9519_v25 }
 0x3a7   :  { %2298 = vmatpush1.bf16.msra.mxu0 %v12289_v57  ;;  %2339 = vmatpush1.bf16.msra.mxu1 %v9525_v7 }
 0x3a8   :  { %2299 = vmatprep.subr.bf16.mxu0 %v12290_v27  ;;  %2340 = vmatprep.subr.bf16.mxu1 %v9528_v54 }
 0x3ab   :  { %2300 = vmatpush1.bf16.msra.mxu0 %v12291_v49  ;;  %2341 = vmatpush1.bf16.msra.mxu1 %v9533_v29 }
 0x3ac   :  { %2301 = vmatprep.subr.bf16.mxu0 %v12292_v37  ;;  %2342 = vmatprep.subr.bf16.mxu1 %v9536_v16 }
 0x3af   :  { %2302 = vmatpush1.bf16.msra.mxu0 %v12293_v43  ;;  %2343 = vmatpush1.bf16.msra.mxu1 %v9541_v14 }
 0x3b0   :  { %2303 = vmatprep.subr.bf16.mxu0 %v12294_v35  ;;  %2344 = vmatprep.subr.bf16.mxu1 %v9544_v24 }
 0x3b3   :  { %2304 = vmatpush1.bf16.msra.mxu0 %v12295_v8  ;;  %2345 = vmatpush1.bf16.msra.mxu1 %v9549_v22 }
 0x3b4   :  { %2305 = vmatprep.subr.bf16.mxu0 %v12296_v10  ;;  %2346 = vmatprep.subr.bf16.mxu1 %v9552_v33 }
 0x3b7   :  { %2306 = vmatpush1.bf16.msra.mxu0 %v12297_v19  ;;  %2347 = vmatpush1.bf16.msra.mxu1 %v9557_v31 }
 0x3b8   :  { %2307 = vmatprep.subr.bf16.mxu0 %v12298_v44  ;;  %2348 = vmatprep.subr.bf16.mxu1 %v9560_v41 }
 0x3bb   :  { %2308 = vmatpush1.bf16.msra.mxu0 %v12299_v42  ;;  %2349 = vmatpush1.bf16.msra.mxu1 %v9565_v39 }
 0x3bc   :  { %2309 = vmatprep.subr.bf16.mxu0 %v12300_v0  ;;  %2350 = vmatprep.subr.bf16.mxu1 %v9568_v50 }
 0x3bf   :  { %2310 = vmatpush1.bf16.msra.mxu0 %v12301_v6  ;;  %2351 = vmatpush1.bf16.msra.mxu1 %v12389_v1 }
 0x3c0   :  { %2311 = vmatprep.subr.bf16.mxu0 %v12302_v36  ;;  %2352 = vmatprep.subr.bf16.mxu1 %v12390_v17 }
 0x3c3   :  { %2312 = vmatpush1.bf16.msra.mxu0 %v12303_v32  ;;  %2353 = vmatpush1.bf16.msra.mxu1 %v12391_v63 }
 0x3c4   :  { %2313 = vmatprep.subr.bf16.mxu0 %v12304_v20  ;;  %2354 = vmatprep.subr.bf16.mxu1 %v12392_v47 }
 0x3c7   :  { %2314 = vmatpush1.bf16.msra.mxu0 %v12305_v15  ;;  %2355 = vmatpush1.bf16.msra.mxu1 %v12393_v40 }
 0x3c8   :  { %2315 = vmatprep.subr.bf16.mxu0 %v12394_v61  ;;  %2356 = vmatprep.subr.bf16.mxu1 %v12395_v26 }
 0x3cb   :  { %2316 = vmatpush1.bf16.msra.mxu0 %v12396_v18  ;;  %2357 = vmatpush1.bf16.msra.mxu1 %v12397_v56  ;;  %v12482_v56 = vld [vmem:[#allocation145_spill] sm:$0xff] }
 0x3cc   :  { %2317 = vmatprep.subr.bf16.mxu0 %v12398_v5  ;;  %2358 = vmatprep.subr.bf16.mxu1 %v12399_v28  ;;  %v12481_v28 = vld [vmem:[#allocation168_spill] sm:$0xff]  ;;  %v12483_v18 = vld [vmem:[#allocation169_spill] sm:$0xff] }
 0x3cf   :  { %2318 = vmatpush1.bf16.msra.mxu0 %v12400_v48  ;;  %2359 = vmatpush1.bf16.msra.mxu1 %v12401_v45  ;;  %v12411_v48 = vld [vmem:[#allocation133_spill] sm:$0xff]  ;;  %v12412_v45 = vld [vmem:[#allocation118_spill] sm:$0xff] }
 0x3d0   :  { %2319 = vmatprep.subr.bf16.mxu0 %v12402_v53  ;;  %2360 = vmatprep.subr.bf16.mxu1 %v12403_v58  ;;  %v12413_v53 = vld [vmem:[#allocation134_spill] sm:$0xff]  ;;  %v12414_v58 = vld [vmem:[#allocation23_spill] sm:$0xff] }
 0x3d3   :  { %2320 = vmatpush1.bf16.msra.mxu0 %v12404_v4  ;;  %2361 = vmatpush1.bf16.msra.mxu1 %v12405_v34  ;;  %v12415_v4 = vld [vmem:[#allocation55_spill] sm:$0xff]  ;;  %v12480_v34 = vld [vmem:[#allocation144_spill] sm:$0xff] }
 0x3d4   :  { %2321 = vmatprep.subr.bf16.mxu0 %v12406_v59  ;;  %2362 = vmatprep.subr.bf16.mxu1 %v12407_v2  ;;  %v12416_v2 = vld [vmem:[#allocation24_spill] sm:$0xff]  ;;  %v12425_v59 = vld [vmem:[#allocation65_spill] sm:$0xff] }
 0x3d7   :  { %2322 = vmatpush1.bf16.msra.mxu0 %v12408_v3  ;;  %2363 = vmatpush1.bf16.msra.mxu1 %v12409_v11  ;;  %v12417_v3 = vld [vmem:[#allocation57_spill] sm:$0xff] }
 0x3d8   :  { %2323 = vmatprep.subr.bf16.mxu0 %v12410_v55  ;;  %2364 = vmatprep.subr.bf16.mxu1 %v12411_v48  ;;  %v12418_v11 = vld [vmem:[#allocation25_spill] sm:$0xff]  ;;  %v12419_v55 = vld [vmem:[#allocation59_spill] sm:$0xff]  ;;  %v12420_v48 = vld [vmem:[#allocation26_spill] sm:$0xff] }
 0x3db   :  { %2324 = vmatpush1.bf16.msra.mxu0 %v12412_v45  ;;  %2365 = vmatpush1.bf16.msra.mxu1 %v12413_v53  ;;  %v12421_v45 = vld [vmem:[#allocation61_spill] sm:$0xff]  ;;  %v12422_v53 = vld [vmem:[#allocation27_spill] sm:$0xff] }
 0x3dc   :  { %2457 = vmatprep.subr.bf16.mxu0 %v12414_v58  ;;  %2498 = vmatprep.subr.bf16.mxu1 %v12415_v4  ;;  %v12423_v58 = vld [vmem:[#allocation63_spill] sm:$0xff]  ;;  %v12424_v4 = vld [vmem:[#allocation28_spill] sm:$0xff] }
 0x3de   :  { %2326 = vmatmul.mubr.bf16.vlgmr.msra.gmra.mrb[36].mxu0 %v10150_v46  ;;  %2367 = vmatmul.mubr.bf16.vlgmr.msra.gmra.mrb[68].mxu1 %v10150_v46  ;;  %v12426_v46 = vld [vmem:[#allocation29_spill] sm:$0xff] }
 0x3df   :  { %2458 = vmatpush1.bf16.msra.mxu0 %v12416_v2  ;;  %2499 = vmatpush1.bf16.msra.mxu1 %v12417_v3  ;;  %v12427_v2 = vld [vmem:[#allocation67_spill] sm:$0xff]  ;;  %v12428_v3 = vld [vmem:[#allocation30_spill] sm:$0xff] }
 0x3e0   :  { %2459 = vmatprep.subr.bf16.mxu0 %v12418_v11  ;;  %2500 = vmatprep.subr.bf16.mxu1 %v12419_v55  ;;  %v12429_v11 = vld [vmem:[#allocation69_spill] sm:$0xff]  ;;  %v12430_v55 = vld [vmem:[#allocation31_spill] sm:$0xff] }
 0x3e3   :  { %2460 = vmatpush1.bf16.msra.mxu0 %v12420_v48  ;;  %2501 = vmatpush1.bf16.msra.mxu1 %v12421_v45  ;;  %v12431_v48 = vld [vmem:[#allocation71_spill] sm:$0xff]  ;;  %v12432_v45 = vld [vmem:[#allocation32_spill] sm:$0xff] }
 0x3e4   :  { %2461 = vmatprep.subr.bf16.mxu0 %v12422_v53  ;;  %2502 = vmatprep.subr.bf16.mxu1 %v12423_v58  ;;  %v12433_v53 = vld [vmem:[#allocation73_spill] sm:$0xff] }
 0x3e5   :  { %v12434_v58 = vld [vmem:[#allocation33_spill] sm:$0xff] }
 0x3e7   :  { %2462 = vmatpush1.bf16.msra.mxu0 %v12424_v4  ;;  %2503 = vmatpush1.bf16.msra.mxu1 %v12425_v59  ;;  %v12435_v4 = vld [vmem:[#allocation75_spill] sm:$0xff]  ;;  %v12436_v59 = vld [vmem:[#allocation34_spill] sm:$0xff] }
 0x3e8   :  { %2463 = vmatprep.subr.bf16.mxu0 %v12426_v46  ;;  %2504 = vmatprep.subr.bf16.mxu1 %v12427_v2  ;;  %v12437_v46 = vld [vmem:[#allocation77_spill] sm:$0xff]  ;;  %v12438_v2 = vld [vmem:[#allocation35_spill] sm:$0xff] }
 0x3eb   :  { %2464 = vmatpush1.bf16.msra.mxu0 %v12428_v3  ;;  %2505 = vmatpush1.bf16.msra.mxu1 %v12429_v11  ;;  %v12439_v3 = vld [vmem:[#allocation79_spill] sm:$0xff]  ;;  %v12440_v11 = vld [vmem:[#allocation36_spill] sm:$0xff] }
 0x3ec   :  { %2465 = vmatprep.subr.bf16.mxu0 %v12430_v55  ;;  %2506 = vmatprep.subr.bf16.mxu1 %v12431_v48  ;;  %v12441_v55 = vld [vmem:[#allocation81_spill] sm:$0xff] }
 0x3ed   :  { %v12442_v48 = vld [vmem:[#allocation37_spill] sm:$0xff] }
 0x3ef   :  { %2466 = vmatpush1.bf16.msra.mxu0 %v12432_v45  ;;  %2507 = vmatpush1.bf16.msra.mxu1 %v12433_v53  ;;  %v12443_v45 = vld [vmem:[#allocation83_spill] sm:$0xff]  ;;  %v12444_v53 = vld [vmem:[#allocation38_spill] sm:$0xff] }
 0x3f0   :  { %2467 = vmatprep.subr.bf16.mxu0 %v12434_v58  ;;  %2508 = vmatprep.subr.bf16.mxu1 %v12435_v4  ;;  %v12445_v58 = vld [vmem:[#allocation85_spill] sm:$0xff]  ;;  %v12446_v4 = vld [vmem:[#allocation39_spill] sm:$0xff] }
 0x3f3   :  { %2468 = vmatpush1.bf16.msra.mxu0 %v12436_v59  ;;  %2509 = vmatpush1.bf16.msra.mxu1 %v12437_v46  ;;  %v12447_v59 = vld [vmem:[#allocation87_spill] sm:$0xff]  ;;  %v12448_v46 = vld [vmem:[#allocation40_spill] sm:$0xff] }
 0x3f4   :  { %2469 = vmatprep.subr.bf16.mxu0 %v12438_v2  ;;  %2510 = vmatprep.subr.bf16.mxu1 %v12439_v3  ;;  %v12449_v2 = vld [vmem:[#allocation89_spill] sm:$0xff] }
 0x3f5   :  { %v12450_v3 = vld [vmem:[#allocation41_spill] sm:$0xff] }
 0x3f7   :  { %2470 = vmatpush1.bf16.msra.mxu0 %v12440_v11  ;;  %2511 = vmatpush1.bf16.msra.mxu1 %v12441_v55  ;;  %v12451_v11 = vld [vmem:[#allocation91_spill] sm:$0xff]  ;;  %v12452_v55 = vld [vmem:[#allocation42_spill] sm:$0xff] }
 0x3f8   :  { %2471 = vmatprep.subr.bf16.mxu0 %v12442_v48  ;;  %2512 = vmatprep.subr.bf16.mxu1 %v12443_v45  ;;  %v12453_v48 = vld [vmem:[#allocation93_spill] sm:$0xff]  ;;  %v12454_v45 = vld [vmem:[#allocation43_spill] sm:$0xff] }
 0x3fb   :  { %2472 = vmatpush1.bf16.msra.mxu0 %v12444_v53  ;;  %2513 = vmatpush1.bf16.msra.mxu1 %v12445_v58  ;;  %v12455_v53 = vld [vmem:[#allocation95_spill] sm:$0xff]  ;;  %v12456_v58 = vld [vmem:[#allocation44_spill] sm:$0xff] }
 0x3fc   :  { %2473 = vmatprep.subr.bf16.mxu0 %v12446_v4  ;;  %2514 = vmatprep.subr.bf16.mxu1 %v12447_v59  ;;  %v12457_v4 = vld [vmem:[#allocation97_spill] sm:$0xff] }
 0x3fd   :  { %v12458_v59 = vld [vmem:[#allocation45_spill] sm:$0xff] }
 0x3ff   :  { %2474 = vmatpush1.bf16.msra.mxu0 %v12448_v46  ;;  %2515 = vmatpush1.bf16.msra.mxu1 %v12449_v2  ;;  %v12459_v46 = vld [vmem:[#allocation99_spill] sm:$0xff]  ;;  %v12460_v2 = vld [vmem:[#allocation46_spill] sm:$0xff] }
 0x400   :  { %2475 = vmatprep.subr.bf16.mxu0 %v12450_v3  ;;  %2516 = vmatprep.subr.bf16.mxu1 %v12451_v11  ;;  %v12461_v3 = vld [vmem:[#allocation101_spill] sm:$0xff]  ;;  %v12462_v11 = vld [vmem:[#allocation47_spill] sm:$0xff] }
 0x403   :  { %2476 = vmatpush1.bf16.msra.mxu0 %v12452_v55  ;;  %2517 = vmatpush1.bf16.msra.mxu1 %v12453_v48  ;;  %v12463_v55 = vld [vmem:[#allocation103_spill] sm:$0xff]  ;;  %v12464_v48 = vld [vmem:[#allocation48_spill] sm:$0xff] }
 0x404   :  { %2477 = vmatprep.subr.bf16.mxu0 %v12454_v45  ;;  %2518 = vmatprep.subr.bf16.mxu1 %v12455_v53  ;;  %v12465_v45 = vld [vmem:[#allocation105_spill] sm:$0xff] }
 0x405   :  { %v12466_v53 = vld [vmem:[#allocation49_spill] sm:$0xff] }
 0x407   :  { %2478 = vmatpush1.bf16.msra.mxu0 %v12456_v58  ;;  %2519 = vmatpush1.bf16.msra.mxu1 %v12457_v4  ;;  %v12467_v58 = vld [vmem:[#allocation107_spill] sm:$0xff]  ;;  %v12468_v4 = vld [vmem:[#allocation50_spill] sm:$0xff] }
 0x408   :  { %2479 = vmatprep.subr.bf16.mxu0 %v12458_v59  ;;  %2520 = vmatprep.subr.bf16.mxu1 %v12459_v46  ;;  %v12469_v59 = vld [vmem:[#allocation109_spill] sm:$0xff]  ;;  %v12470_v46 = vld [vmem:[#allocation51_spill] sm:$0xff] }
 0x40b   :  { %2480 = vmatpush1.bf16.msra.mxu0 %v12460_v2  ;;  %2521 = vmatpush1.bf16.msra.mxu1 %v12461_v3  ;;  %v12471_v2 = vld [vmem:[#allocation111_spill] sm:$0xff]  ;;  %v12472_v3 = vld [vmem:[#allocation52_spill] sm:$0xff] }
 0x40c   :  { %2481 = vmatprep.subr.bf16.mxu0 %v12462_v11  ;;  %2522 = vmatprep.subr.bf16.mxu1 %v12463_v55  ;;  %v12473_v11 = vld [vmem:[#allocation113_spill] sm:$0xff] }
 0x40d   :  { %v12474_v55 = vld [vmem:[#allocation53_spill] sm:$0xff] }
 0x40f   :  { %2482 = vmatpush1.bf16.msra.mxu0 %v12464_v48  ;;  %2523 = vmatpush1.bf16.msra.mxu1 %v12465_v45  ;;  %v12475_v48 = vld [vmem:[#allocation115_spill] sm:$0xff]  ;;  %v12476_v45 = vld [vmem:[#allocation54_spill] sm:$0xff] }
 0x410   :  { %2483 = vmatprep.subr.bf16.mxu0 %v12466_v53  ;;  %2524 = vmatprep.subr.bf16.mxu1 %v12467_v58  ;;  %v12477_v53 = vld [vmem:[#allocation117_spill] sm:$0xff]  ;;  %v12478_v58 = vld [vmem:[#allocation56_spill] sm:$0xff] }
 0x413   :  { %2484 = vmatpush1.bf16.msra.mxu0 %v12468_v4  ;;  %2525 = vmatpush1.bf16.msra.mxu1 %v12469_v59  ;;  %v12479_v4 = vld [vmem:[#allocation119_spill] sm:$0xff] }
 0x414   :  { %2485 = vmatprep.subr.bf16.mxu0 %v12470_v46  ;;  %2526 = vmatprep.subr.bf16.mxu1 %v12471_v2 }
 0x417   :  { %2486 = vmatpush1.bf16.msra.mxu0 %v12472_v3  ;;  %2527 = vmatpush1.bf16.msra.mxu1 %v12473_v11 }
 0x418   :  { %2487 = vmatprep.subr.bf16.mxu0 %v12474_v55  ;;  %2528 = vmatprep.subr.bf16.mxu1 %v12475_v48 }
 0x41b   :  { %2488 = vmatpush1.bf16.msra.mxu0 %v12476_v45  ;;  %2529 = vmatpush1.bf16.msra.mxu1 %v12477_v53 }
 0x41c   :  { %2539 = vmatprep.subr.bf16.mxu0 %v12478_v58  ;;  %2580 = vmatprep.subr.bf16.mxu1 %v12479_v4 }
 0x471   :  { %v2245_v59 = vpop.f32.mrb[32].mxu0  ;;  %v2286_v46 = vpop.f32.mrb[64].mxu1 }
 0x472   :  { %v2379_v2 = vadd.f32 %v2245_v59, %v12480_v34  ;;  %v2381_v3 = vadd.f32 %v2286_v46, %v12481_v28  ;;  %v2247_v5 = vpop.f32.mrb[33].mxu0  ;;  %v2288_v11 = vpop.f32.mrb[65].mxu1  ;;  %v12486_v59 = vld [vmem:[#allocation158_spill] sm:$0xff] }
 0x473   :  { %v2380_v55 = vadd.f32 %v2247_v5, %v12482_v56  ;;  %v2382_v48 = vadd.f32 %v2288_v11, %v12483_v18  ;;  %v2249_v26 = vpop.f32.mrb[34].mxu0  ;;  %v2290_v45 = vpop.f32.mrb[66].mxu1 }
 0x474   :  { %v7470_v61 = vmul.f32 -1.442695, %v2379_v2  ;;  %v2250_v53 = vpop.f32.mrb[35].mxu0  ;;  %v2291_v40 = vpop.f32.mrb[67].mxu1 }
 0x475   :  { %v7471_v58 = vmul.f32 -1.442695, %v2380_v55  ;;  %v7472_v4 = vmul.f32 -1.442695, %v2382_v48  ;;  %v10289_v55 = vpop.permute.xlu1 %2443 }
 0x476   :  { %8262 = vpow2.f32 %v7470_v61  ;;  %12484 = vst [vmem:[#allocation62_spill] sm:$0xff] %v10289_v55  ;;  %vm2445_vm14 = vcmp.eq.s32.totalorder %v10289_v55, 1  ;;  %v12511_v55 = vld [vmem:[#allocation116_spill] sm:$0xff] }
 0x477   :  { %8264 = vpow2.f32 %v7471_v58 }
 0x478   :  { %8266 = vpow2.f32 %v7472_v4 }
 0x479   :  { %8268 = vtanh.f32 %v2381_v3  ;;  %v12487_v3 = vld [vmem:[#allocation190_spill] sm:$0xff] }
 0x480   :  { %v8263_v15 = vpop.eup %8262 }
 0x481   :  { %v8265_v47 = vpop.eup %8264  ;;  %v2394_v34 = vadd.f32 1.0, %v8263_v15 }
 0x482   :  { %v2400_v28 = vadd.f32 1.0, %v8265_v47  ;;  %v8267_v56 = vpop.eup %8266 }
 0x483   :  { %8270 = vrcp.f32 %v2394_v34  ;;  %v8269_v5 = vpop.eup %8268  ;;  %v2407_v45 = vadd.f32 1.0, %v8267_v56  ;;  %v12488_v56 = vld [vmem:[#allocation159_spill] sm:$0xff] }
 0x484   :  { %8272 = vrcp.f32 %v2400_v28 }
 0x485   :  { %8274 = vrcp.f32 %v2407_v45 }
 0x48d   :  { %v8271_v11 = vpop.eup %8270 }
 0x48e   :  { %v8273_v26 = vpop.eup %8272  ;;  %v2411_v18 = vmul.f32 %v8271_v11, %v8269_v5  ;;  %v12489_v11 = vld [vmem:[#allocation191_spill] sm:$0xff] }
 0x48f   :  { %v2410_v40 = vmul.f32 %v8273_v26, %v10118_v12  ;;  %v8275_v47 = vpop.eup %8274 }
 0x491   :  { %v2412_v61 = vadd.f32 %v2411_v18, %v2410_v40 }
 0x493   :  { %8276 = vtanh.f32 %v2412_v61  ;;  %v10295_v15 = vsel %vm2445_vm14, %v2412_v61, %v10118_v12 }
 0x494   :  { %12485 = vst [vmem:[#allocation64_spill] sm:$0xff] %v10295_v15 }
 0x49d   :  { %v8277_v48 = vpop.eup %8276 }
 0x49e   :  { %v2414_v53 = vmul.f32 %v8277_v48, %v8275_v47 }
 0x4b1   :  { %v2327_v58 = vpop.f32.mrb[36].mxu0  ;;  %v2368_v4 = vpop.f32.mrb[68].mxu1 }
 0x4b2   :  { %v2387_v2 = vadd.f32 %v2327_v58, %v12486_v59  ;;  %v2389_v46 = vadd.f32 %v2368_v4, %v12487_v3  ;;  %v2329_v34 = vpop.f32.mrb[37].mxu0  ;;  %v2370_v28 = vpop.f32.mrb[69].mxu1 }
 0x4b3   :  { %v2388_v5 = vadd.f32 %v2329_v34, %v12488_v56  ;;  %v2390_v26 = vadd.f32 %v2370_v28, %v12489_v11  ;;  %v2331_v18 = vpop.f32.mrb[38].mxu0  ;;  %v2372_v45 = vpop.f32.mrb[70].mxu1 }
 0x4b4   :  { %v7473_v40 = vmul.f32 -1.442695, %v2387_v2  ;;  %v2332_v12 = vpop.f32.mrb[39].mxu0  ;;  %v2373_v61 = vpop.f32.mrb[71].mxu1  ;;  %v10313_v45 = vsel %vm2445_vm14, %v2414_v53, %v10125_v51  ;;  %v12491_v51 = vld [vmem:[#allocation96_spill] sm:$0xff]  ;;  %v12493_v53 = vld [vmem:[#allocation98_spill] sm:$0xff] }
 0x4b5   :  { %v7474_v15 = vmul.f32 -1.442695, %v2388_v5  ;;  %v7475_v47 = vmul.f32 -1.442695, %v2390_v26  ;;  %v10302_v5 = vpop.permute.xlu0 %2450  ;;  %v12494_v61 = vld [vmem:[#allocation124_spill] sm:$0xff] }
 0x4b6   :  { %8278 = vpow2.f32 %v7473_v40  ;;  %12490 = vst [vmem:[#allocation66_spill] sm:$0xff] %v10302_v5  ;;  %vm2452_vm15 = vcmp.eq.s32.totalorder %v10302_v5, 1  ;;  %v12512_v5 = vld [vmem:[#allocation133_spill] sm:$0xff] }
 0x4b7   :  { %8280 = vpow2.f32 %v7474_v15 }
 0x4b8   :  { %8282 = vpow2.f32 %v7475_v47  ;;  %v12495_v47 = vld [vmem:[#allocation100_spill] sm:$0xff] }
 0x4b9   :  { %8284 = vtanh.f32 %v2389_v46 }
 0x4c0   :  { %v8279_v48 = vpop.eup %8278 }
 0x4c1   :  { %v8281_v20 = vpop.eup %8280  ;;  %v2418_v58 = vadd.f32 1.0, %v8279_v48  ;;  %v12496_v48 = vld [vmem:[#allocation125_spill] sm:$0xff] }
 0x4c2   :  { %v2424_v4 = vadd.f32 1.0, %v8281_v20  ;;  %v8283_v59 = vpop.eup %8282 }
 0x4c3   :  { %8286 = vrcp.f32 %v2418_v58  ;;  %v8285_v3 = vpop.eup %8284  ;;  %v2431_v2 = vadd.f32 1.0, %v8283_v59  ;;  %v12497_v58 = vld [vmem:[#allocation102_spill] sm:$0xff]  ;;  %v12499_v59 = vld [vmem:[#allocation104_spill] sm:$0xff] }
 0x4c4   :  { %8288 = vrcp.f32 %v2424_v4  ;;  %v12498_v4 = vld [vmem:[#allocation126_spill] sm:$0xff] }
 0x4c5   :  { %8290 = vrcp.f32 %v2431_v2  ;;  %v12504_v2 = vld [vmem:[#allocation129_spill] sm:$0xff] }
 0x4cd   :  { %v8287_v34 = vpop.eup %8286 }
 0x4ce   :  { %v8289_v28 = vpop.eup %8288  ;;  %v2435_v56 = vmul.f32 %v8287_v34, %v8285_v3  ;;  %v12500_v3 = vld [vmem:[#allocation127_spill] sm:$0xff]  ;;  %v12501_v34 = vld [vmem:[#allocation106_spill] sm:$0xff] }
 0x4cf   :  { %v2434_v11 = vmul.f32 %v8289_v28, %v10137_v62  ;;  %v8291_v46 = vpop.eup %8290  ;;  %v12502_v28 = vld [vmem:[#allocation128_spill] sm:$0xff] }
 0x4d1   :  { %v2436_v15 = vadd.f32 %v2435_v56, %v2434_v11  ;;  %v12503_v56 = vld [vmem:[#allocation108_spill] sm:$0xff]  ;;  %v12505_v11 = vld [vmem:[#allocation110_spill] sm:$0xff] }
 0x4d3   :  { %8292 = vtanh.f32 %v2436_v15  ;;  %v10308_v20 = vsel %vm2452_vm15, %v2436_v15, %v10137_v62  ;;  %v10324_v62 = vpack.c.bf16 %v10313_v45, %v10313_v45  ;;  %v12506_v15 = vld [vmem:[#allocation130_spill] sm:$0xff] }
 0x4dd   :  { %v8293_v26 = vpop.eup %8292 }
 0x4de   :  { %v2438_v18 = vmul.f32 %v8293_v26, %v8291_v46  ;;  %v12507_v46 = vld [vmem:[#allocation112_spill] sm:$0xff]  ;;  %v12508_v26 = vld [vmem:[#allocation131_spill] sm:$0xff] }
 0x4e0   :  { %v10318_v40 = vsel %vm2452_vm15, %v2438_v18, %v10144_v23  ;;  %v12492_v23 = vld [vmem:[#allocation123_spill] sm:$0xff]  ;;  %v12509_v18 = vld [vmem:[#allocation114_spill] sm:$0xff] }
 0x4e1   :  { %v2456_v12 = vpack.c.bf16 %v10318_v40, %v10318_v40 }
 0x4e3   :  { %2489 = vmatprep.mubr.bf16.mxu0 %v2456_v12  ;;  %2530 = vmatprep.mubr.bf16.mxu1 %v2456_v12 }
 0x4e4   :  { %2490 = vmatmul.mubr.bf16.vlgmr.msra.gmra.mrb[40].mxu0 %v10324_v62  ;;  %2531 = vmatmul.mubr.bf16.vlgmr.msra.gmra.mrb[72].mxu1 %v10324_v62 }
 0x4e5   :  { %2540 = vmatpush1.bf16.msra.mxu0 %v12285_v60  ;;  %2581 = vmatpush1.bf16.msra.mxu1 %v9506_v9 }
 0x4e6   :  { %2571 = vmatprep.mubr.bf16.mxu0 %v2456_v12  ;;  %2612 = vmatprep.mubr.bf16.mxu1 %v2456_v12  ;;  %v12510_v12 = vld [vmem:[#allocation132_spill] sm:$0xff] }
 0x4e7   :  { %2541 = vmatprep.subr.bf16.mxu0 %v12286_v13  ;;  %2582 = vmatprep.subr.bf16.mxu1 %v9510_v30 }
 0x4e9   :  { %2542 = vmatpush1.bf16.msra.mxu0 %v12287_v38  ;;  %2583 = vmatpush1.bf16.msra.mxu1 %v9516_v21 }
 0x4ea   :  { %2543 = vmatprep.subr.bf16.mxu0 %v12288_v52  ;;  %2584 = vmatprep.subr.bf16.mxu1 %v9519_v25 }
 0x4ed   :  { %2544 = vmatpush1.bf16.msra.mxu0 %v12289_v57  ;;  %2585 = vmatpush1.bf16.msra.mxu1 %v9525_v7 }
 0x4ee   :  { %2545 = vmatprep.subr.bf16.mxu0 %v12290_v27  ;;  %2586 = vmatprep.subr.bf16.mxu1 %v9528_v54 }
 0x4f1   :  { %2546 = vmatpush1.bf16.msra.mxu0 %v12291_v49  ;;  %2587 = vmatpush1.bf16.msra.mxu1 %v9533_v29 }
 0x4f2   :  { %2547 = vmatprep.subr.bf16.mxu0 %v12292_v37  ;;  %2588 = vmatprep.subr.bf16.mxu1 %v9536_v16 }
 0x4f5   :  { %2548 = vmatpush1.bf16.msra.mxu0 %v12293_v43  ;;  %2589 = vmatpush1.bf16.msra.mxu1 %v9541_v14 }
 0x4f6   :  { %2549 = vmatprep.subr.bf16.mxu0 %v12294_v35  ;;  %2590 = vmatprep.subr.bf16.mxu1 %v9544_v24 }
 0x4f9   :  { %2550 = vmatpush1.bf16.msra.mxu0 %v12295_v8  ;;  %2591 = vmatpush1.bf16.msra.mxu1 %v9549_v22 }
 0x4fa   :  { %2551 = vmatprep.subr.bf16.mxu0 %v12296_v10  ;;  %2592 = vmatprep.subr.bf16.mxu1 %v9552_v33 }
 0x4fd   :  { %2552 = vmatpush1.bf16.msra.mxu0 %v12297_v19  ;;  %2593 = vmatpush1.bf16.msra.mxu1 %v9557_v31 }
 0x4fe   :  { %2553 = vmatprep.subr.bf16.mxu0 %v12298_v44  ;;  %2594 = vmatprep.subr.bf16.mxu1 %v9560_v41 }
 0x501   :  { %2554 = vmatpush1.bf16.msra.mxu0 %v12299_v42  ;;  %2595 = vmatpush1.bf16.msra.mxu1 %v9565_v39 }
 0x502   :  { %2555 = vmatprep.subr.bf16.mxu0 %v12300_v0  ;;  %2596 = vmatprep.subr.bf16.mxu1 %v9568_v50 }
 0x505   :  { %2556 = vmatpush1.bf16.msra.mxu0 %v12301_v6  ;;  %2597 = vmatpush1.bf16.msra.mxu1 %v12389_v1 }
 0x506   :  { %2557 = vmatprep.subr.bf16.mxu0 %v12302_v36  ;;  %2598 = vmatprep.subr.bf16.mxu1 %v12390_v17 }
 0x509   :  { %2558 = vmatpush1.bf16.msra.mxu0 %v12303_v32  ;;  %2599 = vmatpush1.bf16.msra.mxu1 %v12391_v63 }
 0x50a   :  { %2559 = vmatprep.subr.bf16.mxu0 %v12491_v51  ;;  %2600 = vmatprep.subr.bf16.mxu1 %v12492_v23 }
 0x50d   :  { %2560 = vmatpush1.bf16.msra.mxu0 %v12493_v53  ;;  %2601 = vmatpush1.bf16.msra.mxu1 %v12494_v61 }
 0x50e   :  { %2561 = vmatprep.subr.bf16.mxu0 %v12495_v47  ;;  %2602 = vmatprep.subr.bf16.mxu1 %v12496_v48 }
 0x511   :  { %2562 = vmatpush1.bf16.msra.mxu0 %v12497_v58  ;;  %2603 = vmatpush1.bf16.msra.mxu1 %v12498_v4  ;;  %v12584_v4 = vld [vmem:[#allocation171_spill] sm:$0xff] }
 0x512   :  { %2563 = vmatprep.subr.bf16.mxu0 %v12499_v59  ;;  %2604 = vmatprep.subr.bf16.mxu1 %v12500_v3  ;;  %v12583_v59 = vld [vmem:[#allocation147_spill] sm:$0xff] }
 0x515   :  { %2564 = vmatpush1.bf16.msra.mxu0 %v12501_v34  ;;  %2605 = vmatpush1.bf16.msra.mxu1 %v12502_v28  ;;  %v12513_v28 = vld [vmem:[#allocation118_spill] sm:$0xff] }
 0x516   :  { %2565 = vmatprep.subr.bf16.mxu0 %v12503_v56  ;;  %2606 = vmatprep.subr.bf16.mxu1 %v12504_v2  ;;  %v12514_v56 = vld [vmem:[#allocation134_spill] sm:$0xff]  ;;  %v12515_v2 = vld [vmem:[#allocation23_spill] sm:$0xff] }
 0x517   :  { %v12582_v34 = vld [vmem:[#allocation170_spill] sm:$0xff] }
 0x519   :  { %2566 = vmatpush1.bf16.msra.mxu0 %v12505_v11  ;;  %2607 = vmatpush1.bf16.msra.mxu1 %v12506_v15  ;;  %v12516_v11 = vld [vmem:[#allocation55_spill] sm:$0xff]  ;;  %v12581_v15 = vld [vmem:[#allocation146_spill] sm:$0xff] }
 0x51a   :  { %2567 = vmatprep.subr.bf16.mxu0 %v12507_v46  ;;  %2608 = vmatprep.subr.bf16.mxu1 %v12508_v26  ;;  %v12517_v26 = vld [vmem:[#allocation24_spill] sm:$0xff]  ;;  %v12526_v46 = vld [vmem:[#allocation65_spill] sm:$0xff] }
 0x51d   :  { %2568 = vmatpush1.bf16.msra.mxu0 %v12509_v18  ;;  %2609 = vmatpush1.bf16.msra.mxu1 %v12510_v12  ;;  %v12518_v18 = vld [vmem:[#allocation57_spill] sm:$0xff] }
 0x51e   :  { %2569 = vmatprep.subr.bf16.mxu0 %v12511_v55  ;;  %2610 = vmatprep.subr.bf16.mxu1 %v12512_v5  ;;  %v12519_v12 = vld [vmem:[#allocation25_spill] sm:$0xff]  ;;  %v12520_v55 = vld [vmem:[#allocation59_spill] sm:$0xff]  ;;  %v12521_v5 = vld [vmem:[#allocation26_spill] sm:$0xff] }
 0x521   :  { %2570 = vmatpush1.bf16.msra.mxu0 %v12513_v28  ;;  %2611 = vmatpush1.bf16.msra.mxu1 %v12514_v56  ;;  %v12522_v28 = vld [vmem:[#allocation61_spill] sm:$0xff]  ;;  %v12523_v56 = vld [vmem:[#allocation27_spill] sm:$0xff] }
 0x522   :  { %2703 = vmatprep.subr.bf16.mxu0 %v12515_v2  ;;  %2744 = vmatprep.subr.bf16.mxu1 %v12516_v11  ;;  %v12524_v2 = vld [vmem:[#allocation63_spill] sm:$0xff]  ;;  %v12525_v11 = vld [vmem:[#allocation28_spill] sm:$0xff] }
 0x524   :  { %2572 = vmatmul.mubr.bf16.vlgmr.msra.gmra.mrb[44].mxu0 %v10324_v62  ;;  %2613 = vmatmul.mubr.bf16.vlgmr.msra.gmra.mrb[76].mxu1 %v10324_v62  ;;  %v12527_v62 = vld [vmem:[#allocation29_spill] sm:$0xff] }
 0x525   :  { %2704 = vmatpush1.bf16.msra.mxu0 %v12517_v26  ;;  %2745 = vmatpush1.bf16.msra.mxu1 %v12518_v18  ;;  %v12528_v26 = vld [vmem:[#allocation67_spill] sm:$0xff]  ;;  %v12529_v18 = vld [vmem:[#allocation30_spill] sm:$0xff] }
 0x526   :  { %2705 = vmatprep.subr.bf16.mxu0 %v12519_v12  ;;  %2746 = vmatprep.subr.bf16.mxu1 %v12520_v55  ;;  %v12530_v12 = vld [vmem:[#allocation69_spill] sm:$0xff]  ;;  %v12531_v55 = vld [vmem:[#allocation31_spill] sm:$0xff] }
 0x529   :  { %2706 = vmatpush1.bf16.msra.mxu0 %v12521_v5  ;;  %2747 = vmatpush1.bf16.msra.mxu1 %v12522_v28  ;;  %v12532_v5 = vld [vmem:[#allocation71_spill] sm:$0xff]  ;;  %v12533_v28 = vld [vmem:[#allocation32_spill] sm:$0xff] }
 0x52a   :  { %2707 = vmatprep.subr.bf16.mxu0 %v12523_v56  ;;  %2748 = vmatprep.subr.bf16.mxu1 %v12524_v2  ;;  %v12534_v56 = vld [vmem:[#allocation73_spill] sm:$0xff] }
 0x52b   :  { %v12535_v2 = vld [vmem:[#allocation33_spill] sm:$0xff] }
 0x52d   :  { %2708 = vmatpush1.bf16.msra.mxu0 %v12525_v11  ;;  %2749 = vmatpush1.bf16.msra.mxu1 %v12526_v46  ;;  %v12536_v11 = vld [vmem:[#allocation75_spill] sm:$0xff]  ;;  %v12537_v46 = vld [vmem:[#allocation34_spill] sm:$0xff] }
 0x52e   :  { %2709 = vmatprep.subr.bf16.mxu0 %v12527_v62  ;;  %2750 = vmatprep.subr.bf16.mxu1 %v12528_v26  ;;  %v12538_v62 = vld [vmem:[#allocation77_spill] sm:$0xff]  ;;  %v12539_v26 = vld [vmem:[#allocation35_spill] sm:$0xff] }
 0x531   :  { %2710 = vmatpush1.bf16.msra.mxu0 %v12529_v18  ;;  %2751 = vmatpush1.bf16.msra.mxu1 %v12530_v12  ;;  %v12540_v18 = vld [vmem:[#allocation79_spill] sm:$0xff]  ;;  %v12541_v12 = vld [vmem:[#allocation36_spill] sm:$0xff] }
 0x532   :  { %2711 = vmatprep.subr.bf16.mxu0 %v12531_v55  ;;  %2752 = vmatprep.subr.bf16.mxu1 %v12532_v5  ;;  %v12542_v55 = vld [vmem:[#allocation81_spill] sm:$0xff] }
 0x533   :  { %v12543_v5 = vld [vmem:[#allocation37_spill] sm:$0xff] }
 0x535   :  { %2712 = vmatpush1.bf16.msra.mxu0 %v12533_v28  ;;  %2753 = vmatpush1.bf16.msra.mxu1 %v12534_v56  ;;  %v12544_v28 = vld [vmem:[#allocation83_spill] sm:$0xff]  ;;  %v12545_v56 = vld [vmem:[#allocation38_spill] sm:$0xff] }
 0x536   :  { %2713 = vmatprep.subr.bf16.mxu0 %v12535_v2  ;;  %2754 = vmatprep.subr.bf16.mxu1 %v12536_v11  ;;  %v12546_v2 = vld [vmem:[#allocation85_spill] sm:$0xff]  ;;  %v12547_v11 = vld [vmem:[#allocation39_spill] sm:$0xff] }
 0x539   :  { %2714 = vmatpush1.bf16.msra.mxu0 %v12537_v46  ;;  %2755 = vmatpush1.bf16.msra.mxu1 %v12538_v62  ;;  %v12548_v46 = vld [vmem:[#allocation87_spill] sm:$0xff]  ;;  %v12549_v62 = vld [vmem:[#allocation40_spill] sm:$0xff] }
 0x53a   :  { %2715 = vmatprep.subr.bf16.mxu0 %v12539_v26  ;;  %2756 = vmatprep.subr.bf16.mxu1 %v12540_v18  ;;  %v12550_v26 = vld [vmem:[#allocation89_spill] sm:$0xff] }
 0x53b   :  { %v12551_v18 = vld [vmem:[#allocation41_spill] sm:$0xff] }
 0x53d   :  { %2716 = vmatpush1.bf16.msra.mxu0 %v12541_v12  ;;  %2757 = vmatpush1.bf16.msra.mxu1 %v12542_v55  ;;  %v12552_v12 = vld [vmem:[#allocation91_spill] sm:$0xff]  ;;  %v12553_v55 = vld [vmem:[#allocation42_spill] sm:$0xff] }
 0x53e   :  { %2717 = vmatprep.subr.bf16.mxu0 %v12543_v5  ;;  %2758 = vmatprep.subr.bf16.mxu1 %v12544_v28  ;;  %v12554_v5 = vld [vmem:[#allocation93_spill] sm:$0xff]  ;;  %v12555_v28 = vld [vmem:[#allocation43_spill] sm:$0xff] }
 0x541   :  { %2718 = vmatpush1.bf16.msra.mxu0 %v12545_v56  ;;  %2759 = vmatpush1.bf16.msra.mxu1 %v12546_v2  ;;  %v12556_v56 = vld [vmem:[#allocation95_spill] sm:$0xff]  ;;  %v12557_v2 = vld [vmem:[#allocation44_spill] sm:$0xff] }
 0x542   :  { %2719 = vmatprep.subr.bf16.mxu0 %v12547_v11  ;;  %2760 = vmatprep.subr.bf16.mxu1 %v12548_v46  ;;  %v12558_v11 = vld [vmem:[#allocation97_spill] sm:$0xff] }
 0x543   :  { %v12559_v46 = vld [vmem:[#allocation45_spill] sm:$0xff] }
 0x545   :  { %2720 = vmatpush1.bf16.msra.mxu0 %v12549_v62  ;;  %2761 = vmatpush1.bf16.msra.mxu1 %v12550_v26  ;;  %v12560_v62 = vld [vmem:[#allocation99_spill] sm:$0xff]  ;;  %v12561_v26 = vld [vmem:[#allocation46_spill] sm:$0xff] }
 0x546   :  { %2721 = vmatprep.subr.bf16.mxu0 %v12551_v18  ;;  %2762 = vmatprep.subr.bf16.mxu1 %v12552_v12  ;;  %v12562_v18 = vld [vmem:[#allocation101_spill] sm:$0xff]  ;;  %v12563_v12 = vld [vmem:[#allocation47_spill] sm:$0xff] }
 0x549   :  { %2722 = vmatpush1.bf16.msra.mxu0 %v12553_v55  ;;  %2763 = vmatpush1.bf16.msra.mxu1 %v12554_v5  ;;  %v12564_v55 = vld [vmem:[#allocation103_spill] sm:$0xff]  ;;  %v12565_v5 = vld [vmem:[#allocation48_spill] sm:$0xff] }
 0x54a   :  { %2723 = vmatprep.subr.bf16.mxu0 %v12555_v28  ;;  %2764 = vmatprep.subr.bf16.mxu1 %v12556_v56  ;;  %v12566_v28 = vld [vmem:[#allocation105_spill] sm:$0xff] }
 0x54b   :  { %v12567_v56 = vld [vmem:[#allocation49_spill] sm:$0xff] }
 0x54d   :  { %2724 = vmatpush1.bf16.msra.mxu0 %v12557_v2  ;;  %2765 = vmatpush1.bf16.msra.mxu1 %v12558_v11  ;;  %v12568_v2 = vld [vmem:[#allocation107_spill] sm:$0xff]  ;;  %v12569_v11 = vld [vmem:[#allocation50_spill] sm:$0xff] }
 0x54e   :  { %2725 = vmatprep.subr.bf16.mxu0 %v12559_v46  ;;  %2766 = vmatprep.subr.bf16.mxu1 %v12560_v62  ;;  %v12570_v46 = vld [vmem:[#allocation109_spill] sm:$0xff]  ;;  %v12571_v62 = vld [vmem:[#allocation51_spill] sm:$0xff] }
 0x551   :  { %2726 = vmatpush1.bf16.msra.mxu0 %v12561_v26  ;;  %2767 = vmatpush1.bf16.msra.mxu1 %v12562_v18  ;;  %v12572_v26 = vld [vmem:[#allocation111_spill] sm:$0xff]  ;;  %v12573_v18 = vld [vmem:[#allocation52_spill] sm:$0xff] }
 0x552   :  { %2727 = vmatprep.subr.bf16.mxu0 %v12563_v12  ;;  %2768 = vmatprep.subr.bf16.mxu1 %v12564_v55  ;;  %v12574_v12 = vld [vmem:[#allocation113_spill] sm:$0xff] }
 0x553   :  { %v12575_v55 = vld [vmem:[#allocation53_spill] sm:$0xff] }
 0x555   :  { %2728 = vmatpush1.bf16.msra.mxu0 %v12565_v5  ;;  %2769 = vmatpush1.bf16.msra.mxu1 %v12566_v28  ;;  %v12576_v5 = vld [vmem:[#allocation115_spill] sm:$0xff]  ;;  %v12577_v28 = vld [vmem:[#allocation54_spill] sm:$0xff] }
 0x556   :  { %2729 = vmatprep.subr.bf16.mxu0 %v12567_v56  ;;  %2770 = vmatprep.subr.bf16.mxu1 %v12568_v2  ;;  %v12578_v56 = vld [vmem:[#allocation117_spill] sm:$0xff]  ;;  %v12579_v2 = vld [vmem:[#allocation56_spill] sm:$0xff] }
 0x559   :  { %2730 = vmatpush1.bf16.msra.mxu0 %v12569_v11  ;;  %2771 = vmatpush1.bf16.msra.mxu1 %v12570_v46  ;;  %v12580_v11 = vld [vmem:[#allocation119_spill] sm:$0xff] }
 0x55a   :  { %2731 = vmatprep.subr.bf16.mxu0 %v12571_v62  ;;  %2772 = vmatprep.subr.bf16.mxu1 %v12572_v26 }
 0x55d   :  { %2732 = vmatpush1.bf16.msra.mxu0 %v12573_v18  ;;  %2773 = vmatpush1.bf16.msra.mxu1 %v12574_v12 }
 0x55e   :  { %2733 = vmatprep.subr.bf16.mxu0 %v12575_v55  ;;  %2774 = vmatprep.subr.bf16.mxu1 %v12576_v5 }
 0x561   :  { %2734 = vmatpush1.bf16.msra.mxu0 %v12577_v28  ;;  %2775 = vmatpush1.bf16.msra.mxu1 %v12578_v56 }
 0x562   :  { %2785 = vmatprep.subr.bf16.mxu0 %v12579_v2  ;;  %2826 = vmatprep.subr.bf16.mxu1 %v12580_v11 }
 0x5b7   :  { %v2491_v46 = vpop.f32.mrb[40].mxu0  ;;  %v2532_v62 = vpop.f32.mrb[72].mxu1 }
 0x5b8   :  { %v2625_v26 = vadd.f32 %v2491_v46, %v12581_v15  ;;  %v2627_v18 = vadd.f32 %v2532_v62, %v12582_v34  ;;  %v2493_v3 = vpop.f32.mrb[41].mxu0  ;;  %v2534_v12 = vpop.f32.mrb[73].mxu1  ;;  %v12588_v62 = vld [vmem:[#allocation188_spill] sm:$0xff] }
 0x5b9   :  { %v2626_v55 = vadd.f32 %v2493_v3, %v12583_v59  ;;  %v2628_v5 = vadd.f32 %v2534_v12, %v12584_v4  ;;  %v2495_v58 = vpop.f32.mrb[42].mxu0  ;;  %v2536_v28 = vpop.f32.mrb[74].mxu1 }
 0x5ba   :  { %v7476_v48 = vmul.f32 -1.442695, %v2625_v26  ;;  %v2496_v56 = vpop.f32.mrb[43].mxu0  ;;  %v2537_v47 = vpop.f32.mrb[75].mxu1 }
 0x5bb   :  { %v7477_v2 = vmul.f32 -1.442695, %v2626_v55  ;;  %v7478_v11 = vmul.f32 -1.442695, %v2628_v5  ;;  %v10462_v56 = vpop.permute.xlu1 %2689  ;;  %v12585_v55 = vld [vmem:[#allocation64_spill] sm:$0xff] }
 0x5bc   :  { %8294 = vpow2.f32 %v7476_v48  ;;  %vm2691_vm0 = vcmp.eq.s32.totalorder %v10462_v56, 1  ;;  %v12691_v56 = vld [vmem:[#allocation122_spill] sm:$0xff] }
 0x5bd   :  { %8296 = vpow2.f32 %v7477_v2 }
 0x5be   :  { %8298 = vpow2.f32 %v7478_v11 }
 0x5bf   :  { %8300 = vtanh.f32 %v2627_v18  ;;  %v12587_v18 = vld [vmem:[#allocation156_spill] sm:$0xff] }
 0x5c6   :  { %v8295_v61 = vpop.eup %8294 }
 0x5c7   :  { %v8297_v53 = vpop.eup %8296  ;;  %v2640_v15 = vadd.f32 1.0, %v8295_v61 }
 0x5c8   :  { %v2646_v34 = vadd.f32 1.0, %v8297_v53  ;;  %v8299_v59 = vpop.eup %8298 }
 0x5c9   :  { %8302 = vrcp.f32 %v2640_v15  ;;  %v8301_v3 = vpop.eup %8300  ;;  %v2653_v46 = vadd.f32 1.0, %v8299_v59 }
 0x5ca   :  { %8304 = vrcp.f32 %v2646_v34 }
 0x5cb   :  { %8306 = vrcp.f32 %v2653_v46 }
 0x5d3   :  { %v8303_v4 = vpop.eup %8302 }
 0x5d4   :  { %v8305_v58 = vpop.eup %8304  ;;  %v2657_v28 = vmul.f32 %v8303_v4, %v8301_v3  ;;  %v12589_v3 = vld [vmem:[#allocation157_spill] sm:$0xff] }
 0x5d5   :  { %v2656_v47 = vmul.f32 %v8305_v58, %v12585_v55  ;;  %v8307_v53 = vpop.eup %8306  ;;  %v12590_v58 = vld [vmem:[#allocation189_spill] sm:$0xff] }
 0x5d7   :  { %v2658_v48 = vadd.f32 %v2657_v28, %v2656_v47 }
 0x5d9   :  { %8308 = vtanh.f32 %v2658_v48  ;;  %v10469_v5 = vsel %vm2691_vm0, %v2658_v48, %v12585_v55 }
 0x5da   :  { %12586 = vst [vmem:[#allocation68_spill] sm:$0xff] %v10469_v5 }
 0x5e3   :  { %v8309_v61 = vpop.eup %8308 }
 0x5e4   :  { %v2660_v2 = vmul.f32 %v8309_v61, %v8307_v53 }
 0x5f7   :  { %v2573_v11 = vpop.f32.mrb[44].mxu0  ;;  %v2614_v26 = vpop.f32.mrb[76].mxu1 }
 0x5f8   :  { %v2633_v12 = vadd.f32 %v2573_v11, %v12587_v18  ;;  %v2635_v15 = vadd.f32 %v2614_v26, %v12588_v62  ;;  %v2575_v34 = vpop.f32.mrb[45].mxu0  ;;  %v2616_v59 = vpop.f32.mrb[77].mxu1 }
 0x5f9   :  { %v2634_v4 = vadd.f32 %v2575_v34, %v12589_v3  ;;  %v2636_v28 = vadd.f32 %v2616_v59, %v12590_v58  ;;  %v2577_v46 = vpop.f32.mrb[46].mxu0  ;;  %v2618_v47 = vpop.f32.mrb[78].mxu1 }
 0x5fa   :  { %v7479_v23 = vmul.f32 -1.442695, %v2633_v12  ;;  %v2578_v55 = vpop.f32.mrb[47].mxu0  ;;  %v2619_v48 = vpop.f32.mrb[79].mxu1  ;;  %v10487_v46 = vsel %vm2691_vm0, %v2660_v2, %v10313_v45  ;;  %v12591_v45 = vld [vmem:[#allocation96_spill] sm:$0xff]  ;;  %v12593_v2 = vld [vmem:[#allocation98_spill] sm:$0xff] }
 0x5fb   :  { %v7480_v5 = vmul.f32 -1.442695, %v2634_v4  ;;  %v7481_v53 = vmul.f32 -1.442695, %v2636_v28  ;;  %v10475_v58 = vpop.permute.xlu0 %2696  ;;  %v12594_v48 = vld [vmem:[#allocation124_spill] sm:$0xff] }
 0x5fc   :  { %8310 = vpow2.f32 %v7479_v23  ;;  %vm2698_vm1 = vcmp.eq.s32.totalorder %v10475_v58, 1  ;;  %v12692_v58 = vld [vmem:[#allocation96_spill] sm:$0xff] }
 0x5fd   :  { %8312 = vpow2.f32 %v7480_v5 }
 0x5fe   :  { %8314 = vpow2.f32 %v7481_v53  ;;  %v12595_v53 = vld [vmem:[#allocation100_spill] sm:$0xff] }
 0x5ff   :  { %8316 = vtanh.f32 %v2635_v15 }
 0x606   :  { %v8311_v61 = vpop.eup %8310 }
 0x607   :  { %v8313_v51 = vpop.eup %8312  ;;  %v2664_v11 = vadd.f32 1.0, %v8311_v61  ;;  %v12596_v61 = vld [vmem:[#allocation125_spill] sm:$0xff] }
 0x608   :  { %v2670_v26 = vadd.f32 1.0, %v8313_v51  ;;  %v8315_v18 = vpop.eup %8314 }
 0x609   :  { %8318 = vrcp.f32 %v2664_v11  ;;  %v8317_v62 = vpop.eup %8316  ;;  %v2677_v12 = vadd.f32 1.0, %v8315_v18  ;;  %v12597_v11 = vld [vmem:[#allocation102_spill] sm:$0xff]  ;;  %v12599_v18 = vld [vmem:[#allocation104_spill] sm:$0xff] }
 0x60a   :  { %8320 = vrcp.f32 %v2670_v26  ;;  %v12598_v26 = vld [vmem:[#allocation126_spill] sm:$0xff] }
 0x60b   :  { %8322 = vrcp.f32 %v2677_v12  ;;  %v12604_v12 = vld [vmem:[#allocation129_spill] sm:$0xff] }
 0x613   :  { %v8319_v34 = vpop.eup %8318 }
 0x614   :  { %v8321_v59 = vpop.eup %8320  ;;  %v2681_v3 = vmul.f32 %v8319_v34, %v8317_v62  ;;  %v12600_v62 = vld [vmem:[#allocation127_spill] sm:$0xff]  ;;  %v12601_v34 = vld [vmem:[#allocation106_spill] sm:$0xff] }
 0x615   :  { %v2680_v23 = vmul.f32 %v8321_v59, %v10308_v20  ;;  %v8323_v15 = vpop.eup %8322  ;;  %v12602_v59 = vld [vmem:[#allocation128_spill] sm:$0xff] }
 0x617   :  { %v2682_v5 = vadd.f32 %v2681_v3, %v2680_v23  ;;  %v12603_v3 = vld [vmem:[#allocation108_spill] sm:$0xff]  ;;  %v12605_v23 = vld [vmem:[#allocation110_spill] sm:$0xff] }
 0x619   :  { %8324 = vtanh.f32 %v2682_v5  ;;  %v10482_v51 = vsel %vm2698_vm1, %v2682_v5, %v10308_v20  ;;  %v10498_v20 = vpack.c.bf16 %v10487_v46, %v10487_v46  ;;  %v12606_v5 = vld [vmem:[#allocation130_spill] sm:$0xff] }
 0x623   :  { %v8325_v4 = vpop.eup %8324 }
 0x624   :  { %v2684_v28 = vmul.f32 %v8325_v4, %v8323_v15  ;;  %v12607_v15 = vld [vmem:[#allocation112_spill] sm:$0xff]  ;;  %v12608_v4 = vld [vmem:[#allocation131_spill] sm:$0xff] }
 0x626   :  { %v10492_v47 = vsel %vm2698_vm1, %v2684_v28, %v10318_v40  ;;  %v12592_v40 = vld [vmem:[#allocation123_spill] sm:$0xff]  ;;  %v12609_v28 = vld [vmem:[#allocation114_spill] sm:$0xff] }
 0x627   :  { %v2702_v55 = vpack.c.bf16 %v10492_v47, %v10492_v47 }
 0x629   :  { %2735 = vmatprep.mubr.bf16.mxu0 %v2702_v55  ;;  %2776 = vmatprep.mubr.bf16.mxu1 %v2702_v55 }
 0x62a   :  { %2736 = vmatmul.mubr.bf16.vlgmr.msra.gmra.mrb[48].mxu0 %v10498_v20  ;;  %2777 = vmatmul.mubr.bf16.vlgmr.msra.gmra.mrb[80].mxu1 %v10498_v20 }
 0x62b   :  { %2786 = vmatpush1.bf16.msra.mxu0 %v12285_v60  ;;  %2827 = vmatpush1.bf16.msra.mxu1 %v9506_v9 }
 0x62c   :  { %2817 = vmatprep.mubr.bf16.mxu0 %v2702_v55  ;;  %2858 = vmatprep.mubr.bf16.mxu1 %v2702_v55  ;;  %v12610_v55 = vld [vmem:[#allocation132_spill] sm:$0xff] }
 0x62d   :  { %2787 = vmatprep.subr.bf16.mxu0 %v12286_v13  ;;  %2828 = vmatprep.subr.bf16.mxu1 %v9510_v30 }
 0x62f   :  { %2788 = vmatpush1.bf16.msra.mxu0 %v12287_v38  ;;  %2829 = vmatpush1.bf16.msra.mxu1 %v9516_v21 }
 0x630   :  { %2789 = vmatprep.subr.bf16.mxu0 %v12288_v52  ;;  %2830 = vmatprep.subr.bf16.mxu1 %v9519_v25 }
 0x633   :  { %2790 = vmatpush1.bf16.msra.mxu0 %v12289_v57  ;;  %2831 = vmatpush1.bf16.msra.mxu1 %v9525_v7 }
 0x634   :  { %2791 = vmatprep.subr.bf16.mxu0 %v12290_v27  ;;  %2832 = vmatprep.subr.bf16.mxu1 %v9528_v54 }
 0x637   :  { %2792 = vmatpush1.bf16.msra.mxu0 %v12291_v49  ;;  %2833 = vmatpush1.bf16.msra.mxu1 %v9533_v29 }
 0x638   :  { %2793 = vmatprep.subr.bf16.mxu0 %v12292_v37  ;;  %2834 = vmatprep.subr.bf16.mxu1 %v9536_v16 }
 0x63b   :  { %2794 = vmatpush1.bf16.msra.mxu0 %v12293_v43  ;;  %2835 = vmatpush1.bf16.msra.mxu1 %v9541_v14 }
 0x63c   :  { %2795 = vmatprep.subr.bf16.mxu0 %v12294_v35  ;;  %2836 = vmatprep.subr.bf16.mxu1 %v9544_v24 }
 0x63f   :  { %2796 = vmatpush1.bf16.msra.mxu0 %v12295_v8  ;;  %2837 = vmatpush1.bf16.msra.mxu1 %v9549_v22 }
 0x640   :  { %2797 = vmatprep.subr.bf16.mxu0 %v12296_v10  ;;  %2838 = vmatprep.subr.bf16.mxu1 %v9552_v33 }
 0x643   :  { %2798 = vmatpush1.bf16.msra.mxu0 %v12297_v19  ;;  %2839 = vmatpush1.bf16.msra.mxu1 %v9557_v31 }
 0x644   :  { %2799 = vmatprep.subr.bf16.mxu0 %v12298_v44  ;;  %2840 = vmatprep.subr.bf16.mxu1 %v9560_v41 }
 0x647   :  { %2800 = vmatpush1.bf16.msra.mxu0 %v12299_v42  ;;  %2841 = vmatpush1.bf16.msra.mxu1 %v9565_v39 }
 0x648   :  { %2801 = vmatprep.subr.bf16.mxu0 %v12300_v0  ;;  %2842 = vmatprep.subr.bf16.mxu1 %v9568_v50 }
 0x64b   :  { %2802 = vmatpush1.bf16.msra.mxu0 %v12301_v6  ;;  %2843 = vmatpush1.bf16.msra.mxu1 %v12389_v1 }
 0x64c   :  { %2803 = vmatprep.subr.bf16.mxu0 %v12302_v36  ;;  %2844 = vmatprep.subr.bf16.mxu1 %v12390_v17 }
 0x64f   :  { %2804 = vmatpush1.bf16.msra.mxu0 %v12303_v32  ;;  %2845 = vmatpush1.bf16.msra.mxu1 %v12391_v63 }
 0x650   :  { %2805 = vmatprep.subr.bf16.mxu0 %v12591_v45  ;;  %2846 = vmatprep.subr.bf16.mxu1 %v12592_v40 }
 0x653   :  { %2806 = vmatpush1.bf16.msra.mxu0 %v12593_v2  ;;  %2847 = vmatpush1.bf16.msra.mxu1 %v12594_v48 }
 0x654   :  { %2807 = vmatprep.subr.bf16.mxu0 %v12595_v53  ;;  %2848 = vmatprep.subr.bf16.mxu1 %v12596_v61  ;;  %v12684_v61 = vld [vmem:[#allocation173_spill] sm:$0xff] }
 0x657   :  { %2808 = vmatpush1.bf16.msra.mxu0 %v12597_v11  ;;  %2849 = vmatpush1.bf16.msra.mxu1 %v12598_v26  ;;  %v12683_v11 = vld [vmem:[#allocation153_spill] sm:$0xff] }
 0x658   :  { %2809 = vmatprep.subr.bf16.mxu0 %v12599_v18  ;;  %2850 = vmatprep.subr.bf16.mxu1 %v12600_v62  ;;  %v12611_v62 = vld [vmem:[#allocation116_spill] sm:$0xff] }
 0x659   :  { %v12682_v18 = vld [vmem:[#allocation172_spill] sm:$0xff] }
 0x65b   :  { %2810 = vmatpush1.bf16.msra.mxu0 %v12601_v34  ;;  %2851 = vmatpush1.bf16.msra.mxu1 %v12602_v59  ;;  %v12612_v34 = vld [vmem:[#allocation133_spill] sm:$0xff]  ;;  %v12613_v59 = vld [vmem:[#allocation118_spill] sm:$0xff] }
 0x65c   :  { %2811 = vmatprep.subr.bf16.mxu0 %v12603_v3  ;;  %2852 = vmatprep.subr.bf16.mxu1 %v12604_v12  ;;  %v12614_v3 = vld [vmem:[#allocation134_spill] sm:$0xff]  ;;  %v12615_v12 = vld [vmem:[#allocation23_spill] sm:$0xff] }
 0x65f   :  { %2812 = vmatpush1.bf16.msra.mxu0 %v12605_v23  ;;  %2853 = vmatpush1.bf16.msra.mxu1 %v12606_v5  ;;  %v12616_v23 = vld [vmem:[#allocation55_spill] sm:$0xff]  ;;  %v12681_v5 = vld [vmem:[#allocation152_spill] sm:$0xff] }
 0x660   :  { %2813 = vmatprep.subr.bf16.mxu0 %v12607_v15  ;;  %2854 = vmatprep.subr.bf16.mxu1 %v12608_v4  ;;  %v12617_v4 = vld [vmem:[#allocation24_spill] sm:$0xff]  ;;  %v12626_v15 = vld [vmem:[#allocation65_spill] sm:$0xff] }
 0x663   :  { %2814 = vmatpush1.bf16.msra.mxu0 %v12609_v28  ;;  %2855 = vmatpush1.bf16.msra.mxu1 %v12610_v55  ;;  %v12618_v28 = vld [vmem:[#allocation57_spill] sm:$0xff] }
 0x664   :  { %2815 = vmatprep.subr.bf16.mxu0 %v12611_v62  ;;  %2856 = vmatprep.subr.bf16.mxu1 %v12612_v34  ;;  %v12619_v55 = vld [vmem:[#allocation25_spill] sm:$0xff]  ;;  %v12620_v62 = vld [vmem:[#allocation59_spill] sm:$0xff]  ;;  %v12621_v34 = vld [vmem:[#allocation26_spill] sm:$0xff] }
 0x667   :  { %2816 = vmatpush1.bf16.msra.mxu0 %v12613_v59  ;;  %2857 = vmatpush1.bf16.msra.mxu1 %v12614_v3  ;;  %v12622_v59 = vld [vmem:[#allocation61_spill] sm:$0xff]  ;;  %v12623_v3 = vld [vmem:[#allocation27_spill] sm:$0xff] }
 0x668   :  { %2937 = vmatprep.subr.bf16.mxu0 %v12615_v12  ;;  %2978 = vmatprep.subr.bf16.mxu1 %v12616_v23  ;;  %v12624_v12 = vld [vmem:[#allocation63_spill] sm:$0xff]  ;;  %v12625_v23 = vld [vmem:[#allocation28_spill] sm:$0xff] }
 0x66a   :  { %2818 = vmatmul.mubr.bf16.vlgmr.msra.gmra.mrb[52].mxu0 %v10498_v20  ;;  %2859 = vmatmul.mubr.bf16.vlgmr.msra.gmra.mrb[84].mxu1 %v10498_v20  ;;  %v12627_v20 = vld [vmem:[#allocation29_spill] sm:$0xff] }
 0x66b   :  { %2938 = vmatpush1.bf16.msra.mxu0 %v12617_v4  ;;  %2979 = vmatpush1.bf16.msra.mxu1 %v12618_v28  ;;  %v12628_v4 = vld [vmem:[#allocation67_spill] sm:$0xff]  ;;  %v12629_v28 = vld [vmem:[#allocation30_spill] sm:$0xff] }
 0x66c   :  { %2939 = vmatprep.subr.bf16.mxu0 %v12619_v55  ;;  %2980 = vmatprep.subr.bf16.mxu1 %v12620_v62  ;;  %v12630_v55 = vld [vmem:[#allocation69_spill] sm:$0xff]  ;;  %v12631_v62 = vld [vmem:[#allocation31_spill] sm:$0xff] }
 0x66f   :  { %2940 = vmatpush1.bf16.msra.mxu0 %v12621_v34  ;;  %2981 = vmatpush1.bf16.msra.mxu1 %v12622_v59  ;;  %v12632_v34 = vld [vmem:[#allocation71_spill] sm:$0xff]  ;;  %v12633_v59 = vld [vmem:[#allocation32_spill] sm:$0xff] }
 0x670   :  { %2941 = vmatprep.subr.bf16.mxu0 %v12623_v3  ;;  %2982 = vmatprep.subr.bf16.mxu1 %v12624_v12  ;;  %v12634_v3 = vld [vmem:[#allocation73_spill] sm:$0xff] }
 0x671   :  { %v12635_v12 = vld [vmem:[#allocation33_spill] sm:$0xff] }
 0x673   :  { %2942 = vmatpush1.bf16.msra.mxu0 %v12625_v23  ;;  %2983 = vmatpush1.bf16.msra.mxu1 %v12626_v15  ;;  %v12636_v23 = vld [vmem:[#allocation75_spill] sm:$0xff]  ;;  %v12637_v15 = vld [vmem:[#allocation34_spill] sm:$0xff] }
 0x674   :  { %2943 = vmatprep.subr.bf16.mxu0 %v12627_v20  ;;  %2984 = vmatprep.subr.bf16.mxu1 %v12628_v4  ;;  %v12638_v20 = vld [vmem:[#allocation77_spill] sm:$0xff]  ;;  %v12639_v4 = vld [vmem:[#allocation35_spill] sm:$0xff] }
 0x677   :  { %2944 = vmatpush1.bf16.msra.mxu0 %v12629_v28  ;;  %2985 = vmatpush1.bf16.msra.mxu1 %v12630_v55  ;;  %v12640_v28 = vld [vmem:[#allocation79_spill] sm:$0xff]  ;;  %v12641_v55 = vld [vmem:[#allocation36_spill] sm:$0xff] }
 0x678   :  { %2945 = vmatprep.subr.bf16.mxu0 %v12631_v62  ;;  %2986 = vmatprep.subr.bf16.mxu1 %v12632_v34  ;;  %v12642_v62 = vld [vmem:[#allocation81_spill] sm:$0xff] }
 0x679   :  { %v12643_v34 = vld [vmem:[#allocation37_spill] sm:$0xff] }
 0x67b   :  { %2946 = vmatpush1.bf16.msra.mxu0 %v12633_v59  ;;  %2987 = vmatpush1.bf16.msra.mxu1 %v12634_v3  ;;  %v12644_v59 = vld [vmem:[#allocation83_spill] sm:$0xff]  ;;  %v12645_v3 = vld [vmem:[#allocation38_spill] sm:$0xff] }
 0x67c   :  { %2947 = vmatprep.subr.bf16.mxu0 %v12635_v12  ;;  %2988 = vmatprep.subr.bf16.mxu1 %v12636_v23  ;;  %v12646_v12 = vld [vmem:[#allocation85_spill] sm:$0xff]  ;;  %v12647_v23 = vld [vmem:[#allocation39_spill] sm:$0xff] }
 0x67f   :  { %2948 = vmatpush1.bf16.msra.mxu0 %v12637_v15  ;;  %2989 = vmatpush1.bf16.msra.mxu1 %v12638_v20  ;;  %v12648_v15 = vld [vmem:[#allocation87_spill] sm:$0xff]  ;;  %v12649_v20 = vld [vmem:[#allocation40_spill] sm:$0xff] }
 0x680   :  { %2949 = vmatprep.subr.bf16.mxu0 %v12639_v4  ;;  %2990 = vmatprep.subr.bf16.mxu1 %v12640_v28  ;;  %v12650_v4 = vld [vmem:[#allocation89_spill] sm:$0xff] }
 0x681   :  { %v12651_v28 = vld [vmem:[#allocation41_spill] sm:$0xff] }
 0x683   :  { %2950 = vmatpush1.bf16.msra.mxu0 %v12641_v55  ;;  %2991 = vmatpush1.bf16.msra.mxu1 %v12642_v62  ;;  %v12652_v55 = vld [vmem:[#allocation91_spill] sm:$0xff]  ;;  %v12653_v62 = vld [vmem:[#allocation42_spill] sm:$0xff] }
 0x684   :  { %2951 = vmatprep.subr.bf16.mxu0 %v12643_v34  ;;  %2992 = vmatprep.subr.bf16.mxu1 %v12644_v59  ;;  %v12654_v34 = vld [vmem:[#allocation93_spill] sm:$0xff]  ;;  %v12655_v59 = vld [vmem:[#allocation43_spill] sm:$0xff] }
 0x687   :  { %2952 = vmatpush1.bf16.msra.mxu0 %v12645_v3  ;;  %2993 = vmatpush1.bf16.msra.mxu1 %v12646_v12  ;;  %v12656_v3 = vld [vmem:[#allocation95_spill] sm:$0xff]  ;;  %v12657_v12 = vld [vmem:[#allocation44_spill] sm:$0xff] }
 0x688   :  { %2953 = vmatprep.subr.bf16.mxu0 %v12647_v23  ;;  %2994 = vmatprep.subr.bf16.mxu1 %v12648_v15  ;;  %v12658_v23 = vld [vmem:[#allocation97_spill] sm:$0xff] }
 0x689   :  { %v12659_v15 = vld [vmem:[#allocation45_spill] sm:$0xff] }
 0x68b   :  { %2954 = vmatpush1.bf16.msra.mxu0 %v12649_v20  ;;  %2995 = vmatpush1.bf16.msra.mxu1 %v12650_v4  ;;  %v12660_v20 = vld [vmem:[#allocation99_spill] sm:$0xff]  ;;  %v12661_v4 = vld [vmem:[#allocation46_spill] sm:$0xff] }
 0x68c   :  { %2955 = vmatprep.subr.bf16.mxu0 %v12651_v28  ;;  %2996 = vmatprep.subr.bf16.mxu1 %v12652_v55  ;;  %v12662_v28 = vld [vmem:[#allocation101_spill] sm:$0xff]  ;;  %v12663_v55 = vld [vmem:[#allocation47_spill] sm:$0xff] }
 0x68f   :  { %2956 = vmatpush1.bf16.msra.mxu0 %v12653_v62  ;;  %2997 = vmatpush1.bf16.msra.mxu1 %v12654_v34  ;;  %v12664_v62 = vld [vmem:[#allocation103_spill] sm:$0xff]  ;;  %v12665_v34 = vld [vmem:[#allocation48_spill] sm:$0xff] }
 0x690   :  { %2957 = vmatprep.subr.bf16.mxu0 %v12655_v59  ;;  %2998 = vmatprep.subr.bf16.mxu1 %v12656_v3  ;;  %v12666_v59 = vld [vmem:[#allocation105_spill] sm:$0xff] }
 0x691   :  { %v12667_v3 = vld [vmem:[#allocation49_spill] sm:$0xff] }
 0x693   :  { %2958 = vmatpush1.bf16.msra.mxu0 %v12657_v12  ;;  %2999 = vmatpush1.bf16.msra.mxu1 %v12658_v23  ;;  %v12668_v12 = vld [vmem:[#allocation107_spill] sm:$0xff]  ;;  %v12669_v23 = vld [vmem:[#allocation50_spill] sm:$0xff] }
 0x694   :  { %2959 = vmatprep.subr.bf16.mxu0 %v12659_v15  ;;  %3000 = vmatprep.subr.bf16.mxu1 %v12660_v20  ;;  %v12670_v15 = vld [vmem:[#allocation109_spill] sm:$0xff]  ;;  %v12671_v20 = vld [vmem:[#allocation51_spill] sm:$0xff] }
 0x697   :  { %2960 = vmatpush1.bf16.msra.mxu0 %v12661_v4  ;;  %3001 = vmatpush1.bf16.msra.mxu1 %v12662_v28  ;;  %v12672_v4 = vld [vmem:[#allocation111_spill] sm:$0xff]  ;;  %v12673_v28 = vld [vmem:[#allocation52_spill] sm:$0xff] }
 0x698   :  { %2961 = vmatprep.subr.bf16.mxu0 %v12663_v55  ;;  %3002 = vmatprep.subr.bf16.mxu1 %v12664_v62  ;;  %v12674_v55 = vld [vmem:[#allocation113_spill] sm:$0xff] }
 0x699   :  { %v12675_v62 = vld [vmem:[#allocation53_spill] sm:$0xff] }
 0x69b   :  { %2962 = vmatpush1.bf16.msra.mxu0 %v12665_v34  ;;  %3003 = vmatpush1.bf16.msra.mxu1 %v12666_v59  ;;  %v12676_v34 = vld [vmem:[#allocation115_spill] sm:$0xff]  ;;  %v12677_v59 = vld [vmem:[#allocation54_spill] sm:$0xff] }
 0x69c   :  { %2963 = vmatprep.subr.bf16.mxu0 %v12667_v3  ;;  %3004 = vmatprep.subr.bf16.mxu1 %v12668_v12  ;;  %v12678_v3 = vld [vmem:[#allocation117_spill] sm:$0xff]  ;;  %v12679_v12 = vld [vmem:[#allocation56_spill] sm:$0xff] }
 0x69f   :  { %2964 = vmatpush1.bf16.msra.mxu0 %v12669_v23  ;;  %3005 = vmatpush1.bf16.msra.mxu1 %v12670_v15  ;;  %v12680_v23 = vld [vmem:[#allocation119_spill] sm:$0xff] }
 0x6a0   :  { %2965 = vmatprep.subr.bf16.mxu0 %v12671_v20  ;;  %3006 = vmatprep.subr.bf16.mxu1 %v12672_v4 }
 0x6a3   :  { %2966 = vmatpush1.bf16.msra.mxu0 %v12673_v28  ;;  %3007 = vmatpush1.bf16.msra.mxu1 %v12674_v55 }
 0x6a4   :  { %2967 = vmatprep.subr.bf16.mxu0 %v12675_v62  ;;  %3008 = vmatprep.subr.bf16.mxu1 %v12676_v34 }
 0x6a7   :  { %2968 = vmatpush1.bf16.msra.mxu0 %v12677_v59  ;;  %3009 = vmatpush1.bf16.msra.mxu1 %v12678_v3 }
 0x6a8   :  { %3019 = vmatprep.subr.bf16.mxu0 %v12679_v12  ;;  %3060 = vmatprep.subr.bf16.mxu1 %v12680_v23 }
 0x6fd   :  { %v2737_v15 = vpop.f32.mrb[48].mxu0  ;;  %v2778_v20 = vpop.f32.mrb[80].mxu1 }
 0x6fe   :  { %v2871_v4 = vadd.f32 %v2737_v15, %v12681_v5  ;;  %v2873_v28 = vadd.f32 %v2778_v20, %v12682_v18  ;;  %v2739_v26 = vpop.f32.mrb[49].mxu0  ;;  %v2780_v55 = vpop.f32.mrb[81].mxu1 }
 0x6ff   :  { %v2872_v62 = vadd.f32 %v2739_v26, %v12683_v11  ;;  %v2874_v34 = vadd.f32 %v2780_v55, %v12684_v61  ;;  %v2741_v53 = vpop.f32.mrb[50].mxu0  ;;  %v2782_v59 = vpop.f32.mrb[82].mxu1  ;;  %v12688_v55 = vld [vmem:[#allocation186_spill] sm:$0xff] }
 0x700   :  { %v7482_v48 = vmul.f32 -1.442695, %v2871_v4  ;;  %v2742_v3 = vpop.f32.mrb[51].mxu0  ;;  %v2783_v2 = vpop.f32.mrb[83].mxu1  ;;  %v12687_v4 = vld [vmem:[#allocation150_spill] sm:$0xff] }
 0x701   :  { %v7483_v12 = vmul.f32 -1.442695, %v2872_v62  ;;  %v7484_v23 = vmul.f32 -1.442695, %v2874_v34  ;;  %v12685_v3 = vld [vmem:[#allocation68_spill] sm:$0xff] }
 0x702   :  { %8326 = vpow2.f32 %v7482_v48 }
 0x703   :  { %8328 = vpow2.f32 %v7483_v12 }
 0x704   :  { %8330 = vpow2.f32 %v7484_v23 }
 0x705   :  { %8332 = vtanh.f32 %v2873_v28 }
 0x70c   :  { %v8327_v40 = vpop.eup %8326 }
 0x70d   :  { %v8329_v45 = vpop.eup %8328  ;;  %v2886_v5 = vadd.f32 1.0, %v8327_v40 }
 0x70e   :  { %v2892_v18 = vadd.f32 1.0, %v8329_v45  ;;  %v8331_v11 = vpop.eup %8330 }
 0x70f   :  { %8334 = vrcp.f32 %v2886_v5  ;;  %v8333_v26 = vpop.eup %8332  ;;  %v2899_v15 = vadd.f32 1.0, %v8331_v11  ;;  %v12689_v11 = vld [vmem:[#allocation151_spill] sm:$0xff] }
 0x710   :  { %8336 = vrcp.f32 %v2892_v18 }
 0x711   :  { %8338 = vrcp.f32 %v2899_v15 }
 0x719   :  { %v8335_v61 = vpop.eup %8334 }
 0x71a   :  { %v8337_v53 = vpop.eup %8336  ;;  %v2903_v59 = vmul.f32 %v8335_v61, %v8333_v26  ;;  %v12690_v61 = vld [vmem:[#allocation187_spill] sm:$0xff] }
 0x71b   :  { %v2902_v2 = vmul.f32 %v8337_v53, %v12685_v3  ;;  %v8339_v48 = vpop.eup %8338 }
 0x71d   :  { %v2904_v62 = vadd.f32 %v2903_v59, %v2902_v2 }
 0x71f   :  { %8340 = vtanh.f32 %v2904_v62  ;;  %v10640_v40 = vsel %vm2698_vm1, %v2904_v62, %v12685_v3 }
 0x720   :  { %12686 = vst [vmem:[#allocation70_spill] sm:$0xff] %v10640_v40 }
 0x729   :  { %v8341_v45 = vpop.eup %8340 }
 0x72a   :  { %v2906_v34 = vmul.f32 %v8341_v45, %v8339_v48 }
 0x73d   :  { %v2819_v12 = vpop.f32.mrb[52].mxu0  ;;  %v2860_v23 = vpop.f32.mrb[84].mxu1 }
 0x73e   :  { %v2879_v28 = vadd.f32 %v2819_v12, %v12687_v4  ;;  %v2881_v20 = vadd.f32 %v2860_v23, %v12688_v55  ;;  %v2821_v5 = vpop.f32.mrb[53].mxu0  ;;  %v2862_v18 = vpop.f32.mrb[85].mxu1 }
 0x73f   :  { %v2880_v26 = vadd.f32 %v2821_v5, %v12689_v11  ;;  %v2882_v53 = vadd.f32 %v2862_v18, %v12690_v61  ;;  %v2823_v59 = vpop.f32.mrb[54].mxu0  ;;  %v2864_v15 = vpop.f32.mrb[86].mxu1 }
 0x740   :  { %v7485_v2 = vmul.f32 -1.442695, %v2879_v28  ;;  %v2824_v3 = vpop.f32.mrb[55].mxu0  ;;  %v2865_v62 = vpop.f32.mrb[87].mxu1  ;;  %v10655_v59 = vsel %vm2698_vm1, %v2906_v34, %v10487_v46  ;;  %v12693_v46 = vld [vmem:[#allocation123_spill] sm:$0xff]  ;;  %v12695_v34 = vld [vmem:[#allocation124_spill] sm:$0xff] }
 0x741   :  { %v7486_v40 = vmul.f32 -1.442695, %v2880_v26  ;;  %v7487_v48 = vmul.f32 -1.442695, %v2882_v53  ;;  %v12696_v3 = vld [vmem:[#allocation100_spill] sm:$0xff]  ;;  %v12697_v62 = vld [vmem:[#allocation125_spill] sm:$0xff] }
 0x742   :  { %8342 = vpow2.f32 %v7485_v2 }
 0x743   :  { %8344 = vpow2.f32 %v7486_v40 }
 0x744   :  { %8346 = vpow2.f32 %v7487_v48  ;;  %v12698_v48 = vld [vmem:[#allocation102_spill] sm:$0xff] }
 0x745   :  { %8348 = vtanh.f32 %v2881_v20 }
 0x74c   :  { %v8343_v45 = vpop.eup %8342 }
 0x74d   :  { %v8345_v63 = vpop.eup %8344  ;;  %v2910_v12 = vadd.f32 1.0, %v8343_v45  ;;  %v12699_v45 = vld [vmem:[#allocation126_spill] sm:$0xff] }
 0x74e   :  { %v2916_v23 = vadd.f32 1.0, %v8345_v63  ;;  %v8347_v4 = vpop.eup %8346 }
 0x74f   :  { %8350 = vrcp.f32 %v2910_v12  ;;  %v8349_v55 = vpop.eup %8348  ;;  %v2923_v28 = vadd.f32 1.0, %v8347_v4  ;;  %v12700_v12 = vld [vmem:[#allocation104_spill] sm:$0xff]  ;;  %v12702_v4 = vld [vmem:[#allocation106_spill] sm:$0xff] }
 0x750   :  { %8352 = vrcp.f32 %v2916_v23  ;;  %v12701_v23 = vld [vmem:[#allocation127_spill] sm:$0xff] }
 0x751   :  { %8354 = vrcp.f32 %v2923_v28  ;;  %v12707_v28 = vld [vmem:[#allocation130_spill] sm:$0xff] }
 0x759   :  { %v8351_v5 = vpop.eup %8350 }
 0x75a   :  { %v8353_v18 = vpop.eup %8352  ;;  %v2927_v11 = vmul.f32 %v8351_v5, %v8349_v55  ;;  %v12703_v55 = vld [vmem:[#allocation128_spill] sm:$0xff] }
 0x75b   :  { %v2926_v61 = vmul.f32 %v8353_v18, %v10482_v51  ;;  %v8355_v20 = vpop.eup %8354  ;;  %v12704_v5 = vld [vmem:[#allocation108_spill] sm:$0xff]  ;;  %v12705_v18 = vld [vmem:[#allocation129_spill] sm:$0xff] }
 0x75d   :  { %v2928_v26 = vadd.f32 %v2927_v11, %v2926_v61  ;;  %v12706_v11 = vld [vmem:[#allocation110_spill] sm:$0xff]  ;;  %v12708_v61 = vld [vmem:[#allocation112_spill] sm:$0xff] }
 0x75f   :  { %8356 = vtanh.f32 %v2928_v26  ;;  %v10650_v40 = vsel %vm2691_vm0, %v2928_v26, %v10482_v51  ;;  %v10666_v51 = vpack.c.bf16 %v10655_v59, %v10655_v59  ;;  %v12709_v26 = vld [vmem:[#allocation131_spill] sm:$0xff] }
 0x769   :  { %v8357_v63 = vpop.eup %8356 }
 0x76a   :  { %v2930_v53 = vmul.f32 %v8357_v63, %v8355_v20  ;;  %v12710_v20 = vld [vmem:[#allocation114_spill] sm:$0xff]  ;;  %v12711_v63 = vld [vmem:[#allocation132_spill] sm:$0xff] }
 0x76c   :  { %v10660_v15 = vsel %vm2691_vm0, %v2930_v53, %v10492_v47  ;;  %v12694_v47 = vld [vmem:[#allocation98_spill] sm:$0xff]  ;;  %v12712_v53 = vld [vmem:[#allocation116_spill] sm:$0xff] }
 0x76d   :  { %v2936_v2 = vpack.c.bf16 %v10660_v15, %v10660_v15 }
 0x76f   :  { %2969 = vmatprep.mubr.bf16.mxu0 %v2936_v2  ;;  %3010 = vmatprep.mubr.bf16.mxu1 %v2936_v2 }
 0x770   :  { %2970 = vmatmul.mubr.bf16.vlgmr.msra.gmra.mrb[56].mxu0 %v10666_v51  ;;  %3011 = vmatmul.mubr.bf16.vlgmr.msra.gmra.mrb[88].mxu1 %v10666_v51 }
 0x771   :  { %3020 = vmatpush1.bf16.msra.mxu0 %v12285_v60  ;;  %3061 = vmatpush1.bf16.msra.mxu1 %v9506_v9 }
 0x772   :  { %3051 = vmatprep.mubr.bf16.mxu0 %v2936_v2  ;;  %3092 = vmatprep.mubr.bf16.mxu1 %v2936_v2  ;;  %v12713_v2 = vld [vmem:[#allocation133_spill] sm:$0xff] }
 0x773   :  { %3021 = vmatprep.subr.bf16.mxu0 %v12286_v13  ;;  %3062 = vmatprep.subr.bf16.mxu1 %v9510_v30 }
 0x775   :  { %3022 = vmatpush1.bf16.msra.mxu0 %v12287_v38  ;;  %3063 = vmatpush1.bf16.msra.mxu1 %v9516_v21 }
 0x776   :  { %3023 = vmatprep.subr.bf16.mxu0 %v12288_v52  ;;  %3064 = vmatprep.subr.bf16.mxu1 %v9519_v25 }
 0x779   :  { %3024 = vmatpush1.bf16.msra.mxu0 %v12289_v57  ;;  %3065 = vmatpush1.bf16.msra.mxu1 %v9525_v7 }
 0x77a   :  { %3025 = vmatprep.subr.bf16.mxu0 %v12290_v27  ;;  %3066 = vmatprep.subr.bf16.mxu1 %v9528_v54 }
 0x77d   :  { %3026 = vmatpush1.bf16.msra.mxu0 %v12291_v49  ;;  %3067 = vmatpush1.bf16.msra.mxu1 %v9533_v29 }
 0x77e   :  { %3027 = vmatprep.subr.bf16.mxu0 %v12292_v37  ;;  %3068 = vmatprep.subr.bf16.mxu1 %v9536_v16 }
 0x781   :  { %3028 = vmatpush1.bf16.msra.mxu0 %v12293_v43  ;;  %3069 = vmatpush1.bf16.msra.mxu1 %v9541_v14 }
 0x782   :  { %3029 = vmatprep.subr.bf16.mxu0 %v12294_v35  ;;  %3070 = vmatprep.subr.bf16.mxu1 %v9544_v24 }
 0x785   :  { %3030 = vmatpush1.bf16.msra.mxu0 %v12295_v8  ;;  %3071 = vmatpush1.bf16.msra.mxu1 %v9549_v22 }
 0x786   :  { %3031 = vmatprep.subr.bf16.mxu0 %v12296_v10  ;;  %3072 = vmatprep.subr.bf16.mxu1 %v9552_v33 }
 0x789   :  { %3032 = vmatpush1.bf16.msra.mxu0 %v12297_v19  ;;  %3073 = vmatpush1.bf16.msra.mxu1 %v9557_v31 }
 0x78a   :  { %3033 = vmatprep.subr.bf16.mxu0 %v12298_v44  ;;  %3074 = vmatprep.subr.bf16.mxu1 %v9560_v41 }
 0x78d   :  { %3034 = vmatpush1.bf16.msra.mxu0 %v12299_v42  ;;  %3075 = vmatpush1.bf16.msra.mxu1 %v9565_v39 }
 0x78e   :  { %3035 = vmatprep.subr.bf16.mxu0 %v12300_v0  ;;  %3076 = vmatprep.subr.bf16.mxu1 %v9568_v50 }
 0x791   :  { %3036 = vmatpush1.bf16.msra.mxu0 %v12301_v6  ;;  %3077 = vmatpush1.bf16.msra.mxu1 %v12389_v1 }
 0x792   :  { %3037 = vmatprep.subr.bf16.mxu0 %v12302_v36  ;;  %3078 = vmatprep.subr.bf16.mxu1 %v12390_v17 }
 0x795   :  { %3038 = vmatpush1.bf16.msra.mxu0 %v12303_v32  ;;  %3079 = vmatpush1.bf16.msra.mxu1 %v12691_v56 }
 0x796   :  { %3039 = vmatprep.subr.bf16.mxu0 %v12692_v58  ;;  %3080 = vmatprep.subr.bf16.mxu1 %v12693_v46 }
 0x799   :  { %3040 = vmatpush1.bf16.msra.mxu0 %v12694_v47  ;;  %3081 = vmatpush1.bf16.msra.mxu1 %v12695_v34 }
 0x79a   :  { %3041 = vmatprep.subr.bf16.mxu0 %v12696_v3  ;;  %3082 = vmatprep.subr.bf16.mxu1 %v12697_v62 }
 0x79d   :  { %3042 = vmatpush1.bf16.msra.mxu0 %v12698_v48  ;;  %3083 = vmatpush1.bf16.msra.mxu1 %v12699_v45  ;;  %v12785_v45 = vld [vmem:[#allocation175_spill] sm:$0xff] }
 0x79e   :  { %3043 = vmatprep.subr.bf16.mxu0 %v12700_v12  ;;  %3084 = vmatprep.subr.bf16.mxu1 %v12701_v23  ;;  %v12784_v12 = vld [vmem:[#allocation155_spill] sm:$0xff] }
 0x7a1   :  { %3044 = vmatpush1.bf16.msra.mxu0 %v12702_v4  ;;  %3085 = vmatpush1.bf16.msra.mxu1 %v12703_v55  ;;  %v12714_v55 = vld [vmem:[#allocation118_spill] sm:$0xff] }
 0x7a2   :  { %3045 = vmatprep.subr.bf16.mxu0 %v12704_v5  ;;  %3086 = vmatprep.subr.bf16.mxu1 %v12705_v18  ;;  %v12715_v5 = vld [vmem:[#allocation134_spill] sm:$0xff]  ;;  %v12716_v18 = vld [vmem:[#allocation23_spill] sm:$0xff] }
 0x7a3   :  { %v12783_v4 = vld [vmem:[#allocation174_spill] sm:$0xff] }
 0x7a5   :  { %3046 = vmatpush1.bf16.msra.mxu0 %v12706_v11  ;;  %3087 = vmatpush1.bf16.msra.mxu1 %v12707_v28  ;;  %v12717_v11 = vld [vmem:[#allocation55_spill] sm:$0xff]  ;;  %v12782_v28 = vld [vmem:[#allocation154_spill] sm:$0xff] }
 0x7a6   :  { %3047 = vmatprep.subr.bf16.mxu0 %v12708_v61  ;;  %3088 = vmatprep.subr.bf16.mxu1 %v12709_v26  ;;  %v12718_v26 = vld [vmem:[#allocation24_spill] sm:$0xff]  ;;  %v12727_v61 = vld [vmem:[#allocation65_spill] sm:$0xff] }
 0x7a9   :  { %3048 = vmatpush1.bf16.msra.mxu0 %v12710_v20  ;;  %3089 = vmatpush1.bf16.msra.mxu1 %v12711_v63  ;;  %v12719_v20 = vld [vmem:[#allocation57_spill] sm:$0xff] }
 0x7aa   :  { %3049 = vmatprep.subr.bf16.mxu0 %v12712_v53  ;;  %3090 = vmatprep.subr.bf16.mxu1 %v12713_v2  ;;  %v12720_v63 = vld [vmem:[#allocation25_spill] sm:$0xff]  ;;  %v12721_v53 = vld [vmem:[#allocation59_spill] sm:$0xff]  ;;  %v12722_v2 = vld [vmem:[#allocation26_spill] sm:$0xff] }
 0x7ad   :  { %3050 = vmatpush1.bf16.msra.mxu0 %v12714_v55  ;;  %3091 = vmatpush1.bf16.msra.mxu1 %v12715_v5  ;;  %v12723_v55 = vld [vmem:[#allocation61_spill] sm:$0xff]  ;;  %v12724_v5 = vld [vmem:[#allocation27_spill] sm:$0xff] }
 0x7ae   :  { %3171 = vmatprep.subr.bf16.mxu0 %v12716_v18  ;;  %3212 = vmatprep.subr.bf16.mxu1 %v12717_v11  ;;  %v12725_v18 = vld [vmem:[#allocation63_spill] sm:$0xff]  ;;  %v12726_v11 = vld [vmem:[#allocation28_spill] sm:$0xff] }
 0x7b0   :  { %3052 = vmatmul.mubr.bf16.vlgmr.msra.gmra.mrb[60].mxu0 %v10666_v51  ;;  %3093 = vmatmul.mubr.bf16.vlgmr.msra.gmra.mrb[92].mxu1 %v10666_v51  ;;  %v12728_v51 = vld [vmem:[#allocation29_spill] sm:$0xff] }
 0x7b1   :  { %3172 = vmatpush1.bf16.msra.mxu0 %v12718_v26  ;;  %3213 = vmatpush1.bf16.msra.mxu1 %v12719_v20  ;;  %v12729_v26 = vld [vmem:[#allocation67_spill] sm:$0xff]  ;;  %v12730_v20 = vld [vmem:[#allocation30_spill] sm:$0xff] }
 0x7b2   :  { %3173 = vmatprep.subr.bf16.mxu0 %v12720_v63  ;;  %3214 = vmatprep.subr.bf16.mxu1 %v12721_v53  ;;  %v12731_v63 = vld [vmem:[#allocation69_spill] sm:$0xff]  ;;  %v12732_v53 = vld [vmem:[#allocation31_spill] sm:$0xff] }
 0x7b5   :  { %3174 = vmatpush1.bf16.msra.mxu0 %v12722_v2  ;;  %3215 = vmatpush1.bf16.msra.mxu1 %v12723_v55  ;;  %v12733_v2 = vld [vmem:[#allocation71_spill] sm:$0xff]  ;;  %v12734_v55 = vld [vmem:[#allocation32_spill] sm:$0xff] }
 0x7b6   :  { %3175 = vmatprep.subr.bf16.mxu0 %v12724_v5  ;;  %3216 = vmatprep.subr.bf16.mxu1 %v12725_v18  ;;  %v12735_v5 = vld [vmem:[#allocation73_spill] sm:$0xff] }
 0x7b7   :  { %v12736_v18 = vld [vmem:[#allocation33_spill] sm:$0xff] }
 0x7b9   :  { %3176 = vmatpush1.bf16.msra.mxu0 %v12726_v11  ;;  %3217 = vmatpush1.bf16.msra.mxu1 %v12727_v61  ;;  %v12737_v11 = vld [vmem:[#allocation75_spill] sm:$0xff]  ;;  %v12738_v61 = vld [vmem:[#allocation34_spill] sm:$0xff] }
 0x7ba   :  { %3177 = vmatprep.subr.bf16.mxu0 %v12728_v51  ;;  %3218 = vmatprep.subr.bf16.mxu1 %v12729_v26  ;;  %v12739_v51 = vld [vmem:[#allocation77_spill] sm:$0xff]  ;;  %v12740_v26 = vld [vmem:[#allocation35_spill] sm:$0xff] }
 0x7bd   :  { %3178 = vmatpush1.bf16.msra.mxu0 %v12730_v20  ;;  %3219 = vmatpush1.bf16.msra.mxu1 %v12731_v63  ;;  %v12741_v20 = vld [vmem:[#allocation79_spill] sm:$0xff]  ;;  %v12742_v63 = vld [vmem:[#allocation36_spill] sm:$0xff] }
 0x7be   :  { %3179 = vmatprep.subr.bf16.mxu0 %v12732_v53  ;;  %3220 = vmatprep.subr.bf16.mxu1 %v12733_v2  ;;  %v12743_v53 = vld [vmem:[#allocation81_spill] sm:$0xff] }
 0x7bf   :  { %v12744_v2 = vld [vmem:[#allocation37_spill] sm:$0xff] }
 0x7c1   :  { %3180 = vmatpush1.bf16.msra.mxu0 %v12734_v55  ;;  %3221 = vmatpush1.bf16.msra.mxu1 %v12735_v5  ;;  %v12745_v55 = vld [vmem:[#allocation83_spill] sm:$0xff]  ;;  %v12746_v5 = vld [vmem:[#allocation38_spill] sm:$0xff] }
 0x7c2   :  { %3181 = vmatprep.subr.bf16.mxu0 %v12736_v18  ;;  %3222 = vmatprep.subr.bf16.mxu1 %v12737_v11  ;;  %v12747_v18 = vld [vmem:[#allocation85_spill] sm:$0xff]  ;;  %v12748_v11 = vld [vmem:[#allocation39_spill] sm:$0xff] }
 0x7c5   :  { %3182 = vmatpush1.bf16.msra.mxu0 %v12738_v61  ;;  %3223 = vmatpush1.bf16.msra.mxu1 %v12739_v51  ;;  %v12749_v61 = vld [vmem:[#allocation87_spill] sm:$0xff]  ;;  %v12750_v51 = vld [vmem:[#allocation40_spill] sm:$0xff] }
 0x7c6   :  { %3183 = vmatprep.subr.bf16.mxu0 %v12740_v26  ;;  %3224 = vmatprep.subr.bf16.mxu1 %v12741_v20  ;;  %v12751_v26 = vld [vmem:[#allocation89_spill] sm:$0xff] }
 0x7c7   :  { %v12752_v20 = vld [vmem:[#allocation41_spill] sm:$0xff] }
 0x7c9   :  { %3184 = vmatpush1.bf16.msra.mxu0 %v12742_v63  ;;  %3225 = vmatpush1.bf16.msra.mxu1 %v12743_v53  ;;  %v12753_v63 = vld [vmem:[#allocation91_spill] sm:$0xff]  ;;  %v12754_v53 = vld [vmem:[#allocation42_spill] sm:$0xff] }
 0x7ca   :  { %3185 = vmatprep.subr.bf16.mxu0 %v12744_v2  ;;  %3226 = vmatprep.subr.bf16.mxu1 %v12745_v55  ;;  %v12755_v2 = vld [vmem:[#allocation93_spill] sm:$0xff]  ;;  %v12756_v55 = vld [vmem:[#allocation43_spill] sm:$0xff] }
 0x7cd   :  { %3186 = vmatpush1.bf16.msra.mxu0 %v12746_v5  ;;  %3227 = vmatpush1.bf16.msra.mxu1 %v12747_v18  ;;  %v12757_v5 = vld [vmem:[#allocation95_spill] sm:$0xff]  ;;  %v12758_v18 = vld [vmem:[#allocation44_spill] sm:$0xff] }
 0x7ce   :  { %3187 = vmatprep.subr.bf16.mxu0 %v12748_v11  ;;  %3228 = vmatprep.subr.bf16.mxu1 %v12749_v61  ;;  %v12759_v11 = vld [vmem:[#allocation97_spill] sm:$0xff] }
 0x7cf   :  { %v12760_v61 = vld [vmem:[#allocation45_spill] sm:$0xff] }
 0x7d1   :  { %3188 = vmatpush1.bf16.msra.mxu0 %v12750_v51  ;;  %3229 = vmatpush1.bf16.msra.mxu1 %v12751_v26  ;;  %v12761_v51 = vld [vmem:[#allocation99_spill] sm:$0xff]  ;;  %v12762_v26 = vld [vmem:[#allocation46_spill] sm:$0xff] }
 0x7d2   :  { %3189 = vmatprep.subr.bf16.mxu0 %v12752_v20  ;;  %3230 = vmatprep.subr.bf16.mxu1 %v12753_v63  ;;  %v12763_v20 = vld [vmem:[#allocation101_spill] sm:$0xff]  ;;  %v12764_v63 = vld [vmem:[#allocation47_spill] sm:$0xff] }
 0x7d5   :  { %3190 = vmatpush1.bf16.msra.mxu0 %v12754_v53  ;;  %3231 = vmatpush1.bf16.msra.mxu1 %v12755_v2  ;;  %v12765_v53 = vld [vmem:[#allocation103_spill] sm:$0xff]  ;;  %v12766_v2 = vld [vmem:[#allocation48_spill] sm:$0xff] }
 0x7d6   :  { %3191 = vmatprep.subr.bf16.mxu0 %v12756_v55  ;;  %3232 = vmatprep.subr.bf16.mxu1 %v12757_v5  ;;  %v12767_v55 = vld [vmem:[#allocation105_spill] sm:$0xff] }
 0x7d7   :  { %v12768_v5 = vld [vmem:[#allocation49_spill] sm:$0xff] }
 0x7d9   :  { %3192 = vmatpush1.bf16.msra.mxu0 %v12758_v18  ;;  %3233 = vmatpush1.bf16.msra.mxu1 %v12759_v11  ;;  %v12769_v18 = vld [vmem:[#allocation107_spill] sm:$0xff]  ;;  %v12770_v11 = vld [vmem:[#allocation50_spill] sm:$0xff] }
 0x7da   :  { %3193 = vmatprep.subr.bf16.mxu0 %v12760_v61  ;;  %3234 = vmatprep.subr.bf16.mxu1 %v12761_v51  ;;  %v12771_v61 = vld [vmem:[#allocation109_spill] sm:$0xff]  ;;  %v12772_v51 = vld [vmem:[#allocation51_spill] sm:$0xff] }
 0x7dd   :  { %3194 = vmatpush1.bf16.msra.mxu0 %v12762_v26  ;;  %3235 = vmatpush1.bf16.msra.mxu1 %v12763_v20  ;;  %v12773_v26 = vld [vmem:[#allocation111_spill] sm:$0xff]  ;;  %v12774_v20 = vld [vmem:[#allocation52_spill] sm:$0xff] }
 0x7de   :  { %3195 = vmatprep.subr.bf16.mxu0 %v12764_v63  ;;  %3236 = vmatprep.subr.bf16.mxu1 %v12765_v53  ;;  %v12775_v63 = vld [vmem:[#allocation113_spill] sm:$0xff] }
 0x7df   :  { %v12776_v53 = vld [vmem:[#allocation53_spill] sm:$0xff] }
 0x7e1   :  { %3196 = vmatpush1.bf16.msra.mxu0 %v12766_v2  ;;  %3237 = vmatpush1.bf16.msra.mxu1 %v12767_v55  ;;  %v12777_v2 = vld [vmem:[#allocation115_spill] sm:$0xff]  ;;  %v12778_v55 = vld [vmem:[#allocation54_spill] sm:$0xff] }
 0x7e2   :  { %3197 = vmatprep.subr.bf16.mxu0 %v12768_v5  ;;  %3238 = vmatprep.subr.bf16.mxu1 %v12769_v18  ;;  %v12779_v5 = vld [vmem:[#allocation117_spill] sm:$0xff]  ;;  %v12780_v18 = vld [vmem:[#allocation56_spill] sm:$0xff] }
 0x7e5   :  { %3198 = vmatpush1.bf16.msra.mxu0 %v12770_v11  ;;  %3239 = vmatpush1.bf16.msra.mxu1 %v12771_v61  ;;  %v12781_v11 = vld [vmem:[#allocation119_spill] sm:$0xff] }
 0x7e6   :  { %3199 = vmatprep.subr.bf16.mxu0 %v12772_v51  ;;  %3240 = vmatprep.subr.bf16.mxu1 %v12773_v26 }
 0x7e9   :  { %3200 = vmatpush1.bf16.msra.mxu0 %v12774_v20  ;;  %3241 = vmatpush1.bf16.msra.mxu1 %v12775_v63 }
 0x7ea   :  { %3201 = vmatprep.subr.bf16.mxu0 %v12776_v53  ;;  %3242 = vmatprep.subr.bf16.mxu1 %v12777_v2 }
 0x7ed   :  { %3202 = vmatpush1.bf16.msra.mxu0 %v12778_v55  ;;  %3243 = vmatpush1.bf16.msra.mxu1 %v12779_v5 }
 0x7ee   :  { %3253 = vmatprep.subr.bf16.mxu0 %v12780_v18  ;;  %3294 = vmatprep.subr.bf16.mxu1 %v12781_v11 }
 0x843   :  { %v2971_v61 = vpop.f32.mrb[56].mxu0  ;;  %v3012_v51 = vpop.f32.mrb[88].mxu1 }
 0x844   :  { %v3105_v26 = vadd.f32 %v2971_v61, %v12782_v28  ;;  %v3107_v20 = vadd.f32 %v3012_v51, %v12783_v4  ;;  %v2973_v23 = vpop.f32.mrb[57].mxu0  ;;  %v3014_v63 = vpop.f32.mrb[89].mxu1  ;;  %v12790_v51 = vld [vmem:[#allocation184_spill] sm:$0xff] }
 0x845   :  { %v3106_v53 = vadd.f32 %v2973_v23, %v12784_v12  ;;  %v3108_v2 = vadd.f32 %v3014_v63, %v12785_v45  ;;  %v2975_v48 = vpop.f32.mrb[58].mxu0  ;;  %v3016_v55 = vpop.f32.mrb[90].mxu1 }
 0x846   :  { %v7488_v62 = vmul.f32 -1.442695, %v3105_v26  ;;  %v2976_v5 = vpop.f32.mrb[59].mxu0  ;;  %v3017_v3 = vpop.f32.mrb[91].mxu1 }
 0x847   :  { %v7489_v18 = vmul.f32 -1.442695, %v3106_v53  ;;  %v7490_v11 = vmul.f32 -1.442695, %v3108_v2  ;;  %v12786_v5 = vld [vmem:[#allocation70_spill] sm:$0xff]  ;;  %v12789_v53 = vld [vmem:[#allocation148_spill] sm:$0xff] }
 0x848   :  { %8358 = vpow2.f32 %v7488_v62  ;;  %v12796_v62 = vld [vmem:[#allocation98_spill] sm:$0xff] }
 0x849   :  { %8360 = vpow2.f32 %v7489_v18 }
 0x84a   :  { %8362 = vpow2.f32 %v7490_v11 }
 0x84b   :  { %8364 = vtanh.f32 %v3107_v20 }
 0x852   :  { %v8359_v34 = vpop.eup %8358 }
 0x853   :  { %v8361_v47 = vpop.eup %8360  ;;  %v3120_v28 = vadd.f32 1.0, %v8359_v34 }
 0x854   :  { %v3126_v4 = vadd.f32 1.0, %v8361_v47  ;;  %v8363_v12 = vpop.eup %8362 }
 0x855   :  { %8366 = vrcp.f32 %v3120_v28  ;;  %v8365_v23 = vpop.eup %8364  ;;  %v3133_v61 = vadd.f32 1.0, %v8363_v12 }
 0x856   :  { %8368 = vrcp.f32 %v3126_v4 }
 0x857   :  { %8370 = vrcp.f32 %v3133_v61 }
 0x85f   :  { %v8367_v45 = vpop.eup %8366 }
 0x860   :  { %v8369_v48 = vpop.eup %8368  ;;  %v3137_v55 = vmul.f32 %v8367_v45, %v8365_v23  ;;  %v12791_v23 = vld [vmem:[#allocation149_spill] sm:$0xff] }
 0x861   :  { %v3136_v3 = vmul.f32 %v8369_v48, %v12786_v5  ;;  %v8371_v18 = vpop.eup %8370  ;;  %v12792_v48 = vld [vmem:[#allocation185_spill] sm:$0xff] }
 0x863   :  { %v3138_v26 = vadd.f32 %v3137_v55, %v3136_v3 }
 0x865   :  { %8372 = vtanh.f32 %v3138_v26  ;;  %v10808_v34 = vsel %vm2452_vm15, %v3138_v26, %v12786_v5 }
 0x866   :  { %12788 = vst [vmem:[#allocation72_spill] sm:$0xff] %v10808_v34 }
 0x86f   :  { %v8373_v47 = vpop.eup %8372 }
 0x870   :  { %v3140_v11 = vmul.f32 %v8373_v47, %v8371_v18 }
 0x883   :  { %v3053_v20 = vpop.f32.mrb[60].mxu0  ;;  %v3094_v63 = vpop.f32.mrb[92].mxu1 }
 0x884   :  { %v3113_v2 = vadd.f32 %v3053_v20, %v12789_v53  ;;  %v3115_v28 = vadd.f32 %v3094_v63, %v12790_v51  ;;  %v3055_v4 = vpop.f32.mrb[61].mxu0  ;;  %v3096_v12 = vpop.f32.mrb[93].mxu1 }
 0x885   :  { %v3114_v45 = vadd.f32 %v3055_v4, %v12791_v23  ;;  %v3116_v55 = vadd.f32 %v3096_v12, %v12792_v48  ;;  %v3057_v61 = vpop.f32.mrb[62].mxu0  ;;  %v3098_v3 = vpop.f32.mrb[94].mxu1 }
 0x886   :  { %v7491_v46 = vmul.f32 -1.442695, %v3113_v2  ;;  %v3058_v5 = vpop.f32.mrb[63].mxu0  ;;  %v3099_v26 = vpop.f32.mrb[95].mxu1  ;;  %v10823_v61 = vsel %vm2452_vm15, %v3140_v11, %v10655_v59  ;;  %v12794_v59 = vld [vmem:[#allocation96_spill] sm:$0xff] }
 0x887   :  { %v7492_v34 = vmul.f32 -1.442695, %v3114_v45  ;;  %v7493_v18 = vmul.f32 -1.442695, %v3116_v55  ;;  %v12797_v11 = vld [vmem:[#allocation124_spill] sm:$0xff] }
 0x888   :  { %8374 = vpow2.f32 %v7491_v46  ;;  %v12798_v26 = vld [vmem:[#allocation100_spill] sm:$0xff]  ;;  %v12811_v46 = vld [vmem:[#allocation131_spill] sm:$0xff] }
 0x889   :  { %8376 = vpow2.f32 %v7492_v34 }
 0x88a   :  { %8378 = vpow2.f32 %v7493_v18  ;;  %v12799_v18 = vld [vmem:[#allocation125_spill] sm:$0xff] }
 0x88b   :  { %8380 = vtanh.f32 %v3115_v28 }
 0x892   :  { %v8375_v47 = vpop.eup %8374 }
 0x893   :  { %v8377_v58 = vpop.eup %8376  ;;  %v3144_v20 = vadd.f32 1.0, %v8375_v47  ;;  %v12800_v47 = vld [vmem:[#allocation102_spill] sm:$0xff] }
 0x894   :  { %v3150_v63 = vadd.f32 1.0, %v8377_v58  ;;  %v8379_v53 = vpop.eup %8378 }
 0x895   :  { %8382 = vrcp.f32 %v3144_v20  ;;  %v8381_v51 = vpop.eup %8380  ;;  %v3157_v2 = vadd.f32 1.0, %v8379_v53  ;;  %v12801_v20 = vld [vmem:[#allocation126_spill] sm:$0xff]  ;;  %v12803_v53 = vld [vmem:[#allocation127_spill] sm:$0xff] }
 0x896   :  { %8384 = vrcp.f32 %v3150_v63  ;;  %v12802_v63 = vld [vmem:[#allocation104_spill] sm:$0xff] }
 0x897   :  { %8386 = vrcp.f32 %v3157_v2  ;;  %v12808_v2 = vld [vmem:[#allocation110_spill] sm:$0xff] }
 0x89f   :  { %v8383_v4 = vpop.eup %8382 }
 0x8a0   :  { %v8385_v12 = vpop.eup %8384  ;;  %v3161_v23 = vmul.f32 %v8383_v4, %v8381_v51  ;;  %v12804_v51 = vld [vmem:[#allocation106_spill] sm:$0xff]  ;;  %v12805_v4 = vld [vmem:[#allocation128_spill] sm:$0xff] }
 0x8a1   :  { %v3160_v48 = vmul.f32 %v8385_v12, %v10650_v40  ;;  %v8387_v28 = vpop.eup %8386  ;;  %v12806_v12 = vld [vmem:[#allocation108_spill] sm:$0xff] }
 0x8a3   :  { %v3162_v45 = vadd.f32 %v3161_v23, %v3160_v48  ;;  %v12807_v23 = vld [vmem:[#allocation129_spill] sm:$0xff]  ;;  %v12809_v48 = vld [vmem:[#allocation130_spill] sm:$0xff] }
 0x8a5   :  { %8388 = vtanh.f32 %v3162_v45  ;;  %v10818_v34 = vsel %vm2445_vm14, %v3162_v45, %v10650_v40  ;;  %v10834_v40 = vpack.c.bf16 %v10823_v61, %v10823_v61  ;;  %v12810_v45 = vld [vmem:[#allocation112_spill] sm:$0xff] }
 0x8af   :  { %v8389_v58 = vpop.eup %8388 }
 0x8b0   :  { %v3164_v55 = vmul.f32 %v8389_v58, %v8387_v28  ;;  %v12812_v28 = vld [vmem:[#allocation114_spill] sm:$0xff]  ;;  %v12813_v58 = vld [vmem:[#allocation132_spill] sm:$0xff] }
 0x8b2   :  { %v10828_v3 = vsel %vm2445_vm14, %v3164_v55, %v10660_v15  ;;  %v12795_v15 = vld [vmem:[#allocation123_spill] sm:$0xff]  ;;  %v12814_v55 = vld [vmem:[#allocation116_spill] sm:$0xff] }
 0x8b3   :  { %v3170_v5 = vpack.c.bf16 %v10828_v3, %v10828_v3 }
 0x8b5   :  { %3203 = vmatprep.mubr.bf16.mxu0 %v3170_v5  ;;  %3244 = vmatprep.mubr.bf16.mxu1 %v3170_v5 }
 0x8b6   :  { %3204 = vmatmul.mubr.bf16.vlgmr.msra.gmra.mrb[64].mxu0 %v10834_v40  ;;  %3245 = vmatmul.mubr.bf16.vlgmr.msra.gmra.mrb[96].mxu1 %v10834_v40 }
 0x8b7   :  { %3254 = vmatpush1.bf16.msra.mxu0 %v12285_v60  ;;  %3295 = vmatpush1.bf16.msra.mxu1 %v9506_v9 }
 0x8b8   :  { %3285 = vmatprep.mubr.bf16.mxu0 %v3170_v5  ;;  %3326 = vmatprep.mubr.bf16.mxu1 %v3170_v5  ;;  %v12815_v5 = vld [vmem:[#allocation133_spill] sm:$0xff] }
 0x8b9   :  { %3255 = vmatprep.subr.bf16.mxu0 %v12286_v13  ;;  %3296 = vmatprep.subr.bf16.mxu1 %v9510_v30 }
 0x8bb   :  { %3256 = vmatpush1.bf16.msra.mxu0 %v12287_v38  ;;  %3297 = vmatpush1.bf16.msra.mxu1 %v9516_v21 }
 0x8bc   :  { %3257 = vmatprep.subr.bf16.mxu0 %v12288_v52  ;;  %3298 = vmatprep.subr.bf16.mxu1 %v9519_v25 }
 0x8bf   :  { %3258 = vmatpush1.bf16.msra.mxu0 %v12289_v57  ;;  %3299 = vmatpush1.bf16.msra.mxu1 %v9525_v7 }
 0x8c0   :  { %3259 = vmatprep.subr.bf16.mxu0 %v12290_v27  ;;  %3300 = vmatprep.subr.bf16.mxu1 %v9528_v54 }
 0x8c3   :  { %3260 = vmatpush1.bf16.msra.mxu0 %v12291_v49  ;;  %3301 = vmatpush1.bf16.msra.mxu1 %v9533_v29 }
 0x8c4   :  { %3261 = vmatprep.subr.bf16.mxu0 %v12292_v37  ;;  %3302 = vmatprep.subr.bf16.mxu1 %v9536_v16 }
 0x8c7   :  { %3262 = vmatpush1.bf16.msra.mxu0 %v12293_v43  ;;  %3303 = vmatpush1.bf16.msra.mxu1 %v9541_v14 }
 0x8c8   :  { %3263 = vmatprep.subr.bf16.mxu0 %v12294_v35  ;;  %3304 = vmatprep.subr.bf16.mxu1 %v9544_v24 }
 0x8cb   :  { %3264 = vmatpush1.bf16.msra.mxu0 %v12295_v8  ;;  %3305 = vmatpush1.bf16.msra.mxu1 %v9549_v22 }
 0x8cc   :  { %3265 = vmatprep.subr.bf16.mxu0 %v12296_v10  ;;  %3306 = vmatprep.subr.bf16.mxu1 %v9552_v33 }
 0x8cf   :  { %3266 = vmatpush1.bf16.msra.mxu0 %v12297_v19  ;;  %3307 = vmatpush1.bf16.msra.mxu1 %v9557_v31 }
 0x8d0   :  { %3267 = vmatprep.subr.bf16.mxu0 %v12298_v44  ;;  %3308 = vmatprep.subr.bf16.mxu1 %v9560_v41 }
 0x8d3   :  { %3268 = vmatpush1.bf16.msra.mxu0 %v12299_v42  ;;  %3309 = vmatpush1.bf16.msra.mxu1 %v9565_v39 }
 0x8d4   :  { %3269 = vmatprep.subr.bf16.mxu0 %v12300_v0  ;;  %3310 = vmatprep.subr.bf16.mxu1 %v9568_v50 }
 0x8d7   :  { %3270 = vmatpush1.bf16.msra.mxu0 %v12301_v6  ;;  %3311 = vmatpush1.bf16.msra.mxu1 %v12389_v1 }
 0x8d8   :  { %3271 = vmatprep.subr.bf16.mxu0 %v12302_v36  ;;  %3312 = vmatprep.subr.bf16.mxu1 %v12390_v17 }
 0x8db   :  { %3272 = vmatpush1.bf16.msra.mxu0 %v12303_v32  ;;  %3313 = vmatpush1.bf16.msra.mxu1 %v12691_v56 }
 0x8dc   :  { %3273 = vmatprep.subr.bf16.mxu0 %v12794_v59  ;;  %3314 = vmatprep.subr.bf16.mxu1 %v12795_v15 }
 0x8df   :  { %3274 = vmatpush1.bf16.msra.mxu0 %v12796_v62  ;;  %3315 = vmatpush1.bf16.msra.mxu1 %v12797_v11 }
 0x8e0   :  { %3275 = vmatprep.subr.bf16.mxu0 %v12798_v26  ;;  %3316 = vmatprep.subr.bf16.mxu1 %v12799_v18 }
 0x8e3   :  { %3276 = vmatpush1.bf16.msra.mxu0 %v12800_v47  ;;  %3317 = vmatpush1.bf16.msra.mxu1 %v12801_v20  ;;  %v12887_v20 = vld [vmem:[#allocation177_spill] sm:$0xff] }
 0x8e4   :  { %3277 = vmatprep.subr.bf16.mxu0 %v12802_v63  ;;  %3318 = vmatprep.subr.bf16.mxu1 %v12803_v53  ;;  %v12886_v63 = vld [vmem:[#allocation161_spill] sm:$0xff] }
 0x8e7   :  { %3278 = vmatpush1.bf16.msra.mxu0 %v12804_v51  ;;  %3319 = vmatpush1.bf16.msra.mxu1 %v12805_v4  ;;  %v12816_v4 = vld [vmem:[#allocation118_spill] sm:$0xff]  ;;  %v12885_v51 = vld [vmem:[#allocation176_spill] sm:$0xff] }
 0x8e8   :  { %3279 = vmatprep.subr.bf16.mxu0 %v12806_v12  ;;  %3320 = vmatprep.subr.bf16.mxu1 %v12807_v23  ;;  %v12817_v12 = vld [vmem:[#allocation134_spill] sm:$0xff]  ;;  %v12818_v23 = vld [vmem:[#allocation23_spill] sm:$0xff] }
 0x8eb   :  { %3280 = vmatpush1.bf16.msra.mxu0 %v12808_v2  ;;  %3321 = vmatpush1.bf16.msra.mxu1 %v12809_v48  ;;  %v12819_v2 = vld [vmem:[#allocation55_spill] sm:$0xff]  ;;  %v12884_v48 = vld [vmem:[#allocation160_spill] sm:$0xff] }
 0x8ec   :  { %3281 = vmatprep.subr.bf16.mxu0 %v12810_v45  ;;  %3322 = vmatprep.subr.bf16.mxu1 %v12811_v46  ;;  %v12820_v46 = vld [vmem:[#allocation24_spill] sm:$0xff]  ;;  %v12829_v45 = vld [vmem:[#allocation65_spill] sm:$0xff] }
 0x8ef   :  { %3282 = vmatpush1.bf16.msra.mxu0 %v12812_v28  ;;  %3323 = vmatpush1.bf16.msra.mxu1 %v12813_v58  ;;  %v12821_v28 = vld [vmem:[#allocation57_spill] sm:$0xff] }
 0x8f0   :  { %3283 = vmatprep.subr.bf16.mxu0 %v12814_v55  ;;  %3324 = vmatprep.subr.bf16.mxu1 %v12815_v5  ;;  %v12822_v58 = vld [vmem:[#allocation25_spill] sm:$0xff]  ;;  %v12823_v55 = vld [vmem:[#allocation59_spill] sm:$0xff]  ;;  %v12824_v5 = vld [vmem:[#allocation26_spill] sm:$0xff] }
 0x8f3   :  { %3284 = vmatpush1.bf16.msra.mxu0 %v12816_v4  ;;  %3325 = vmatpush1.bf16.msra.mxu1 %v12817_v12  ;;  %v12825_v4 = vld [vmem:[#allocation61_spill] sm:$0xff]  ;;  %v12826_v12 = vld [vmem:[#allocation27_spill] sm:$0xff] }
 0x8f4   :  { %3405 = vmatprep.subr.bf16.mxu0 %v12818_v23  ;;  %3446 = vmatprep.subr.bf16.mxu1 %v12819_v2  ;;  %v12827_v23 = vld [vmem:[#allocation63_spill] sm:$0xff]  ;;  %v12828_v2 = vld [vmem:[#allocation28_spill] sm:$0xff] }
 0x8f6   :  { %3286 = vmatmul.mubr.bf16.vlgmr.msra.gmra.mrb[68].mxu0 %v10834_v40  ;;  %3327 = vmatmul.mubr.bf16.vlgmr.msra.gmra.mrb[100].mxu1 %v10834_v40  ;;  %v12830_v40 = vld [vmem:[#allocation29_spill] sm:$0xff] }
 0x8f7   :  { %3406 = vmatpush1.bf16.msra.mxu0 %v12820_v46  ;;  %3447 = vmatpush1.bf16.msra.mxu1 %v12821_v28  ;;  %v12831_v46 = vld [vmem:[#allocation67_spill] sm:$0xff]  ;;  %v12832_v28 = vld [vmem:[#allocation30_spill] sm:$0xff] }
 0x8f8   :  { %3407 = vmatprep.subr.bf16.mxu0 %v12822_v58  ;;  %3448 = vmatprep.subr.bf16.mxu1 %v12823_v55  ;;  %v12833_v58 = vld [vmem:[#allocation69_spill] sm:$0xff]  ;;  %v12834_v55 = vld [vmem:[#allocation31_spill] sm:$0xff] }
 0x8fb   :  { %3408 = vmatpush1.bf16.msra.mxu0 %v12824_v5  ;;  %3449 = vmatpush1.bf16.msra.mxu1 %v12825_v4  ;;  %v12835_v5 = vld [vmem:[#allocation71_spill] sm:$0xff]  ;;  %v12836_v4 = vld [vmem:[#allocation32_spill] sm:$0xff] }
 0x8fc   :  { %3409 = vmatprep.subr.bf16.mxu0 %v12826_v12  ;;  %3450 = vmatprep.subr.bf16.mxu1 %v12827_v23  ;;  %v12837_v12 = vld [vmem:[#allocation73_spill] sm:$0xff] }
 0x8fd   :  { %v12838_v23 = vld [vmem:[#allocation33_spill] sm:$0xff] }
 0x8ff   :  { %3410 = vmatpush1.bf16.msra.mxu0 %v12828_v2  ;;  %3451 = vmatpush1.bf16.msra.mxu1 %v12829_v45  ;;  %v12839_v2 = vld [vmem:[#allocation75_spill] sm:$0xff]  ;;  %v12840_v45 = vld [vmem:[#allocation34_spill] sm:$0xff] }
 0x900   :  { %3411 = vmatprep.subr.bf16.mxu0 %v12830_v40  ;;  %3452 = vmatprep.subr.bf16.mxu1 %v12831_v46  ;;  %v12841_v40 = vld [vmem:[#allocation77_spill] sm:$0xff]  ;;  %v12842_v46 = vld [vmem:[#allocation35_spill] sm:$0xff] }
 0x903   :  { %3412 = vmatpush1.bf16.msra.mxu0 %v12832_v28  ;;  %3453 = vmatpush1.bf16.msra.mxu1 %v12833_v58  ;;  %v12843_v28 = vld [vmem:[#allocation79_spill] sm:$0xff]  ;;  %v12844_v58 = vld [vmem:[#allocation36_spill] sm:$0xff] }
 0x904   :  { %3413 = vmatprep.subr.bf16.mxu0 %v12834_v55  ;;  %3454 = vmatprep.subr.bf16.mxu1 %v12835_v5  ;;  %v12845_v55 = vld [vmem:[#allocation81_spill] sm:$0xff] }
 0x905   :  { %v12846_v5 = vld [vmem:[#allocation37_spill] sm:$0xff] }
 0x907   :  { %3414 = vmatpush1.bf16.msra.mxu0 %v12836_v4  ;;  %3455 = vmatpush1.bf16.msra.mxu1 %v12837_v12  ;;  %v12847_v4 = vld [vmem:[#allocation83_spill] sm:$0xff]  ;;  %v12848_v12 = vld [vmem:[#allocation38_spill] sm:$0xff] }
 0x908   :  { %3415 = vmatprep.subr.bf16.mxu0 %v12838_v23  ;;  %3456 = vmatprep.subr.bf16.mxu1 %v12839_v2  ;;  %v12849_v23 = vld [vmem:[#allocation85_spill] sm:$0xff]  ;;  %v12850_v2 = vld [vmem:[#allocation39_spill] sm:$0xff] }
 0x90b   :  { %3416 = vmatpush1.bf16.msra.mxu0 %v12840_v45  ;;  %3457 = vmatpush1.bf16.msra.mxu1 %v12841_v40  ;;  %v12851_v45 = vld [vmem:[#allocation87_spill] sm:$0xff]  ;;  %v12852_v40 = vld [vmem:[#allocation40_spill] sm:$0xff] }
 0x90c   :  { %3417 = vmatprep.subr.bf16.mxu0 %v12842_v46  ;;  %3458 = vmatprep.subr.bf16.mxu1 %v12843_v28  ;;  %v12853_v46 = vld [vmem:[#allocation89_spill] sm:$0xff] }
 0x90d   :  { %v12854_v28 = vld [vmem:[#allocation41_spill] sm:$0xff] }
 0x90f   :  { %3418 = vmatpush1.bf16.msra.mxu0 %v12844_v58  ;;  %3459 = vmatpush1.bf16.msra.mxu1 %v12845_v55  ;;  %v12855_v58 = vld [vmem:[#allocation91_spill] sm:$0xff]  ;;  %v12856_v55 = vld [vmem:[#allocation42_spill] sm:$0xff] }
 0x910   :  { %3419 = vmatprep.subr.bf16.mxu0 %v12846_v5  ;;  %3460 = vmatprep.subr.bf16.mxu1 %v12847_v4  ;;  %v12857_v5 = vld [vmem:[#allocation93_spill] sm:$0xff]  ;;  %v12858_v4 = vld [vmem:[#allocation43_spill] sm:$0xff] }
 0x913   :  { %3420 = vmatpush1.bf16.msra.mxu0 %v12848_v12  ;;  %3461 = vmatpush1.bf16.msra.mxu1 %v12849_v23  ;;  %v12859_v12 = vld [vmem:[#allocation95_spill] sm:$0xff]  ;;  %v12860_v23 = vld [vmem:[#allocation44_spill] sm:$0xff] }
 0x914   :  { %3421 = vmatprep.subr.bf16.mxu0 %v12850_v2  ;;  %3462 = vmatprep.subr.bf16.mxu1 %v12851_v45  ;;  %v12861_v2 = vld [vmem:[#allocation97_spill] sm:$0xff] }
 0x915   :  { %v12862_v45 = vld [vmem:[#allocation45_spill] sm:$0xff] }
 0x917   :  { %3422 = vmatpush1.bf16.msra.mxu0 %v12852_v40  ;;  %3463 = vmatpush1.bf16.msra.mxu1 %v12853_v46  ;;  %v12863_v40 = vld [vmem:[#allocation99_spill] sm:$0xff]  ;;  %v12864_v46 = vld [vmem:[#allocation46_spill] sm:$0xff] }
 0x918   :  { %3423 = vmatprep.subr.bf16.mxu0 %v12854_v28  ;;  %3464 = vmatprep.subr.bf16.mxu1 %v12855_v58  ;;  %v12865_v28 = vld [vmem:[#allocation101_spill] sm:$0xff]  ;;  %v12866_v58 = vld [vmem:[#allocation47_spill] sm:$0xff] }
 0x91b   :  { %3424 = vmatpush1.bf16.msra.mxu0 %v12856_v55  ;;  %3465 = vmatpush1.bf16.msra.mxu1 %v12857_v5  ;;  %v12867_v55 = vld [vmem:[#allocation103_spill] sm:$0xff]  ;;  %v12868_v5 = vld [vmem:[#allocation48_spill] sm:$0xff] }
 0x91c   :  { %3425 = vmatprep.subr.bf16.mxu0 %v12858_v4  ;;  %3466 = vmatprep.subr.bf16.mxu1 %v12859_v12  ;;  %v12869_v4 = vld [vmem:[#allocation105_spill] sm:$0xff] }
 0x91d   :  { %v12870_v12 = vld [vmem:[#allocation49_spill] sm:$0xff] }
 0x91f   :  { %3426 = vmatpush1.bf16.msra.mxu0 %v12860_v23  ;;  %3467 = vmatpush1.bf16.msra.mxu1 %v12861_v2  ;;  %v12871_v23 = vld [vmem:[#allocation107_spill] sm:$0xff]  ;;  %v12872_v2 = vld [vmem:[#allocation50_spill] sm:$0xff] }
 0x920   :  { %3427 = vmatprep.subr.bf16.mxu0 %v12862_v45  ;;  %3468 = vmatprep.subr.bf16.mxu1 %v12863_v40  ;;  %v12873_v45 = vld [vmem:[#allocation109_spill] sm:$0xff]  ;;  %v12874_v40 = vld [vmem:[#allocation51_spill] sm:$0xff] }
 0x923   :  { %3428 = vmatpush1.bf16.msra.mxu0 %v12864_v46  ;;  %3469 = vmatpush1.bf16.msra.mxu1 %v12865_v28  ;;  %v12875_v46 = vld [vmem:[#allocation111_spill] sm:$0xff]  ;;  %v12876_v28 = vld [vmem:[#allocation52_spill] sm:$0xff] }
 0x924   :  { %3429 = vmatprep.subr.bf16.mxu0 %v12866_v58  ;;  %3470 = vmatprep.subr.bf16.mxu1 %v12867_v55  ;;  %v12877_v58 = vld [vmem:[#allocation113_spill] sm:$0xff] }
 0x925   :  { %v12878_v55 = vld [vmem:[#allocation53_spill] sm:$0xff] }
 0x927   :  { %3430 = vmatpush1.bf16.msra.mxu0 %v12868_v5  ;;  %3471 = vmatpush1.bf16.msra.mxu1 %v12869_v4  ;;  %v12879_v5 = vld [vmem:[#allocation115_spill] sm:$0xff]  ;;  %v12880_v4 = vld [vmem:[#allocation54_spill] sm:$0xff] }
 0x928   :  { %3431 = vmatprep.subr.bf16.mxu0 %v12870_v12  ;;  %3472 = vmatprep.subr.bf16.mxu1 %v12871_v23  ;;  %v12881_v12 = vld [vmem:[#allocation117_spill] sm:$0xff]  ;;  %v12882_v23 = vld [vmem:[#allocation56_spill] sm:$0xff] }
 0x92b   :  { %3432 = vmatpush1.bf16.msra.mxu0 %v12872_v2  ;;  %3473 = vmatpush1.bf16.msra.mxu1 %v12873_v45  ;;  %v12883_v2 = vld [vmem:[#allocation119_spill] sm:$0xff] }
 0x92c   :  { %3433 = vmatprep.subr.bf16.mxu0 %v12874_v40  ;;  %3474 = vmatprep.subr.bf16.mxu1 %v12875_v46 }
 0x92f   :  { %3434 = vmatpush1.bf16.msra.mxu0 %v12876_v28  ;;  %3475 = vmatpush1.bf16.msra.mxu1 %v12877_v58 }
 0x930   :  { %3435 = vmatprep.subr.bf16.mxu0 %v12878_v55  ;;  %3476 = vmatprep.subr.bf16.mxu1 %v12879_v5 }
 0x933   :  { %3436 = vmatpush1.bf16.msra.mxu0 %v12880_v4  ;;  %3477 = vmatpush1.bf16.msra.mxu1 %v12881_v12 }
 0x934   :  { %3487 = vmatprep.subr.bf16.mxu0 %v12882_v23  ;;  %3528 = vmatprep.subr.bf16.mxu1 %v12883_v2 }
 0x989   :  { %v3205_v45 = vpop.f32.mrb[64].mxu0  ;;  %v3246_v40 = vpop.f32.mrb[96].mxu1 }
 0x98a   :  { %v3339_v46 = vadd.f32 %v3205_v45, %v12884_v48  ;;  %v3341_v28 = vadd.f32 %v3246_v40, %v12885_v51  ;;  %v3207_v53 = vpop.f32.mrb[65].mxu0  ;;  %v3248_v58 = vpop.f32.mrb[97].mxu1 }
 0x98b   :  { %v3340_v55 = vadd.f32 %v3207_v53, %v12886_v63  ;;  %v3342_v5 = vadd.f32 %v3248_v58, %v12887_v20  ;;  %v3209_v47 = vpop.f32.mrb[66].mxu0  ;;  %v3250_v4 = vpop.f32.mrb[98].mxu1 }
 0x98c   :  { %v7494_v18 = vmul.f32 -1.442695, %v3339_v46  ;;  %v3210_v12 = vpop.f32.mrb[67].mxu0  ;;  %v3251_v26 = vpop.f32.mrb[99].mxu1  ;;  %v12888_v46 = vld [vmem:[#allocation72_spill] sm:$0xff] }
 0x98d   :  { %v7495_v23 = vmul.f32 -1.442695, %v3340_v55  ;;  %v7496_v2 = vmul.f32 -1.442695, %v3342_v5  ;;  %v12891_v12 = vld [vmem:[#allocation142_spill] sm:$0xff] }
 0x98e   :  { %8390 = vpow2.f32 %v7494_v18  ;;  %v7951_v18 = vld [vmem:[#allocation8 + $0x70] ss:$8 sps:$4 sm:$0xff]  }
 0x98f   :  { %8392 = vpow2.f32 %v7495_v23 }
 0x990   :  { %8394 = vpow2.f32 %v7496_v2  ;;  %v12892_v2 = vld [vmem:[#allocation182_spill] sm:$0xff] }
 0x991   :  { %8396 = vtanh.f32 %v3341_v28 }
 0x998   :  { %v8391_v11 = vpop.eup %8390 }
 0x999   :  { %v8393_v62 = vpop.eup %8392  ;;  %v3354_v48 = vadd.f32 1.0, %v8391_v11 }
 0x99a   :  { %v3360_v51 = vadd.f32 1.0, %v8393_v62  ;;  %v8395_v63 = vpop.eup %8394 }
 0x99b   :  { %8398 = vrcp.f32 %v3354_v48  ;;  %v8397_v53 = vpop.eup %8396  ;;  %v3367_v40 = vadd.f32 1.0, %v8395_v63 }
 0x99c   :  { %8400 = vrcp.f32 %v3360_v51 }
 0x99d   :  { %8402 = vrcp.f32 %v3367_v40 }
 0x9a5   :  { %v8399_v20 = vpop.eup %8398 }
 0x9a6   :  { %v8401_v47 = vpop.eup %8400  ;;  %v3371_v45 = vmul.f32 %v8399_v20, %v8397_v53  ;;  %v12893_v53 = vld [vmem:[#allocation143_spill] sm:$0xff] }
 0x9a7   :  { %v3370_v26 = vmul.f32 %v8401_v47, %v12888_v46  ;;  %v8403_v28 = vpop.eup %8402  ;;  %v12894_v47 = vld [vmem:[#allocation183_spill] sm:$0xff] }
 0x9a9   :  { %v3372_v58 = vadd.f32 %v3371_v45, %v3370_v26 }
 0x9ab   :  { %8404 = vtanh.f32 %v3372_v58  ;;  %v10976_v11 = vsel %vm2206_vm13, %v3372_v58, %v12888_v46 }
 0x9ac   :  { %12890 = vst [vmem:[#allocation74_spill] sm:$0xff] %v10976_v11 }
 0x9b5   :  { %v8405_v62 = vpop.eup %8404 }
 0x9b6   :  { %v3374_v55 = vmul.f32 %v8405_v62, %v8403_v28 }
 0x9c9   :  { %v3287_v5 = vpop.f32.mrb[68].mxu0  ;;  %v3328_v4 = vpop.f32.mrb[100].mxu1 }
 0x9ca   :  { %v3347_v23 = vadd.f32 %v3287_v5, %v12891_v12  ;;  %v3349_v48 = vadd.f32 %v3328_v4, %v12892_v2  ;;  %v3289_v51 = vpop.f32.mrb[69].mxu0  ;;  %v3330_v63 = vpop.f32.mrb[101].mxu1 }
 0x9cb   :  { %v3348_v20 = vadd.f32 %v3289_v51, %v12893_v53  ;;  %v3350_v45 = vadd.f32 %v3330_v63, %v12894_v47  ;;  %v3291_v40 = vpop.f32.mrb[70].mxu0  ;;  %v3332_v26 = vpop.f32.mrb[102].mxu1 }
 0x9cc   :  { %v7497_v15 = vmul.f32 -1.442695, %v3347_v23  ;;  %v3292_v46 = vpop.f32.mrb[71].mxu0  ;;  %v3333_v58 = vpop.f32.mrb[103].mxu1  ;;  %v10991_v40 = vsel %vm2206_vm13, %v3374_v55, %v10823_v61  ;;  %v7948_v61 = vld [vmem:[#allocation8 + $0x60] ss:$8 sps:$4 sm:$0xff]  }
 0x9cd   :  { %v7498_v11 = vmul.f32 -1.442695, %v3348_v20  ;;  %v7499_v28 = vmul.f32 -1.442695, %v3350_v45  ;;  %v7956_v55 = vld [vmem:[#allocation8 + $0x84] ss:$8 sps:$4 sm:$0xff]  }
 0x9ce   :  { %8406 = vpow2.f32 %v7497_v15  ;;  %v7954_v58 = vld [vmem:[#allocation8 + $0x80] ss:$8 sps:$4 sm:$0xff]   ;;  %v7977_v15 = vld [vmem:[#allocation8 + $0xf4] ss:$8 sps:$4 sm:$0xff]  }
 0x9cf   :  { %8408 = vpow2.f32 %v7498_v11 }
 0x9d0   :  { %8410 = vpow2.f32 %v7499_v28  ;;  %v7959_v28 = vld [vmem:[#allocation8 + $0x94] ss:$8 sps:$4 sm:$0xff]  }
 0x9d1   :  { %8412 = vtanh.f32 %v3349_v48 }
 0x9d8   :  { %v8407_v62 = vpop.eup %8406 }
 0x9d9   :  { %v8409_v59 = vpop.eup %8408  ;;  %v3378_v5 = vadd.f32 1.0, %v8407_v62  ;;  %v7957_v62 = vld [vmem:[#allocation8 + $0x90] ss:$8 sps:$4 sm:$0xff]  }
 0x9da   :  { %v3384_v4 = vadd.f32 1.0, %v8409_v59  ;;  %v8411_v12 = vpop.eup %8410 }
 0x9db   :  { %8414 = vrcp.f32 %v3378_v5  ;;  %v8413_v2 = vpop.eup %8412  ;;  %v3391_v23 = vadd.f32 1.0, %v8411_v12  ;;  %v7962_v5 = vld [vmem:[#allocation8 + $0xa4] ss:$8 sps:$4 sm:$0xff]   ;;  %v7965_v12 = vld [vmem:[#allocation8 + $0xb4] ss:$8 sps:$4 sm:$0xff]  }
 0x9dc   :  { %8416 = vrcp.f32 %v3384_v4  ;;  %v7960_v4 = vld [vmem:[#allocation8 + $0xa0] ss:$8 sps:$4 sm:$0xff]  }
 0x9dd   :  { %8418 = vrcp.f32 %v3391_v23  ;;  %v7969_v23 = vld [vmem:[#allocation8 + $0xd0] ss:$8 sps:$4 sm:$0xff]  }
 0x9e5   :  { %v8415_v51 = vpop.eup %8414 }
 0x9e6   :  { %v8417_v63 = vpop.eup %8416  ;;  %v3395_v53 = vmul.f32 %v8415_v51, %v8413_v2  ;;  %v7963_v2 = vld [vmem:[#allocation8 + $0xb0] ss:$8 sps:$4 sm:$0xff]   ;;  %v7966_v51 = vld [vmem:[#allocation8 + $0xc0] ss:$8 sps:$4 sm:$0xff]  }
 0x9e7   :  { %v3394_v47 = vmul.f32 %v8417_v63, %v10818_v34  ;;  %v8419_v48 = vpop.eup %8418  ;;  %v7968_v63 = vld [vmem:[#allocation8 + $0xc4] ss:$8 sps:$4 sm:$0xff]  }
 0x9e9   :  { %v3396_v20 = vadd.f32 %v3395_v53, %v3394_v47  ;;  %v7971_v53 = vld [vmem:[#allocation8 + $0xd4] ss:$8 sps:$4 sm:$0xff]   ;;  %v7974_v47 = vld [vmem:[#allocation8 + $0xe4] ss:$8 sps:$4 sm:$0xff]  }
 0x9eb   :  { %8420 = vtanh.f32 %v3396_v20  ;;  %v10986_v11 = vsel %vm2199_vm12, %v3396_v20, %v10818_v34  ;;  %v11002_v34 = vpack.c.bf16 %v10991_v40, %v10991_v40  ;;  %v7972_v20 = vld [vmem:[#allocation8 + $0xe0] ss:$8 sps:$4 sm:$0xff]  }
 0x9f5   :  { %v8421_v59 = vpop.eup %8420 }
 0x9f6   :  { %v3398_v45 = vmul.f32 %v8421_v59, %v8419_v48  ;;  %v7975_v48 = vld [vmem:[#allocation8 + $0xf0] ss:$8 sps:$4 sm:$0xff]   ;;  %v7980_v59 = vld [vmem:[#allocation8 + $0x104] ss:$8 sps:$4 sm:$0xff]  }
 0x9f8   :  { %v10996_v26 = vsel %vm2199_vm12, %v3398_v45, %v10828_v3  ;;  %v7953_v3 = vld [vmem:[#allocation8 + $0x74] ss:$8 sps:$4 sm:$0xff]  }
 0x9f9   :  { %v3404_v46 = vpack.c.bf16 %v10996_v26, %v10996_v26 }
 0x9fb   :  { %3437 = vmatprep.mubr.bf16.mxu0 %v3404_v46  ;;  %3478 = vmatprep.mubr.bf16.mxu1 %v3404_v46 }
 0x9fc   :  { %3438 = vmatmul.mubr.bf16.vlgmr.msra.gmra.mrb[72].mxu0 %v11002_v34  ;;  %3479 = vmatmul.mubr.bf16.vlgmr.msra.gmra.mrb[104].mxu1 %v11002_v34 }
 0x9fd   :  { %3488 = vmatpush1.bf16.msra.mxu0 %v12285_v60  ;;  %3529 = vmatpush1.bf16.msra.mxu1 %v9506_v9  ;;  %v12906_v9 = vld [vmem:[#allocation106_spill] sm:$0xff]  ;;  %v12912_v60 = vld [vmem:[#allocation112_spill] sm:$0xff] }
 0x9fe   :  { %3519 = vmatprep.mubr.bf16.mxu0 %v3404_v46  ;;  %3560 = vmatprep.mubr.bf16.mxu1 %v3404_v46 }
 0x9ff   :  { %3489 = vmatprep.subr.bf16.mxu0 %v12286_v13  ;;  %3530 = vmatprep.subr.bf16.mxu1 %v9510_v30  ;;  %v12908_v30 = vld [vmem:[#allocation108_spill] sm:$0xff]  ;;  %v12913_v13 = vld [vmem:[#allocation131_spill] sm:$0xff] }
 0xa01   :  { %3490 = vmatpush1.bf16.msra.mxu0 %v12287_v38  ;;  %3531 = vmatpush1.bf16.msra.mxu1 %v9516_v21  ;;  %v12909_v21 = vld [vmem:[#allocation129_spill] sm:$0xff]  ;;  %v12914_v38 = vld [vmem:[#allocation114_spill] sm:$0xff] }
 0xa02   :  { %3491 = vmatprep.subr.bf16.mxu0 %v12288_v52  ;;  %3532 = vmatprep.subr.bf16.mxu1 %v9519_v25  ;;  %v12910_v25 = vld [vmem:[#allocation110_spill] sm:$0xff]  ;;  %v12915_v52 = vld [vmem:[#allocation132_spill] sm:$0xff] }
 0xa05   :  { %3492 = vmatpush1.bf16.msra.mxu0 %v12289_v57  ;;  %3533 = vmatpush1.bf16.msra.mxu1 %v9525_v7  ;;  %v12896_v7 = vld [vmem:[#allocation96_spill] sm:$0xff] }
 0xa06   :  { %3493 = vmatprep.subr.bf16.mxu0 %v12290_v27  ;;  %3534 = vmatprep.subr.bf16.mxu1 %v9528_v54  ;;  %v12911_v54 = vld [vmem:[#allocation130_spill] sm:$0xff]  ;;  %v12916_v57 = vld [vmem:[#allocation116_spill] sm:$0xff]  ;;  %v12917_v27 = vld [vmem:[#allocation133_spill] sm:$0xff] }
 0xa09   :  { %3494 = vmatpush1.bf16.msra.mxu0 %v12291_v49  ;;  %3535 = vmatpush1.bf16.msra.mxu1 %v9533_v29  ;;  %v12907_v29 = vld [vmem:[#allocation128_spill] sm:$0xff]  ;;  %v12918_v49 = vld [vmem:[#allocation118_spill] sm:$0xff] }
 0xa0a   :  { %3495 = vmatprep.subr.bf16.mxu0 %v12292_v37  ;;  %3536 = vmatprep.subr.bf16.mxu1 %v9536_v16  ;;  %v12898_v16 = vld [vmem:[#allocation98_spill] sm:$0xff] }
 0xa0b   :  { %v12919_v37 = vld [vmem:[#allocation134_spill] sm:$0xff] }
 0xa0d   :  { %3496 = vmatpush1.bf16.msra.mxu0 %v12293_v43  ;;  %3537 = vmatpush1.bf16.msra.mxu1 %v9541_v14  ;;  %v12897_v14 = vld [vmem:[#allocation123_spill] sm:$0xff]  ;;  %v12920_v43 = vmov 0  }
 0xa0e   :  { %3497 = vmatprep.subr.bf16.mxu0 %v12294_v35  ;;  %3538 = vmatprep.subr.bf16.mxu1 %v9544_v24  ;;  %v12900_v24 = vld [vmem:[#allocation100_spill] sm:$0xff]  ;;  %v7930_v35 = vld [vmem:[#allocation8] ss:$8 sps:$4 sm:$0xff]  }
 0xa11   :  { %3498 = vmatpush1.bf16.msra.mxu0 %v12295_v8  ;;  %3539 = vmatpush1.bf16.msra.mxu1 %v9549_v22  ;;  %v12899_v22 = vld [vmem:[#allocation124_spill] sm:$0xff]  ;;  %v7932_v8 = vld [vmem:[#allocation8 + $0x4] ss:$8 sps:$4 sm:$0xff]  }
 0xa12   :  { %3499 = vmatprep.subr.bf16.mxu0 %v12296_v10  ;;  %3540 = vmatprep.subr.bf16.mxu1 %v9552_v33  ;;  %v12902_v33 = vld [vmem:[#allocation102_spill] sm:$0xff]  ;;  %v7935_v10 = vld [vmem:[#allocation8 + $0x14] ss:$8 sps:$4 sm:$0xff]  }
 0xa15   :  { %3500 = vmatpush1.bf16.msra.mxu0 %v12297_v19  ;;  %3541 = vmatpush1.bf16.msra.mxu1 %v9557_v31  ;;  %v12901_v31 = vld [vmem:[#allocation125_spill] sm:$0xff] }
 0xa16   :  { %3501 = vmatprep.subr.bf16.mxu0 %v12298_v44  ;;  %3542 = vmatprep.subr.bf16.mxu1 %v9560_v41  ;;  %v12904_v41 = vld [vmem:[#allocation104_spill] sm:$0xff]  ;;  %v7938_v44 = vld [vmem:[#allocation8 + $0x24] ss:$8 sps:$4 sm:$0xff]  }
 0xa17   :  { %v7933_v19 = vld [vmem:[#allocation8 + $0x10] ss:$8 sps:$4 sm:$0xff]  }
 0xa19   :  { %3502 = vmatpush1.bf16.msra.mxu0 %v12299_v42  ;;  %3543 = vmatpush1.bf16.msra.mxu1 %v9565_v39  ;;  %v12903_v39 = vld [vmem:[#allocation126_spill] sm:$0xff] }
 0xa1a   :  { %3503 = vmatprep.subr.bf16.mxu0 %v12300_v0  ;;  %3544 = vmatprep.subr.bf16.mxu1 %v9568_v50  ;;  %v12905_v50 = vld [vmem:[#allocation127_spill] sm:$0xff]  ;;  %v7941_v0 = vld [vmem:[#allocation8 + $0x34] ss:$8 sps:$4 sm:$0xff]  }
 0xa1b   :  { %v7936_v42 = vld [vmem:[#allocation8 + $0x20] ss:$8 sps:$4 sm:$0xff]  }
 0xa1d   :  { %3504 = vmatpush1.bf16.msra.mxu0 %v12301_v6  ;;  %3545 = vmatpush1.bf16.msra.mxu1 %v12389_v1  ;;  %v7939_v6 = vld [vmem:[#allocation8 + $0x30] ss:$8 sps:$4 sm:$0xff]   ;;  %v7947_v1 = vld [vmem:[#allocation8 + $0x54] ss:$8 sps:$4 sm:$0xff]  }
 0xa1e   :  { %3505 = vmatprep.subr.bf16.mxu0 %v12302_v36  ;;  %3546 = vmatprep.subr.bf16.mxu1 %v12390_v17  ;;  %v7944_v36 = vld [vmem:[#allocation8 + $0x44] ss:$8 sps:$4 sm:$0xff]   ;;  %v7945_v17 = vld [vmem:[#allocation8 + $0x50] ss:$8 sps:$4 sm:$0xff]  }
 0xa21   :  { %3506 = vmatpush1.bf16.msra.mxu0 %v12303_v32  ;;  %3547 = vmatpush1.bf16.msra.mxu1 %v12691_v56  ;;  %v7942_v32 = vld [vmem:[#allocation8 + $0x40] ss:$8 sps:$4 sm:$0xff]   ;;  %v7950_v56 = vld [vmem:[#allocation8 + $0x64] ss:$8 sps:$4 sm:$0xff]  }
 0xa22   :  { %3507 = vmatprep.subr.bf16.mxu0 %v12896_v7  ;;  %3548 = vmatprep.subr.bf16.mxu1 %v12897_v14  ;;  %v12922_v14 = vld [vmem:[#allocation178_spill] sm:$0xff] }
 0xa25   :  { %3508 = vmatpush1.bf16.msra.mxu0 %v12898_v16  ;;  %3549 = vmatpush1.bf16.msra.mxu1 %v12899_v22 }
 0xa26   :  { %3509 = vmatprep.subr.bf16.mxu0 %v12900_v24  ;;  %3550 = vmatprep.subr.bf16.mxu1 %v12901_v31  ;;  %v12923_v31 = vld [vmem:[#allocation163_spill] sm:$0xff] }
 0xa29   :  { %3510 = vmatpush1.bf16.msra.mxu0 %v12902_v33  ;;  %3551 = vmatpush1.bf16.msra.mxu1 %v12903_v39  ;;  %v12924_v39 = vld [vmem:[#allocation179_spill] sm:$0xff] }
 0xa2a   :  { %3511 = vmatprep.subr.bf16.mxu0 %v12904_v41  ;;  %3552 = vmatprep.subr.bf16.mxu1 %v12905_v50 }
 0xa2d   :  { %3512 = vmatpush1.bf16.msra.mxu0 %v12906_v9  ;;  %3553 = vmatpush1.bf16.msra.mxu1 %v12907_v29 }
 0xa2e   :  { %3513 = vmatprep.subr.bf16.mxu0 %v12908_v30  ;;  %3554 = vmatprep.subr.bf16.mxu1 %v12909_v21 }
 0xa31   :  { %3514 = vmatpush1.bf16.msra.mxu0 %v12910_v25  ;;  %3555 = vmatpush1.bf16.msra.mxu1 %v12911_v54 }
 0xa32   :  { %3515 = vmatprep.subr.bf16.mxu0 %v12912_v60  ;;  %3556 = vmatprep.subr.bf16.mxu1 %v12913_v13 }
 0xa35   :  { %3516 = vmatpush1.bf16.msra.mxu0 %v12914_v38  ;;  %3557 = vmatpush1.bf16.msra.mxu1 %v12915_v52 }
 0xa36   :  { %3517 = vmatprep.subr.bf16.mxu0 %v12916_v57  ;;  %3558 = vmatprep.subr.bf16.mxu1 %v12917_v27 }
 0xa39   :  { %3518 = vmatpush1.bf16.msra.mxu0 %v12918_v49  ;;  %3559 = vmatpush1.bf16.msra.mxu1 %v12919_v37 }
 0xa3a   :  { %4037 = vmatprep.subr.bf16.mxu0 %v7932_v8 }
 0xa3c   :  { %3520 = vmatmul.mubr.bf16.vlgmr.msra.gmra.mrb[76].mxu0 %v11002_v34  ;;  %3561 = vmatmul.mubr.bf16.vlgmr.msra.gmra.mrb[108].mxu1 %v11002_v34  ;;  %v12921_v34 = vld [vmem:[#allocation162_spill] sm:$0xff] }
 0xa3d   :  { %4399 = vmatprep.mubr.bf16.mxu1 %v12920_v43  ;;  %4038 = vmatpush1.bf16.msra.mxu0 %v7930_v35 }
 0xa3e   :  { %4039 = vmatprep.subr.bf16.mxu0 %v7935_v10  ;;  %v12925_v10 = vld [vmem:[#allocation74_spill] sm:$0xff] }
 0xa41   :  { %4040 = vmatpush1.bf16.msra.mxu0 %v7933_v19 }
 0xa42   :  { %4041 = vmatprep.subr.bf16.mxu0 %v7938_v44 }
 0xa45   :  { %4042 = vmatpush1.bf16.msra.mxu0 %v7936_v42  ;;  %v11128_v42 = vld [vmem:[#allocation13] ss:$16 sps:$4 sm:$0xff]  }
 0xa46   :  { %4043 = vmatprep.subr.bf16.mxu0 %v7941_v0 }
 0xa49   :  { %4044 = vmatpush1.bf16.msra.mxu0 %v7939_v6 }
 0xa4a   :  { %4045 = vmatprep.subr.bf16.mxu0 %v7944_v36 }
 0xa4d   :  { %4046 = vmatpush1.bf16.msra.mxu0 %v7942_v32 }
 0xa4e   :  { %4047 = vmatprep.subr.bf16.mxu0 %v7947_v1  ;;  %v8026_v1 = vld [vmem:[#allocation11] ss:$16 sps:$4 sm:$0xff]  }
 0xa51   :  { %4048 = vmatpush1.bf16.msra.mxu0 %v7945_v17  ;;  %v8028_v17 = vld [vmem:[#allocation11 + $0x4] ss:$16 sps:$4 sm:$0xff]  }
 0xa52   :  { %4049 = vmatprep.subr.bf16.mxu0 %v7950_v56  ;;  %v8031_v56 = vld [vmem:[#allocation11 + $0x24] ss:$16 sps:$4 sm:$0xff]   ;;  %4367 = vmatprep.subr.bf16.mxu1 %v8028_v17 }
 0xa53   :  { %4368 = vmatpush1.bf16.msra.mxu1 %v8026_v1  ;;  %v11105_v17 = vld [vmem:[%s11819_s1 + $0x10] sm:$0xff]  }
 0xa54   :  { %4369 = vmatprep.subr.bf16.mxu1 %v8031_v56  ;;  %v8023_v56 = vld [vmem:[#allocation8 + $0x1f0] ss:$8 sps:$4 sm:$0xff]  }
 0xa55   :  { %4050 = vmatpush1.bf16.msra.mxu0 %v7948_v61  ;;  %v8029_v61 = vld [vmem:[#allocation11 + $0x20] ss:$16 sps:$4 sm:$0xff]  }
 0xa56   :  { %4051 = vmatprep.subr.bf16.mxu0 %v7953_v3  ;;  %v8034_v3 = vld [vmem:[#allocation11 + $0x44] ss:$16 sps:$4 sm:$0xff]  }
 0xa57   :  { %4370 = vmatpush1.bf16.msra.mxu1 %v8029_v61 }
 0xa58   :  { %4371 = vmatprep.subr.bf16.mxu1 %v8034_v3  ;;  %v8065_v3 = vld [vmem:[#allocation11 + $0x88] ss:$16 sps:$4 sm:$0xff]  }
 0xa59   :  { %4052 = vmatpush1.bf16.msra.mxu0 %v7951_v18  ;;  %v8032_v18 = vld [vmem:[#allocation11 + $0x40] ss:$16 sps:$4 sm:$0xff]  }
 0xa5a   :  { %4053 = vmatprep.subr.bf16.mxu0 %v7956_v55  ;;  %v8037_v55 = vld [vmem:[#allocation11 + $0x64] ss:$16 sps:$4 sm:$0xff]  }
 0xa5b   :  { %4372 = vmatpush1.bf16.msra.mxu1 %v8032_v18  ;;  %v8070_v18 = vld [vmem:[#allocation11 + $0xac] ss:$16 sps:$4 sm:$0xff]  }
 0xa5c   :  { %4373 = vmatprep.subr.bf16.mxu1 %v8037_v55  ;;  %v8068_v55 = vld [vmem:[#allocation11 + $0xa8] ss:$16 sps:$4 sm:$0xff]  }
 0xa5d   :  { %4054 = vmatpush1.bf16.msra.mxu0 %v7954_v58  ;;  %v8035_v58 = vld [vmem:[#allocation11 + $0x60] ss:$16 sps:$4 sm:$0xff]  }
 0xa5e   :  { %4055 = vmatprep.subr.bf16.mxu0 %v7959_v28  ;;  %v8040_v28 = vld [vmem:[#allocation11 + $0x84] ss:$16 sps:$4 sm:$0xff]  }
 0xa5f   :  { %4374 = vmatpush1.bf16.msra.mxu1 %v8035_v58  ;;  %v8074_v58 = vld [vmem:[#allocation11 + $0xcc] ss:$16 sps:$4 sm:$0xff]  }
 0xa60   :  { %4375 = vmatprep.subr.bf16.mxu1 %v8040_v28  ;;  %v11115_v28 = vld [vmem:[%s11819_s1 + $0x18] sm:$0xff]  }
 0xa61   :  { %4056 = vmatpush1.bf16.msra.mxu0 %v7957_v62 }
 0xa62   :  { %4057 = vmatprep.subr.bf16.mxu0 %v7962_v5 }
 0xa65   :  { %4058 = vmatpush1.bf16.msra.mxu0 %v7960_v4  ;;  %v12927_v4 = vld [vmem:[#allocation138_spill] sm:$0xff] }
 0xa66   :  { %4059 = vmatprep.subr.bf16.mxu0 %v7965_v12 }
 0xa69   :  { %4060 = vmatpush1.bf16.msra.mxu0 %v7963_v2  ;;  %v12928_v2 = vld [vmem:[#allocation180_spill] sm:$0xff] }
 0xa6a   :  { %4061 = vmatprep.subr.bf16.mxu0 %v7968_v63 }
 0xa6d   :  { %4062 = vmatpush1.bf16.msra.mxu0 %v7966_v51 }
 0xa6e   :  { %4063 = vmatprep.subr.bf16.mxu0 %v7971_v53 }
 0xa71   :  { %4064 = vmatpush1.bf16.msra.mxu0 %v7969_v23  ;;  %v12929_v23 = vld [vmem:[#allocation140_spill] sm:$0xff] }
 0xa72   :  { %4065 = vmatprep.subr.bf16.mxu0 %v7974_v47 }
 0xa75   :  { %4066 = vmatpush1.bf16.msra.mxu0 %v7972_v20  ;;  %v12930_v20 = vld [vmem:[#allocation181_spill] sm:$0xff] }
 0xa76   :  { %4067 = vmatprep.subr.bf16.mxu0 %v7977_v15 }
 0xa79   :  { %4068 = vmatpush1.bf16.msra.mxu0 %v7975_v48 }
 0xa7a   :  { %4078 = vmatprep.subr.bf16.mxu0 %v7980_v59 }
 0xacf   :  { %v3439_v45 = vpop.f32.mrb[72].mxu0  ;;  %v3480_v46 = vpop.f32.mrb[104].mxu1 }
 0xad0   :  { %v3573_v7 = vadd.f32 %v3439_v45, %v12921_v34  ;;  %v3575_v16 = vadd.f32 %v3480_v46, %v12922_v14  ;;  %v3441_v22 = vpop.f32.mrb[73].mxu0  ;;  %v3482_v24 = vpop.f32.mrb[105].mxu1  ;;  %v8038_v45 = vld [vmem:[#allocation11 + $0x80] ss:$16 sps:$4 sm:$0xff]   ;;  %v8043_v14 = vld [vmem:[#allocation11 + $0xa4] ss:$16 sps:$4 sm:$0xff]  }
 0xad1   :  { %v3574_v33 = vadd.f32 %v3441_v22, %v12923_v31  ;;  %v3576_v41 = vadd.f32 %v3482_v24, %v12924_v39  ;;  %v3443_v50 = vpop.f32.mrb[74].mxu0  ;;  %v3484_v9 = vpop.f32.mrb[106].mxu1  ;;  %4376 = vmatpush1.bf16.msra.mxu1 %v8038_v45  ;;  %v8041_v22 = vld [vmem:[#allocation11 + $0xa0] ss:$16 sps:$4 sm:$0xff]   ;;  %v8046_v24 = vld [vmem:[#allocation11 + $0xc4] ss:$16 sps:$4 sm:$0xff]  }
 0xad2   :  { %v7500_v29 = vmul.f32 -1.442695, %v3573_v7  ;;  %v3444_v30 = vpop.f32.mrb[75].mxu0  ;;  %v3485_v21 = vpop.f32.mrb[107].mxu1  ;;  %4377 = vmatprep.subr.bf16.mxu1 %v8043_v14  ;;  %v8044_v31 = vld [vmem:[#allocation11 + $0xc0] ss:$16 sps:$4 sm:$0xff]  }
 0xad3   :  { %v7501_v25 = vmul.f32 -1.442695, %v3574_v33  ;;  %v7502_v54 = vmul.f32 -1.442695, %v3576_v41  ;;  %v8049_v33 = vld [vmem:[#allocation11 + $0xe4] ss:$16 sps:$4 sm:$0xff]  }
 0xad4   :  { %8422 = vpow2.f32 %v7500_v29  ;;  %v8047_v41 = vld [vmem:[#allocation11 + $0xe0] ss:$16 sps:$4 sm:$0xff]   ;;  %v8053_v9 = vld [vmem:[#allocation11 + $0xc] ss:$16 sps:$4 sm:$0xff]   ;;  %v11139_v45 = vld [vmem:[#allocation13 + $0x44] ss:$16 sps:$4 sm:$0xff]  }
 0xad5   :  { %8424 = vpow2.f32 %v7501_v25  ;;  %4378 = vmatpush1.bf16.msra.mxu1 %v8041_v22  ;;  %v11090_v25 = vld [vmem:[%s11819_s1] sm:$0xff]  }
 0xad6   :  { %8426 = vpow2.f32 %v7502_v54  ;;  %4379 = vmatprep.subr.bf16.mxu1 %v8046_v24  ;;  %v8051_v54 = vld [vmem:[#allocation11 + $0x8] ss:$16 sps:$4 sm:$0xff]   ;;  %v11145_v14 = vld [vmem:[#allocation13 + $0x64] ss:$16 sps:$4 sm:$0xff]   ;;  %v11149_v24 = vld [vmem:[#allocation13 + $0x60] ss:$16 sps:$4 sm:$0xff]  }
 0xad7   :  { %8428 = vtanh.f32 %v3575_v16  ;;  %v7992_v22 = vld [vmem:[#allocation8 + $0x144] ss:$8 sps:$4 sm:$0xff]  }
 0xad9   :  { %4380 = vmatpush1.bf16.msra.mxu1 %v8044_v31  ;;  %v11153_v31 = vld [vmem:[#allocation13 + $0x84] ss:$16 sps:$4 sm:$0xff]  }
 0xada   :  { %4381 = vmatprep.subr.bf16.mxu1 %v8049_v33  ;;  %v7990_v33 = vld [vmem:[#allocation8 + $0x140] ss:$8 sps:$4 sm:$0xff]  }
 0xadd   :  { %4382 = vmatpush1.bf16.msra.mxu1 %v8047_v41  ;;  %v11156_v41 = vld [vmem:[#allocation13 + $0x80] ss:$16 sps:$4 sm:$0xff]  }
 0xade   :  { %v8423_v60 = vpop.eup %8422  ;;  %4440 = vmatprep.subr.bf16.mxu1 %v8053_v9  ;;  %v7993_v9 = vld [vmem:[#allocation8 + $0x150] ss:$8 sps:$4 sm:$0xff]  }
 0xadf   :  { %v8425_v13 = vpop.eup %8424  ;;  %v3588_v38 = vadd.f32 1.0, %v8423_v60  ;;  %v8056_v60 = vld [vmem:[#allocation11 + $0x2c] ss:$16 sps:$4 sm:$0xff]  }
 0xae0   :  { %v3594_v52 = vadd.f32 1.0, %v8425_v13  ;;  %v8427_v57 = vpop.eup %8426  ;;  %4400 = vmatmul.mubr.bf16.vlgmr.msra.gmra.mrb[112].mxu1 %v11090_v25  ;;  %v8054_v13 = vld [vmem:[#allocation11 + $0x28] ss:$16 sps:$4 sm:$0xff]  }
 0xae1   :  { %8430 = vrcp.f32 %v3588_v38  ;;  %v8429_v27 = vpop.eup %8428  ;;  %v3601_v8 = vadd.f32 1.0, %v8427_v57  ;;  %4441 = vmatpush1.bf16.msra.mxu1 %v8051_v54  ;;  %4409 = vmatprep.mubr.bf16.mxu1 %v12920_v43  ;;  %v8060_v38 = vld [vmem:[#allocation11 + $0x4c] ss:$16 sps:$4 sm:$0xff]  }
 0xae2   :  { %8432 = vrcp.f32 %v3594_v52  ;;  %4442 = vmatprep.subr.bf16.mxu1 %v8056_v60  ;;  %v11097_v52 = vld [vmem:[%s11819_s1 + $0x8] sm:$0xff]   ;;  %v8001_v54 = vld [vmem:[#allocation8 + $0x174] ss:$8 sps:$4 sm:$0xff]  }
 0xae3   :  { %8434 = vrcp.f32 %v3601_v8  ;;  %v11170_v60 = vld [vmem:[#allocation13 + $0xc0] ss:$16 sps:$4 sm:$0xff]  }
 0xae5   :  { %4443 = vmatpush1.bf16.msra.mxu1 %v8054_v13  ;;  %v7999_v13 = vld [vmem:[#allocation8 + $0x170] ss:$8 sps:$4 sm:$0xff]  }
 0xae6   :  { %4444 = vmatprep.subr.bf16.mxu1 %v8060_v38  ;;  %v8004_v38 = vld [vmem:[#allocation8 + $0x184] ss:$8 sps:$4 sm:$0xff]  }
 0xae8   :  { %4410 = vmatmul.mubr.bf16.gmra.mrb[116].mxu1 %v11097_v52 }
 0xae9   :  { %4419 = vmatprep.mubr.bf16.mxu1 %v12920_v43 }
 0xaeb   :  { %v8431_v49 = vpop.eup %8430 }
 0xaec   :  { %v8433_v37 = vpop.eup %8432  ;;  %v3605_v35 = vmul.f32 %v8431_v49, %v8429_v27  ;;  %v8058_v27 = vld [vmem:[#allocation11 + $0x48] ss:$16 sps:$4 sm:$0xff]  }
 0xaed   :  { %v3604_v19 = vmul.f32 %v8433_v37, %v12925_v10  ;;  %v8435_v6 = vpop.eup %8434  ;;  %v8063_v37 = vld [vmem:[#allocation11 + $0x6c] ss:$16 sps:$4 sm:$0xff]   ;;  %4445 = vmatpush1.bf16.msra.mxu1 %v8058_v27 }
 0xaee   :  { %4446 = vmatprep.subr.bf16.mxu1 %v8063_v37  ;;  %v8005_v27 = vld [vmem:[#allocation8 + $0x190] ss:$8 sps:$4 sm:$0xff]   ;;  %v8008_v37 = vld [vmem:[#allocation8 + $0x1a0] ss:$8 sps:$4 sm:$0xff]  }
 0xaef   :  { %v3606_v44 = vadd.f32 %v3605_v35, %v3604_v19 }
 0xaf0   :  { %4420 = vmatmul.mubr.bf16.gmra.mrb[120].mxu1 %v11105_v17 }
 0xaf1   :  { %8436 = vtanh.f32 %v3606_v44  ;;  %v11079_v0 = vsel %vm1960_vm8, %v3606_v44, %v12925_v10  ;;  %4429 = vmatprep.mubr.bf16.mxu1 %v12920_v43 }
 0xaf8   :  { %4430 = vmatmul.mubr.bf16.gmra.mrb[124].mxu1 %v11115_v28 }
 0xaf9   :  { %4472 = vmatprep.mubr.bf16.mxu1 %v12920_v43 }
 0xafb   :  { %v8437_v36 = vpop.eup %8436 }
 0xafc   :  { %v11081_v32 = vmul.f32 %v8437_v36, %v8435_v6  ;;  %v8061_v6 = vld [vmem:[#allocation11 + $0x68] ss:$16 sps:$4 sm:$0xff]   ;;  %v8067_v36 = vld [vmem:[#allocation11 + $0x8c] ss:$16 sps:$4 sm:$0xff]  }
 0xafd   :  { %4447 = vmatpush1.bf16.msra.mxu1 %v8061_v6  ;;  %v8017_v6 = vld [vmem:[#allocation8 + $0x1d0] ss:$8 sps:$4 sm:$0xff]  }
 0xafe   :  { %4448 = vmatprep.subr.bf16.mxu1 %v8067_v36  ;;  %v8022_v36 = vld [vmem:[#allocation8 + $0x1e4] ss:$8 sps:$4 sm:$0xff]  }
 0xb01   :  { %4449 = vmatpush1.bf16.msra.mxu1 %v8065_v3  ;;  %v11195_v3 = vld [vmem:[#allocation13 + $0xe0] ss:$16 sps:$4 sm:$0xff]  }
 0xb02   :  { %4450 = vmatprep.subr.bf16.mxu1 %v8070_v18  ;;  %v11201_v18 = vld [vmem:[#allocation13 + $0xc] ss:$16 sps:$4 sm:$0xff]  }
 0xb05   :  { %4451 = vmatpush1.bf16.msra.mxu1 %v8068_v55  ;;  %v4161_v55 = vld [vmem:[#allocation14] sm:$0xf] }
 0xb06   :  { %4452 = vmatprep.subr.bf16.mxu1 %v8074_v58 }
 0xb0f   :  { %v3521_v62 = vpop.f32.mrb[76].mxu0  ;;  %v3562_v5 = vpop.f32.mrb[108].mxu1 }
 0xb10   :  { %v3581_v12 = vadd.f32 %v3521_v62, %v12927_v4  ;;  %v3583_v51 = vadd.f32 %v3562_v5, %v12928_v2  ;;  %v3523_v63 = vpop.f32.mrb[77].mxu0  ;;  %v3564_v53 = vpop.f32.mrb[109].mxu1  ;;  %v8072_v62 = vld [vmem:[#allocation11 + $0xc8] ss:$16 sps:$4 sm:$0xff]   ;;  %v8077_v5 = vld [vmem:[#allocation11 + $0xec] ss:$16 sps:$4 sm:$0xff]   ;;  %v3633_v2 = vsel %vm1960_vm8, %v11081_v32, %v10991_v40 }
 0xb11   :  { %v3582_v47 = vadd.f32 %v3523_v63, %v12929_v23  ;;  %v3584_v15 = vadd.f32 %v3564_v53, %v12930_v20  ;;  %v3525_v48 = vpop.f32.mrb[78].mxu0  ;;  %v3566_v59 = vpop.f32.mrb[110].mxu1  ;;  %4453 = vmatpush1.bf16.msra.mxu1 %v8072_v62  ;;  %v11126_v53 = vld [vmem:[#allocation13 + $0x4] ss:$16 sps:$4 sm:$0xff]   ;;  %v3637_v20 = vpack.c.bf16 %v3633_v2, %v3633_v2 }
 0xb12   :  { %v7503_v46 = vmul.f32 -1.442695, %v3581_v12  ;;  %v3526_v34 = vpop.f32.mrb[79].mxu0  ;;  %v3567_v7 = vpop.f32.mrb[111].mxu1  ;;  %4454 = vmatprep.subr.bf16.mxu1 %v8077_v5  ;;  %v11131_v40 = vld [vmem:[#allocation13 + $0x24] ss:$16 sps:$4 sm:$0xff]  }
 0xb13   :  { %v7504_v16 = vmul.f32 -1.442695, %v3582_v47  ;;  %v7505_v39 = vmul.f32 -1.442695, %v3584_v15  ;;  %v7978_v47 = vld [vmem:[#allocation8 + $0x100] ss:$8 sps:$4 sm:$0xff]  }
 0xb14   :  { %8438 = vpow2.f32 %v7503_v46  ;;  %v7983_v15 = vld [vmem:[#allocation8 + $0x114] ss:$8 sps:$4 sm:$0xff]   ;;  %v7986_v32 = vld [vmem:[#allocation8 + $0x124] ss:$8 sps:$4 sm:$0xff]   ;;  %v7984_v46 = vld [vmem:[#allocation8 + $0x120] ss:$8 sps:$4 sm:$0xff]  }
 0xb15   :  { %8440 = vpow2.f32 %v7504_v16  ;;  %v11135_v59 = vld [vmem:[#allocation13 + $0x20] ss:$16 sps:$4 sm:$0xff]  }
 0xb16   :  { %8442 = vpow2.f32 %v7505_v39  ;;  %v7989_v34 = vld [vmem:[#allocation8 + $0x134] ss:$8 sps:$4 sm:$0xff]   ;;  %v7987_v16 = vld [vmem:[#allocation8 + $0x130] ss:$8 sps:$4 sm:$0xff]  }
 0xb17   :  { %8444 = vtanh.f32 %v3583_v51  ;;  %v8075_v51 = vld [vmem:[#allocation11 + $0xe8] ss:$16 sps:$4 sm:$0xff]   ;;  %v11142_v7 = vld [vmem:[#allocation13 + $0x40] ss:$16 sps:$4 sm:$0xff]  }
 0xb18   :  { %4455 = vmatpush1.bf16.msra.mxu1 %v8075_v51  ;;  %v7995_v39 = vld [vmem:[#allocation8 + $0x154] ss:$8 sps:$4 sm:$0xff]  }
 0xb19   :  { %4742 = vmatprep.subr.bf16.mxu1 %v11126_v53 }
 0xb1b   :  { %4473 = vmatmul.mubr.bf16.vlgmr.msra.gmra.mrb[128].mxu1 %v11090_v25  ;;  %v7996_v25 = vld [vmem:[#allocation8 + $0x160] ss:$8 sps:$4 sm:$0xff]  }
 0xb1c   :  { %4743 = vmatpush1.bf16.msra.mxu1 %v11128_v42  ;;  %4482 = vmatprep.mubr.bf16.mxu1 %v12920_v43 }
 0xb1d   :  { %4744 = vmatprep.subr.bf16.mxu1 %v11131_v40 }
 0xb1e   :  { %v8439_v50 = vpop.eup %8438 }
 0xb1f   :  { %v8441_v29 = vpop.eup %8440  ;;  %v3612_v30 = vadd.f32 1.0, %v8439_v50  ;;  %v11159_v50 = vld [vmem:[#allocation13 + $0xa4] ss:$16 sps:$4 sm:$0xff]  }
 0xb20   :  { %v3618_v21 = vadd.f32 1.0, %v8441_v29  ;;  %v8443_v57 = vpop.eup %8442  ;;  %4745 = vmatpush1.bf16.msra.mxu1 %v11135_v59  ;;  %v7998_v29 = vld [vmem:[#allocation8 + $0x164] ss:$8 sps:$4 sm:$0xff]  }
 0xb21   :  { %8446 = vrcp.f32 %v3612_v30  ;;  %v8445_v49 = vpop.eup %8444  ;;  %v3625_v19 = vadd.f32 1.0, %v8443_v57  ;;  %4746 = vmatprep.subr.bf16.mxu1 %v11139_v45  ;;  %v11163_v30 = vld [vmem:[#allocation13 + $0xa0] ss:$16 sps:$4 sm:$0xff]  }
 0xb22   :  { %8448 = vrcp.f32 %v3618_v21  ;;  %v11167_v21 = vld [vmem:[#allocation13 + $0xc4] ss:$16 sps:$4 sm:$0xff]  }
 0xb23   :  { %8450 = vrcp.f32 %v3625_v19  ;;  %4483 = vmatmul.mubr.bf16.gmra.mrb[132].mxu1 %v11097_v52  ;;  %v8002_v52 = vld [vmem:[#allocation8 + $0x180] ss:$8 sps:$4 sm:$0xff]   ;;  %v8007_v57 = vld [vmem:[#allocation8 + $0x194] ss:$8 sps:$4 sm:$0xff]  }
 0xb24   :  { %4747 = vmatpush1.bf16.msra.mxu1 %v11142_v7  ;;  %4492 = vmatprep.mubr.bf16.mxu1 %v12920_v43  ;;  %v8014_v19 = vld [vmem:[#allocation8 + $0x1c0] ss:$8 sps:$4 sm:$0xff]  }
 0xb25   :  { %4748 = vmatprep.subr.bf16.mxu1 %v11145_v14 }
 0xb28   :  { %4749 = vmatpush1.bf16.msra.mxu1 %v11149_v24 }
 0xb29   :  { %4750 = vmatprep.subr.bf16.mxu1 %v11153_v31 }
 0xb2b   :  { %v8447_v35 = vpop.eup %8446  ;;  %4493 = vmatmul.mubr.bf16.gmra.mrb[136].mxu1 %v11105_v17  ;;  %v8025_v17 = vld [vmem:[#allocation8 + $0x1f4] ss:$8 sps:$4 sm:$0xff]  }
 0xb2c   :  { %v8449_v8 = vpop.eup %8448  ;;  %v3629_v10 = vmul.f32 %v8447_v35, %v8445_v49  ;;  %4751 = vmatpush1.bf16.msra.mxu1 %v11156_v41  ;;  %4502 = vmatprep.mubr.bf16.mxu1 %v12920_v43  ;;  %v8010_v49 = vld [vmem:[#allocation8 + $0x1a4] ss:$8 sps:$4 sm:$0xff]   ;;  %v8013_v35 = vld [vmem:[#allocation8 + $0x1b4] ss:$8 sps:$4 sm:$0xff]  }
 0xb2d   :  { %v3628_v44 = vmul.f32 %v8449_v8, %v10986_v11  ;;  %4752 = vmatprep.subr.bf16.mxu1 %v11159_v50  ;;  %v8011_v8 = vld [vmem:[#allocation8 + $0x1b0] ss:$8 sps:$4 sm:$0xff]  }
 0xb2f   :  { %v3630_v1 = vadd.f32 %v3629_v10, %v3628_v44  ;;  %v8016_v10 = vld [vmem:[#allocation8 + $0x1c4] ss:$8 sps:$4 sm:$0xff]   ;;  %v8019_v44 = vld [vmem:[#allocation8 + $0x1d4] ss:$8 sps:$4 sm:$0xff]  }
 0xb30   :  { %4753 = vmatpush1.bf16.msra.mxu1 %v11163_v30 }
 0xb31   :  { %8452 = vtanh.f32 %v3630_v1  ;;  %v3636_v61 = vsel %vm1953_vm9, %v3630_v1, %v10986_v11  ;;  %v8451_v11 = vpop.eup %8450  ;;  %4754 = vmatprep.subr.bf16.mxu1 %v11167_v21  ;;  %v8020_v1 = vld [vmem:[#allocation8 + $0x1e0] ss:$8 sps:$4 sm:$0xff]  }
 0xb32   :  { %v3640_v48 = vpack.c.bf16 %v3636_v61, %v3636_v61  ;;  %v3639_v61 = vpack.c.bf16 %v11079_v0, %v11079_v0  ;;  %v11193_v0 = vld [vmem:[#allocation13 + $0xe4] ss:$16 sps:$4 sm:$0xff]  }
 0xb33   :  { %4503 = vmatmul.mubr.bf16.gmra.mrb[140].mxu1 %v11115_v28  ;;  %v12932_v28 = vld [vmem:[#allocation136_spill] sm:$0xff] }
 0xb34   :  { %4755 = vmatpush1.bf16.msra.mxu1 %v11170_v60  ;;  %4774 = vmatprep.mubr.bf16.mxu1 %v12920_v43  ;;  %v11208_v62 = vrot.slane %v4161_v55, %v12932_v28 }
 0xb35   :  { %4756 = vmatprep.subr.bf16.mxu1 %v11193_v0 }
 0xb38   :  { %4757 = vmatpush1.bf16.msra.mxu1 %v11195_v3 }
 0xb39   :  { %4783 = vmatprep.subr.bf16.mxu1 %v11201_v18 }
 0xb3b   :  { %v8453_v4 = vpop.eup %8452 }
 0xb3c   :  { %v3632_v12 = vmul.f32 %v8453_v4, %v8451_v11  ;;  %v12933_v11 = vld [vmem:[#allocation137_spill] sm:$0xff] }
 0xb3d   :  { %v11211_v5 = vrot.slane %v4161_v55, %v12933_v11 }
 0xb3e   :  { %v3635_v63 = vsel %vm1953_vm9, %v3632_v12, %v10996_v26  ;;  %v7981_v26 = vld [vmem:[#allocation8 + $0x110] ss:$8 sps:$4 sm:$0xff]  }
 0xb3f   :  { %v3638_v23 = vpack.c.bf16 %v3635_v63, %v3635_v63 }
 0xb41   :  { %4069 = vmatprep.mubr.bf16.mxu0 %v3638_v23 }
 0xb42   :  { %4070 = vmatmul.mubr.bf16.vlgmr.msra.gmra.mrb[80].mxu0 %v3637_v20 }
 0xb43   :  { %4079 = vmatpush1.bf16.msra.mxu0 %v7978_v47  ;;  %4110 = vmatprep.mubr.bf16.mxu0 %v3640_v48 }
 0xb44   :  { %4080 = vmatprep.subr.bf16.mxu0 %v7983_v15 }
 0xb47   :  { %4081 = vmatpush1.bf16.msra.mxu0 %v7981_v26 }
 0xb48   :  { %4082 = vmatprep.subr.bf16.mxu0 %v7986_v32 }
 0xb4b   :  { %4083 = vmatpush1.bf16.msra.mxu0 %v7984_v46 }
 0xb4c   :  { %4084 = vmatprep.subr.bf16.mxu0 %v7989_v34 }
 0xb4f   :  { %4085 = vmatpush1.bf16.msra.mxu0 %v7987_v16 }
 0xb50   :  { %4086 = vmatprep.subr.bf16.mxu0 %v7992_v22 }
 0xb53   :  { %4087 = vmatpush1.bf16.msra.mxu0 %v7990_v33 }
 0xb54   :  { %4088 = vmatprep.subr.bf16.mxu0 %v7995_v39 }
 0xb57   :  { %4089 = vmatpush1.bf16.msra.mxu0 %v7993_v9 }
 0xb58   :  { %4090 = vmatprep.subr.bf16.mxu0 %v7998_v29 }
 0xb5b   :  { %4091 = vmatpush1.bf16.msra.mxu0 %v7996_v25 }
 0xb5c   :  { %4092 = vmatprep.subr.bf16.mxu0 %v8001_v54 }
 0xb5f   :  { %4093 = vmatpush1.bf16.msra.mxu0 %v7999_v13 }
 0xb60   :  { %4094 = vmatprep.subr.bf16.mxu0 %v8004_v38 }
 0xb63   :  { %4095 = vmatpush1.bf16.msra.mxu0 %v8002_v52 }
 0xb64   :  { %4096 = vmatprep.subr.bf16.mxu0 %v8007_v57 }
 0xb67   :  { %4097 = vmatpush1.bf16.msra.mxu0 %v8005_v27 }
 0xb68   :  { %4098 = vmatprep.subr.bf16.mxu0 %v8010_v49 }
 0xb6b   :  { %4099 = vmatpush1.bf16.msra.mxu0 %v8008_v37 }
 0xb6c   :  { %4100 = vmatprep.subr.bf16.mxu0 %v8013_v35  ;;  %v12944_v35 = vld [vmem:[#allocation135_spill] sm:$0xff] }
 0xb6f   :  { %4101 = vmatpush1.bf16.msra.mxu0 %v8011_v8  ;;  %v12945_v8 = vsub.s32 2, %v12944_v35 }
 0xb70   :  { %4102 = vmatprep.subr.bf16.mxu0 %v8016_v10 }
 0xb71   :  { %v11259_v10 = vrot.slane %v4161_v55, %v12945_v8 }
 0xb73   :  { %4103 = vmatpush1.bf16.msra.mxu0 %v8014_v19 }
 0xb74   :  { %4104 = vmatprep.subr.bf16.mxu0 %v8019_v44  ;;  %v12946_v44 = vsub.s32 3, %v12944_v35 }
 0xb77   :  { %4105 = vmatpush1.bf16.msra.mxu0 %v8017_v6  ;;  %v11265_v6 = vrot.slane %v4161_v55, %v12946_v44 }
 0xb78   :  { %4106 = vmatprep.subr.bf16.mxu0 %v8022_v36 }
 0xb7b   :  { %4107 = vmatpush1.bf16.msra.mxu0 %v8020_v1 }
 0xb7c   :  { %4108 = vmatprep.subr.bf16.mxu0 %v8025_v17 }
 0xb7f   :  { %4109 = vmatpush1.bf16.msra.mxu0 %v8023_v56 }
 0xb80   :  { %5050 = vmatprep.subr.bf16.mxu0 %v11126_v53 }
 0xb82   :  { %4111 = vmatmul.mubr.bf16.vlgmr.msra.gmra.mrb[80].mxu0 %v3639_v61 }
 0xb83   :  { %5051 = vmatpush1.bf16.msra.mxu0 %v11128_v42  ;;  %5082 = vmatprep.mubr.bf16.mxu0 %v12920_v43 }
 0xb84   :  { %5052 = vmatprep.subr.bf16.mxu0 %v11131_v40 }
 0xb87   :  { %5053 = vmatpush1.bf16.msra.mxu0 %v11135_v59 }
 0xb88   :  { %5054 = vmatprep.subr.bf16.mxu0 %v11139_v45 }
 0xb8b   :  { %5055 = vmatpush1.bf16.msra.mxu0 %v11142_v7 }
 0xb8c   :  { %5056 = vmatprep.subr.bf16.mxu0 %v11145_v14 }
 0xb8f   :  { %5057 = vmatpush1.bf16.msra.mxu0 %v11149_v24 }
 0xb90   :  { %5058 = vmatprep.subr.bf16.mxu0 %v11153_v31 }
 0xb93   :  { %5059 = vmatpush1.bf16.msra.mxu0 %v11156_v41 }
 0xb94   :  { %5060 = vmatprep.subr.bf16.mxu0 %v11159_v50 }
 0xb97   :  { %5061 = vmatpush1.bf16.msra.mxu0 %v11163_v30 }
 0xb98   :  { %5062 = vmatprep.subr.bf16.mxu0 %v11167_v21 }
 0xb9b   :  { %5063 = vmatpush1.bf16.msra.mxu0 %v11170_v60 }
 0xb9c   :  { %5064 = vmatprep.subr.bf16.mxu0 %v11193_v0 }
 0xb9f   :  { %5065 = vmatpush1.bf16.msra.mxu0 %v11195_v3 }
 0xba0   :  { %5358 = vmatprep.subr.bf16.mxu0 %v11126_v53 }
 0xbb3   :  { %v11205_v58 = vpop.f32.mrb[112].mxu1 }
 0xbb4   :  { %v11213_v4 = vpop.f32.mrb[113].mxu1 }
 0xbb5   :  { %v4405_v12 = vpop.f32.mrb[114].mxu1 }
 0xbb6   :  { %v11216_v2 = vadd.f32 %v4405_v12, %v11208_v62  ;;  %v4407_v51 = vpop.f32.mrb[115].mxu1 }
 0xbb7   :  { %v11219_v63 = vadd.f32 %v4407_v51, %v11211_v5 }
 0xbbb   :  { %v4411_v23 = vpop.f32.mrb[116].mxu1 }
 0xbbc   :  { %v11222_v47 = vadd.f32 %v4411_v23, %v11208_v62  ;;  %v4413_v20 = vpop.f32.mrb[117].mxu1 }
 0xbbd   :  { %v11225_v15 = vadd.f32 %v4413_v20, %v11211_v5  ;;  %v4415_v48 = vpop.f32.mrb[118].mxu1 }
 0xbbe   :  { %v11228_v26 = vadd.f32 %v4415_v48, %v11208_v62  ;;  %v4417_v32 = vpop.f32.mrb[119].mxu1 }
 0xbbf   :  { %v11231_v46 = vadd.f32 %v4417_v32, %v11211_v5 }
 0xbc0   :  { %12934 = vst [vmem:[#allocation76_spill] sm:$0xff] %v11228_v26 }
 0xbc1   :  { %12935 = vst [vmem:[#allocation78_spill] sm:$0xff] %v11231_v46 }
 0xbc3   :  { %v4421_v34 = vpop.f32.mrb[120].mxu1 }
 0xbc4   :  { %v11234_v16 = vadd.f32 %v4421_v34, %v11208_v62  ;;  %v4423_v22 = vpop.f32.mrb[121].mxu1 }
 0xbc5   :  { %v11237_v33 = vadd.f32 %v4423_v22, %v11211_v5  ;;  %v4425_v39 = vpop.f32.mrb[122].mxu1 }
 0xbc6   :  { %12936 = vst [vmem:[#allocation80_spill] sm:$0xff] %v11234_v16  ;;  %v11240_v9 = vadd.f32 %v4425_v39, %v11208_v62  ;;  %v4427_v29 = vpop.f32.mrb[123].mxu1 }
 0xbc7   :  { %12937 = vst [vmem:[#allocation82_spill] sm:$0xff] %v11237_v33  ;;  %v11243_v25 = vadd.f32 %v4427_v29, %v11211_v5 }
 0xbc8   :  { %12938 = vst [vmem:[#allocation84_spill] sm:$0xff] %v11240_v9 }
 0xbc9   :  { %12939 = vst [vmem:[#allocation86_spill] sm:$0xff] %v11243_v25  ;;  %v4404_v25 = vadd.f32 %v11213_v4, %v11211_v5 }
 0xbcb   :  { %v4431_v54 = vpop.f32.mrb[124].mxu1 }
 0xbcc   :  { %v11246_v13 = vadd.f32 %v4431_v54, %v11208_v62  ;;  %v4433_v38 = vpop.f32.mrb[125].mxu1 }
 0xbcd   :  { %v11249_v52 = vadd.f32 %v4433_v38, %v11211_v5  ;;  %v4435_v57 = vpop.f32.mrb[126].mxu1 }
 0xbce   :  { %12940 = vst [vmem:[#allocation88_spill] sm:$0xff] %v11246_v13  ;;  %v11252_v27 = vadd.f32 %v4435_v57, %v11208_v62  ;;  %v4437_v49 = vpop.f32.mrb[127].mxu1  ;;  %v11356_v13 = vld [vmem:[#allocation13 + $0xec] ss:$16 sps:$4 sm:$0xff]  }
 0xbcf   :  { %12941 = vst [vmem:[#allocation90_spill] sm:$0xff] %v11249_v52  ;;  %v11255_v37 = vadd.f32 %v4437_v49, %v11211_v5  ;;  %v11350_v52 = vld [vmem:[#allocation13 + $0xcc] ss:$16 sps:$4 sm:$0xff]  }
 0xbd0   :  { %12942 = vst [vmem:[#allocation92_spill] sm:$0xff] %v11252_v27 }
 0xbd1   :  { %12943 = vst [vmem:[#allocation94_spill] sm:$0xff] %v11255_v37 }
 0xbee   :  { %v11261_v19 = vpop.f32.mrb[128].mxu1 }
 0xbef   :  { %v11267_v36 = vpop.f32.mrb[129].mxu1 }
 0xbf0   :  { %v4478_v1 = vpop.f32.mrb[130].mxu1 }
 0xbf1   :  { %v11270_v17 = vadd.f32 %v4478_v1, %v11259_v10  ;;  %v4480_v56 = vpop.f32.mrb[131].mxu1 }
 0xbf2   :  { %v11273_v61 = vadd.f32 %v4480_v56, %v11265_v6 }
 0xbf6   :  { %v4484_v12 = vpop.f32.mrb[132].mxu1 }
 0xbf7   :  { %v11276_v51 = vadd.f32 %v4484_v12, %v11259_v10  ;;  %v4486_v23 = vpop.f32.mrb[133].mxu1 }
 0xbf8   :  { %v11279_v20 = vadd.f32 %v4486_v23, %v11265_v6  ;;  %v4488_v55 = vpop.f32.mrb[134].mxu1 }
 0xbf9   :  { %v11282_v48 = vadd.f32 %v4488_v55, %v11259_v10  ;;  %v4490_v32 = vpop.f32.mrb[135].mxu1 }
 0xbfa   :  { %12947 = vst [vmem:[#allocation139_spill] sm:$0xff] %v11279_v20  ;;  %v11285_v34 = vadd.f32 %v4490_v32, %v11265_v6 }
 0xbfb   :  { %12948 = vst [vmem:[#allocation166_spill] sm:$0xff] %v11282_v48 }
 0xbfc   :  { %12949 = vst [vmem:[#allocation141_spill] sm:$0xff] %v11285_v34 }
 0xbfe   :  { %v4494_v22 = vpop.f32.mrb[136].mxu1 }
 0xbff   :  { %v11288_v39 = vadd.f32 %v4494_v22, %v11259_v10  ;;  %v4496_v29 = vpop.f32.mrb[137].mxu1  ;;  %v11311_v22 = vld [vmem:[#allocation10] sm:$0x3] }
 0xc00   :  { %v11291_v54 = vadd.f32 %v4496_v29, %v11265_v6  ;;  %v4498_v38 = vpop.f32.mrb[138].mxu1  ;;  %v3710_v29 = vrot.slane %v11311_v22, %v12932_v28  ;;  %v11344_v28 = vld [vmem:[#allocation13 + $0xac] ss:$16 sps:$4 sm:$0xff]   ;;  %v3714_v20 = vrot.slane %v11311_v22, %v12933_v11 }
 0xc01   :  { %12950 = vst [vmem:[#allocation167_spill] sm:$0xff] %v11288_v39  ;;  %v11294_v57 = vadd.f32 %v4498_v38, %v11259_v10  ;;  %v4500_v49 = vpop.f32.mrb[139].mxu1 }
 0xc02   :  { %12951 = vst [vmem:[#allocation164_spill] sm:$0xff] %v11291_v54  ;;  %v11297_v35 = vadd.f32 %v4500_v49, %v11265_v6 }
 0xc03   :  { %12952 = vst [vmem:[#allocation192_spill] sm:$0xff] %v11294_v57 }
 0xc04   :  { %12953 = vst [vmem:[#allocation165_spill] sm:$0xff] %v11297_v35  ;;  %v11359_v35 = vld [vmem:[#allocation13 + $0xe8] ss:$16 sps:$4 sm:$0xff]  }
 0xc06   :  { %v4504_v8 = vpop.f32.mrb[140].mxu1 }
 0xc07   :  { %v11300_v44 = vadd.f32 %v4504_v8, %v11259_v10  ;;  %v4506_v1 = vpop.f32.mrb[141].mxu1 }
 0xc08   :  { %v11303_v56 = vadd.f32 %v4506_v1, %v11265_v6  ;;  %v4508_v12 = vpop.f32.mrb[142].mxu1 }
 0xc09   :  { %12954 = vst [vmem:[#allocation193_spill] sm:$0xff] %v11300_v44  ;;  %v11306_v23 = vadd.f32 %v4508_v12, %v11259_v10  ;;  %v4510_v55 = vpop.f32.mrb[143].mxu1  ;;  %v11353_v44 = vld [vmem:[#allocation13 + $0xc8] ss:$16 sps:$4 sm:$0xff]  }
 0xc0a   :  { %12955 = vst [vmem:[#allocation120_spill] sm:$0xff] %v11303_v56  ;;  %v11309_v32 = vadd.f32 %v4510_v55, %v11265_v6  ;;  %v11317_v56 = vld [vmem:[#allocation13 + $0x8] ss:$16 sps:$4 sm:$0xff]  }
 0xc0b   :  { %12956 = vst [vmem:[#allocation121_spill] sm:$0xff] %v11306_v23  ;;  %v11319_v23 = vld [vmem:[#allocation13 + $0x2c] ss:$16 sps:$4 sm:$0xff]   ;;  %v11322_v55 = vld [vmem:[#allocation13 + $0x28] ss:$16 sps:$4 sm:$0xff]  }
 0xc0c   :  { %12957 = vst [vmem:[#allocation144_spill] sm:$0xff] %v11309_v32  ;;  %v11347_v32 = vld [vmem:[#allocation13 + $0xa8] ss:$16 sps:$4 sm:$0xff]  }
 0xc55   :  { %v4112_v38 = vpop.f32.mrb[80].mxu0 }
 0xc56   :  { %v7902_v49 = vadd.f32 %v4112_v38, %v3710_v29  ;;  %v11315_v8 = vpop.f32.mrb[81].mxu0  ;;  %v11326_v29 = vld [vmem:[#allocation13 + $0x4c] ss:$16 sps:$4 sm:$0xff]   ;;  %v11335_v38 = vld [vmem:[#allocation13 + $0x68] ss:$16 sps:$4 sm:$0xff]  }
 0xc57   :  { %v4116_v37 = vpop.f32.mrb[82].mxu0 }
 0xc58   :  { %v4119_v1 = vmax.f32 %v7902_v49, 0.0  ;;  %v4117_v27 = vpop.f32.mrb[83].mxu0  ;;  %v11329_v37 = vld [vmem:[#allocation13 + $0x48] ss:$16 sps:$4 sm:$0xff]   ;;  %v11338_v49 = vld [vmem:[#allocation13 + $0x8c] ss:$16 sps:$4 sm:$0xff]  }
 0xc59   :  { %v11332_v27 = vld [vmem:[#allocation13 + $0x6c] ss:$16 sps:$4 sm:$0xff]  }
 0xc5a   :  { %v4549_v12 = vpack.c.bf16 %v4119_v1, %v4119_v1  ;;  %v11341_v1 = vld [vmem:[#allocation13 + $0x88] ss:$16 sps:$4 sm:$0xff]  }
 0xc5c   :  { %4775 = vmatmul.mubr.bf16.vlgmr.msra.gmra.mrb[144].mxu1 %v4549_v12 }
 0xc5d   :  { %4784 = vmatpush1.bf16.msra.mxu1 %v11317_v56  ;;  %4815 = vmatprep.mubr.bf16.mxu1 %v12920_v43 }
 0xc5e   :  { %4785 = vmatprep.subr.bf16.mxu1 %v11319_v23 }
 0xc61   :  { %4786 = vmatpush1.bf16.msra.mxu1 %v11322_v55 }
 0xc62   :  { %4787 = vmatprep.subr.bf16.mxu1 %v11326_v29 }
 0xc65   :  { %4788 = vmatpush1.bf16.msra.mxu1 %v11329_v37 }
 0xc66   :  { %4789 = vmatprep.subr.bf16.mxu1 %v11332_v27 }
 0xc69   :  { %4790 = vmatpush1.bf16.msra.mxu1 %v11335_v38 }
 0xc6a   :  { %4791 = vmatprep.subr.bf16.mxu1 %v11338_v49 }
 0xc6d   :  { %4792 = vmatpush1.bf16.msra.mxu1 %v11341_v1 }
 0xc6e   :  { %4793 = vmatprep.subr.bf16.mxu1 %v11344_v28 }
 0xc71   :  { %4794 = vmatpush1.bf16.msra.mxu1 %v11347_v32 }
 0xc72   :  { %4795 = vmatprep.subr.bf16.mxu1 %v11350_v52 }
 0xc75   :  { %4796 = vmatpush1.bf16.msra.mxu1 %v11353_v44 }
 0xc76   :  { %4797 = vmatprep.subr.bf16.mxu1 %v11356_v13 }
 0xc79   :  { %4798 = vmatpush1.bf16.msra.mxu1 %v11359_v35 }
 0xc7a   :  { %5091 = vmatprep.subr.bf16.mxu1 %v11201_v18 }
 0xc7c   :  { %4816 = vmatmul.mubr.bf16.vlgmr.msra.gmra.mrb[148].mxu1 %v4549_v12  ;;  %v4402_v12 = vadd.f32 %v11205_v58, %v11208_v62  ;;  %v7903_v58 = vadd.f32 %v11315_v8, %v3714_v20 }
 0xc7d   :  { %5092 = vmatpush1.bf16.msra.mxu1 %v11317_v56  ;;  %5123 = vmatprep.mubr.bf16.mxu1 %v12920_v43 }
 0xc7e   :  { %5093 = vmatprep.subr.bf16.mxu1 %v11319_v23  ;;  %v4120_v5 = vmax.f32 %v7903_v58, 0.0 }
 0xc81   :  { %5094 = vmatpush1.bf16.msra.mxu1 %v11322_v55 }
 0xc82   :  { %5095 = vmatprep.subr.bf16.mxu1 %v11326_v29 }
 0xc85   :  { %5096 = vmatpush1.bf16.msra.mxu1 %v11329_v37 }
 0xc86   :  { %5097 = vmatprep.subr.bf16.mxu1 %v11332_v27 }
 0xc89   :  { %5098 = vmatpush1.bf16.msra.mxu1 %v11335_v38 }
 0xc8a   :  { %5099 = vmatprep.subr.bf16.mxu1 %v11338_v49 }
 0xc8d   :  { %5100 = vmatpush1.bf16.msra.mxu1 %v11341_v1 }
 0xc8e   :  { %5101 = vmatprep.subr.bf16.mxu1 %v11344_v28 }
 0xc91   :  { %5102 = vmatpush1.bf16.msra.mxu1 %v11347_v32 }
 0xc92   :  { %5103 = vmatprep.subr.bf16.mxu1 %v11350_v52 }
 0xc95   :  { %5104 = vmatpush1.bf16.msra.mxu1 %v11353_v44 }
 0xc96   :  { %5105 = vmatprep.subr.bf16.mxu1 %v11356_v13 }
 0xc99   :  { %5106 = vmatpush1.bf16.msra.mxu1 %v11359_v35 }
 0xc9a   :  { %5399 = vmatprep.subr.bf16.mxu1 %v11201_v18 }
 0xd2f   :  { %v4776_v57 = vpop.f32.mrb[144].mxu1 }
 0xd30   :  { %v4824_v9 = vadd.f32 %v4776_v57, %v4402_v12  ;;  %v4778_v54 = vpop.f32.mrb[145].mxu1 }
 0xd31   :  { %v4825_v33 = vadd.f32 %v4778_v54, %v4404_v25  ;;  %v4780_v39 = vpop.f32.mrb[146].mxu1 }
 0xd32   :  { %v4781_v16 = vpop.f32.mrb[147].mxu1  ;;  %v7638_v46 = vmul.f32 -1.442695, %v4824_v9 }
 0xd33   :  { %v7639_v34 = vmul.f32 -1.442695, %v4825_v33  ;;  %v4475_v16 = vadd.f32 %v11261_v19, %v11259_v10  ;;  %v4477_v33 = vadd.f32 %v11267_v36, %v11265_v6 }
 0xd35   :  { %8454 = vpow2.f32 %v7639_v34 }
 0xd36   :  { %8456 = vpow2.f32 %v7638_v46 }
 0xd3f   :  { %v8455_v48 = vpop.eup %8454 }
 0xd40   :  { %v4837_v26 = vadd.f32 1.0, %v8455_v48  ;;  %v8457_v62 = vpop.eup %8456 }
 0xd41   :  { %v4831_v57 = vadd.f32 1.0, %v8457_v62 }
 0xd42   :  { %8458 = vrcp.f32 %v4837_v26 }
 0xd43   :  { %8460 = vrcp.f32 %v4831_v57 }
 0xd4c   :  { %v8459_v4 = vpop.eup %8458 }
 0xd4d   :  { %v4847_v12 = vmul.f32 %v8459_v4, %v4120_v5  ;;  %v8461_v39 = vpop.eup %8460 }
 0xd4f   :  { %v4817_v9 = vpop.f32.mrb[148].mxu1 }
 0xd50   :  { %v4826_v46 = vadd.f32 %v4817_v9, %v4475_v16  ;;  %v4819_v25 = vpop.f32.mrb[149].mxu1 }
 0xd51   :  { %v4827_v26 = vadd.f32 %v4819_v25, %v4477_v33  ;;  %v4821_v48 = vpop.f32.mrb[150].mxu1 }
 0xd52   :  { %8462 = vtanh.f32 %v4826_v46  ;;  %v4822_v34 = vpop.f32.mrb[151].mxu1 }
 0xd53   :  { %v7640_v20 = vmul.f32 -1.442695, %v4827_v26 }
 0xd55   :  { %8464 = vpow2.f32 %v7640_v20 }
 0xd5c   :  { %v8463_v54 = vpop.eup %8462 }
 0xd5d   :  { %v4848_v22 = vmul.f32 %v8463_v54, %v8461_v39 }
 0xd5f   :  { %v8465_v8 = vpop.eup %8464  ;;  %v11392_v58 = vadd.f32 %v4848_v22, %v4847_v12 }
 0xd60   :  { %v4844_v10 = vadd.f32 1.0, %v8465_v8 }
 0xd61   :  { %8466 = vtanh.f32 %v11392_v58 }
 0xd62   :  { %8468 = vrcp.f32 %v4844_v10 }
 0xd6b   :  { %v8467_v19 = vpop.eup %8466 }
 0xd6c   :  { %v8469_v6 = vpop.eup %8468 }
 0xd6d   :  { %v11395_v36 = vmul.f32 %v8469_v6, %v8467_v19 }
 0xd6f   :  { %v4857_v62 = vpack.c.bf16 %v11395_v36, %v11395_v36 }
 0xd71   :  { %5083 = vmatmul.mubr.bf16.vlgmr.msra.gmra.mrb[84].mxu0 %v4857_v62  ;;  %5124 = vmatmul.mubr.bf16.vlgmr.msra.gmra.mrb[152].mxu1 %v4857_v62 }
 0xd72   :  { %5359 = vmatpush1.bf16.msra.mxu0 %v11128_v42  ;;  %5400 = vmatpush1.bf16.msra.mxu1 %v11317_v56 }
 0xd73   :  { %5360 = vmatprep.subr.bf16.mxu0 %v11131_v40  ;;  %5401 = vmatprep.subr.bf16.mxu1 %v11319_v23 }
 0xd74   :  { %5390 = vmatprep.mubr.bf16.mxu0 %v12920_v43  ;;  %5431 = vmatprep.mubr.bf16.mxu1 %v12920_v43 }
 0xd76   :  { %5361 = vmatpush1.bf16.msra.mxu0 %v11135_v59  ;;  %5402 = vmatpush1.bf16.msra.mxu1 %v11322_v55 }
 0xd77   :  { %5362 = vmatprep.subr.bf16.mxu0 %v11139_v45  ;;  %5403 = vmatprep.subr.bf16.mxu1 %v11326_v29 }
 0xd7a   :  { %5363 = vmatpush1.bf16.msra.mxu0 %v11142_v7  ;;  %5404 = vmatpush1.bf16.msra.mxu1 %v11329_v37 }
 0xd7b   :  { %5364 = vmatprep.subr.bf16.mxu0 %v11145_v14  ;;  %5405 = vmatprep.subr.bf16.mxu1 %v11332_v27 }
 0xd7e   :  { %5365 = vmatpush1.bf16.msra.mxu0 %v11149_v24  ;;  %5406 = vmatpush1.bf16.msra.mxu1 %v11335_v38 }
 0xd7f   :  { %5366 = vmatprep.subr.bf16.mxu0 %v11153_v31  ;;  %5407 = vmatprep.subr.bf16.mxu1 %v11338_v49 }
 0xd82   :  { %5367 = vmatpush1.bf16.msra.mxu0 %v11156_v41  ;;  %5408 = vmatpush1.bf16.msra.mxu1 %v11341_v1 }
 0xd83   :  { %5368 = vmatprep.subr.bf16.mxu0 %v11159_v50  ;;  %5409 = vmatprep.subr.bf16.mxu1 %v11344_v28 }
 0xd86   :  { %5369 = vmatpush1.bf16.msra.mxu0 %v11163_v30  ;;  %5410 = vmatpush1.bf16.msra.mxu1 %v11347_v32 }
 0xd87   :  { %5370 = vmatprep.subr.bf16.mxu0 %v11167_v21  ;;  %5411 = vmatprep.subr.bf16.mxu1 %v11350_v52 }
 0xd8a   :  { %5371 = vmatpush1.bf16.msra.mxu0 %v11170_v60  ;;  %5412 = vmatpush1.bf16.msra.mxu1 %v11353_v44 }
 0xd8b   :  { %5372 = vmatprep.subr.bf16.mxu0 %v11193_v0  ;;  %5413 = vmatprep.subr.bf16.mxu1 %v11356_v13 }
 0xd8e   :  { %5373 = vmatpush1.bf16.msra.mxu0 %v11195_v3  ;;  %5414 = vmatpush1.bf16.msra.mxu1 %v11359_v35 }
 0xd8f   :  { %5666 = vmatprep.subr.bf16.mxu0 %v11126_v53  ;;  %5707 = vmatprep.subr.bf16.mxu1 %v11201_v18 }
 0xe44   :  { %v5084_v5 = vpop.f32.mrb[84].mxu0  ;;  %v5125_v4 = vpop.f32.mrb[152].mxu1 }
 0xe45   :  { %v5132_v57 = vadd.f32 %v5084_v5, %v11216_v2  ;;  %v5134_v12 = vadd.f32 %v5125_v4, %v11270_v17  ;;  %v5086_v16 = vpop.f32.mrb[85].mxu0  ;;  %v5127_v33 = vpop.f32.mrb[153].mxu1 }
 0xe46   :  { %v5133_v9 = vadd.f32 %v5086_v16, %v11219_v63  ;;  %v5135_v46 = vadd.f32 %v5127_v33, %v11273_v61  ;;  %v5088_v25 = vpop.f32.mrb[86].mxu0  ;;  %v5129_v26 = vpop.f32.mrb[154].mxu1  ;;  %v11495_v16 = vld [vmem:[#allocation13] ss:$16 sps:$4 sm:$0xff]   ;;  %v11497_v33 = vld [vmem:[#allocation13 + $0x8] ss:$16 sps:$4 sm:$0xff]  }
 0xe47   :  { %v7673_v48 = vmul.f32 -1.442695, %v5132_v57  ;;  %v5089_v34 = vpop.f32.mrb[87].mxu0  ;;  %v5130_v20 = vpop.f32.mrb[155].mxu1  ;;  %v11507_v25 = vld [vmem:[#allocation13 + $0x20] ss:$16 sps:$4 sm:$0xff]  }
 0xe48   :  { %v7674_v53 = vmul.f32 -1.442695, %v5133_v9  ;;  %v7675_v18 = vmul.f32 -1.442695, %v5135_v46  ;;  %v11503_v9 = vld [vmem:[#allocation13 + $0x24] ss:$16 sps:$4 sm:$0xff]  }
 0xe49   :  { %8470 = vpow2.f32 %v7673_v48  ;;  %v11505_v46 = vld [vmem:[#allocation13 + $0x2c] ss:$16 sps:$4 sm:$0xff]   ;;  %v11509_v26 = vld [vmem:[#allocation13 + $0x28] ss:$16 sps:$4 sm:$0xff]   ;;  %v11515_v48 = vld [vmem:[#allocation13 + $0x44] ss:$16 sps:$4 sm:$0xff]  }
 0xe4a   :  { %8472 = vpow2.f32 %v7674_v53  ;;  %v11517_v34 = vld [vmem:[#allocation13 + $0x4c] ss:$16 sps:$4 sm:$0xff]   ;;  %v11519_v20 = vld [vmem:[#allocation13 + $0x40] ss:$16 sps:$4 sm:$0xff]   ;;  %v11521_v53 = vld [vmem:[#allocation13 + $0x48] ss:$16 sps:$4 sm:$0xff]  }
 0xe4b   :  { %8474 = vpow2.f32 %v7675_v18  ;;  %v11527_v18 = vld [vmem:[#allocation13 + $0x64] ss:$16 sps:$4 sm:$0xff]  }
 0xe4c   :  { %8476 = vtanh.f32 %v5134_v12 }
 0xe53   :  { %v8471_v39 = vpop.eup %8470 }
 0xe54   :  { %v8473_v54 = vpop.eup %8472  ;;  %v5139_v2 = vadd.f32 1.0, %v8471_v39  ;;  %v11529_v39 = vld [vmem:[#allocation13 + $0x6c] ss:$16 sps:$4 sm:$0xff]  }
 0xe55   :  { %v5145_v17 = vadd.f32 1.0, %v8473_v54  ;;  %v8475_v63 = vpop.eup %8474  ;;  %v11531_v54 = vld [vmem:[#allocation13 + $0x60] ss:$16 sps:$4 sm:$0xff]  }
 0xe56   :  { %8478 = vrcp.f32 %v5139_v2  ;;  %v8477_v22 = vpop.eup %8476  ;;  %v5152_v19 = vadd.f32 1.0, %v8475_v63  ;;  %v11533_v2 = vld [vmem:[#allocation13 + $0x68] ss:$16 sps:$4 sm:$0xff]   ;;  %v11541_v63 = vld [vmem:[#allocation13 + $0x8c] ss:$16 sps:$4 sm:$0xff]  }
 0xe57   :  { %8480 = vrcp.f32 %v5145_v17  ;;  %v11539_v17 = vld [vmem:[#allocation13 + $0x84] ss:$16 sps:$4 sm:$0xff]  }
 0xe58   :  { %8482 = vrcp.f32 %v5152_v19  ;;  %v11555_v19 = vld [vmem:[#allocation13 + $0xa8] ss:$16 sps:$4 sm:$0xff]  }
 0xe60   :  { %v8479_v61 = vpop.eup %8478 }
 0xe61   :  { %v8481_v8 = vpop.eup %8480  ;;  %v5156_v10 = vmul.f32 %v8479_v61, %v8477_v22  ;;  %v11543_v22 = vld [vmem:[#allocation13 + $0x80] ss:$16 sps:$4 sm:$0xff]   ;;  %v11545_v61 = vld [vmem:[#allocation13 + $0x88] ss:$16 sps:$4 sm:$0xff]  }
 0xe62   :  { %v5155_v6 = vmul.f32 %v8481_v8, %v11392_v58  ;;  %v8483_v5 = vpop.eup %8482  ;;  %v11493_v58 = vld [vmem:[#allocation13 + $0xc] ss:$16 sps:$4 sm:$0xff]   ;;  %v11549_v8 = vld [vmem:[#allocation13 + $0xa4] ss:$16 sps:$4 sm:$0xff]  }
 0xe64   :  { %v11438_v62 = vadd.f32 %v5156_v10, %v5155_v6  ;;  %v11553_v10 = vld [vmem:[#allocation13 + $0xa0] ss:$16 sps:$4 sm:$0xff]   ;;  %v11557_v6 = vld [vmem:[#allocation13 + $0xac] ss:$16 sps:$4 sm:$0xff]  }
 0xe66   :  { %8484 = vtanh.f32 %v11438_v62 }
 0xe70   :  { %v8485_v4 = vpop.eup %8484 }
 0xe71   :  { %v11441_v57 = vmul.f32 %v8485_v4, %v8483_v5  ;;  %v11562_v5 = vld [vmem:[#allocation13 + $0xcc] ss:$16 sps:$4 sm:$0xff]   ;;  %v11567_v4 = vld [vmem:[#allocation13 + $0xc0] ss:$16 sps:$4 sm:$0xff]  }
 0xe73   :  { %v5165_v12 = vpack.c.bf16 %v11441_v57, %v11441_v57 }
 0xe75   :  { %5391 = vmatmul.mubr.bf16.vlgmr.msra.gmra.mrb[88].mxu0 %v5165_v12  ;;  %5432 = vmatmul.mubr.bf16.vlgmr.msra.gmra.mrb[156].mxu1 %v5165_v12  ;;  %v11569_v12 = vld [vmem:[#allocation13 + $0xc8] ss:$16 sps:$4 sm:$0xff]  }
 0xe76   :  { %5667 = vmatpush1.bf16.msra.mxu0 %v11128_v42  ;;  %5708 = vmatpush1.bf16.msra.mxu1 %v11317_v56 }
 0xe77   :  { %5668 = vmatprep.subr.bf16.mxu0 %v11131_v40  ;;  %5709 = vmatprep.subr.bf16.mxu1 %v11319_v23 }
 0xe78   :  { %5698 = vmatprep.mubr.bf16.mxu0 %v12920_v43  ;;  %5739 = vmatprep.mubr.bf16.mxu1 %v12920_v43 }
 0xe7a   :  { %5669 = vmatpush1.bf16.msra.mxu0 %v11135_v59  ;;  %5710 = vmatpush1.bf16.msra.mxu1 %v11322_v55 }
 0xe7b   :  { %5670 = vmatprep.subr.bf16.mxu0 %v11139_v45  ;;  %5711 = vmatprep.subr.bf16.mxu1 %v11326_v29 }
 0xe7e   :  { %5671 = vmatpush1.bf16.msra.mxu0 %v11142_v7  ;;  %5712 = vmatpush1.bf16.msra.mxu1 %v11329_v37 }
 0xe7f   :  { %5672 = vmatprep.subr.bf16.mxu0 %v11145_v14  ;;  %5713 = vmatprep.subr.bf16.mxu1 %v11332_v27 }
 0xe82   :  { %5673 = vmatpush1.bf16.msra.mxu0 %v11149_v24  ;;  %5714 = vmatpush1.bf16.msra.mxu1 %v11335_v38 }
 0xe83   :  { %5674 = vmatprep.subr.bf16.mxu0 %v11153_v31  ;;  %5715 = vmatprep.subr.bf16.mxu1 %v11338_v49  ;;  %v12958_v31 = vld [vmem:[#allocation139_spill] sm:$0xff] }
 0xe86   :  { %5675 = vmatpush1.bf16.msra.mxu0 %v11156_v41  ;;  %5716 = vmatpush1.bf16.msra.mxu1 %v11341_v1  ;;  %v11491_v1 = vld [vmem:[#allocation13 + $0x4] ss:$16 sps:$4 sm:$0xff]  }
 0xe87   :  { %5676 = vmatprep.subr.bf16.mxu0 %v11159_v50  ;;  %5717 = vmatprep.subr.bf16.mxu1 %v11344_v28 }
 0xe8a   :  { %5677 = vmatpush1.bf16.msra.mxu0 %v11163_v30  ;;  %5718 = vmatpush1.bf16.msra.mxu1 %v11347_v32 }
 0xe8b   :  { %5678 = vmatprep.subr.bf16.mxu0 %v11167_v21  ;;  %5719 = vmatprep.subr.bf16.mxu1 %v11350_v52 }
 0xe8e   :  { %5679 = vmatpush1.bf16.msra.mxu0 %v11170_v60  ;;  %5720 = vmatpush1.bf16.msra.mxu1 %v11353_v44 }
 0xe8f   :  { %5680 = vmatprep.subr.bf16.mxu0 %v11193_v0  ;;  %5721 = vmatprep.subr.bf16.mxu1 %v11356_v13 }
 0xe92   :  { %5681 = vmatpush1.bf16.msra.mxu0 %v11195_v3  ;;  %5722 = vmatpush1.bf16.msra.mxu1 %v11359_v35 }
 0xe93   :  { %5974 = vmatprep.subr.bf16.mxu0 %v11491_v1  ;;  %6015 = vmatprep.subr.bf16.mxu1 %v11493_v58 }
 0xf48   :  { %v5392_v42 = vpop.f32.mrb[88].mxu0  ;;  %v5433_v40 = vpop.f32.mrb[156].mxu1 }
 0xf49   :  { %v5440_v59 = vadd.f32 %v5392_v42, %v11222_v47  ;;  %v5442_v45 = vadd.f32 %v5433_v40, %v11276_v51  ;;  %v5394_v7 = vpop.f32.mrb[89].mxu0  ;;  %v5435_v14 = vpop.f32.mrb[157].mxu1  ;;  %v11573_v42 = vld [vmem:[#allocation13 + $0xe4] ss:$16 sps:$4 sm:$0xff]   ;;  %v11575_v40 = vld [vmem:[#allocation13 + $0xec] ss:$16 sps:$4 sm:$0xff]  }
 0xf4a   :  { %v5441_v24 = vadd.f32 %v5394_v7, %v11225_v15  ;;  %v5443_v41 = vadd.f32 %v5435_v14, %v12958_v31  ;;  %v5396_v50 = vpop.f32.mrb[90].mxu0  ;;  %v5437_v30 = vpop.f32.mrb[158].mxu1 }
 0xf4b   :  { %v7708_v21 = vmul.f32 -1.442695, %v5440_v59  ;;  %v5397_v60 = vpop.f32.mrb[91].mxu0  ;;  %v5438_v0 = vpop.f32.mrb[159].mxu1  ;;  %v11579_v59 = vld [vmem:[#allocation13 + $0xe0] ss:$16 sps:$4 sm:$0xff]  }
 0xf4c   :  { %v7709_v3 = vmul.f32 -1.442695, %v5441_v24  ;;  %v7710_v28 = vmul.f32 -1.442695, %v5443_v41  ;;  %v12959_v24 = vld [vmem:[#allocation76_spill] sm:$0xff]  ;;  %v12960_v41 = vld [vmem:[#allocation166_spill] sm:$0xff] }
 0xf4d   :  { %8486 = vpow2.f32 %v7708_v21  ;;  %v12961_v60 = vld [vmem:[#allocation78_spill] sm:$0xff] }
 0xf4e   :  { %8488 = vpow2.f32 %v7709_v3  ;;  %v12962_v3 = vld [vmem:[#allocation141_spill] sm:$0xff] }
 0xf4f   :  { %8490 = vpow2.f32 %v7710_v28 }
 0xf50   :  { %8492 = vtanh.f32 %v5442_v45  ;;  %v11581_v45 = vld [vmem:[#allocation13 + $0xe8] ss:$16 sps:$4 sm:$0xff]  }
 0xf57   :  { %v8487_v13 = vpop.eup %8486 }
 0xf58   :  { %v8489_v52 = vpop.eup %8488  ;;  %v5447_v47 = vadd.f32 1.0, %v8487_v13 }
 0xf59   :  { %v5453_v51 = vadd.f32 1.0, %v8489_v52  ;;  %v8491_v15 = vpop.eup %8490 }
 0xf5a   :  { %8494 = vrcp.f32 %v5447_v47  ;;  %v8493_v35 = vpop.eup %8492  ;;  %v5460_v32 = vadd.f32 1.0, %v8491_v15 }
 0xf5b   :  { %8496 = vrcp.f32 %v5453_v51 }
 0xf5c   :  { %8498 = vrcp.f32 %v5460_v32 }
 0xf64   :  { %v8495_v44 = vpop.eup %8494 }
 0xf65   :  { %v8497_v56 = vpop.eup %8496  ;;  %v5464_v23 = vmul.f32 %v8495_v44, %v8493_v35 }
 0xf66   :  { %v5463_v55 = vmul.f32 %v8497_v56, %v11438_v62  ;;  %v8499_v37 = vpop.eup %8498  ;;  %v11560_v62 = vld [vmem:[#allocation13 + $0xc4] ss:$16 sps:$4 sm:$0xff]  }
 0xf68   :  { %v11482_v29 = vadd.f32 %v5464_v23, %v5463_v55 }
 0xf6a   :  { %8500 = vtanh.f32 %v11482_v29 }
 0xf74   :  { %v8501_v27 = vpop.eup %8500 }
 0xf75   :  { %v11485_v38 = vmul.f32 %v8501_v27, %v8499_v37 }
 0xf77   :  { %v5473_v49 = vpack.c.bf16 %v11485_v38, %v11485_v38 }
 0xf79   :  { %5699 = vmatmul.mubr.bf16.vlgmr.msra.gmra.mrb[92].mxu0 %v5473_v49  ;;  %5740 = vmatmul.mubr.bf16.vlgmr.msra.gmra.mrb[160].mxu1 %v5473_v49 }
 0xf7a   :  { %6006 = vmatprep.mubr.bf16.mxu0 %v12920_v43  ;;  %6047 = vmatprep.mubr.bf16.mxu1 %v12920_v43 }
 0xf7b   :  { %5975 = vmatpush1.bf16.msra.mxu0 %v11495_v16  ;;  %6016 = vmatpush1.bf16.msra.mxu1 %v11497_v33 }
 0xf7c   :  { %5976 = vmatprep.subr.bf16.mxu0 %v11503_v9  ;;  %6017 = vmatprep.subr.bf16.mxu1 %v11505_v46 }
 0xf7f   :  { %5977 = vmatpush1.bf16.msra.mxu0 %v11507_v25  ;;  %6018 = vmatpush1.bf16.msra.mxu1 %v11509_v26 }
 0xf80   :  { %5978 = vmatprep.subr.bf16.mxu0 %v11515_v48  ;;  %6019 = vmatprep.subr.bf16.mxu1 %v11517_v34 }
 0xf83   :  { %5979 = vmatpush1.bf16.msra.mxu0 %v11519_v20  ;;  %6020 = vmatpush1.bf16.msra.mxu1 %v11521_v53 }
 0xf84   :  { %5980 = vmatprep.subr.bf16.mxu0 %v11527_v18  ;;  %6021 = vmatprep.subr.bf16.mxu1 %v11529_v39 }
 0xf87   :  { %5981 = vmatpush1.bf16.msra.mxu0 %v11531_v54  ;;  %6022 = vmatpush1.bf16.msra.mxu1 %v11533_v2 }
 0xf88   :  { %5982 = vmatprep.subr.bf16.mxu0 %v11539_v17  ;;  %6023 = vmatprep.subr.bf16.mxu1 %v11541_v63 }
 0xf8b   :  { %5983 = vmatpush1.bf16.msra.mxu0 %v11543_v22  ;;  %6024 = vmatpush1.bf16.msra.mxu1 %v11545_v61 }
 0xf8c   :  { %5984 = vmatprep.subr.bf16.mxu0 %v11549_v8  ;;  %6025 = vmatprep.subr.bf16.mxu1 %v11557_v6 }
 0xf8f   :  { %5985 = vmatpush1.bf16.msra.mxu0 %v11553_v10  ;;  %6026 = vmatpush1.bf16.msra.mxu1 %v11555_v19 }
 0xf90   :  { %5986 = vmatprep.subr.bf16.mxu0 %v11560_v62  ;;  %6027 = vmatprep.subr.bf16.mxu1 %v11562_v5 }
 0xf93   :  { %5987 = vmatpush1.bf16.msra.mxu0 %v11567_v4  ;;  %6028 = vmatpush1.bf16.msra.mxu1 %v11569_v12 }
 0xf94   :  { %5988 = vmatprep.subr.bf16.mxu0 %v11573_v42  ;;  %6029 = vmatprep.subr.bf16.mxu1 %v11575_v40 }
 0xf97   :  { %5989 = vmatpush1.bf16.msra.mxu0 %v11579_v59  ;;  %6030 = vmatpush1.bf16.msra.mxu1 %v11581_v45 }
 0xf98   :  { %6282 = vmatprep.subr.bf16.mxu0 %v11491_v1  ;;  %6323 = vmatprep.subr.bf16.mxu1 %v11493_v58 }
0x104c   :  { %v5700_v7 = vpop.f32.mrb[92].mxu0  ;;  %v5741_v14 = vpop.f32.mrb[160].mxu1 }
0x104d   :  { %v5748_v31 = vadd.f32 %v5700_v7, %v12959_v24  ;;  %v5750_v50 = vadd.f32 %v5741_v14, %v12960_v41  ;;  %v5702_v30 = vpop.f32.mrb[93].mxu0  ;;  %v5743_v21 = vpop.f32.mrb[161].mxu1 }
0x104e   :  { %v5749_v0 = vadd.f32 %v5702_v30, %v12961_v60  ;;  %v5751_v28 = vadd.f32 %v5743_v21, %v12962_v3  ;;  %v5704_v13 = vpop.f32.mrb[94].mxu0  ;;  %v5745_v52 = vpop.f32.mrb[162].mxu1  ;;  %v12963_v3 = vld [vmem:[#allocation80_spill] sm:$0xff] }
0x104f   :  { %v7743_v47 = vmul.f32 -1.442695, %v5748_v31  ;;  %v5705_v51 = vpop.f32.mrb[95].mxu0  ;;  %v5746_v15 = vpop.f32.mrb[163].mxu1  ;;  %v12964_v13 = vld [vmem:[#allocation167_spill] sm:$0xff] }
0x1050   :  { %v7744_v35 = vmul.f32 -1.442695, %v5749_v0  ;;  %v7745_v44 = vmul.f32 -1.442695, %v5751_v28  ;;  %v12965_v15 = vld [vmem:[#allocation82_spill] sm:$0xff] }
0x1051   :  { %8502 = vpow2.f32 %v7743_v47 }
0x1052   :  { %8504 = vpow2.f32 %v7744_v35 }
0x1053   :  { %8506 = vpow2.f32 %v7745_v44  ;;  %v12966_v44 = vld [vmem:[#allocation164_spill] sm:$0xff] }
0x1054   :  { %8508 = vtanh.f32 %v5750_v50 }
0x105b   :  { %v8503_v56 = vpop.eup %8502 }
0x105c   :  { %v8505_v23 = vpop.eup %8504  ;;  %v5755_v32 = vadd.f32 1.0, %v8503_v56 }
0x105d   :  { %v5761_v55 = vadd.f32 1.0, %v8505_v23  ;;  %v8507_v37 = vpop.eup %8506 }
0x105e   :  { %8510 = vrcp.f32 %v5755_v32  ;;  %v8509_v27 = vpop.eup %8508  ;;  %v5768_v24 = vadd.f32 1.0, %v8507_v37 }
0x105f   :  { %8512 = vrcp.f32 %v5761_v55 }
0x1060   :  { %8514 = vrcp.f32 %v5768_v24 }
0x1068   :  { %v8511_v49 = vpop.eup %8510 }
0x1069   :  { %v8513_v7 = vpop.eup %8512  ;;  %v5772_v14 = vmul.f32 %v8511_v49, %v8509_v27 }
0x106a   :  { %v5771_v31 = vmul.f32 %v8513_v7, %v11482_v29  ;;  %v8515_v30 = vpop.eup %8514 }
0x106c   :  { %v11594_v41 = vadd.f32 %v5772_v14, %v5771_v31 }
0x106e   :  { %8516 = vtanh.f32 %v11594_v41 }
0x1078   :  { %v8517_v21 = vpop.eup %8516 }
0x1079   :  { %v11597_v60 = vmul.f32 %v8517_v21, %v8515_v30 }
0x107b   :  { %v5781_v50 = vpack.c.bf16 %v11597_v60, %v11597_v60 }
0x107d   :  { %6007 = vmatmul.mubr.bf16.vlgmr.msra.gmra.mrb[96].mxu0 %v5781_v50  ;;  %6048 = vmatmul.mubr.bf16.vlgmr.msra.gmra.mrb[164].mxu1 %v5781_v50 }
0x107e   :  { %6283 = vmatpush1.bf16.msra.mxu0 %v11495_v16  ;;  %6324 = vmatpush1.bf16.msra.mxu1 %v11497_v33 }
0x107f   :  { %6284 = vmatprep.subr.bf16.mxu0 %v11503_v9  ;;  %6325 = vmatprep.subr.bf16.mxu1 %v11505_v46 }
0x1080   :  { %6314 = vmatprep.mubr.bf16.mxu0 %v12920_v43  ;;  %6355 = vmatprep.mubr.bf16.mxu1 %v12920_v43 }
0x1082   :  { %6285 = vmatpush1.bf16.msra.mxu0 %v11507_v25  ;;  %6326 = vmatpush1.bf16.msra.mxu1 %v11509_v26 }
0x1083   :  { %6286 = vmatprep.subr.bf16.mxu0 %v11515_v48  ;;  %6327 = vmatprep.subr.bf16.mxu1 %v11517_v34 }
0x1086   :  { %6287 = vmatpush1.bf16.msra.mxu0 %v11519_v20  ;;  %6328 = vmatpush1.bf16.msra.mxu1 %v11521_v53 }
0x1087   :  { %6288 = vmatprep.subr.bf16.mxu0 %v11527_v18  ;;  %6329 = vmatprep.subr.bf16.mxu1 %v11529_v39 }
0x108a   :  { %6289 = vmatpush1.bf16.msra.mxu0 %v11531_v54  ;;  %6330 = vmatpush1.bf16.msra.mxu1 %v11533_v2 }
0x108b   :  { %6290 = vmatprep.subr.bf16.mxu0 %v11539_v17  ;;  %6331 = vmatprep.subr.bf16.mxu1 %v11541_v63 }
0x108e   :  { %6291 = vmatpush1.bf16.msra.mxu0 %v11543_v22  ;;  %6332 = vmatpush1.bf16.msra.mxu1 %v11545_v61 }
0x108f   :  { %6292 = vmatprep.subr.bf16.mxu0 %v11549_v8  ;;  %6333 = vmatprep.subr.bf16.mxu1 %v11557_v6 }
0x1092   :  { %6293 = vmatpush1.bf16.msra.mxu0 %v11553_v10  ;;  %6334 = vmatpush1.bf16.msra.mxu1 %v11555_v19 }
0x1093   :  { %6294 = vmatprep.subr.bf16.mxu0 %v11560_v62  ;;  %6335 = vmatprep.subr.bf16.mxu1 %v11562_v5 }
0x1096   :  { %6295 = vmatpush1.bf16.msra.mxu0 %v11567_v4  ;;  %6336 = vmatpush1.bf16.msra.mxu1 %v11569_v12 }
0x1097   :  { %6296 = vmatprep.subr.bf16.mxu0 %v11573_v42  ;;  %6337 = vmatprep.subr.bf16.mxu1 %v11575_v40 }
0x109a   :  { %6297 = vmatpush1.bf16.msra.mxu0 %v11579_v59  ;;  %6338 = vmatpush1.bf16.msra.mxu1 %v11581_v45 }
0x109b   :  { %6590 = vmatprep.subr.bf16.mxu0 %v11491_v1  ;;  %6631 = vmatprep.subr.bf16.mxu1 %v11493_v58 }
0x1150   :  { %v6008_v29 = vpop.f32.mrb[96].mxu0  ;;  %v6049_v0 = vpop.f32.mrb[164].mxu1 }
0x1151   :  { %v6056_v28 = vadd.f32 %v6008_v29, %v12963_v3  ;;  %v6058_v52 = vadd.f32 %v6049_v0, %v12964_v13  ;;  %v6010_v47 = vpop.f32.mrb[97].mxu0  ;;  %v6051_v51 = vpop.f32.mrb[165].mxu1 }
0x1152   :  { %v6057_v35 = vadd.f32 %v6010_v47, %v12965_v15  ;;  %v6059_v56 = vadd.f32 %v6051_v51, %v12966_v44  ;;  %v6012_v23 = vpop.f32.mrb[98].mxu0  ;;  %v6053_v32 = vpop.f32.mrb[166].mxu1 }
0x1153   :  { %v7778_v55 = vmul.f32 -1.442695, %v6056_v28  ;;  %v6013_v37 = vpop.f32.mrb[99].mxu0  ;;  %v6054_v27 = vpop.f32.mrb[167].mxu1  ;;  %v12968_v32 = vld [vmem:[#allocation192_spill] sm:$0xff] }
0x1154   :  { %v7779_v49 = vmul.f32 -1.442695, %v6057_v35  ;;  %v7780_v7 = vmul.f32 -1.442695, %v6059_v56  ;;  %v12967_v56 = vld [vmem:[#allocation84_spill] sm:$0xff] }
0x1155   :  { %8518 = vpow2.f32 %v7778_v55 }
0x1156   :  { %8520 = vpow2.f32 %v7779_v49  ;;  %v12969_v49 = vld [vmem:[#allocation86_spill] sm:$0xff] }
0x1157   :  { %8522 = vpow2.f32 %v7780_v7 }
0x1158   :  { %8524 = vtanh.f32 %v6058_v52 }
0x115f   :  { %v8519_v14 = vpop.eup %8518 }
0x1160   :  { %v8521_v24 = vpop.eup %8520  ;;  %v6063_v31 = vadd.f32 1.0, %v8519_v14  ;;  %v12970_v14 = vld [vmem:[#allocation165_spill] sm:$0xff] }
0x1161   :  { %v6069_v30 = vadd.f32 1.0, %v8521_v24  ;;  %v8523_v21 = vpop.eup %8522 }
0x1162   :  { %8526 = vrcp.f32 %v6063_v31  ;;  %v8525_v50 = vpop.eup %8524  ;;  %v6076_v28 = vadd.f32 1.0, %v8523_v21 }
0x1163   :  { %8528 = vrcp.f32 %v6069_v30 }
0x1164   :  { %8530 = vrcp.f32 %v6076_v28 }
0x116c   :  { %v8527_v29 = vpop.eup %8526 }
0x116d   :  { %v8529_v0 = vpop.eup %8528  ;;  %v6080_v3 = vmul.f32 %v8527_v29, %v8525_v50 }
0x116e   :  { %v6079_v13 = vmul.f32 %v8529_v0, %v11594_v41  ;;  %v8531_v51 = vpop.eup %8530 }
0x1170   :  { %v11640_v47 = vadd.f32 %v6080_v3, %v6079_v13 }
0x1172   :  { %8532 = vtanh.f32 %v11640_v47 }
0x117c   :  { %v8533_v15 = vpop.eup %8532 }
0x117d   :  { %v11643_v35 = vmul.f32 %v8533_v15, %v8531_v51 }
0x117f   :  { %v6089_v52 = vpack.c.bf16 %v11643_v35, %v11643_v35 }
0x1181   :  { %6315 = vmatmul.mubr.bf16.vlgmr.msra.gmra.mrb[100].mxu0 %v6089_v52  ;;  %6356 = vmatmul.mubr.bf16.vlgmr.msra.gmra.mrb[168].mxu1 %v6089_v52 }
0x1182   :  { %6591 = vmatpush1.bf16.msra.mxu0 %v11495_v16  ;;  %6632 = vmatpush1.bf16.msra.mxu1 %v11497_v33 }
0x1183   :  { %6592 = vmatprep.subr.bf16.mxu0 %v11503_v9  ;;  %6633 = vmatprep.subr.bf16.mxu1 %v11505_v46 }
0x1184   :  { %6622 = vmatprep.mubr.bf16.mxu0 %v12920_v43  ;;  %6663 = vmatprep.mubr.bf16.mxu1 %v12920_v43 }
0x1186   :  { %6593 = vmatpush1.bf16.msra.mxu0 %v11507_v25  ;;  %6634 = vmatpush1.bf16.msra.mxu1 %v11509_v26 }
0x1187   :  { %6594 = vmatprep.subr.bf16.mxu0 %v11515_v48  ;;  %6635 = vmatprep.subr.bf16.mxu1 %v11517_v34 }
0x118a   :  { %6595 = vmatpush1.bf16.msra.mxu0 %v11519_v20  ;;  %6636 = vmatpush1.bf16.msra.mxu1 %v11521_v53 }
0x118b   :  { %6596 = vmatprep.subr.bf16.mxu0 %v11527_v18  ;;  %6637 = vmatprep.subr.bf16.mxu1 %v11529_v39 }
0x118e   :  { %6597 = vmatpush1.bf16.msra.mxu0 %v11531_v54  ;;  %6638 = vmatpush1.bf16.msra.mxu1 %v11533_v2 }
0x118f   :  { %6598 = vmatprep.subr.bf16.mxu0 %v11539_v17  ;;  %6639 = vmatprep.subr.bf16.mxu1 %v11541_v63 }
0x1192   :  { %6599 = vmatpush1.bf16.msra.mxu0 %v11543_v22  ;;  %6640 = vmatpush1.bf16.msra.mxu1 %v11545_v61 }
0x1193   :  { %6600 = vmatprep.subr.bf16.mxu0 %v11549_v8  ;;  %6641 = vmatprep.subr.bf16.mxu1 %v11557_v6 }
0x1196   :  { %6601 = vmatpush1.bf16.msra.mxu0 %v11553_v10  ;;  %6642 = vmatpush1.bf16.msra.mxu1 %v11555_v19 }
0x1197   :  { %6602 = vmatprep.subr.bf16.mxu0 %v11560_v62  ;;  %6643 = vmatprep.subr.bf16.mxu1 %v11562_v5 }
0x119a   :  { %6603 = vmatpush1.bf16.msra.mxu0 %v11567_v4  ;;  %6644 = vmatpush1.bf16.msra.mxu1 %v11569_v12 }
0x119b   :  { %6604 = vmatprep.subr.bf16.mxu0 %v11573_v42  ;;  %6645 = vmatprep.subr.bf16.mxu1 %v11575_v40 }
0x119e   :  { %6605 = vmatpush1.bf16.msra.mxu0 %v11579_v59  ;;  %6646 = vmatpush1.bf16.msra.mxu1 %v11581_v45 }
0x119f   :  { %6898 = vmatprep.subr.bf16.mxu0 %v11491_v1  ;;  %6939 = vmatprep.subr.bf16.mxu1 %v11493_v58 }
0x1254   :  { %v6316_v41 = vpop.f32.mrb[100].mxu0  ;;  %v6357_v44 = vpop.f32.mrb[168].mxu1 }
0x1255   :  { %v6364_v23 = vadd.f32 %v6316_v41, %v12967_v56  ;;  %v6366_v55 = vadd.f32 %v6357_v44, %v12968_v32  ;;  %v6318_v37 = vpop.f32.mrb[101].mxu0  ;;  %v6359_v27 = vpop.f32.mrb[169].mxu1 }
0x1256   :  { %v6365_v7 = vadd.f32 %v6318_v37, %v12969_v49  ;;  %v6367_v24 = vadd.f32 %v6359_v27, %v12970_v14  ;;  %v6320_v31 = vpop.f32.mrb[102].mxu0  ;;  %v6361_v30 = vpop.f32.mrb[170].mxu1 }
0x1257   :  { %v7813_v21 = vmul.f32 -1.442695, %v6364_v23  ;;  %v6321_v50 = vpop.f32.mrb[103].mxu0  ;;  %v6362_v29 = vpop.f32.mrb[171].mxu1  ;;  %v8174_v30 = vld [vmem:[%s11829_s11] ss:$8 sps:$4 sm:$0xff]  }
0x1258   :  { %v7814_v1 = vmul.f32 -1.442695, %v6365_v7  ;;  %v7815_v58 = vmul.f32 -1.442695, %v6367_v24  ;;  %v8179_v50 = vld [vmem:[%s11829_s11 + $0x14] ss:$8 sps:$4 sm:$0xff]  }
0x1259   :  { %8534 = vpow2.f32 %v7813_v21  ;;  %v8177_v29 = vld [vmem:[%s11829_s11 + $0x10] ss:$8 sps:$4 sm:$0xff]  }
0x125a   :  { %8536 = vpow2.f32 %v7814_v1  ;;  %v8182_v1 = vld [vmem:[%s11829_s11 + $0x24] ss:$8 sps:$4 sm:$0xff]  }
0x125b   :  { %8538 = vpow2.f32 %v7815_v58  ;;  %v8180_v58 = vld [vmem:[%s11829_s11 + $0x20] ss:$8 sps:$4 sm:$0xff]  }
0x125c   :  { %8540 = vtanh.f32 %v6366_v55 }
0x1263   :  { %v8535_v0 = vpop.eup %8534 }
0x1264   :  { %v8537_v3 = vpop.eup %8536  ;;  %v6371_v28 = vadd.f32 1.0, %v8535_v0  ;;  %v8185_v0 = vld [vmem:[%s11829_s11 + $0x34] ss:$8 sps:$4 sm:$0xff]  }
0x1265   :  { %v6377_v13 = vadd.f32 1.0, %v8537_v3  ;;  %v8539_v51 = vpop.eup %8538  ;;  %v8183_v3 = vld [vmem:[%s11829_s11 + $0x30] ss:$8 sps:$4 sm:$0xff]  }
0x1266   :  { %8542 = vrcp.f32 %v6371_v28  ;;  %v8541_v15 = vpop.eup %8540  ;;  %v6384_v56 = vadd.f32 1.0, %v8539_v51  ;;  %v8188_v28 = vld [vmem:[%s11829_s11 + $0x44] ss:$8 sps:$4 sm:$0xff]   ;;  %v8191_v51 = vld [vmem:[%s11829_s11 + $0x54] ss:$8 sps:$4 sm:$0xff]  }
0x1267   :  { %8544 = vrcp.f32 %v6377_v13  ;;  %v8186_v13 = vld [vmem:[%s11829_s11 + $0x40] ss:$8 sps:$4 sm:$0xff]  }
0x1268   :  { %8546 = vrcp.f32 %v6384_v56  ;;  %v8195_v56 = vld [vmem:[%s11829_s11 + $0x70] ss:$8 sps:$4 sm:$0xff]  }
0x1270   :  { %v8543_v52 = vpop.eup %8542 }
0x1271   :  { %v8545_v41 = vpop.eup %8544  ;;  %v6388_v44 = vmul.f32 %v8543_v52, %v8541_v15  ;;  %v8189_v15 = vld [vmem:[%s11829_s11 + $0x50] ss:$8 sps:$4 sm:$0xff]   ;;  %v8194_v52 = vld [vmem:[%s11829_s11 + $0x64] ss:$8 sps:$4 sm:$0xff]  }
0x1272   :  { %v6387_v23 = vmul.f32 %v8545_v41, %v11640_v47  ;;  %v8547_v37 = vpop.eup %8546  ;;  %v8192_v41 = vld [vmem:[%s11829_s11 + $0x60] ss:$8 sps:$4 sm:$0xff]  }
0x1274   :  { %v11686_v32 = vadd.f32 %v6388_v44, %v6387_v23  ;;  %v8197_v44 = vld [vmem:[%s11829_s11 + $0x74] ss:$8 sps:$4 sm:$0xff]   ;;  %v7017_v23 = vpack.c.bf16 %v11441_v57, %v11395_v36 }
0x1275   :  { %v12976_v36 = vld [vmem:[#allocation121_spill] sm:$0xff] }
0x1276   :  { %8548 = vtanh.f32 %v11686_v32 }
0x1280   :  { %v8549_v27 = vpop.eup %8548 }
0x1281   :  { %v11689_v49 = vmul.f32 %v8549_v27, %v8547_v37 }
0x1283   :  { %v6397_v55 = vpack.c.bf16 %v11689_v49, %v11689_v49  ;;  %v7019_v37 = vpack.c.bf16 %v11689_v49, %v11643_v35 }
0x1285   :  { %6623 = vmatmul.mubr.bf16.vlgmr.msra.gmra.mrb[104].mxu0 %v6397_v55  ;;  %6664 = vmatmul.mubr.bf16.vlgmr.msra.gmra.mrb[172].mxu1 %v6397_v55 }
0x1286   :  { %6899 = vmatpush1.bf16.msra.mxu0 %v11495_v16  ;;  %6940 = vmatpush1.bf16.msra.mxu1 %v11497_v33  ;;  %v8176_v16 = vld [vmem:[%s11829_s11 + $0x4] ss:$8 sps:$4 sm:$0xff]   ;;  %s8783_s11 = smov [#allocation17]  }
0x1287   :  { %6900 = vmatprep.subr.bf16.mxu0 %v11503_v9  ;;  %6941 = vmatprep.subr.bf16.mxu1 %v11505_v46  ;;  %v12971_v46 = vld [vmem:[#allocation88_spill] sm:$0xff]  ;;  %s7223_s22 = sshll.u32 %s8783_s11, 4  ;;  %s7224_s22 = int_to_ptr.vmem [resolvable:$true] %s7223_s22 }
0x1288   :  { %6930 = vmatprep.mubr.bf16.mxu0 %v12920_v43  ;;  %6971 = vmatprep.mubr.bf16.mxu1 %v12920_v43  ;;  %s8736_s4 = scalar_lea.vmem %s7224_s22, 2048  ;;  %p8741_p1 = scmp.lt.s32.totalorder %s7224_s22, %s7224_s22 }
0x1289   :  { %p8737_p0 = scmp.ne.s32.totalorder %s7224_s22, %s8736_s4  ;;  %p8742_p2 = scmp.lt.s32.totalorder %s8736_s4, %s8736_s4 }
0x128a   :  { %6901 = vmatpush1.bf16.msra.mxu0 %v11507_v25  ;;  %6942 = vmatpush1.bf16.msra.mxu1 %v11509_v26  ;;  %v12972_v26 = vld [vmem:[#allocation193_spill] sm:$0xff] }
0x128b   :  { %6902 = vmatprep.subr.bf16.mxu0 %v11515_v48  ;;  %6943 = vmatprep.subr.bf16.mxu1 %v11517_v34  ;;  %p8743_p3 = por %p8742_p2, %p8741_p1 }
0x128d   :  { %p8744_p4 = pnand %p8743_p3, %p8737_p0 }
0x128e   :  { %6903 = vmatpush1.bf16.msra.mxu0 %v11519_v20  ;;  %6944 = vmatpush1.bf16.msra.mxu1 %v11521_v53  ;;  %v12973_v53 = vld [vmem:[#allocation90_spill] sm:$0xff] }
0x128f   :  { %6904 = vmatprep.subr.bf16.mxu0 %v11527_v18  ;;  %6945 = vmatprep.subr.bf16.mxu1 %v11529_v39  ;;  %v12974_v39 = vld [vmem:[#allocation120_spill] sm:$0xff] }
0x1292   :  { %6905 = vmatpush1.bf16.msra.mxu0 %v11531_v54  ;;  %6946 = vmatpush1.bf16.msra.mxu1 %v11533_v2 }
0x1293   :  { %6906 = vmatprep.subr.bf16.mxu0 %v11539_v17  ;;  %6947 = vmatprep.subr.bf16.mxu1 %v11541_v63 }
0x1296   :  { %6907 = vmatpush1.bf16.msra.mxu0 %v11543_v22  ;;  %6948 = vmatpush1.bf16.msra.mxu1 %v11545_v61 }
0x1297   :  { %6908 = vmatprep.subr.bf16.mxu0 %v11549_v8  ;;  %6949 = vmatprep.subr.bf16.mxu1 %v11557_v6 }
0x129a   :  { %6909 = vmatpush1.bf16.msra.mxu0 %v11553_v10  ;;  %6950 = vmatpush1.bf16.msra.mxu1 %v11555_v19 }
0x129b   :  { %6910 = vmatprep.subr.bf16.mxu0 %v11560_v62  ;;  %6951 = vmatprep.subr.bf16.mxu1 %v11562_v5 }
0x129e   :  { %6911 = vmatpush1.bf16.msra.mxu0 %v11567_v4  ;;  %6952 = vmatpush1.bf16.msra.mxu1 %v11569_v12 }
0x129f   :  { %6912 = vmatprep.subr.bf16.mxu0 %v11573_v42  ;;  %6953 = vmatprep.subr.bf16.mxu1 %v11575_v40 }
0x12a2   :  { %6913 = vmatpush1.bf16.msra.mxu0 %v11579_v59  ;;  %6954 = vmatpush1.bf16.msra.mxu1 %v11581_v45 }
0x12a3   :  { %7129 = vmatprep.subr.bf16.mxu0 %v8176_v16  ;;  %v12975_v16 = vld [vmem:[#allocation92_spill] sm:$0xff] }
0x1358   :  { %v6624_v33 = vpop.f32.mrb[104].mxu0  ;;  %v6665_v9 = vpop.f32.mrb[172].mxu1 }
0x1359   :  { %v6672_v25 = vadd.f32 %v6624_v33, %v12971_v46  ;;  %v6674_v48 = vadd.f32 %v6665_v9, %v12972_v26  ;;  %v6626_v34 = vpop.f32.mrb[105].mxu0  ;;  %v6667_v20 = vpop.f32.mrb[173].mxu1 }
0x135a   :  { %v6673_v18 = vadd.f32 %v6626_v34, %v12973_v53  ;;  %v6675_v54 = vadd.f32 %v6667_v20, %v12974_v39  ;;  %v6628_v2 = vpop.f32.mrb[106].mxu0  ;;  %v6669_v17 = vpop.f32.mrb[174].mxu1 }
0x135b   :  { %v7848_v63 = vmul.f32 -1.442695, %v6672_v25  ;;  %v6629_v22 = vpop.f32.mrb[107].mxu0  ;;  %v6670_v61 = vpop.f32.mrb[175].mxu1  ;;  %v12977_v25 = vld [vmem:[#allocation94_spill] sm:$0xff] }
0x135c   :  { %v7849_v8 = vmul.f32 -1.442695, %v6673_v18  ;;  %v7850_v10 = vmul.f32 -1.442695, %v6675_v54 }
0x135d   :  { %8550 = vpow2.f32 %v7848_v63  ;;  %v7037_v63 = vld [vmem:[#allocation16] sm:$0x3] }
0x135e   :  { %8552 = vpow2.f32 %v7849_v8 }
0x135f   :  { %8554 = vpow2.f32 %v7850_v10 }
0x1360   :  { %8556 = vtanh.f32 %v6674_v48 }
0x1367   :  { %v8551_v19 = vpop.eup %8550 }
0x1368   :  { %v8553_v6 = vpop.eup %8552  ;;  %v6679_v62 = vadd.f32 1.0, %v8551_v19 }
0x1369   :  { %v6685_v5 = vadd.f32 1.0, %v8553_v6  ;;  %v8555_v4 = vpop.eup %8554  ;;  %v12979_v6 = vld [vmem:[#allocation136_spill] sm:$0xff] }
0x136a   :  { %8558 = vrcp.f32 %v6679_v62  ;;  %v8557_v12 = vpop.eup %8556  ;;  %v6692_v45 = vadd.f32 1.0, %v8555_v4  ;;  %v7042_v62 = vrot.slane %v7037_v63, %v12979_v6  ;;  %v7046_v4 = vrot.slane %v7037_v63, %v12933_v11 }
0x136b   :  { %8560 = vrcp.f32 %v6685_v5 }
0x136c   :  { %8562 = vrcp.f32 %v6692_v45 }
0x1374   :  { %v8559_v42 = vpop.eup %8558 }
0x1375   :  { %v8561_v40 = vpop.eup %8560  ;;  %v6696_v59 = vmul.f32 %v8559_v42, %v8557_v12 }
0x1376   :  { %v6695_v47 = vmul.f32 %v8561_v40, %v11686_v32  ;;  %v8563_v14 = vpop.eup %8562  ;;  %v7018_v32 = vpack.c.bf16 %v11597_v60, %v11485_v38  ;;  %v12978_v38 = vld [vmem:[#allocation144_spill] sm:$0xff] }
0x1378   :  { %v11733_v7 = vadd.f32 %v6696_v59, %v6695_v47 }
0x137a   :  { %8564 = vtanh.f32 %v11733_v7 }
0x1384   :  { %v8565_v24 = vpop.eup %8564 }
0x1385   :  { %v11736_v31 = vmul.f32 %v8565_v24, %v8563_v14 }
0x1387   :  { %v6705_v21 = vpack.c.bf16 %v11736_v31, %v11736_v31 }
0x1389   :  { %6931 = vmatmul.mubr.bf16.vlgmr.msra.gmra.mrb[108].mxu0 %v6705_v21  ;;  %6972 = vmatmul.mubr.bf16.vlgmr.msra.gmra.mrb[176].mxu1 %v6705_v21 }
0x138a   :  { %7130 = vmatpush1.bf16.msra.mxu0 %v8174_v30  ;;  %7161 = vmatprep.mubr.bf16.mxu0 %v12920_v43 }
0x138b   :  { %7131 = vmatprep.subr.bf16.mxu0 %v8179_v50 }
0x138e   :  { %7132 = vmatpush1.bf16.msra.mxu0 %v8177_v29 }
0x138f   :  { %7133 = vmatprep.subr.bf16.mxu0 %v8182_v1 }
0x1392   :  { %7134 = vmatpush1.bf16.msra.mxu0 %v8180_v58 }
0x1393   :  { %7135 = vmatprep.subr.bf16.mxu0 %v8185_v0 }
0x1396   :  { %7136 = vmatpush1.bf16.msra.mxu0 %v8183_v3 }
0x1397   :  { %7137 = vmatprep.subr.bf16.mxu0 %v8188_v28 }
0x139a   :  { %7138 = vmatpush1.bf16.msra.mxu0 %v8186_v13 }
0x139b   :  { %7139 = vmatprep.subr.bf16.mxu0 %v8191_v51 }
0x139e   :  { %7140 = vmatpush1.bf16.msra.mxu0 %v8189_v15 }
0x139f   :  { %7141 = vmatprep.subr.bf16.mxu0 %v8194_v52 }
0x13a2   :  { %7142 = vmatpush1.bf16.msra.mxu0 %v8192_v41 }
0x13a3   :  { %7143 = vmatprep.subr.bf16.mxu0 %v8197_v44 }
0x13a6   :  { %7144 = vmatpush1.bf16.msra.mxu0 %v8195_v56 }
0x13a9   :  { %7162 = vmatmul.mubr.bf16.vlgmr.msra.gmra.mrb[112].mxu0 %v7017_v23 }
0x13aa   :  { %7171 = vmatprep.mubr.bf16.mxu0 %v12920_v43 }
0x13b1   :  { %7172 = vmatmul.mubr.bf16.gmra.mrb[116].mxu0 %v7018_v32 }
0x13b2   :  { %7181 = vmatprep.mubr.bf16.mxu0 %v12920_v43 }
0x13b9   :  { %7182 = vmatmul.mubr.bf16.gmra.mrb[120].mxu0 %v7019_v37 }
0x13ba   :  { %7191 = vmatprep.mubr.bf16.mxu0 %v12920_v43 }
0x145c   :  { %v6932_v27 = vpop.f32.mrb[108].mxu0  ;;  %v6973_v55 = vpop.f32.mrb[176].mxu1 }
0x145d   :  { %v6980_v33 = vadd.f32 %v6932_v27, %v12975_v16  ;;  %v6982_v57 = vadd.f32 %v6973_v55, %v12976_v36  ;;  %v6934_v9 = vpop.f32.mrb[109].mxu0  ;;  %v6975_v46 = vpop.f32.mrb[177].mxu1 }
0x145e   :  { %v6981_v26 = vadd.f32 %v6934_v9, %v12977_v25  ;;  %v6983_v60 = vadd.f32 %v6975_v46, %v12978_v38  ;;  %v6936_v48 = vpop.f32.mrb[110].mxu0  ;;  %v6977_v34 = vpop.f32.mrb[178].mxu1 }
0x145f   :  { %v7883_v20 = vmul.f32 -1.442695, %v6980_v33  ;;  %v6937_v53 = vpop.f32.mrb[111].mxu0  ;;  %v6978_v35 = vpop.f32.mrb[179].mxu1 }
0x1460   :  { %v7884_v49 = vmul.f32 -1.442695, %v6981_v26  ;;  %v7885_v43 = vmul.f32 -1.442695, %v6983_v60 }
0x1461   :  { %8566 = vpow2.f32 %v7883_v20 }
0x1462   :  { %8568 = vpow2.f32 %v7884_v49 }
0x1463   :  { %8570 = vpow2.f32 %v7885_v43 }
0x1464   :  { %8572 = vtanh.f32 %v6982_v57 }
0x146b   :  { %v8567_v18 = vpop.eup %8566 }
0x146c   :  { %v8569_v39 = vpop.eup %8568  ;;  %v6987_v54 = vadd.f32 1.0, %v8567_v18 }
0x146d   :  { %v6993_v2 = vadd.f32 1.0, %v8569_v39  ;;  %v8571_v17 = vpop.eup %8570 }
0x146e   :  { %8574 = vrcp.f32 %v6987_v54  ;;  %v8573_v22 = vpop.eup %8572  ;;  %v7000_v19 = vadd.f32 1.0, %v8571_v17 }
0x146f   :  { %8576 = vrcp.f32 %v6993_v2 }
0x1470   :  { %8578 = vrcp.f32 %v7000_v19 }
0x1478   :  { %v8575_v61 = vpop.eup %8574 }
0x1479   :  { %v8577_v8 = vpop.eup %8576  ;;  %v7004_v10 = vmul.f32 %v8575_v61, %v8573_v22 }
0x147a   :  { %v7003_v5 = vmul.f32 %v8577_v8, %v11733_v7  ;;  %v8579_v1 = vpop.eup %8578 }
0x147c   :  { %v7163_v12 = vpop.f32.mrb[112].mxu0  ;;  %v7005_v42 = vadd.f32 %v7004_v10, %v7003_v5 }
0x147d   :  { %v7164_v40 = vadd.f32 %v7163_v12, %v7042_v62  ;;  %v7165_v59 = vpop.f32.mrb[113].mxu0 }
0x147e   :  { %v7166_v45 = vadd.f32 %v7165_v59, %v7046_v4  ;;  %v7167_v47 = vpop.f32.mrb[114].mxu0  ;;  %8580 = vtanh.f32 %v7005_v42 }
0x147f   :  { %7202 = vst [vmem:[#allocation17] sm:$0xff] %v7164_v40  ;;  %v7168_v14 = vadd.f32 %v7167_v47, %v7042_v62  ;;  %v7169_v24 = vpop.f32.mrb[115].mxu0 }
0x1480   :  { %7203 = vst [vmem:[#allocation17 + $0x8] sm:$0xff] %v7166_v45  ;;  %v7170_v30 = vadd.f32 %v7169_v24, %v7046_v4 }
0x1481   :  { %7204 = vst [vmem:[#allocation17 + $0x10] sm:$0xff] %v7168_v14 }
0x1482   :  { %7205 = vst [vmem:[#allocation17 + $0x18] sm:$0xff] %v7170_v30 }
0x1484   :  { %v7173_v21 = vpop.f32.mrb[116].mxu0 }
0x1485   :  { %v7174_v50 = vadd.f32 %v7173_v21, %v7042_v62  ;;  %v7175_v7 = vpop.f32.mrb[117].mxu0 }
0x1486   :  { %v7176_v29 = vadd.f32 %v7175_v7, %v7046_v4  ;;  %v7177_v11 = vpop.f32.mrb[118].mxu0 }
0x1487   :  { %7206 = vst [vmem:[#allocation17 + $0x20] sm:$0xff] %v7174_v50  ;;  %v7178_v58 = vadd.f32 %v7177_v11, %v7042_v62  ;;  %v7179_v0 = vpop.f32.mrb[119].mxu0 }
0x1488   :  { %v8581_v3 = vpop.eup %8580  ;;  %7207 = vst [vmem:[#allocation17 + $0x28] sm:$0xff] %v7176_v29  ;;  %v7180_v28 = vadd.f32 %v7179_v0, %v7046_v4 }
0x1489   :  { %7208 = vst [vmem:[#allocation17 + $0x30] sm:$0xff] %v7178_v58  ;;  %v7007_v13 = vmul.f32 %v8581_v3, %v8579_v1 }
0x148a   :  { %7209 = vst [vmem:[#allocation17 + $0x38] sm:$0xff] %v7180_v28 }
0x148b   :  { %v7020_v51 = vpack.c.bf16 %v7007_v13, %v11736_v31 }
0x148c   :  { %v7183_v15 = vpop.f32.mrb[120].mxu0 }
0x148d   :  { %v7184_v52 = vadd.f32 %v7183_v15, %v7042_v62  ;;  %v7185_v41 = vpop.f32.mrb[121].mxu0  ;;  %7192 = vmatmul.mubr.bf16.gmra.mrb[124].mxu0 %v7020_v51 }
0x148e   :  { %v7186_v44 = vadd.f32 %v7185_v41, %v7046_v4  ;;  %v7187_v56 = vpop.f32.mrb[122].mxu0 }
0x148f   :  { %7210 = vst [vmem:[#allocation17 + $0x40] sm:$0xff] %v7184_v52  ;;  %v7188_v23 = vadd.f32 %v7187_v56, %v7042_v62  ;;  %v7189_v32 = vpop.f32.mrb[123].mxu0 }
0x1490   :  { %7211 = vst [vmem:[#allocation17 + $0x48] sm:$0xff] %v7186_v44  ;;  %v7190_v37 = vadd.f32 %v7189_v32, %v7046_v4 }
0x1491   :  { %7212 = vst [vmem:[#allocation17 + $0x50] sm:$0xff] %v7188_v23 }
0x1492   :  { %7213 = vst [vmem:[#allocation17 + $0x58] sm:$0xff] %v7190_v37 }
0x1560   :  { %v7193_v27 = vpop.f32.mrb[124].mxu0 }
0x1561   :  { %v7194_v55 = vadd.f32 %v7193_v27, %v7042_v62  ;;  %v7195_v16 = vpop.f32.mrb[125].mxu0 }
0x1562   :  { %v7196_v33 = vadd.f32 %v7195_v16, %v7046_v4  ;;  %v7197_v31 = vpop.f32.mrb[126].mxu0 }
0x1563   :  { %7214 = vst [vmem:[#allocation17 + $0x60] sm:$0xff] %v7194_v55  ;;  %v7198_v36 = vadd.f32 %v7197_v31, %v7042_v62  ;;  %v7199_v57 = vpop.f32.mrb[127].mxu0 }
0x1564   :  { %7215 = vst [vmem:[#allocation17 + $0x68] sm:$0xff] %v7196_v33  ;;  %v7200_v9 = vadd.f32 %v7199_v57, %v7046_v4 }
0x1565   :  { %7216 = vst [vmem:[#allocation17 + $0x70] sm:$0xff] %v7198_v36 }
0x1566   :  { %7217 = vst [vmem:[#allocation17 + $0x78] sm:$0xff] %v7200_v9 }
0x1567   :  { %8747 = shalt.err (!%p8744_p4)
}
0x1568   :  { %s8748_s24 = scalar_lea.hbm %s11831_s13, 2048 }
0x1569   :  { %p8749_p5 = scmp.ne.s32.totalorder %s11831_s13, %s8748_s24  ;;  %p8752_p6 = scmp.lt.u32.totalorder %s8748_s24, %s11831_s13 }
0x156b   :  { %p8754_p7 = pnand %p8752_p6, %p8749_p5 }
0x156d   :  { %8757 = shalt.err (!%p8754_p7)
}
0x156e   :  { %7229 = dma.vmem_to_hbm [thread:$0]  %s7224_s22, 2048, %s11831_s13, [#allocation7], %s8772_s6, %s8772_s6, %s8773_s26  }
0x156f   :  { %8766 = dma.done.wait [#allocation7], 2048  }
0x1570   :  { %8767 = vsyncadd [#allocation7], 4294965248 }
0x1571   :  { %7233 = vsyncpa [#allocation6], 1 }
0x1572   :  { %7234 = vsyncpa [#allocation9], 1 }
0x1573   :  { %7235 = vsyncpa [#allocation12], 1 }
0x1574   :  { %7236 = vsyncpa [#allocation15], 1 }
0x1575   :  { %7237 = vsyncpa [#allocation7], 1 }

</bundles_post_ra>
